<compile_context>
chip_gen: v6e
topology: v6e:2x2x1
jax: 0.10.0
libtpu: 0.0.40
codegen_flags: <defaults>
</compile_context>

<pallas_src>
import functools
import re

import jax
import jax.numpy as jnp
from jax.experimental import pallas as pl
from jax.experimental.pallas import tpu as pltpu


# Logical and lane-padded hidden sizes.
H1, H2 = 400, 600          # fc/hd2 width, hd width
H1P, H2P = 512, 640        # padded to multiples of 128


# ---------------------------------------------------------------------------
# Kernel
# ---------------------------------------------------------------------------
def _critic_kernel(s_ref, a_ref, sm_ref, w2_ref, w3_ref, out_ref, *, use_bf16_act):
    # Inputs arrive transposed: batch on the lane axis.
    s0 = s_ref[0:1, :]                       # (1, TM) state feature 0
    s1 = s_ref[1:2, :]                       # (1, TM) state feature 1
    a0 = a_ref[0:1, :]                       # (1, TM) action

    # Packed small parameters: one (H2P, 8) f32 buffer, static column slices
    # (ref.at-style static views -> no extra DMAs, no runtime cost).
    w_s0 = sm_ref[:H1P, 0:1]                 # (H1P, 1) fc weight col for s0
    w_s1 = sm_ref[:H1P, 1:2]                 # (H1P, 1) fc weight col for s1
    w_a  = sm_ref[:H1P, 2:3]                 # (H1P, 1) fc weight col for a
    b1   = sm_ref[:H1P, 3:4]                 # (H1P, 1)
    b2   = sm_ref[:, 4:5]                    # (H2P, 1)
    b3   = sm_ref[:H1P, 5:6]                 # (H1P, 1)
    w4   = sm_ref[:H1P, 6:7]                 # (H1P, 1) Q_layer weight column
    b4   = sm_ref[0:1, 7:8]                  # (1, 1)

    # fc: Linear(3 -> 400), no activation.  A K=3 matmul would waste the MXU;
    # three VPU outer products instead (VPU has plenty of slack here).
    h1 = w_s0 * s0 + w_s1 * s1 + w_a * a0 + b1                   # (H1P, TM) f32

    # hd: Linear(400 -> 600) + tanh.  bf16 MXU operands, f32 accumulation.
    z2 = jnp.dot(w2_ref[...], h1.astype(jnp.bfloat16),
                 preferred_element_type=jnp.float32) + b2        # (H2P, TM) f32
    if use_bf16_act:            # v6e/v7x: bf16 EUP tanh, bf16-resident activations
        h2 = jnp.tanh(z2.astype(jnp.bfloat16))
    else:                       # v5e: f32 tanh (no bf16 EUP), cast only for the MXU
        h2 = jnp.tanh(z2).astype(jnp.bfloat16)

    # hd2: Linear(600 -> 400) + tanh.
    z3 = jnp.dot(w3_ref[...], h2, preferred_element_type=jnp.float32) + b3
    if use_bf16_act:
        h3 = jnp.tanh(z3.astype(jnp.bfloat16)).astype(jnp.float32)
    else:
        h3 = jnp.tanh(z3)                                        # (H1P, TM) f32

    # Q_layer: Linear(400 -> 1) as VPU multiply + sublane reduce.  The (1, TM)
    # result is already lane-dense -> unmasked full-width store.
    q = jnp.sum(h3 * w4, axis=0, keepdims=True) + b4             # (1, TM) f32
    out_ref[...] = q.astype(out_ref.dtype)


# ---------------------------------------------------------------------------
# Wrapper
# ---------------------------------------------------------------------------
def _round_up(x, m):
    return ((x + m - 1) // m) * m


def _tpu_generation(default=6):
    try:
        kind = jax.devices()[0].device_kind.lower()
    except Exception:
        return default
    m_ = re.search(r"v(\d+)", kind)
    return int(m_.group(1)) if m_ else default


def _pick_tm(batch, gen):
    """Batch tile size.  Batch lives on the LANE axis, so tiled runs need a
    multiple of 128; tiny batches use a single full-extent tile (always legal)."""
    if batch <= 128:
        return batch
    cap = 512                               # a few MB of activations; fits all gens
    if gen >= 7:
        # v7x has 2 TensorCores: ensure >= 2 grid steps so both get work.
        return max(128, min(cap, _round_up((batch + 1) // 2, 128)))
    return max(128, min(cap, _round_up(batch, 128)))


@jax.jit
def critic_forward(s, a, kparams):
    """s: (B, 2) f32, a: (B, 1) f32 -> Q: (B, 1) f32."""
    B = s.shape[0]
    gen = _tpu_generation()
    use_bf16_act = gen >= 6                 # f32 tanh on v5e (no bf16 EUP)

    tm = _pick_tm(B, gen)
    nt = pl.cdiv(B, tm)
    bp = nt * tm

    # Transpose inputs so the batch sits on the lane axis (tiny XLA ops;
    # buys lane-dense input tiles and a lane-dense output store).
    sT = s.T                                # (2, B)
    aT = a.T                                # (1, B)

    kernel = functools.partial(_critic_kernel, use_bf16_act=use_bf16_act)

    out = pl.pallas_call(
        kernel,
        out_shape=jax.ShapeDtypeStruct((1, bp), jnp.float32),
        grid=(nt,),
        in_specs=[
            pl.BlockSpec((2, tm), lambda i: (0, i)),       # s^T tile
            pl.BlockSpec((1, tm), lambda i: (0, i)),       # a^T tile
            pl.BlockSpec((H2P, 8), lambda i: (0, 0)),      # packed small params
            pl.BlockSpec((H2P, H1P), lambda i: (0, 0)),    # W2^T (bf16), resident
            pl.BlockSpec((H1P, H2P), lambda i: (0, 0)),    # W3^T (bf16), resident
        ],
        out_specs=pl.BlockSpec((1, tm), lambda i: (0, i)), # lane-dense Q row
        compiler_params=pltpu.CompilerParams(
            dimension_semantics=("parallel",),             # v7x: shard tiles over 2 TCs
            vmem_limit_bytes=32 * 1024 * 1024,
        ),
    )(sT, aT, kparams["small"], kparams["w2T"], kparams["w3T"])

    return out[0, :B][:, None]              # drop padded columns -> (B, 1)


# ---------------------------------------------------------------------------
# Parameter init (matches PyTorch: xavier_uniform_ weights, default bias init)
# ---------------------------------------------------------------------------
def _xavier_uniform(key, fan_in, fan_out):
    bound = (6.0 / (fan_in + fan_out)) ** 0.5
    return jax.random.uniform(key, (fan_in, fan_out),
                              minval=-bound, maxval=bound, dtype=jnp.float32)


def _linear_bias(key, fan_in, fan_out):
    bound = 1.0 / (fan_in ** 0.5)
    return jax.random.uniform(key, (1, fan_out),
                              minval=-bound, maxval=bound, dtype=jnp.float32)


def init_params(key):
    ks = jax.random.split(key, 8)
    return {
        "w1": _xavier_uniform(ks[0], 3, 400),   "b1": _linear_bias(ks[1], 3, 400),
        "w2": _xavier_uniform(ks[2], 400, 600), "b2": _linear_bias(ks[3], 400, 600),
        "w3": _xavier_uniform(ks[4], 600, 400), "b3": _linear_bias(ks[5], 600, 400),
        "w4": _xavier_uniform(ks[6], 400, 1),   "b4": _linear_bias(ks[7], 400, 1),
    }


def pack_kernel_params(p):
    """Kernel-side layout: transposed weights, zero-padded hidden dims, all
    small params packed into one (H2P, 8) f32 buffer (single DMA)."""
    small = jnp.zeros((H2P, 8), jnp.float32)
    small = small.at[:H1, 0].set(p["w1"][0, :])     # fc weights for state feat 0
    small = small.at[:H1, 1].set(p["w1"][1, :])     # fc weights for state feat 1
    small = small.at[:H1, 2].set(p["w1"][2, :])     # fc weights for action
    small = small.at[:H1, 3].set(p["b1"][0, :])
    small = small.at[:H2, 4].set(p["b2"][0, :])
    small = small.at[:H1, 5].set(p["b3"][0, :])
    small = small.at[:H1, 6].set(p["w4"][:, 0])     # Q_layer weight
    small = small.at[0, 7].set(p["b4"][0, 0])

    w2T = jnp.zeros((H2P, H1P), jnp.bfloat16)
    w2T = w2T.at[:H2, :H1].set(p["w2"].T.astype(jnp.bfloat16))   # (600,400) -> padded
    w3T = jnp.zeros((H1P, H2P), jnp.bfloat16)
    w3T = w3T.at[:H1, :H2].set(p["w3"].T.astype(jnp.bfloat16))   # (400,600) -> padded

    return {"small": small, "w2T": w2T, "w3T": w3T}


# ---------------------------------------------------------------------------
# References
# ---------------------------------------------------------------------------
def _reference_forward_f32(s, a, p):
    x = jnp.concatenate([s, a], axis=1)
    h1 = x @ p["w1"] + p["b1"]
    h2 = jnp.tanh(h1 @ p["w2"] + p["b2"])
    h3 = jnp.tanh(h2 @ p["w3"] + p["b3"])
    return h3 @ p["w4"] + p["b4"]


def _reference_forward_mixed(s, a, p, use_bf16_act):
    """Same precision path as the kernel (bf16 MXU, bf16/f32 tanh)."""
    x = jnp.concatenate([s, a], axis=1)
    h1 = x @ p["w1"] + p["b1"]
    z2 = jnp.dot(h1.astype(jnp.bfloat16), p["w2"].astype(jnp.bfloat16),
                 preferred_element_type=jnp.float32) + p["b2"]
    h2 = jnp.tanh(z2.astype(jnp.bfloat16)) if use_bf16_act else jnp.tanh(z2).astype(jnp.bfloat16)
    z3 = jnp.dot(h2, p["w3"].astype(jnp.bfloat16),
                 preferred_element_type=jnp.float32) + p["b3"]
    h3 = (jnp.tanh(z3.astype(jnp.bfloat16)).astype(jnp.float32)
          if use_bf16_act else jnp.tanh(z3))
    return h3 @ p["w4"] + p["b4"]


if __name__ == "__main__":
    key = jax.random.PRNGKey(0)
    kp, ks_, ka_ = jax.random.split(key, 3)

    params = init_params(kp)
    kparams = pack_kernel_params(params)

    B = 8
    s = jax.random.normal(ks_, (B, 2), dtype=jnp.float32)   # state: 2 features
    a = jax.random.normal(ka_, (B, 1), dtype=jnp.float32)   # action: 1 feature

    q = jax.block_until_ready(critic_forward(s, a, kparams))

    use_bf16_act = _tpu_generation() >= 6
    q_ref_mixed = _reference_forward_mixed(s, a, params, use_bf16_act)
    q_ref_f32 = _reference_forward_f32(s, a, params)

    assert q.shape == (B, 1)
    assert jnp.allclose(q, q_ref_mixed, atol=2e-2, rtol=2e-2), \
        "mismatch vs matching-precision reference"
    assert jnp.allclose(q, q_ref_f32, atol=1e-1, rtol=1e-1), \
        "mismatch vs full-f32 reference"

    print("KERNEL_OK")
</pallas_src>

<mosaic_0001>
module attributes {stable_mosaic.version = 11 : i64} {
  func.func @_critic_kernel(%arg0: i32, %arg1: memref<2x8xf32, #tpu.memory_space<vmem>>, %arg2: memref<1x8xf32, #tpu.memory_space<vmem>>, %arg3: memref<640x8xf32, #tpu.memory_space<vmem>>, %arg4: memref<640x512xbf16, #tpu.memory_space<vmem>>, %arg5: memref<512x640xbf16, #tpu.memory_space<vmem>>, %arg6: memref<1x8xf32, #tpu.memory_space<vmem>>) attributes {dimension_semantics = [#tpu.dimension_semantics<parallel>], iteration_bounds = array<i64: 1>, scalar_prefetch = 0 : i64, scratch_operands = 0 : i64, tpu.core_type = #tpu.core_type<tc>, window_params = [{transform_indices = @transform_0, window_bounds = array<i64: 2, 8>}, {transform_indices = @transform_1, window_bounds = array<i64: 1, 8>}, {pipeline_mode = #tpu.pipeline_mode<synchronous>, transform_indices = @transform_2, window_bounds = array<i64: 640, 8>}, {pipeline_mode = #tpu.pipeline_mode<synchronous>, transform_indices = @transform_3, window_bounds = array<i64: 640, 512>}, {pipeline_mode = #tpu.pipeline_mode<synchronous>, transform_indices = @transform_4, window_bounds = array<i64: 512, 640>}, {transform_indices = @transform_5, window_bounds = array<i64: 1, 8>}]} {
    %c0 = arith.constant 0 : index
    %c0_0 = arith.constant 0 : index
    %0 = vector.load %arg1[%c0, %c0_0] : memref<2x8xf32, #tpu.memory_space<vmem>>, vector<1x8xf32>
    %c1 = arith.constant 1 : index
    %c0_1 = arith.constant 0 : index
    %1 = vector.load %arg1[%c1, %c0_1] : memref<2x8xf32, #tpu.memory_space<vmem>>, vector<1x8xf32>
    %c0_2 = arith.constant 0 : index
    %c0_3 = arith.constant 0 : index
    %2 = vector.load %arg2[%c0_2, %c0_3] : memref<1x8xf32, #tpu.memory_space<vmem>>, vector<1x8xf32>
    %c0_4 = arith.constant 0 : index
    %c0_5 = arith.constant 0 : index
    %3 = vector.load %arg3[%c0_4, %c0_5] : memref<640x8xf32, #tpu.memory_space<vmem>>, vector<512x1xf32>
    %c0_6 = arith.constant 0 : index
    %c1_7 = arith.constant 1 : index
    %4 = vector.load %arg3[%c0_6, %c1_7] : memref<640x8xf32, #tpu.memory_space<vmem>>, vector<512x1xf32>
    %c0_8 = arith.constant 0 : index
    %c2 = arith.constant 2 : index
    %5 = vector.load %arg3[%c0_8, %c2] : memref<640x8xf32, #tpu.memory_space<vmem>>, vector<512x1xf32>
    %c0_9 = arith.constant 0 : index
    %c3 = arith.constant 3 : index
    %6 = vector.load %arg3[%c0_9, %c3] : memref<640x8xf32, #tpu.memory_space<vmem>>, vector<512x1xf32>
    %c0_10 = arith.constant 0 : index
    %c4 = arith.constant 4 : index
    %7 = vector.load %arg3[%c0_10, %c4] : memref<640x8xf32, #tpu.memory_space<vmem>>, vector<640x1xf32>
    %c0_11 = arith.constant 0 : index
    %c5 = arith.constant 5 : index
    %8 = vector.load %arg3[%c0_11, %c5] : memref<640x8xf32, #tpu.memory_space<vmem>>, vector<512x1xf32>
    %c0_12 = arith.constant 0 : index
    %c6 = arith.constant 6 : index
    %9 = vector.load %arg3[%c0_12, %c6] : memref<640x8xf32, #tpu.memory_space<vmem>>, vector<512x1xf32>
    %c0_13 = arith.constant 0 : index
    %c7 = arith.constant 7 : index
    %10 = vector.load %arg3[%c0_13, %c7] : memref<640x8xf32, #tpu.memory_space<vmem>>, vector<1x1xf32>
    %11 = vector.broadcast %3 : vector<512x1xf32> to vector<512x8xf32>
    %12 = vector.broadcast %0 : vector<1x8xf32> to vector<512x8xf32>
    %13 = arith.mulf %11, %12 : vector<512x8xf32>
    %14 = vector.broadcast %4 : vector<512x1xf32> to vector<512x8xf32>
    %15 = vector.broadcast %1 : vector<1x8xf32> to vector<512x8xf32>
    %16 = arith.mulf %14, %15 : vector<512x8xf32>
    %17 = arith.addf %13, %16 : vector<512x8xf32>
    %18 = vector.broadcast %5 : vector<512x1xf32> to vector<512x8xf32>
    %19 = vector.broadcast %2 : vector<1x8xf32> to vector<512x8xf32>
    %20 = arith.mulf %18, %19 : vector<512x8xf32>
    %21 = arith.addf %17, %20 : vector<512x8xf32>
    %22 = vector.broadcast %6 : vector<512x1xf32> to vector<512x8xf32>
    %23 = arith.addf %21, %22 : vector<512x8xf32>
    %c0_14 = arith.constant 0 : index
    %c0_15 = arith.constant 0 : index
    %24 = vector.load %arg4[%c0_14, %c0_15] : memref<640x512xbf16, #tpu.memory_space<vmem>>, vector<640x512xbf16>
    %25 = arith.truncf %23 : vector<512x8xf32> to vector<512x8xbf16>
    %cst = arith.constant dense<0.000000e+00> : vector<640x8xf32>
    %26 = tpu.matmul %24, %25, %cst {dimension_numbers = #tpu.dot_dimension_numbers<[1], [0], [0], [1], [0, 0, 1, 1], [], []>} : vector<640x512xbf16>, vector<512x8xbf16>, vector<640x8xf32> -> vector<640x8xf32>
    %27 = vector.broadcast %7 : vector<640x1xf32> to vector<640x8xf32>
    %28 = arith.addf %26, %27 : vector<640x8xf32>
    %29 = arith.truncf %28 : vector<640x8xf32> to vector<640x8xbf16>
    %30 = math.tanh %29 : vector<640x8xbf16>
    %c0_16 = arith.constant 0 : index
    %c0_17 = arith.constant 0 : index
    %31 = vector.load %arg5[%c0_16, %c0_17] : memref<512x640xbf16, #tpu.memory_space<vmem>>, vector<512x640xbf16>
    %cst_18 = arith.constant dense<0.000000e+00> : vector<512x8xf32>
    %32 = tpu.matmul %31, %30, %cst_18 {dimension_numbers = #tpu.dot_dimension_numbers<[1], [0], [0], [1], [0, 0, 1, 1], [], []>} : vector<512x640xbf16>, vector<640x8xbf16>, vector<512x8xf32> -> vector<512x8xf32>
    %33 = vector.broadcast %8 : vector<512x1xf32> to vector<512x8xf32>
    %34 = arith.addf %32, %33 : vector<512x8xf32>
    %35 = arith.truncf %34 : vector<512x8xf32> to vector<512x8xbf16>
    %36 = math.tanh %35 : vector<512x8xbf16>
    %37 = arith.extf %36 : vector<512x8xbf16> to vector<512x8xf32>
    %38 = vector.broadcast %9 : vector<512x1xf32> to vector<512x8xf32>
    %39 = arith.mulf %37, %38 : vector<512x8xf32>
    %cst_19 = arith.constant dense<0.000000e+00> : vector<8xf32>
    %40 = vector.multi_reduction <add>, %39, %cst_19 [0] : vector<512x8xf32> to vector<8xf32>
    %41 = vector.shape_cast %40 : vector<8xf32> to vector<1x8xf32>
    %42 = vector.broadcast %10 : vector<1x1xf32> to vector<1x8xf32>
    %43 = arith.addf %41, %42 : vector<1x8xf32>
    %c0_20 = arith.constant 0 : index
    %c0_21 = arith.constant 0 : index
    %44 = vector.load %arg6[%c0_20, %c0_21] : memref<1x8xf32, #tpu.memory_space<vmem>>, vector<1x8xf32>
    tpu.vector_store %arg6[%c0_20, %c0_21], %43 {strides = array<i32>} : memref<1x8xf32, #tpu.memory_space<vmem>>, vector<1x8xf32>,
    return
  }
  func.func @transform_0(%arg0: i32) -> (i32, i32) {
    %c0_i32 = arith.constant 0 : i32
    %c0_i32_0 = arith.constant 0 : i32
    return %c0_i32, %arg0 : i32, i32
  }
  func.func @transform_1(%arg0: i32) -> (i32, i32) {
    %c0_i32 = arith.constant 0 : i32
    %c0_i32_0 = arith.constant 0 : i32
    return %c0_i32, %arg0 : i32, i32
  }
  func.func @transform_2(%arg0: i32) -> (i32, i32) {
    %c0_i32 = arith.constant 0 : i32
    %c0_i32_0 = arith.constant 0 : i32
    %c0_i32_1 = arith.constant 0 : i32
    return %c0_i32, %c0_i32_0 : i32, i32
  }
  func.func @transform_3(%arg0: i32) -> (i32, i32) {
    %c0_i32 = arith.constant 0 : i32
    %c0_i32_0 = arith.constant 0 : i32
    %c0_i32_1 = arith.constant 0 : i32
    return %c0_i32, %c0_i32_0 : i32, i32
  }
  func.func @transform_4(%arg0: i32) -> (i32, i32) {
    %c0_i32 = arith.constant 0 : i32
    %c0_i32_0 = arith.constant 0 : i32
    %c0_i32_1 = arith.constant 0 : i32
    return %c0_i32, %c0_i32_0 : i32, i32
  }
  func.func @transform_5(%arg0: i32) -> (i32, i32) {
    %c0_i32 = arith.constant 0 : i32
    %c0_i32_0 = arith.constant 0 : i32
    return %c0_i32, %arg0 : i32, i32
  }
}

</mosaic_0001>

<bundles_post_ra>
// kernel: critic_forward.1
= control target key start
LH: loop header
LB: loop body
LE: loop exit
PB: predicated region body
PF: predicated region fallthrough
CT: control target
= control target key end

     0   :  { %10 = vsyncpa [#allocation3], 0  ;;  %s11560_s0 = inlined_call_operand.vmem [shape: f32[2,8], index: 0, kind: input, shape index: {}]   ;;  %s11561_s1 = inlined_call_operand.vmem [shape: f32[1,8], index: 1, kind: input, shape index: {}]   ;;  %s11562_s2 = inlined_call_operand.vmem [shape: f32[640,8], index: 2, kind: input, shape index: {}]   ;;  %s11563_s3 = inlined_call_operand.hbm [shape: bf16[640,512], index: 3, kind: input, shape index: {}]   ;;  %s11564_s4 = inlined_call_operand.hbm [shape: bf16[512,640], index: 4, kind: input, shape index: {}]   ;;  %s11565_s5 = inlined_call_operand.hbm [shape: f32[1,8], index: 5, kind: output, shape index: {}]  }
   0x1   :  { %11 = vsyncpa [#allocation6], 0 }
   0x2   :  { %12 = vsyncpa [#allocation4], 0  ;;  %s7857_s18 = smov [#allocation2]  }
   0x3   :  { %s24_s19 = sshll.u32 %s7857_s18, 4  ;;  %s25_s19 = int_to_ptr.vmem [resolvable:$true] %s24_s19 }
   0x4   :  { %s7799_s20 = scalar_lea.vmem %s25_s19, 20480  ;;  %p7804_p1 = scmp.lt.s32.totalorder %s25_s19, %s25_s19 }
   0x5   :  { %p7800_p0 = scmp.ne.s32.totalorder %s25_s19, %s7799_s20  ;;  %p7805_p2 = scmp.lt.s32.totalorder %s7799_s20, %s7799_s20 }
   0x7   :  { %p7806_p3 = por %p7805_p2, %p7804_p1 }
   0x9   :  { %p7807_p4 = pnand %p7806_p3, %p7800_p0 }
   0xb   :  { %7810 = shalt.err (!%p7807_p4)
}
   0xc   :  { %s7858_s21 = smov 256   ;;  %s7859_s22 = smov 16  }
   0xd   :  { %30 = dma.hbm_to_vmem [thread:$0]  %s11563_s3, 20480, %s25_s19, [#allocation3], %s7858_s21, %s7858_s21, %s7859_s22  }
   0xe   :  { %s7860_s25 = smov [#allocation5]  }
   0xf   :  { %s36_s26 = sshll.u32 %s7860_s25, 4  ;;  %s37_s26 = int_to_ptr.vmem [resolvable:$true] %s36_s26 }
  0x10   :  { %s7819_s27 = scalar_lea.vmem %s37_s26, 20480  ;;  %p7824_p6 = scmp.lt.s32.totalorder %s37_s26, %s37_s26 }
  0x11   :  { %p7820_p5 = scmp.ne.s32.totalorder %s37_s26, %s7819_s27  ;;  %p7825_p7 = scmp.lt.s32.totalorder %s7819_s27, %s7819_s27 }
  0x13   :  { %p7826_p8 = por %p7825_p7, %p7824_p6 }
  0x15   :  { %p7827_p9 = pnand %p7826_p8, %p7820_p5 }
  0x17   :  { %7830 = shalt.err (!%p7827_p9)
}
  0x18   :  { %s7861_s28 = smov 320   ;;  %s7862_s29 = smov 20  }
  0x19   :  { %42 = dma.hbm_to_vmem [thread:$0]  %s11564_s4, 20480, %s37_s26, [#allocation6], %s7861_s28, %s7861_s28, %s7862_s29  }
  0x1a   :  { %7851 = dma.done.wait [#allocation3], 20480  }
  0x1b   :  { %7852 = vsyncadd [#allocation3], 4294946816 }
  0x1c   :  { %7853 = dma.done.wait [#allocation6], 20480  }
  0x1d   :  { %7854 = vsyncadd [#allocation6], 4294946816  ;;  %v11566_v0 = vmov 0   ;;  %v7915_v1 = vld [vmem:[%s11562_s2 + $0x10] sm:$0xff]  ;;  %v7920_v2 = vld [vmem:[%s11562_s2] sm:$0xff]  ;;  %vm6329_vm0 = vcmask 64512  }
  0x1e   :  { %6978 = vset.pattern.permute.xlu1 %v11566_v0  ;;  %6977 = vset.pattern.permute.xlu0 %v11566_v0  ;;  %v7927_v3 = vld [vmem:[%s11562_s2 + $0x18] sm:$0xff]  ;;  %v7932_v4 = vld [vmem:[%s11562_s2 + $0x8] sm:$0xff]  ;;  %v7944_v6 = vld [vmem:[%s11562_s2 + $0x20] sm:$0xff]  ;;  %vm6469_vm1 = vcmask 57344  }
  0x1f   :  { %2948 = vmatprep.subr.bf16.mxu0 %v11566_v0  ;;  %6930 = vmatprep.subr.bf16.mxu1 %v11566_v0  ;;  %v7939_v5 = vld [vmem:[%s11562_s2 + $0x28] sm:$0xff]  ;;  %v7951_v7 = vld [vmem:[%s11562_s2 + $0x38] sm:$0xff]  ;;  %v7956_v8 = vld [vmem:[%s11562_s2 + $0x30] sm:$0xff] }
  0x20   :  { %146 = vperm.xlu1 %6978, %v7915_v1   ;;  %136 = vperm.xlu0 %6977, %v7920_v2   ;;  %v7963_v9 = vld [vmem:[%s11562_s2 + $0x48] sm:$0xff]  ;;  %v7968_v10 = vld [vmem:[%s11562_s2 + $0x40] sm:$0xff]  ;;  %v7975_v11 = vld [vmem:[%s11562_s2 + $0x58] sm:$0xff] }
  0x21   :  { %v7980_v12 = vld [vmem:[%s11562_s2 + $0x50] sm:$0xff]  ;;  %v7987_v13 = vld [vmem:[%s11562_s2 + $0x68] sm:$0xff]  ;;  %v7992_v14 = vld [vmem:[%s11562_s2 + $0x60] sm:$0xff] }
  0x22   :  { %v7997_v15 = vld [vmem:[%s11562_s2 + $0x78] sm:$0xff]  ;;  %v8002_v16 = vld [vmem:[%s11562_s2 + $0x70] sm:$0xff]  ;;  %v8009_v17 = vld [vmem:[%s11562_s2 + $0x88] sm:$0xff] }
  0x23   :  { %v8014_v18 = vld [vmem:[%s11562_s2 + $0x80] sm:$0xff]  ;;  %v8021_v19 = vld [vmem:[%s11562_s2 + $0x98] sm:$0xff]  ;;  %v8026_v20 = vld [vmem:[%s11562_s2 + $0x90] sm:$0xff] }
  0x24   :  { %151 = vperm.xlu1 %6978, %v7927_v3   ;;  %141 = vperm.xlu0 %6977, %v7932_v4   ;;  %v8033_v21 = vld [vmem:[%s11562_s2 + $0xa8] sm:$0xff]  ;;  %v8038_v22 = vld [vmem:[%s11562_s2 + $0xa0] sm:$0xff]  ;;  %v8045_v23 = vld [vmem:[%s11562_s2 + $0xb8] sm:$0xff] }
  0x25   :  { %v8050_v24 = vld [vmem:[%s11562_s2 + $0xb0] sm:$0xff]  ;;  %v8057_v25 = vld [vmem:[%s11562_s2 + $0xc8] sm:$0xff]  ;;  %v8062_v26 = vld [vmem:[%s11562_s2 + $0xc0] sm:$0xff] }
  0x26   :  { %v8069_v27 = vld [vmem:[%s11562_s2 + $0xd8] sm:$0xff]  ;;  %v8074_v28 = vld [vmem:[%s11562_s2 + $0xd0] sm:$0xff]  ;;  %v8081_v29 = vld [vmem:[%s11562_s2 + $0xe8] sm:$0xff] }
  0x27   :  { %v8086_v30 = vld [vmem:[%s11562_s2 + $0xe0] sm:$0xff]  ;;  %v8093_v31 = vld [vmem:[%s11562_s2 + $0xf8] sm:$0xff]  ;;  %v8098_v32 = vld [vmem:[%s11562_s2 + $0xf0] sm:$0xff] }
  0x28   :  { %161 = vperm.xlu1 %6978, %v7939_v5   ;;  %156 = vperm.xlu0 %6977, %v7944_v6   ;;  %v8105_v33 = vld [vmem:[%s11562_s2 + $0x108] sm:$0xff]  ;;  %v8110_v34 = vld [vmem:[%s11562_s2 + $0x100] sm:$0xff]  ;;  %v8117_v35 = vld [vmem:[%s11562_s2 + $0x118] sm:$0xff] }
  0x29   :  { %v8122_v36 = vld [vmem:[%s11562_s2 + $0x110] sm:$0xff]  ;;  %v8129_v37 = vld [vmem:[%s11562_s2 + $0x128] sm:$0xff]  ;;  %v8134_v38 = vld [vmem:[%s11562_s2 + $0x120] sm:$0xff] }
  0x2a   :  { %v8141_v39 = vld [vmem:[%s11562_s2 + $0x138] sm:$0xff]  ;;  %v8146_v40 = vld [vmem:[%s11562_s2 + $0x130] sm:$0xff]  ;;  %v8153_v41 = vld [vmem:[%s11562_s2 + $0x148] sm:$0xff] }
  0x2b   :  { %v8158_v42 = vld [vmem:[%s11562_s2 + $0x140] sm:$0xff]  ;;  %v8165_v43 = vld [vmem:[%s11562_s2 + $0x158] sm:$0xff]  ;;  %v8170_v44 = vld [vmem:[%s11562_s2 + $0x150] sm:$0xff] }
  0x2c   :  { %171 = vperm.xlu1 %6978, %v7951_v7   ;;  %166 = vperm.xlu0 %6977, %v7956_v8   ;;  %v8177_v45 = vld [vmem:[%s11562_s2 + $0x168] sm:$0xff]  ;;  %v8182_v46 = vld [vmem:[%s11562_s2 + $0x160] sm:$0xff]  ;;  %v8189_v47 = vld [vmem:[%s11562_s2 + $0x178] sm:$0xff] }
  0x2d   :  { %v8194_v48 = vld [vmem:[%s11562_s2 + $0x170] sm:$0xff]  ;;  %v8201_v49 = vld [vmem:[%s11562_s2 + $0x188] sm:$0xff]  ;;  %v8206_v50 = vld [vmem:[%s11562_s2 + $0x180] sm:$0xff] }
  0x2e   :  { %v8213_v51 = vld [vmem:[%s11562_s2 + $0x198] sm:$0xff]  ;;  %v8218_v52 = vld [vmem:[%s11562_s2 + $0x190] sm:$0xff]  ;;  %v8225_v53 = vld [vmem:[%s11562_s2 + $0x1a8] sm:$0xff] }
  0x2f   :  { %v8230_v54 = vld [vmem:[%s11562_s2 + $0x1a0] sm:$0xff]  ;;  %v8237_v55 = vld [vmem:[%s11562_s2 + $0x1b8] sm:$0xff]  ;;  %v8242_v56 = vld [vmem:[%s11562_s2 + $0x1b0] sm:$0xff] }
  0x30   :  { %181 = vperm.xlu1 %6978, %v7963_v9   ;;  %176 = vperm.xlu0 %6977, %v7968_v10   ;;  %11631 = vst [vmem:[#allocation11_spill] sm:$0xff] %v8237_v55  ;;  %v8249_v57 = vld [vmem:[%s11562_s2 + $0x1c8] sm:$0xff]  ;;  %v8254_v58 = vld [vmem:[%s11562_s2 + $0x1c0] sm:$0xff]  ;;  %v8261_v59 = vld [vmem:[%s11562_s2 + $0x1d8] sm:$0xff] }
  0x31   :  { %11632 = vst [vmem:[#allocation12_spill] sm:$0xff] %v8249_v57  ;;  %11633 = vst [vmem:[#allocation13_spill] sm:$0xff] %v8254_v58  ;;  %v8266_v60 = vld [vmem:[%s11562_s2 + $0x1d0] sm:$0xff]  ;;  %v8273_v61 = vld [vmem:[%s11562_s2 + $0x1e8] sm:$0xff] }
  0x32   :  { %11634 = vst [vmem:[#allocation14_spill] sm:$0xff] %v8261_v59  ;;  %11635 = vst [vmem:[#allocation15_spill] sm:$0xff] %v8266_v60  ;;  %v8278_v62 = vld [vmem:[%s11562_s2 + $0x1e0] sm:$0xff]  ;;  %v8285_v63 = vld [vmem:[%s11562_s2 + $0x1f8] sm:$0xff] }
  0x33   :  { %11636 = vst [vmem:[#allocation16_spill] sm:$0xff] %v8273_v61  ;;  %v8290_v0 = vld [vmem:[%s11562_s2 + $0x1f0] sm:$0xff] }
  0x34   :  { %191 = vperm.xlu1 %6978, %v7975_v11   ;;  %186 = vperm.xlu0 %6977, %v7980_v12  }
  0x38   :  { %201 = vperm.xlu1 %6978, %v7987_v13   ;;  %196 = vperm.xlu0 %6977, %v7992_v14  }
  0x3c   :  { %211 = vperm.xlu1 %6978, %v7997_v15   ;;  %206 = vperm.xlu0 %6977, %v8002_v16  }
  0x40   :  { %221 = vperm.xlu1 %6978, %v8009_v17   ;;  %216 = vperm.xlu0 %6977, %v8014_v18  }
  0x44   :  { %231 = vperm.xlu1 %6978, %v8021_v19   ;;  %226 = vperm.xlu0 %6977, %v8026_v20  }
  0x48   :  { %241 = vperm.xlu1 %6978, %v8033_v21   ;;  %236 = vperm.xlu0 %6977, %v8038_v22  }
  0x4c   :  { %251 = vperm.xlu1 %6978, %v8045_v23   ;;  %246 = vperm.xlu0 %6977, %v8050_v24  }
  0x50   :  { %261 = vperm.xlu1 %6978, %v8057_v25   ;;  %256 = vperm.xlu0 %6977, %v8062_v26  }
  0x54   :  { %271 = vperm.xlu1 %6978, %v8069_v27   ;;  %266 = vperm.xlu0 %6977, %v8074_v28  }
  0x58   :  { %281 = vperm.xlu1 %6978, %v8081_v29   ;;  %276 = vperm.xlu0 %6977, %v8086_v30  }
  0x5c   :  { %291 = vperm.xlu1 %6978, %v8093_v31   ;;  %286 = vperm.xlu0 %6977, %v8098_v32  }
  0x60   :  { %301 = vperm.xlu1 %6978, %v8105_v33   ;;  %296 = vperm.xlu0 %6977, %v8110_v34  }
  0x64   :  { %311 = vperm.xlu1 %6978, %v8117_v35   ;;  %306 = vperm.xlu0 %6977, %v8122_v36  }
  0x68   :  { %321 = vperm.xlu1 %6978, %v8129_v37   ;;  %316 = vperm.xlu0 %6977, %v8134_v38  }
  0x6c   :  { %331 = vperm.xlu1 %6978, %v8141_v39   ;;  %326 = vperm.xlu0 %6977, %v8146_v40  }
  0x70   :  { %341 = vperm.xlu1 %6978, %v8153_v41   ;;  %336 = vperm.xlu0 %6977, %v8158_v42  }
  0x74   :  { %351 = vperm.xlu1 %6978, %v8165_v43   ;;  %346 = vperm.xlu0 %6977, %v8170_v44  }
  0x78   :  { %361 = vperm.xlu1 %6978, %v8177_v45   ;;  %356 = vperm.xlu0 %6977, %v8182_v46  }
  0x7c   :  { %371 = vperm.xlu1 %6978, %v8189_v47   ;;  %366 = vperm.xlu0 %6977, %v8194_v48  }
  0x80   :  { %381 = vperm.xlu1 %6978, %v8201_v49   ;;  %376 = vperm.xlu0 %6977, %v8206_v50  }
  0x84   :  { %391 = vperm.xlu1 %6978, %v8213_v51   ;;  %386 = vperm.xlu0 %6977, %v8218_v52  }
  0x88   :  { %401 = vperm.xlu1 %6978, %v8225_v53   ;;  %396 = vperm.xlu0 %6977, %v8230_v54  }
  0x8c   :  { %411 = vperm.xlu1 %6978, %v8237_v55   ;;  %406 = vperm.xlu0 %6977, %v8242_v56   ;;  %v7864_v55 = vmov 1  }
  0x90   :  { %421 = vperm.xlu1 %6978, %v8249_v57   ;;  %416 = vperm.xlu0 %6977, %v8254_v58  }
  0x94   :  { %431 = vperm.xlu1 %6978, %v8261_v59   ;;  %426 = vperm.xlu0 %6977, %v8266_v60  }
  0x98   :  { %441 = vperm.xlu1 %6978, %v8273_v61   ;;  %436 = vperm.xlu0 %6977, %v8278_v62  }
  0x9b   :  { %v8294_v57 = vpop.permute.xlu1 %146  ;;  %v8296_v58 = vpop.permute.xlu0 %136 }
  0x9c   :  { %11637 = vst [vmem:[#allocation17_spill] sm:$0xff] %v8294_v57  ;;  %11638 = vst [vmem:[#allocation18_spill] sm:$0xff] %v8296_v58  ;;  %451 = vperm.xlu1 %6978, %v8285_v63   ;;  %446 = vperm.xlu0 %6977, %v8290_v0  }
  0x9f   :  { %v8300_v59 = vpop.permute.xlu1 %151  ;;  %v8302_v60 = vpop.permute.xlu0 %141 }
  0xa0   :  { %11639 = vst [vmem:[#allocation19_spill] sm:$0xff] %v8300_v59  ;;  %11640 = vst [vmem:[#allocation20_spill] sm:$0xff] %v8302_v60  ;;  %6980 = vset.pattern.permute.xlu1 %v7864_v55  ;;  %6979 = vset.pattern.permute.xlu0 %v7864_v55 }
  0xa1   :  { %527 = vperm.xlu1 %6980, %v7932_v4   ;;  %523 = vperm.xlu0 %6979, %v7920_v2  }
  0xa3   :  { %v8306_v61 = vpop.permute.xlu1 %161  ;;  %v8308_v57 = vpop.permute.xlu0 %156 }
  0xa4   :  { %11641 = vst [vmem:[#allocation21_spill] sm:$0xff] %v8306_v61  ;;  %11642 = vst [vmem:[#allocation22_spill] sm:$0xff] %v8308_v57  ;;  %v8613_v57 = vld [vmem:[%s11562_s2 + $0x68] sm:$0xff] }
  0xa5   :  { %531 = vperm.xlu1 %6980, %v7915_v1   ;;  %535 = vperm.xlu0 %6979, %v7927_v3  }
  0xa7   :  { %v8312_v58 = vpop.permute.xlu1 %171  ;;  %v8314_v59 = vpop.permute.xlu0 %166 }
  0xa8   :  { %11643 = vst [vmem:[#allocation23_spill] sm:$0xff] %v8312_v58  ;;  %11644 = vst [vmem:[#allocation24_spill] sm:$0xff] %v8314_v59 }
  0xa9   :  { %539 = vperm.xlu1 %6980, %v7944_v6   ;;  %543 = vperm.xlu0 %6979, %v7939_v5  }
  0xab   :  { %v8318_v55 = vpop.permute.xlu1 %181  ;;  %v8320_v4 = vpop.permute.xlu0 %176 }
  0xac   :  { %11645 = vst [vmem:[#allocation25_spill] sm:$0xff] %v8318_v55  ;;  %11646 = vst [vmem:[#allocation26_spill] sm:$0xff] %v8320_v4 }
  0xad   :  { %547 = vperm.xlu1 %6980, %v7956_v8   ;;  %551 = vperm.xlu0 %6979, %v7951_v7  }
  0xaf   :  { %v8324_v2 = vpop.permute.xlu1 %191  ;;  %v8326_v1 = vpop.permute.xlu0 %186 }
  0xb0   :  { %11647 = vst [vmem:[#allocation27_spill] sm:$0xff] %v8324_v2  ;;  %11648 = vst [vmem:[#allocation28_spill] sm:$0xff] %v8326_v1 }
  0xb1   :  { %555 = vperm.xlu1 %6980, %v7968_v10   ;;  %559 = vperm.xlu0 %6979, %v7963_v9  }
  0xb3   :  { %v8330_v3 = vpop.permute.xlu1 %201  ;;  %v8332_v6 = vpop.permute.xlu0 %196 }
  0xb4   :  { %11649 = vst [vmem:[#allocation29_spill] sm:$0xff] %v8330_v3  ;;  %11650 = vst [vmem:[#allocation30_spill] sm:$0xff] %v8332_v6 }
  0xb5   :  { %563 = vperm.xlu1 %6980, %v7980_v12   ;;  %567 = vperm.xlu0 %6979, %v7975_v11  }
  0xb7   :  { %v8336_v5 = vpop.permute.xlu1 %211  ;;  %v8338_v8 = vpop.permute.xlu0 %206 }
  0xb9   :  { %571 = vperm.xlu1 %6980, %v7992_v14   ;;  %575 = vperm.xlu0 %6979, %v7987_v13  }
  0xbb   :  { %v8342_v7 = vpop.permute.xlu1 %221  ;;  %v8344_v10 = vpop.permute.xlu0 %216 }
  0xbc   :  { %11651 = vst [vmem:[#allocation31_spill] sm:$0xff] %v8342_v7  ;;  %11652 = vst [vmem:[#allocation32_spill] sm:$0xff] %v8344_v10  ;;  %v8533_v7 = vld [vmem:[%s11562_s2 + $0x18] sm:$0xff] }
  0xbd   :  { %579 = vperm.xlu1 %6980, %v8002_v16   ;;  %583 = vperm.xlu0 %6979, %v7997_v15  }
  0xbf   :  { %v8348_v9 = vpop.permute.xlu1 %231  ;;  %v8350_v12 = vpop.permute.xlu0 %226 }
  0xc0   :  { %11653 = vst [vmem:[#allocation33_spill] sm:$0xff] %v8348_v9  ;;  %11654 = vst [vmem:[#allocation34_spill] sm:$0xff] %v8350_v12  ;;  %v8539_v12 = vld [vmem:[%s11562_s2 + $0x30] sm:$0xff] }
  0xc1   :  { %587 = vperm.xlu1 %6980, %v8014_v18   ;;  %591 = vperm.xlu0 %6979, %v8009_v17  }
  0xc3   :  { %v8354_v11 = vpop.permute.xlu1 %241  ;;  %v8356_v14 = vpop.permute.xlu0 %236 }
  0xc4   :  { %11655 = vst [vmem:[#allocation35_spill] sm:$0xff] %v8354_v11  ;;  %11656 = vst [vmem:[#allocation36_spill] sm:$0xff] %v8356_v14  ;;  %v8549_v11 = vld [vmem:[%s11562_s2 + $0x28] sm:$0xff] }
  0xc5   :  { %595 = vperm.xlu1 %6980, %v8026_v20   ;;  %599 = vperm.xlu0 %6979, %v8021_v19  }
  0xc7   :  { %v8360_v13 = vpop.permute.xlu1 %251  ;;  %v8362_v16 = vpop.permute.xlu0 %246 }
  0xc8   :  { %11657 = vst [vmem:[#allocation37_spill] sm:$0xff] %v8360_v13  ;;  %11658 = vst [vmem:[#allocation38_spill] sm:$0xff] %v8362_v16  ;;  %v8555_v16 = vld [vmem:[%s11562_s2 + $0x40] sm:$0xff] }
  0xc9   :  { %603 = vperm.xlu1 %6980, %v8038_v22   ;;  %607 = vperm.xlu0 %6979, %v8033_v21  }
  0xcb   :  { %v8366_v15 = vpop.permute.xlu1 %261  ;;  %v8368_v18 = vpop.permute.xlu0 %256 }
  0xcc   :  { %11659 = vst [vmem:[#allocation39_spill] sm:$0xff] %v8366_v15  ;;  %11660 = vst [vmem:[#allocation40_spill] sm:$0xff] %v8368_v18  ;;  %v8565_v15 = vld [vmem:[%s11562_s2 + $0x38] sm:$0xff] }
  0xcd   :  { %611 = vperm.xlu1 %6980, %v8050_v24   ;;  %615 = vperm.xlu0 %6979, %v8045_v23  }
  0xcf   :  { %v8372_v17 = vpop.permute.xlu1 %271  ;;  %v8374_v20 = vpop.permute.xlu0 %266 }
  0xd0   :  { %11661 = vst [vmem:[#allocation41_spill] sm:$0xff] %v8372_v17  ;;  %11662 = vst [vmem:[#allocation42_spill] sm:$0xff] %v8374_v20  ;;  %v8571_v20 = vld [vmem:[%s11562_s2 + $0x50] sm:$0xff] }
  0xd1   :  { %619 = vperm.xlu1 %6980, %v8062_v26   ;;  %623 = vperm.xlu0 %6979, %v8057_v25  }
  0xd3   :  { %v8378_v19 = vpop.permute.xlu1 %281  ;;  %v8380_v22 = vpop.permute.xlu0 %276 }
  0xd4   :  { %11663 = vst [vmem:[#allocation43_spill] sm:$0xff] %v8378_v19  ;;  %11664 = vst [vmem:[#allocation44_spill] sm:$0xff] %v8380_v22  ;;  %v8581_v19 = vld [vmem:[%s11562_s2 + $0x48] sm:$0xff] }
  0xd5   :  { %627 = vperm.xlu1 %6980, %v8074_v28   ;;  %631 = vperm.xlu0 %6979, %v8069_v27  }
  0xd7   :  { %v8384_v21 = vpop.permute.xlu1 %291  ;;  %v8386_v24 = vpop.permute.xlu0 %286 }
  0xd8   :  { %11665 = vst [vmem:[#allocation45_spill] sm:$0xff] %v8384_v21  ;;  %11666 = vst [vmem:[#allocation46_spill] sm:$0xff] %v8386_v24  ;;  %v8587_v24 = vld [vmem:[%s11562_s2 + $0x60] sm:$0xff] }
  0xd9   :  { %635 = vperm.xlu1 %6980, %v8086_v30   ;;  %639 = vperm.xlu0 %6979, %v8081_v29  }
  0xdb   :  { %v8390_v23 = vpop.permute.xlu1 %301  ;;  %v8392_v26 = vpop.permute.xlu0 %296 }
  0xdc   :  { %11667 = vst [vmem:[#allocation47_spill] sm:$0xff] %v8390_v23  ;;  %11668 = vst [vmem:[#allocation48_spill] sm:$0xff] %v8392_v26 }
  0xdd   :  { %643 = vperm.xlu1 %6980, %v8098_v32   ;;  %647 = vperm.xlu0 %6979, %v8093_v31  }
  0xdf   :  { %v8396_v25 = vpop.permute.xlu1 %311  ;;  %v8398_v28 = vpop.permute.xlu0 %306 }
  0xe0   :  { %11669 = vst [vmem:[#allocation49_spill] sm:$0xff] %v8396_v25  ;;  %11670 = vst [vmem:[#allocation50_spill] sm:$0xff] %v8398_v28 }
  0xe1   :  { %651 = vperm.xlu1 %6980, %v8110_v34   ;;  %655 = vperm.xlu0 %6979, %v8105_v33  }
  0xe3   :  { %v8402_v27 = vpop.permute.xlu1 %321  ;;  %v8404_v30 = vpop.permute.xlu0 %316 }
  0xe4   :  { %11671 = vst [vmem:[#allocation51_spill] sm:$0xff] %v8402_v27  ;;  %11672 = vst [vmem:[#allocation52_spill] sm:$0xff] %v8404_v30 }
  0xe5   :  { %659 = vperm.xlu1 %6980, %v8122_v36   ;;  %663 = vperm.xlu0 %6979, %v8117_v35  }
  0xe7   :  { %v8408_v29 = vpop.permute.xlu1 %331  ;;  %v8410_v32 = vpop.permute.xlu0 %326 }
  0xe8   :  { %11673 = vst [vmem:[#allocation53_spill] sm:$0xff] %v8408_v29  ;;  %11674 = vst [vmem:[#allocation54_spill] sm:$0xff] %v8410_v32 }
  0xe9   :  { %667 = vperm.xlu1 %6980, %v8134_v38   ;;  %671 = vperm.xlu0 %6979, %v8129_v37  }
  0xeb   :  { %v8414_v31 = vpop.permute.xlu1 %341  ;;  %v8416_v26 = vpop.permute.xlu0 %336 }
  0xec   :  { %11675 = vst [vmem:[#allocation55_spill] sm:$0xff] %v8414_v31  ;;  %11676 = vst [vmem:[#allocation56_spill] sm:$0xff] %v8416_v26 }
  0xed   :  { %675 = vperm.xlu1 %6980, %v8146_v40   ;;  %679 = vperm.xlu0 %6979, %v8141_v39  }
  0xef   :  { %v8420_v23 = vpop.permute.xlu1 %351  ;;  %v8422_v28 = vpop.permute.xlu0 %346 }
  0xf0   :  { %11677 = vst [vmem:[#allocation57_spill] sm:$0xff] %v8420_v23  ;;  %11678 = vst [vmem:[#allocation58_spill] sm:$0xff] %v8422_v28 }
  0xf1   :  { %683 = vperm.xlu1 %6980, %v8158_v42   ;;  %687 = vperm.xlu0 %6979, %v8153_v41  }
  0xf3   :  { %v8426_v25 = vpop.permute.xlu1 %361  ;;  %v8428_v30 = vpop.permute.xlu0 %356 }
  0xf4   :  { %11679 = vst [vmem:[#allocation59_spill] sm:$0xff] %v8426_v25  ;;  %11680 = vst [vmem:[#allocation60_spill] sm:$0xff] %v8428_v30 }
  0xf5   :  { %691 = vperm.xlu1 %6980, %v8170_v44   ;;  %695 = vperm.xlu0 %6979, %v8165_v43  }
  0xf7   :  { %v8432_v27 = vpop.permute.xlu1 %371  ;;  %v8434_v32 = vpop.permute.xlu0 %366 }
  0xf8   :  { %11681 = vst [vmem:[#allocation61_spill] sm:$0xff] %v8432_v27  ;;  %11682 = vst [vmem:[#allocation62_spill] sm:$0xff] %v8434_v32  ;;  %v8523_v27 = vld [vmem:[%s11562_s2 + $0x20] sm:$0xff] }
  0xf9   :  { %699 = vperm.xlu1 %6980, %v8182_v46   ;;  %703 = vperm.xlu0 %6979, %v8177_v45  }
  0xfb   :  { %v8438_v29 = vpop.permute.xlu1 %381  ;;  %v8440_v26 = vpop.permute.xlu0 %376 }
  0xfc   :  { %11683 = vst [vmem:[#allocation63_spill] sm:$0xff] %v8438_v29  ;;  %11684 = vst [vmem:[#allocation64_spill] sm:$0xff] %v8440_v26 }
  0xfd   :  { %707 = vperm.xlu1 %6980, %v8194_v48   ;;  %711 = vperm.xlu0 %6979, %v8189_v47  }
  0xff   :  { %v8444_v31 = vpop.permute.xlu1 %391  ;;  %v8446_v44 = vpop.permute.xlu0 %386 }
 0x100   :  { %11685 = vst [vmem:[#allocation65_spill] sm:$0xff] %v8444_v31  ;;  %11686 = vst [vmem:[#allocation66_spill] sm:$0xff] %v8446_v44  ;;  %v11697_v44 = vld [vmem:[#allocation12_spill] sm:$0xff] }
 0x101   :  { %715 = vperm.xlu1 %6980, %v8206_v50   ;;  %719 = vperm.xlu0 %6979, %v8201_v49   ;;  %v11693_v49 = vld [vmem:[#allocation11_spill] sm:$0xff] }
 0x103   :  { %v8450_v23 = vpop.permute.xlu1 %401  ;;  %v8452_v28 = vpop.permute.xlu0 %396 }
 0x104   :  { %11687 = vst [vmem:[#allocation67_spill] sm:$0xff] %v8450_v23  ;;  %11688 = vst [vmem:[#allocation68_spill] sm:$0xff] %v8452_v28 }
 0x105   :  { %723 = vperm.xlu1 %6980, %v8218_v52   ;;  %727 = vperm.xlu0 %6979, %v8213_v51   ;;  %v11696_v51 = vld [vmem:[#allocation13_spill] sm:$0xff] }
 0x107   :  { %v8456_v45 = vpop.permute.xlu1 %411  ;;  %v8458_v26 = vpop.permute.xlu0 %406 }
 0x108   :  { %11689 = vst [vmem:[#allocation69_spill] sm:$0xff] %v8456_v45  ;;  %11690 = vst [vmem:[#allocation70_spill] sm:$0xff] %v8458_v26  ;;  %v11701_v45 = vld [vmem:[#allocation14_spill] sm:$0xff] }
 0x109   :  { %731 = vperm.xlu1 %6980, %v8230_v54   ;;  %735 = vperm.xlu0 %6979, %v8225_v53   ;;  %v11700_v53 = vld [vmem:[#allocation15_spill] sm:$0xff] }
 0x10b   :  { %v8462_v29 = vpop.permute.xlu1 %421  ;;  %v8464_v50 = vpop.permute.xlu0 %416 }
 0x10c   :  { %11691 = vst [vmem:[#allocation71_spill] sm:$0xff] %v8462_v29  ;;  %11692 = vst [vmem:[#allocation72_spill] sm:$0xff] %v8464_v50  ;;  %v11704_v29 = vld [vmem:[#allocation16_spill] sm:$0xff] }
 0x10d   :  { %739 = vperm.xlu1 %6980, %v8242_v56   ;;  %743 = vperm.xlu0 %6979, %v11693_v49  }
 0x10f   :  { %v8468_v31 = vpop.permute.xlu1 %431  ;;  %v8470_v52 = vpop.permute.xlu0 %426 }
 0x110   :  { %11694 = vst [vmem:[#allocation11_spill] sm:$0xff] %v8468_v31  ;;  %11695 = vst [vmem:[#allocation73_spill] sm:$0xff] %v8470_v52 }
 0x111   :  { %747 = vperm.xlu1 %6980, %v11696_v51   ;;  %751 = vperm.xlu0 %6979, %v11697_v44  }
 0x113   :  { %v8474_v28 = vpop.permute.xlu1 %441  ;;  %v8476_v23 = vpop.permute.xlu0 %436 }
 0x114   :  { %11698 = vst [vmem:[#allocation13_spill] sm:$0xff] %v8474_v28  ;;  %11699 = vst [vmem:[#allocation12_spill] sm:$0xff] %v8476_v23  ;;  %v11579_v28 = vmov 2  }
 0x115   :  { %755 = vperm.xlu1 %6980, %v11700_v53   ;;  %759 = vperm.xlu0 %6979, %v11701_v45  }
 0x117   :  { %v8480_v26 = vpop.permute.xlu1 %451  ;;  %v8482_v50 = vpop.permute.xlu0 %446 }
 0x118   :  { %11702 = vst [vmem:[#allocation15_spill] sm:$0xff] %v8480_v26  ;;  %11703 = vst [vmem:[#allocation14_spill] sm:$0xff] %v8482_v50  ;;  %v8501_v26 = vld [vmem:[%s11562_s2] sm:$0xff]  ;;  %v8507_v50 = vld [vmem:[%s11562_s2 + $0x8] sm:$0xff] }
 0x119   :  { %763 = vperm.xlu1 %6980, %v8278_v62   ;;  %767 = vperm.xlu0 %6979, %v11704_v29  }
 0x11c   :  { %v8486_v31 = vpop.permute.xlu1 %527  ;;  %v8488_v52 = vpop.permute.xlu0 %523 }
 0x11d   :  { %11705 = vst [vmem:[#allocation74_spill] sm:$0xff] %v8486_v31  ;;  %11706 = vst [vmem:[#allocation75_spill] sm:$0xff] %v8488_v52  ;;  %771 = vperm.xlu1 %6980, %v8290_v0   ;;  %775 = vperm.xlu0 %6979, %v8285_v63   ;;  %v8597_v52 = vld [vmem:[%s11562_s2 + $0x58] sm:$0xff]  ;;  %v8603_v31 = vld [vmem:[%s11562_s2 + $0x70] sm:$0xff] }
 0x120   :  { %v8492_v44 = vpop.permute.xlu1 %531  ;;  %v8494_v23 = vpop.permute.xlu0 %535 }
 0x121   :  { %11707 = vst [vmem:[#allocation76_spill] sm:$0xff] %v8492_v44  ;;  %11708 = vst [vmem:[#allocation77_spill] sm:$0xff] %v8494_v23  ;;  %6981 = vset.pattern.permute.xlu1 %v11579_v28  ;;  %6982 = vset.pattern.permute.xlu0 %v11579_v28  ;;  %v8517_v28 = vld [vmem:[%s11562_s2 + $0x10] sm:$0xff] }
 0x122   :  { %911 = vperm.xlu1 %6981, %v8501_v26   ;;  %915 = vperm.xlu0 %6982, %v8507_v50  }
 0x124   :  { %v8510_v30 = vpop.permute.xlu1 %539  ;;  %v8512_v25 = vpop.permute.xlu0 %543 }
 0x125   :  { %11709 = vst [vmem:[#allocation78_spill] sm:$0xff] %v8510_v30  ;;  %11710 = vst [vmem:[#allocation79_spill] sm:$0xff] %v8512_v25  ;;  %v8619_v25 = vld [vmem:[%s11562_s2 + $0x80] sm:$0xff] }
 0x126   :  { %919 = vperm.xlu1 %6981, %v8517_v28   ;;  %927 = vperm.xlu0 %6982, %v8523_v27   ;;  %11721 = vst [vmem:[#allocation90_spill] sm:$0xff] %v8619_v25 }
 0x128   :  { %v8526_v32 = vpop.permute.xlu1 %547  ;;  %v8528_v10 = vpop.permute.xlu0 %551 }
 0x129   :  { %11711 = vst [vmem:[#allocation80_spill] sm:$0xff] %v8526_v32  ;;  %11712 = vst [vmem:[#allocation81_spill] sm:$0xff] %v8528_v10 }
 0x12a   :  { %923 = vperm.xlu1 %6981, %v8533_v7   ;;  %935 = vperm.xlu0 %6982, %v8539_v12  }
 0x12c   :  { %v8542_v9 = vpop.permute.xlu1 %555  ;;  %v8544_v14 = vpop.permute.xlu0 %559 }
 0x12d   :  { %11713 = vst [vmem:[#allocation82_spill] sm:$0xff] %v8542_v9  ;;  %11714 = vst [vmem:[#allocation83_spill] sm:$0xff] %v8544_v14 }
 0x12e   :  { %931 = vperm.xlu1 %6981, %v8549_v11   ;;  %943 = vperm.xlu0 %6982, %v8555_v16  }
 0x130   :  { %v8558_v13 = vpop.permute.xlu1 %563  ;;  %v8560_v18 = vpop.permute.xlu0 %567 }
 0x131   :  { %11715 = vst [vmem:[#allocation84_spill] sm:$0xff] %v8558_v13  ;;  %11716 = vst [vmem:[#allocation85_spill] sm:$0xff] %v8560_v18 }
 0x132   :  { %939 = vperm.xlu1 %6981, %v8565_v15   ;;  %951 = vperm.xlu0 %6982, %v8571_v20  }
 0x134   :  { %v8574_v17 = vpop.permute.xlu1 %571  ;;  %v8576_v22 = vpop.permute.xlu0 %575 }
 0x135   :  { %11717 = vst [vmem:[#allocation86_spill] sm:$0xff] %v8574_v17  ;;  %11718 = vst [vmem:[#allocation87_spill] sm:$0xff] %v8576_v22  ;;  %v8752_v22 = vld [vmem:[%s11562_s2 + $0xf8] sm:$0xff] }
 0x136   :  { %947 = vperm.xlu1 %6981, %v8581_v19   ;;  %959 = vperm.xlu0 %6982, %v8587_v24   ;;  %11742 = vst [vmem:[#allocation111_spill] sm:$0xff] %v8752_v22 }
 0x138   :  { %v8590_v21 = vpop.permute.xlu1 %579  ;;  %v8592_v60 = vpop.permute.xlu0 %583 }
 0x13a   :  { %955 = vperm.xlu1 %6981, %v8597_v52   ;;  %967 = vperm.xlu0 %6982, %v8603_v31  }
 0x13c   :  { %v8606_v23 = vpop.permute.xlu1 %587  ;;  %v8608_v44 = vpop.permute.xlu0 %591 }
 0x13d   :  { %11719 = vst [vmem:[#allocation88_spill] sm:$0xff] %v8606_v23  ;;  %11720 = vst [vmem:[#allocation89_spill] sm:$0xff] %v8608_v44  ;;  %v8629_v44 = vld [vmem:[%s11562_s2 + $0x78] sm:$0xff]  ;;  %v8635_v23 = vld [vmem:[%s11562_s2 + $0x90] sm:$0xff] }
 0x13e   :  { %963 = vperm.xlu1 %6981, %v8613_v57   ;;  %975 = vperm.xlu0 %6982, %v8619_v25   ;;  %11724 = vst [vmem:[#allocation93_spill] sm:$0xff] %v8635_v23 }
 0x140   :  { %v8622_v30 = vpop.permute.xlu1 %595  ;;  %v8624_v61 = vpop.permute.xlu0 %599 }
 0x141   :  { %11722 = vst [vmem:[#allocation91_spill] sm:$0xff] %v8622_v30  ;;  %11723 = vst [vmem:[#allocation92_spill] sm:$0xff] %v8624_v61  ;;  %v8645_v61 = vld [vmem:[%s11562_s2 + $0x88] sm:$0xff]  ;;  %v8651_v30 = vld [vmem:[%s11562_s2 + $0xa0] sm:$0xff] }
 0x142   :  { %971 = vperm.xlu1 %6981, %v8629_v44   ;;  %983 = vperm.xlu0 %6982, %v8635_v23   ;;  %11727 = vst [vmem:[#allocation96_spill] sm:$0xff] %v8651_v30 }
 0x144   :  { %v8638_v59 = vpop.permute.xlu1 %603  ;;  %v8640_v10 = vpop.permute.xlu0 %607 }
 0x145   :  { %11725 = vst [vmem:[#allocation94_spill] sm:$0xff] %v8638_v59  ;;  %11726 = vst [vmem:[#allocation95_spill] sm:$0xff] %v8640_v10  ;;  %v8661_v10 = vld [vmem:[%s11562_s2 + $0x98] sm:$0xff]  ;;  %v8667_v59 = vld [vmem:[%s11562_s2 + $0xb0] sm:$0xff] }
 0x146   :  { %979 = vperm.xlu1 %6981, %v8645_v61   ;;  %991 = vperm.xlu0 %6982, %v8651_v30  }
 0x148   :  { %v8654_v32 = vpop.permute.xlu1 %611  ;;  %v8656_v58 = vpop.permute.xlu0 %615 }
 0x149   :  { %11728 = vst [vmem:[#allocation97_spill] sm:$0xff] %v8654_v32  ;;  %11729 = vst [vmem:[#allocation98_spill] sm:$0xff] %v8656_v58  ;;  %v8677_v58 = vld [vmem:[%s11562_s2 + $0xa8] sm:$0xff]  ;;  %v8683_v32 = vld [vmem:[%s11562_s2 + $0xc0] sm:$0xff] }
 0x14a   :  { %987 = vperm.xlu1 %6981, %v8661_v10   ;;  %999 = vperm.xlu0 %6982, %v8667_v59  }
 0x14c   :  { %v8670_v29 = vpop.permute.xlu1 %619  ;;  %v8672_v4 = vpop.permute.xlu0 %623 }
 0x14d   :  { %11730 = vst [vmem:[#allocation99_spill] sm:$0xff] %v8670_v29  ;;  %11731 = vst [vmem:[#allocation100_spill] sm:$0xff] %v8672_v4  ;;  %v8693_v4 = vld [vmem:[%s11562_s2 + $0xb8] sm:$0xff]  ;;  %v8699_v29 = vld [vmem:[%s11562_s2 + $0xd0] sm:$0xff] }
 0x14e   :  { %995 = vperm.xlu1 %6981, %v8677_v58   ;;  %1007 = vperm.xlu0 %6982, %v8683_v32  }
 0x150   :  { %v8686_v14 = vpop.permute.xlu1 %627  ;;  %v8688_v9 = vpop.permute.xlu0 %631 }
 0x151   :  { %11732 = vst [vmem:[#allocation101_spill] sm:$0xff] %v8686_v14  ;;  %11733 = vst [vmem:[#allocation102_spill] sm:$0xff] %v8688_v9  ;;  %v8709_v9 = vld [vmem:[%s11562_s2 + $0xc8] sm:$0xff]  ;;  %v8715_v14 = vld [vmem:[%s11562_s2 + $0xe0] sm:$0xff] }
 0x152   :  { %1003 = vperm.xlu1 %6981, %v8693_v4   ;;  %1015 = vperm.xlu0 %6982, %v8699_v29  }
 0x154   :  { %v8702_v55 = vpop.permute.xlu1 %635  ;;  %v8704_v1 = vpop.permute.xlu0 %639 }
 0x155   :  { %11734 = vst [vmem:[#allocation103_spill] sm:$0xff] %v8702_v55  ;;  %11735 = vst [vmem:[#allocation104_spill] sm:$0xff] %v8704_v1  ;;  %v8725_v1 = vld [vmem:[%s11562_s2 + $0xd8] sm:$0xff]  ;;  %v8731_v55 = vld [vmem:[%s11562_s2 + $0xf0] sm:$0xff] }
 0x156   :  { %1011 = vperm.xlu1 %6981, %v8709_v9   ;;  %1023 = vperm.xlu0 %6982, %v8715_v14  }
 0x158   :  { %v8718_v2 = vpop.permute.xlu1 %643  ;;  %v8720_v18 = vpop.permute.xlu0 %647 }
 0x159   :  { %11736 = vst [vmem:[#allocation105_spill] sm:$0xff] %v8718_v2  ;;  %11737 = vst [vmem:[#allocation106_spill] sm:$0xff] %v8720_v18  ;;  %v8741_v18 = vld [vmem:[%s11562_s2 + $0xe8] sm:$0xff] }
 0x15a   :  { %1019 = vperm.xlu1 %6981, %v8725_v1   ;;  %1031 = vperm.xlu0 %6982, %v8731_v55  }
 0x15c   :  { %v8734_v13 = vpop.permute.xlu1 %651  ;;  %v8736_v6 = vpop.permute.xlu0 %655 }
 0x15d   :  { %11738 = vst [vmem:[#allocation107_spill] sm:$0xff] %v8734_v13  ;;  %11739 = vst [vmem:[#allocation108_spill] sm:$0xff] %v8736_v6 }
 0x15e   :  { %1027 = vperm.xlu1 %6981, %v8741_v18   ;;  %1039 = vperm.xlu0 %6982, %v8110_v34  }
 0x160   :  { %v8745_v2 = vpop.permute.xlu1 %659  ;;  %v8747_v3 = vpop.permute.xlu0 %663 }
 0x161   :  { %11740 = vst [vmem:[#allocation109_spill] sm:$0xff] %v8745_v2  ;;  %11741 = vst [vmem:[#allocation110_spill] sm:$0xff] %v8747_v3 }
 0x162   :  { %1035 = vperm.xlu1 %6981, %v8752_v22   ;;  %1047 = vperm.xlu0 %6982, %v8122_v36  }
 0x164   :  { %v8756_v6 = vpop.permute.xlu1 %667  ;;  %v8758_v13 = vpop.permute.xlu0 %671 }
 0x165   :  { %11743 = vst [vmem:[#allocation112_spill] sm:$0xff] %v8756_v6  ;;  %11744 = vst [vmem:[#allocation113_spill] sm:$0xff] %v8758_v13  ;;  %v7659_v6 = vld [vmem:[%s11562_s2 + $0x138] sm:$0xff] }
 0x166   :  { %1043 = vperm.xlu1 %6981, %v8105_v33   ;;  %1055 = vperm.xlu0 %6982, %v8134_v38  }
 0x168   :  { %v8762_v34 = vpop.permute.xlu1 %675  ;;  %v8764_v3 = vpop.permute.xlu0 %679 }
 0x169   :  { %11745 = vst [vmem:[#allocation114_spill] sm:$0xff] %v8762_v34  ;;  %11746 = vst [vmem:[#allocation115_spill] sm:$0xff] %v8764_v3  ;;  %v7660_v34 = vld [vmem:[%s11562_s2 + $0x128] sm:$0xff] }
 0x16a   :  { %1051 = vperm.xlu1 %6981, %v8117_v35   ;;  %1063 = vperm.xlu0 %6982, %v8146_v40  }
 0x16c   :  { %v8768_v2 = vpop.permute.xlu1 %683  ;;  %v8770_v17 = vpop.permute.xlu0 %687 }
 0x16d   :  { %11747 = vst [vmem:[#allocation116_spill] sm:$0xff] %v8768_v2  ;;  %11748 = vst [vmem:[#allocation117_spill] sm:$0xff] %v8770_v17 }
 0x16e   :  { %1059 = vperm.xlu1 %6981, %v8129_v37   ;;  %1071 = vperm.xlu0 %6982, %v8158_v42   ;;  %v11581_v42 = vmov 3  }
 0x170   :  { %v8774_v36 = vpop.permute.xlu1 %691  ;;  %v8776_v33 = vpop.permute.xlu0 %695 }
 0x171   :  { %11749 = vst [vmem:[#allocation118_spill] sm:$0xff] %v8774_v36  ;;  %11750 = vst [vmem:[#allocation119_spill] sm:$0xff] %v8776_v33 }
 0x172   :  { %1067 = vperm.xlu1 %6981, %v8141_v39   ;;  %1099 = vperm.xlu0 %6982, %v8189_v47  }
 0x174   :  { %v8780_v38 = vpop.permute.xlu1 %699  ;;  %v8782_v35 = vpop.permute.xlu0 %703 }
 0x175   :  { %11751 = vst [vmem:[#allocation120_spill] sm:$0xff] %v8780_v38  ;;  %11752 = vst [vmem:[#allocation121_spill] sm:$0xff] %v8782_v35  ;;  %v7663_v35 = vld [vmem:[%s11562_s2 + $0x158] sm:$0xff] }
 0x176   :  { %1075 = vperm.xlu1 %6981, %v8153_v41   ;;  %1087 = vperm.xlu0 %6982, %v8182_v46  }
 0x178   :  { %v8786_v40 = vpop.permute.xlu1 %707  ;;  %v8788_v37 = vpop.permute.xlu0 %711 }
 0x179   :  { %11753 = vst [vmem:[#allocation122_spill] sm:$0xff] %v8786_v40  ;;  %11754 = vst [vmem:[#allocation123_spill] sm:$0xff] %v8788_v37 }
 0x17a   :  { %6983 = vset.pattern.permute.xlu1 %v11581_v42  ;;  %1083 = vperm.xlu0 %6982, %v8165_v43  }
 0x17b   :  { %1361 = vperm.xlu1 %6983, %v8629_v44  }
 0x17c   :  { %v8793_v39 = vpop.permute.xlu1 %715  ;;  %v8795_v13 = vpop.permute.xlu0 %719 }
 0x17d   :  { %11755 = vst [vmem:[#allocation124_spill] sm:$0xff] %v8793_v39  ;;  %11756 = vst [vmem:[#allocation125_spill] sm:$0xff] %v8795_v13 }
 0x17e   :  { %6989 = vset.pattern.permute.xlu0 %v11581_v42 }
 0x17f   :  { %1349 = vperm.xlu1 %6983, %v8587_v24   ;;  %1357 = vperm.xlu0 %6989, %v8603_v31  }
 0x180   :  { %v8800_v41 = vpop.permute.xlu1 %723  ;;  %v8802_v46 = vpop.permute.xlu0 %727 }
 0x181   :  { %11757 = vst [vmem:[#allocation126_spill] sm:$0xff] %v8800_v41  ;;  %11758 = vst [vmem:[#allocation127_spill] sm:$0xff] %v8802_v46 }
 0x183   :  { %1341 = vperm.xlu1 %6983, %v8571_v20   ;;  %1353 = vperm.xlu0 %6989, %v8613_v57  }
 0x184   :  { %v8806_v43 = vpop.permute.xlu1 %731  ;;  %v8808_v44 = vpop.permute.xlu0 %735 }
 0x185   :  { %11759 = vst [vmem:[#allocation128_spill] sm:$0xff] %v8806_v43  ;;  %11760 = vst [vmem:[#allocation129_spill] sm:$0xff] %v8808_v44 }
 0x187   :  { %1333 = vperm.xlu1 %6983, %v8555_v16   ;;  %1345 = vperm.xlu0 %6989, %v8597_v52  }
 0x188   :  { %v8812_v42 = vpop.permute.xlu1 %739  ;;  %v8814_v39 = vpop.permute.xlu0 %743 }
 0x189   :  { %11761 = vst [vmem:[#allocation130_spill] sm:$0xff] %v8812_v42  ;;  %11762 = vst [vmem:[#allocation131_spill] sm:$0xff] %v8814_v39 }
 0x18b   :  { %1325 = vperm.xlu1 %6983, %v8539_v12   ;;  %1337 = vperm.xlu0 %6989, %v8581_v19  }
 0x18c   :  { %v8818_v13 = vpop.permute.xlu1 %747  ;;  %v8820_v46 = vpop.permute.xlu0 %751 }
 0x18d   :  { %11763 = vst [vmem:[#allocation132_spill] sm:$0xff] %v8818_v13  ;;  %11764 = vst [vmem:[#allocation133_spill] sm:$0xff] %v8820_v46  ;;  %v11773_v13 = vmov 3  }
 0x18f   :  { %1317 = vperm.xlu1 %6983, %v8523_v27   ;;  %1329 = vperm.xlu0 %6989, %v8565_v15  }
 0x190   :  { %v8824_v57 = vpop.permute.xlu1 %755  ;;  %v8826_v41 = vpop.permute.xlu0 %759 }
 0x191   :  { %11765 = vst [vmem:[#allocation134_spill] sm:$0xff] %v8824_v57  ;;  %11766 = vst [vmem:[#allocation135_spill] sm:$0xff] %v8826_v41 }
 0x193   :  { %1309 = vperm.xlu1 %6983, %v8517_v28   ;;  %1321 = vperm.xlu0 %6989, %v8549_v11  }
 0x194   :  { %v8830_v52 = vpop.permute.xlu1 %763  ;;  %v8832_v44 = vpop.permute.xlu0 %767 }
 0x195   :  { %11767 = vst [vmem:[#allocation136_spill] sm:$0xff] %v8830_v52  ;;  %11768 = vst [vmem:[#allocation137_spill] sm:$0xff] %v8832_v44  ;;  %v7657_v52 = vld [vmem:[%s11562_s2 + $0x148] sm:$0xff] }
 0x197   :  { %1301 = vperm.xlu1 %6983, %v8501_v26   ;;  %1313 = vperm.xlu0 %6989, %v8533_v7  }
 0x198   :  { %v8836_v19 = vpop.permute.xlu1 %771  ;;  %v8838_v43 = vpop.permute.xlu0 %775 }
 0x199   :  { %11769 = vst [vmem:[#allocation138_spill] sm:$0xff] %v8836_v19  ;;  %11770 = vst [vmem:[#allocation139_spill] sm:$0xff] %v8838_v43 }
 0x19b   :  { %1421 = vperm.xlu1 %6983, %v8731_v55   ;;  %1305 = vperm.xlu0 %6989, %v8507_v50  }
 0x19d   :  { %v8842_v15 = vpop.permute.xlu1 %911  ;;  %v8844_v28 = vpop.permute.xlu0 %915 }
 0x19f   :  { %1413 = vperm.xlu1 %6983, %v8715_v14   ;;  %1425 = vperm.xlu0 %6989, %v8752_v22  }
 0x1a1   :  { %v8848_v11 = vpop.permute.xlu1 %919  ;;  %v8850_v26 = vpop.permute.xlu0 %927 }
 0x1a3   :  { %1405 = vperm.xlu1 %6983, %v8699_v29   ;;  %1417 = vperm.xlu0 %6989, %v8741_v18  }
 0x1a5   :  { %v8854_v7 = vpop.permute.xlu1 %923  ;;  %v8856_v55 = vpop.permute.xlu0 %935 }
 0x1a7   :  { %1397 = vperm.xlu1 %6983, %v8683_v32   ;;  %1409 = vperm.xlu0 %6989, %v8725_v1  }
 0x1a9   :  { %v8860_v39 = vpop.permute.xlu1 %931  ;;  %v8862_v14 = vpop.permute.xlu0 %943 }
 0x1ab   :  { %1389 = vperm.xlu1 %6983, %v8667_v59   ;;  %1401 = vperm.xlu0 %6989, %v8709_v9   ;;  %v11771_v9 = vmov 2  }
 0x1ad   :  { %v8866_v42 = vpop.permute.xlu1 %939  ;;  %v8868_v29 = vpop.permute.xlu0 %951 }
 0x1af   :  { %1381 = vperm.xlu1 %6983, %v8651_v30   ;;  %1393 = vperm.xlu0 %6989, %v8693_v4  }
 0x1b1   :  { %v8872_v18 = vpop.permute.xlu1 %947  ;;  %v8874_v32 = vpop.permute.xlu0 %959 }
 0x1b3   :  { %1373 = vperm.xlu1 %6983, %v8635_v23   ;;  %1385 = vperm.xlu0 %6989, %v8677_v58  }
 0x1b5   :  { %v8878_v1 = vpop.permute.xlu1 %955  ;;  %v8880_v59 = vpop.permute.xlu0 %967 }
 0x1b7   :  { %6984 = vset.pattern.permute.xlu1 %v11771_v9  ;;  %1377 = vperm.xlu0 %6989, %v8661_v10   ;;  %v7656_v10 = vld [vmem:[%s11562_s2 + $0x150] sm:$0xff] }
 0x1b8   :  { %1095 = vperm.xlu1 %6984, %v8194_v48  }
 0x1b9   :  { %v8885_v46 = vpop.permute.xlu1 %963  ;;  %v8887_v4 = vpop.permute.xlu0 %975 }
 0x1ba   :  { %11772 = vst [vmem:[#allocation140_spill] sm:$0xff] %v8887_v4 }
 0x1bb   :  { %1485 = vperm.xlu0 %6989, %v8194_v48   ;;  %v7018_v48 = vld [vmem:[#allocation2 + $0x4] ss:$16 sps:$4 sm:$0xff]  }
 0x1bc   :  { %6985 = vset.pattern.permute.xlu1 %v11773_v13  ;;  %2980 = vmatprep.mubr.bf16.mxu0 %v7018_v48  ;;  %v7021_v48 = vld [vmem:[#allocation2 + $0x404] ss:$16 sps:$4 sm:$0xff]  }
 0x1bd   :  { %1365 = vperm.xlu1 %6985, %v8619_v25   ;;  %v8892_v58 = vpop.permute.xlu1 %971  ;;  %v8894_v41 = vpop.permute.xlu0 %983  ;;  %3236 = vmatprep.mubr.bf16.mxu1 %v7021_v48 }
 0x1be   :  { %11774 = vst [vmem:[#allocation141_spill] sm:$0xff] %v8894_v41 }
 0x1bf   :  { %1469 = vperm.xlu0 %6989, %v7656_v10  }
 0x1c1   :  { %1369 = vperm.xlu1 %6985, %v8645_v61   ;;  %v8900_v57 = vpop.permute.xlu1 %979  ;;  %v8902_v44 = vpop.permute.xlu0 %991  ;;  %v7658_v61 = vld [vmem:[%s11562_s2 + $0x168] sm:$0xff] }
 0x1c2   :  { %11775 = vst [vmem:[#allocation142_spill] sm:$0xff] %v8900_v57 }
 0x1c3   :  { %1465 = vperm.xlu0 %6989, %v7657_v52  }
 0x1c5   :  { %6986 = vset.pattern.permute.xlu1 %v11771_v9  ;;  %v8908_v43 = vpop.permute.xlu1 %987  ;;  %v8910_v19 = vpop.permute.xlu0 %999 }
 0x1c6   :  { %11776 = vst [vmem:[#allocation143_spill] sm:$0xff] %v8908_v43  ;;  %1091 = vperm.xlu1 %6986, %v7658_v61  }
 0x1c7   :  { %1457 = vperm.xlu0 %6989, %v7659_v6   ;;  %v7661_v6 = vld [vmem:[%s11562_s2 + $0x118] sm:$0xff] }
 0x1c9   :  { %v8918_v3 = vpop.permute.xlu1 %995  ;;  %v8920_v52 = vpop.permute.xlu0 %1007 }
 0x1ca   :  { %11777 = vst [vmem:[#allocation144_spill] sm:$0xff] %v8918_v3  ;;  %6987 = vset.pattern.permute.xlu1 %v11773_v13 }
 0x1cb   :  { %1489 = vperm.xlu1 %6987, %v8189_v47   ;;  %1449 = vperm.xlu0 %6989, %v7660_v34   ;;  %v7662_v34 = vld [vmem:[%s11562_s2 + $0x160] sm:$0xff] }
 0x1cd   :  { %v8927_v17 = vpop.permute.xlu1 %1003  ;;  %v8929_v2 = vpop.permute.xlu0 %1015 }
 0x1cf   :  { %6988 = vset.pattern.permute.xlu1 %v11771_v9  ;;  %1441 = vperm.xlu0 %6989, %v7661_v6  }
 0x1d0   :  { %1079 = vperm.xlu1 %6988, %v7656_v10  }
 0x1d1   :  { %v8935_v33 = vpop.permute.xlu1 %1011  ;;  %v8937_v47 = vpop.permute.xlu0 %1023 }
 0x1d3   :  { %1549 = vperm.xlu0 %6989, %v8290_v0  }
 0x1d4   :  { %6990 = vset.pattern.permute.xlu1 %v11773_v13 }
 0x1d5   :  { %1477 = vperm.xlu1 %6990, %v7662_v34   ;;  %v8944_v48 = vpop.permute.xlu1 %1019  ;;  %v8946_v36 = vpop.permute.xlu0 %1031 }
 0x1d7   :  { %1533 = vperm.xlu0 %6989, %v11700_v53   ;;  %v8966_v53 = vld [vmem:[%s11562_s2 + $0x140] sm:$0xff] }
 0x1d8   :  { %11780 = vst [vmem:[#allocation147_spill] sm:$0xff] %v8966_v53 }
 0x1d9   :  { %1481 = vperm.xlu1 %6990, %v7658_v61   ;;  %v8949_v10 = vpop.permute.xlu1 %1027  ;;  %v8951_v6 = vpop.permute.xlu0 %1039 }
 0x1da   :  { %11778 = vst [vmem:[#allocation145_spill] sm:$0xff] %v8951_v6 }
 0x1db   :  { %1517 = vperm.xlu0 %6989, %v8242_v56  }
 0x1dd   :  { %1473 = vperm.xlu1 %6990, %v7663_v35   ;;  %v8957_v38 = vpop.permute.xlu1 %1035  ;;  %v8959_v34 = vpop.permute.xlu0 %1047  ;;  %v8977_v35 = vld [vmem:[%s11562_s2 + $0x130] sm:$0xff] }
 0x1de   :  { %11779 = vst [vmem:[#allocation146_spill] sm:$0xff] %v8959_v34  ;;  %11783 = vst [vmem:[#allocation150_spill] sm:$0xff] %v8977_v35 }
 0x1df   :  { %7002 = vset.pattern.permute.xlu0 %v11771_v9 }
 0x1e0   :  { %1163 = vperm.xlu0 %7002, %v8285_v63  }
 0x1e1   :  { %1461 = vperm.xlu1 %6990, %v8966_v53   ;;  %v8969_v56 = vpop.permute.xlu1 %1043  ;;  %v8971_v61 = vpop.permute.xlu0 %1055 }
 0x1e2   :  { %11781 = vst [vmem:[#allocation148_spill] sm:$0xff] %v8969_v56  ;;  %11782 = vst [vmem:[#allocation149_spill] sm:$0xff] %v8971_v61  ;;  %v8988_v56 = vld [vmem:[%s11562_s2 + $0x120] sm:$0xff] }
 0x1e3   :  { %11786 = vst [vmem:[#allocation153_spill] sm:$0xff] %v8988_v56 }
 0x1e4   :  { %1151 = vperm.xlu0 %7002, %v8278_v62  }
 0x1e5   :  { %1453 = vperm.xlu1 %6990, %v8977_v35   ;;  %v8980_v6 = vpop.permute.xlu1 %1051  ;;  %v8982_v34 = vpop.permute.xlu0 %1063 }
 0x1e6   :  { %11784 = vst [vmem:[#allocation151_spill] sm:$0xff] %v8980_v6  ;;  %11785 = vst [vmem:[#allocation152_spill] sm:$0xff] %v8982_v34  ;;  %v8999_v6 = vld [vmem:[%s11562_s2 + $0x110] sm:$0xff] }
 0x1e7   :  { %11789 = vst [vmem:[#allocation156_spill] sm:$0xff] %v8999_v6 }
 0x1e8   :  { %1147 = vperm.xlu0 %7002, %v11701_v45  }
 0x1e9   :  { %1445 = vperm.xlu1 %6990, %v8988_v56   ;;  %v8991_v62 = vpop.permute.xlu1 %1059  ;;  %v8993_v61 = vpop.permute.xlu0 %1071 }
 0x1ea   :  { %11787 = vst [vmem:[#allocation154_spill] sm:$0xff] %v8991_v62  ;;  %11788 = vst [vmem:[#allocation155_spill] sm:$0xff] %v8993_v61 }
 0x1ec   :  { %1135 = vperm.xlu0 %7002, %v11696_v51   ;;  %v9015_v51 = vld [vmem:[%s11560_s0 + $0x1] ss:$0 sm:$0xff] }
 0x1ed   :  { %1437 = vperm.xlu1 %6990, %v8999_v6   ;;  %v9002_v45 = vpop.permute.xlu1 %1067  ;;  %v9004_v53 = vpop.permute.xlu0 %1099  ;;  %v797_v35 = vmul.f32 %v9015_v51, %v8592_v60 }
 0x1ee   :  { %11790 = vst [vmem:[#allocation157_spill] sm:$0xff] %v9002_v45  ;;  %11791 = vst [vmem:[#allocation158_spill] sm:$0xff] %v9004_v53  ;;  %v796_v45 = vmul.f32 %v9015_v51, %v8590_v21  ;;  %v11796_v53 = vld [vmem:[#allocation87_spill] sm:$0xff] }
 0x1f0   :  { %1131 = vperm.xlu0 %7002, %v11693_v49   ;;  %v9025_v49 = vld [vmem:[%s11560_s0] ss:$0 sm:$0xff] }
 0x1f1   :  { %6991 = vset.pattern.permute.xlu1 %v11771_v9  ;;  %v9008_v62 = vpop.permute.xlu1 %1075  ;;  %v9010_v34 = vpop.permute.xlu0 %1087  ;;  %v472_v21 = vmul.f32 %v9025_v49, %v8338_v8  ;;  %v9051_v8 = vld [vmem:[%s11562_s2 + $0x100] sm:$0xff] }
 0x1f2   :  { %11792 = vst [vmem:[#allocation159_spill] sm:$0xff] %v9008_v62  ;;  %11793 = vst [vmem:[#allocation160_spill] sm:$0xff] %v9010_v34  ;;  %1159 = vperm.xlu1 %6991, %v8290_v0   ;;  %v9030_v62 = vld [vmem:[%s11561_s1] ss:$0 sm:$0xff]  ;;  %v473_v0 = vmul.f32 %v9025_v49, %v8336_v5  ;;  %v795_v5 = vmul.f32 %v9015_v51, %v11796_v53 }
 0x1f3   :  { %v1186_v60 = vmul.f32 %v9030_v62, %v8880_v59  ;;  %v1187_v61 = vmul.f32 %v9030_v62, %v8892_v58  ;;  %v11795_v34 = vld [vmem:[#allocation86_spill] sm:$0xff]  ;;  %v860_v37 = vadd.f32 %v796_v45, %v472_v21  ;;  %v11798_v59 = vld [vmem:[#allocation29_spill] sm:$0xff]  ;;  %v1184_v53 = vmul.f32 %v9030_v62, %v8874_v32  ;;  %v11801_v21 = vld [vmem:[#allocation84_spill] sm:$0xff] }
 0x1f4   :  { %1119 = vperm.xlu0 %7002, %v8230_v54   ;;  %v794_v54 = vmul.f32 %v9015_v51, %v11795_v34  ;;  %v861_v22 = vadd.f32 %v797_v35, %v473_v0  ;;  %11797 = vst [vmem:[#allocation86_spill] sm:$0xff] %v9051_v8  ;;  %v471_v58 = vmul.f32 %v9025_v49, %v11798_v59  ;;  %v9061_v34 = vld [vmem:[%s11562_s2 + $0x198] sm:$0xff]  ;;  %v7670_v32 = vld [vmem:[%s11562_s2 + $0x108] sm:$0xff] }
 0x1f5   :  { %v9041_v56 = vpop.permute.xlu0 %1083  ;;  %11800 = vst [vmem:[#allocation87_spill] sm:$0xff] %v9061_v34  ;;  %v1185_v35 = vmul.f32 %v9030_v62, %v8885_v46  ;;  %v1250_v0 = vadd.f32 %v1186_v60, %v860_v37  ;;  %v792_v59 = vmul.f32 %v9015_v51, %v11801_v21  ;;  %v11803_v46 = vld [vmem:[#allocation17_spill] sm:$0xff]  ;;  %v11804_v37 = vld [vmem:[#allocation27_spill] sm:$0xff]  ;;  %v11805_v60 = vld [vmem:[#allocation28_spill] sm:$0xff] }
 0x1f6   :  { %11794 = vst [vmem:[#allocation161_spill] sm:$0xff] %v9041_v56  ;;  %6992 = vset.pattern.permute.xlu1 %v11773_v13  ;;  %v1362_v6 = vpop.permute.xlu1 %1361  ;;  %v11799_v56 = vld [vmem:[#allocation30_spill] sm:$0xff]  ;;  %v1251_v45 = vadd.f32 %v1187_v61, %v861_v22  ;;  %v859_v23 = vadd.f32 %v795_v5, %v471_v58  ;;  %v9077_v22 = vmul.f32 %v9025_v49, %v11803_v46 }
 0x1f7   :  { %1429 = vperm.xlu1 %6992, %v9051_v8   ;;  %v470_v40 = vmul.f32 %v9025_v49, %v11799_v56  ;;  %v11802_v8 = vld [vmem:[#allocation85_spill] sm:$0xff]  ;;  %v469_v61 = vmul.f32 %v9025_v49, %v11804_v37  ;;  %v11808_v21 = vld [vmem:[#allocation82_spill] sm:$0xff] }
 0x1f8   :  { %1115 = vperm.xlu0 %7002, %v9061_v34   ;;  %v793_v56 = vmul.f32 %v9015_v51, %v11802_v8  ;;  %v1571_v43 = vadd.f32 %v1362_v6, %v1251_v45  ;;  %v468_v8 = vmul.f32 %v9025_v49, %v11805_v60  ;;  %v1183_v6 = vmul.f32 %v9030_v62, %v8878_v1  ;;  %v11807_v45 = vld [vmem:[#allocation25_spill] sm:$0xff] }
 0x1f9   :  { %v858_v30 = vadd.f32 %v794_v54, %v470_v40  ;;  %v1182_v40 = vmul.f32 %v9030_v62, %v8868_v29  ;;  %v1249_v5 = vadd.f32 %v1185_v35, %v859_v23  ;;  %v11809_v29 = vld [vmem:[#allocation83_spill] sm:$0xff]  ;;  %v11810_v23 = vld [vmem:[#allocation26_spill] sm:$0xff] }
 0x1fa   :  { %v1350_v57 = vpop.permute.xlu1 %1349  ;;  %v1358_v4 = vpop.permute.xlu0 %1357  ;;  %v791_v46 = vmul.f32 %v9015_v51, %v11809_v29  ;;  %v856_v37 = vadd.f32 %v792_v59, %v468_v8  ;;  %v857_v25 = vadd.f32 %v793_v56, %v469_v61  ;;  %v11814_v61 = vld [vmem:[#allocation80_spill] sm:$0xff] }
 0x1fb   :  { %v1570_v34 = vadd.f32 %v1358_v4, %v1250_v0  ;;  %1433 = vperm.xlu1 %6992, %v7670_v32   ;;  %v9088_v4 = vld [vmem:[%s11562_s2 + $0x180] sm:$0xff]  ;;  %v1248_v54 = vadd.f32 %v1184_v53, %v858_v30  ;;  %v467_v0 = vmul.f32 %v9025_v49, %v11807_v45  ;;  %v790_v32 = vmul.f32 %v9015_v51, %v11808_v21 }
 0x1fc   :  { %11806 = vst [vmem:[#allocation29_spill] sm:$0xff] %v9088_v4  ;;  %1103 = vperm.xlu0 %7002, %v9088_v4   ;;  %v466_v30 = vmul.f32 %v9025_v49, %v11810_v23  ;;  %v1246_v1 = vadd.f32 %v1182_v40, %v856_v37  ;;  %v1181_v53 = vmul.f32 %v9030_v62, %v8872_v18  ;;  %v11817_v37 = vld [vmem:[#allocation21_spill] sm:$0xff]  ;;  %v11818_v23 = vld [vmem:[#allocation78_spill] sm:$0xff] }
 0x1fd   :  { %v1787_v58 = vpack.c.bf16 %v1571_v43, %v1570_v34  ;;  %v1568_v4 = vadd.f32 %v1350_v57, %v1248_v54  ;;  %v1180_v43 = vmul.f32 %v9030_v62, %v8862_v14  ;;  %v11811_v34 = vld [vmem:[#allocation16_spill] sm:$0xff]  ;;  %v1247_v59 = vadd.f32 %v1183_v6, %v857_v25  ;;  %v11815_v14 = vld [vmem:[#allocation81_spill] sm:$0xff] }
 0x1fe   :  { %v1342_v60 = vpop.permute.xlu1 %1341  ;;  %v1354_v41 = vpop.permute.xlu0 %1353  ;;  %v11812_v57 = vmov 0   ;;  %v788_v8 = vmul.f32 %v9015_v51, %v11814_v61  ;;  %v789_v40 = vmul.f32 %v9015_v51, %v11815_v14  ;;  %v854_v54 = vadd.f32 %v790_v32, %v466_v30  ;;  %v11816_v6 = vld [vmem:[#allocation24_spill] sm:$0xff] }
 0x1ff   :  { %v1569_v3 = vadd.f32 %v1354_v41, %v1249_v5  ;;  %6993 = vset.pattern.permute.xlu1 %v11771_v9  ;;  %2949 = vmatpush1.bf16.msra.mxu0 %v1787_v58  ;;  %v11813_v41 = vld [vmem:[#allocation23_spill] sm:$0xff]  ;;  %v1566_v25 = vadd.f32 %v1342_v60, %v1246_v1  ;;  %v464_v45 = vmul.f32 %v9025_v49, %v11816_v6 }
 0x200   :  { %6946 = vmatpush1.bf16.msra.mxu1 %v1787_v58  ;;  %1155 = vperm.xlu1 %6993, %v11811_v34   ;;  %v465_v56 = vmul.f32 %v9025_v49, %v11813_v41  ;;  %v1178_v21 = vmul.f32 %v9030_v62, %v8856_v55  ;;  %v1244_v32 = vadd.f32 %v1180_v43, %v854_v54  ;;  %v11819_v55 = vld [vmem:[#allocation79_spill] sm:$0xff]  ;;  %v11820_v41 = vld [vmem:[#allocation22_spill] sm:$0xff] }
 0x201   :  { %v1786_v35 = vpack.c.bf16 %v1569_v3, %v1568_v4  ;;  %2950 = vmatprep.subr.bf16.mxu0 %v11812_v57  ;;  %6931 = vmatprep.subr.bf16.mxu1 %v11812_v57  ;;  %v855_v3 = vadd.f32 %v791_v46, %v467_v0  ;;  %v9119_v4 = vld [vmem:[%s11562_s2 + $0x190] sm:$0xff]  ;;  %v1179_v0 = vmul.f32 %v9030_v62, %v8866_v42 }
 0x202   :  { %v1334_v5 = vpop.permute.xlu1 %1333  ;;  %v1346_v58 = vpop.permute.xlu0 %1345  ;;  %7007 = vset.pattern.permute.xlu0 %v11773_v13  ;;  %v463_v60 = vmul.f32 %v9025_v49, %v11817_v37  ;;  %v786_v30 = vmul.f32 %v9015_v51, %v11818_v23  ;;  %v787_v43 = vmul.f32 %v9015_v51, %v11819_v55  ;;  %v852_v1 = vadd.f32 %v788_v8, %v464_v45 }
 0x203   :  { %v1567_v18 = vadd.f32 %v1346_v58, %v1247_v59  ;;  %2951 = vmatpush1.bf16.msra.mxu0 %v1786_v35  ;;  %1501 = vperm.xlu0 %7007, %v9119_v4   ;;  %v1245_v46 = vadd.f32 %v1181_v53, %v855_v3  ;;  %v853_v42 = vadd.f32 %v789_v40, %v465_v56  ;;  %v9141_v53 = vld [vmem:[%s11562_s2 + $0x188] sm:$0xff]  ;;  %v11822_v3 = vld [vmem:[#allocation77_spill] sm:$0xff] }
 0x204   :  { %6947 = vmatpush1.bf16.msra.mxu1 %v1786_v35  ;;  %6994 = vset.pattern.permute.xlu1 %v11773_v13  ;;  %v1564_v59 = vadd.f32 %v1334_v5, %v1244_v32  ;;  %v462_v61 = vmul.f32 %v9025_v49, %v11820_v41  ;;  %v1176_v8 = vmul.f32 %v9030_v62, %v8850_v26  ;;  %v11821_v5 = vld [vmem:[#allocation76_spill] sm:$0xff] }
 0x205   :  { %v1785_v29 = vpack.c.bf16 %v1567_v18, %v1566_v25  ;;  %1553 = vperm.xlu1 %6994, %v8285_v63   ;;  %2952 = vmatprep.subr.bf16.mxu0 %v11812_v57  ;;  %v1242_v14 = vadd.f32 %v1178_v21, %v852_v1  ;;  %v1177_v56 = vmul.f32 %v9030_v62, %v8860_v39  ;;  %v7674_v18 = vld [vmem:[%s11562_s2 + $0x1d0] sm:$0xff] }
 0x206   :  { %v1326_v34 = vpop.permute.xlu1 %1325  ;;  %v1338_v35 = vpop.permute.xlu0 %1337  ;;  %6932 = vmatprep.subr.bf16.mxu1 %v11812_v57  ;;  %v1243_v54 = vadd.f32 %v1179_v0, %v853_v42  ;;  %v784_v58 = vmul.f32 %v9015_v51, %v11821_v5  ;;  %v785_v25 = vmul.f32 %v9015_v51, %v11822_v3  ;;  %v850_v26 = vadd.f32 %v786_v30, %v462_v61  ;;  %v11828_v3 = vld [vmem:[#allocation45_spill] sm:$0xff] }
 0x207   :  { %v1565_v63 = vadd.f32 %v1338_v35, %v1245_v46  ;;  %2953 = vmatpush1.bf16.msra.mxu0 %v1785_v29  ;;  %1497 = vperm.xlu0 %7007, %v9141_v53   ;;  %v851_v45 = vadd.f32 %v787_v43, %v463_v60  ;;  %v1562_v21 = vadd.f32 %v1326_v34, %v1242_v14  ;;  %v7867_v0 = vmov 4   ;;  %v11824_v43 = vld [vmem:[#allocation18_spill] sm:$0xff]  ;;  %v11827_v14 = vld [vmem:[#allocation20_spill] sm:$0xff] }
 0x208   :  { %6948 = vmatpush1.bf16.msra.mxu1 %v1785_v29  ;;  %2954 = vmatprep.subr.bf16.mxu0 %v11812_v57  ;;  %v11823_v29 = vld [vmem:[#allocation19_spill] sm:$0xff]  ;;  %v1174_v37 = vmul.f32 %v9030_v62, %v8848_v11  ;;  %v1240_v23 = vadd.f32 %v1176_v8, %v850_v26  ;;  %v1175_v30 = vmul.f32 %v9030_v62, %v8854_v7  ;;  %v11825_v34 = vld [vmem:[#allocation74_spill] sm:$0xff] }
 0x209   :  { %v1784_v40 = vpack.c.bf16 %v1565_v63, %v1564_v59  ;;  %6995 = vset.pattern.permute.xlu1 %v11771_v9  ;;  %6933 = vmatprep.subr.bf16.mxu1 %v11812_v57  ;;  %v461_v46 = vmul.f32 %v9025_v49, %v11823_v29  ;;  %v1241_v55 = vadd.f32 %v1177_v56, %v851_v45  ;;  %v11826_v11 = vld [vmem:[#allocation75_spill] sm:$0xff]  ;;  %v11830_v45 = vld [vmem:[#allocation106_spill] sm:$0xff] }
 0x20a   :  { %1143 = vperm.xlu1 %6995, %v7674_v18   ;;  %v1318_v6 = vpop.permute.xlu1 %1317  ;;  %v1330_v39 = vpop.permute.xlu0 %1329  ;;  %v458_v1 = vmul.f32 %v9025_v49, %v11824_v43  ;;  %v783_v35 = vmul.f32 %v9015_v51, %v11825_v34  ;;  %v782_v42 = vmul.f32 %v9015_v51, %v11826_v11  ;;  %v848_v59 = vadd.f32 %v784_v58, %v9077_v22 }
 0x20b   :  { %v1563_v32 = vadd.f32 %v1330_v39, %v1243_v54  ;;  %2955 = vmatpush1.bf16.msra.mxu0 %v1784_v40  ;;  %7010 = vset.pattern.permute.xlu0 %v7867_v0  ;;  %v849_v41 = vadd.f32 %v785_v25, %v461_v46  ;;  %v1560_v61 = vadd.f32 %v1318_v6, %v1240_v23  ;;  %v11829_v6 = vld [vmem:[#allocation105_spill] sm:$0xff]  ;;  %v7676_v46 = vld [vmem:[%s11562_s2 + $0x1e8] sm:$0xff] }
 0x20c   :  { %6949 = vmatpush1.bf16.msra.mxu1 %v1784_v40  ;;  %2956 = vmatprep.subr.bf16.mxu0 %v11812_v57  ;;  %v459_v56 = vmul.f32 %v9025_v49, %v11827_v14  ;;  %v1172_v22 = vmul.f32 %v9030_v62, %v8842_v15  ;;  %v1173_v40 = vmul.f32 %v9030_v62, %v8844_v28 }
 0x20d   :  { %v1783_v60 = vpack.c.bf16 %v1563_v32, %v1562_v21  ;;  %6934 = vmatprep.subr.bf16.mxu1 %v11812_v57  ;;  %1817 = vperm.xlu0 %7010, %v8507_v50   ;;  %v9181_v50 = vld [vmem:[%s11562_s2 + $0x1e0] sm:$0xff]  ;;  %v1238_v54 = vadd.f32 %v1174_v37, %v848_v59  ;;  %v1239_v58 = vadd.f32 %v1175_v30, %v849_v41 }
 0x20e   :  { %6996 = vset.pattern.permute.xlu1 %v11773_v13  ;;  %v1310_v7 = vpop.permute.xlu1 %1309  ;;  %v1322_v63 = vpop.permute.xlu0 %1321  ;;  %v489_v25 = vmul.f32 %v9025_v49, %v11828_v3  ;;  %v847_v26 = vadd.f32 %v783_v35, %v459_v56  ;;  %v846_v18 = vadd.f32 %v782_v42, %v458_v1  ;;  %v812_v15 = vmul.f32 %v9015_v51, %v11829_v6  ;;  %v11832_v1 = vld [vmem:[#allocation43_spill] sm:$0xff]  ;;  %v11837_v3 = vld [vmem:[#allocation101_spill] sm:$0xff] }
 0x20f   :  { %v1561_v8 = vadd.f32 %v1322_v63, %v1241_v55  ;;  %1541 = vperm.xlu1 %6996, %v9181_v50   ;;  %2957 = vmatpush1.bf16.msra.mxu0 %v1783_v60  ;;  %v813_v21 = vmul.f32 %v9015_v51, %v11830_v45  ;;  %v1558_v32 = vadd.f32 %v1310_v7, %v1238_v54  ;;  %v11833_v35 = vld [vmem:[#allocation103_spill] sm:$0xff] }
 0x210   :  { %6950 = vmatpush1.bf16.msra.mxu1 %v1783_v60  ;;  %2958 = vmatprep.subr.bf16.mxu0 %v11812_v57  ;;  %v1202_v23 = vmul.f32 %v9030_v62, %v8946_v36  ;;  %v1236_v30 = vadd.f32 %v1172_v22, %v846_v18  ;;  %v1203_v60 = vmul.f32 %v9030_v62, %v8957_v38  ;;  %v11834_v36 = vld [vmem:[#allocation104_spill] sm:$0xff] }
 0x211   :  { %v1782_v5 = vpack.c.bf16 %v1561_v8, %v1560_v61  ;;  %6935 = vmatprep.subr.bf16.mxu1 %v11812_v57  ;;  %1829 = vperm.xlu0 %7010, %v8523_v27   ;;  %v11831_v27 = vld [vmem:[#allocation46_spill] sm:$0xff]  ;;  %v1237_v43 = vadd.f32 %v1173_v40, %v847_v26  ;;  %v487_v34 = vmul.f32 %v9025_v49, %v11832_v1  ;;  %v11835_v8 = vld [vmem:[#allocation44_spill] sm:$0xff] }
 0x212   :  { %v1302_v39 = vpop.permute.xlu1 %1301  ;;  %v1314_v28 = vpop.permute.xlu0 %1313  ;;  %v488_v37 = vmul.f32 %v9025_v49, %v11831_v27  ;;  %v810_v11 = vmul.f32 %v9015_v51, %v11833_v35  ;;  %v811_v42 = vmul.f32 %v9015_v51, %v11834_v36  ;;  %v877_v41 = vadd.f32 %v813_v21, %v489_v25  ;;  %v9225_v22 = vld [vmem:[%s11562_s2 + $0x1c8] sm:$0xff]  ;;  %v11839_v21 = vld [vmem:[#allocation42_spill] sm:$0xff] }
 0x213   :  { %v1559_v29 = vadd.f32 %v1314_v28, %v1239_v58  ;;  %1545 = vperm.xlu1 %6996, %v7676_v46   ;;  %2959 = vmatpush1.bf16.msra.mxu0 %v1782_v5  ;;  %v1556_v38 = vadd.f32 %v1302_v39, %v1236_v30  ;;  %v1200_v14 = vmul.f32 %v9030_v62, %v8937_v47  ;;  %v11836_v58 = vld [vmem:[#allocation41_spill] sm:$0xff]  ;;  %v11840_v30 = vld [vmem:[#allocation39_spill] sm:$0xff] }
 0x214   :  { %6951 = vmatpush1.bf16.msra.mxu1 %v1782_v5  ;;  %2960 = vmatprep.subr.bf16.mxu0 %v11812_v57  ;;  %v876_v59 = vadd.f32 %v812_v15, %v488_v37  ;;  %v1201_v40 = vmul.f32 %v9030_v62, %v8949_v10  ;;  %v1267_v5 = vadd.f32 %v1203_v60, %v877_v41  ;;  %v11838_v15 = vld [vmem:[#allocation102_spill] sm:$0xff] }
 0x215   :  { %v1781_v55 = vpack.c.bf16 %v1559_v29, %v1558_v32  ;;  %6936 = vmatprep.subr.bf16.mxu1 %v11812_v57  ;;  %1837 = vperm.xlu0 %7010, %v8539_v12   ;;  %v486_v12 = vmul.f32 %v9025_v49, %v11835_v8  ;;  %v485_v47 = vmul.f32 %v9025_v49, %v11836_v58  ;;  %v7678_v37 = vld [vmem:[%s11562_s2 + $0x1d8] sm:$0xff] }
 0x216   :  { %v1422_v7 = vpop.permute.xlu1 %1421  ;;  %v1306_v63 = vpop.permute.xlu0 %1305  ;;  %v1266_v56 = vadd.f32 %v1202_v23, %v876_v59  ;;  %v808_v25 = vmul.f32 %v9015_v51, %v11837_v3  ;;  %v809_v10 = vmul.f32 %v9015_v51, %v11838_v15  ;;  %v875_v39 = vadd.f32 %v811_v42, %v487_v34  ;;  %v11843_v59 = vld [vmem:[#allocation40_spill] sm:$0xff]  ;;  %v11844_v8 = vld [vmem:[#allocation97_spill] sm:$0xff] }
 0x217   :  { %v1557_v61 = vadd.f32 %v1306_v63, %v1237_v43  ;;  %6997 = vset.pattern.permute.xlu1 %v11771_v9  ;;  %2961 = vmatpush1.bf16.msra.mxu0 %v1781_v55  ;;  %v874_v26 = vadd.f32 %v810_v11, %v486_v12  ;;  %v484_v32 = vmul.f32 %v9025_v49, %v11839_v21  ;;  %v11846_v3 = vld [vmem:[#allocation37_spill] sm:$0xff]  ;;  %v11849_v21 = vld [vmem:[#allocation95_spill] sm:$0xff] }
 0x218   :  { %6952 = vmatpush1.bf16.msra.mxu1 %v1781_v55  ;;  %1139 = vperm.xlu1 %6997, %v9225_v22   ;;  %v1586_v28 = vadd.f32 %v1422_v7, %v1266_v56  ;;  %v1198_v29 = vmul.f32 %v9030_v62, %v8929_v2  ;;  %v1265_v23 = vadd.f32 %v1201_v40, %v875_v39  ;;  %v11841_v2 = vld [vmem:[#allocation99_spill] sm:$0xff] }
 0x219   :  { %v1780_v54 = vpack.c.bf16 %v1557_v61, %v1556_v38  ;;  %2962 = vmatprep.subr.bf16.mxu0 %v11812_v57  ;;  %6937 = vmatprep.subr.bf16.mxu1 %v11812_v57  ;;  %v1264_v46 = vadd.f32 %v1200_v14, %v874_v26  ;;  %v483_v60 = vmul.f32 %v9025_v49, %v11840_v30  ;;  %v11845_v14 = vld [vmem:[#allocation98_spill] sm:$0xff] }
 0x21a   :  { %v1414_v18 = vpop.permute.xlu1 %1413  ;;  %v1426_v6 = vpop.permute.xlu0 %1425  ;;  %1845 = vperm.xlu0 %7010, %v8555_v16   ;;  %v1199_v16 = vmul.f32 %v9030_v62, %v8944_v48  ;;  %v806_v55 = vmul.f32 %v9015_v51, %v11841_v2  ;;  %v872_v43 = vadd.f32 %v808_v25, %v484_v32  ;;  %v11842_v48 = vld [vmem:[#allocation100_spill] sm:$0xff]  ;;  %v873_v11 = vadd.f32 %v809_v10, %v485_v47  ;;  %v11847_v26 = vld [vmem:[#allocation38_spill] sm:$0xff] }
 0x21b   :  { %v1587_v45 = vadd.f32 %v1426_v6, %v1267_v5  ;;  %2963 = vmatpush1.bf16.msra.mxu0 %v1780_v54  ;;  %v807_v35 = vmul.f32 %v9015_v51, %v11842_v48  ;;  %v1584_v36 = vadd.f32 %v1414_v18, %v1264_v46  ;;  %v482_v7 = vmul.f32 %v9025_v49, %v11843_v59 }
 0x21c   :  { %6953 = vmatpush1.bf16.msra.mxu1 %v1780_v54  ;;  %6998 = vset.pattern.permute.xlu1 %v11773_v13  ;;  %v1196_v63 = vmul.f32 %v9030_v62, %v8920_v52  ;;  %v1262_v41 = vadd.f32 %v1198_v29, %v872_v43  ;;  %v1263_v61 = vadd.f32 %v1199_v16, %v873_v11  ;;  %v9274_v52 = vld [vmem:[%s11562_s2 + $0x1b0] sm:$0xff] }
 0x21d   :  { %v1795_v27 = vpack.c.bf16 %v1587_v45, %v1586_v28  ;;  %1537 = vperm.xlu1 %6998, %v7678_v37   ;;  %2964 = vmatprep.subr.bf16.mxu0 %v11812_v57  ;;  %v804_v12 = vmul.f32 %v9015_v51, %v11844_v8  ;;  %v805_v56 = vmul.f32 %v9015_v51, %v11845_v14  ;;  %v11848_v28 = vld [vmem:[#allocation94_spill] sm:$0xff] }
 0x21e   :  { %v1406_v1 = vpop.permute.xlu1 %1405  ;;  %v1418_v34 = vpop.permute.xlu0 %1417  ;;  %6938 = vmatprep.subr.bf16.mxu1 %v11812_v57  ;;  %1853 = vperm.xlu0 %7010, %v8571_v20   ;;  %v1197_v20 = vmul.f32 %v9030_v62, %v8935_v33  ;;  %v870_v54 = vadd.f32 %v806_v55, %v482_v7  ;;  %v871_v5 = vadd.f32 %v807_v35, %v483_v60  ;;  %v9297_v37 = vld [vmem:[%s11562_s2 + $0x1c0] sm:$0xff]  ;;  %v11851_v60 = vld [vmem:[#allocation36_spill] sm:$0xff] }
 0x21f   :  { %v1585_v42 = vadd.f32 %v1418_v34, %v1265_v23  ;;  %2965 = vmatpush2.bf16.msra.mxu0 %v1795_v27  ;;  %v1582_v58 = vadd.f32 %v1406_v1, %v1262_v41  ;;  %v481_v25 = vmul.f32 %v9025_v49, %v11846_v3  ;;  %v480_v18 = vmul.f32 %v9025_v49, %v11847_v26  ;;  %v11850_v23 = vld [vmem:[#allocation35_spill] sm:$0xff]  ;;  %v11852_v55 = vld [vmem:[#allocation144_spill] sm:$0xff]  ;;  %v11860_v26 = vld [vmem:[#allocation93_spill] sm:$0xff] }
 0x220   :  { %6954 = vmatpush2.bf16.msra.mxu1 %v1795_v27  ;;  %2966 = vmatprep.subr.bf16.mxu0 %v11812_v57  ;;  %v1194_v6 = vmul.f32 %v9030_v62, %v8910_v19  ;;  %v1260_v15 = vadd.f32 %v1196_v63, %v870_v54  ;;  %v1261_v39 = vadd.f32 %v1197_v20, %v871_v5  ;;  %v11853_v35 = vld [vmem:[#allocation91_spill] sm:$0xff]  ;;  %v11855_v63 = vld [vmem:[#allocation90_spill] sm:$0xff] }
 0x221   :  { %v1794_v38 = vpack.c.bf16 %v1585_v42, %v1584_v36  ;;  %6999 = vset.pattern.permute.xlu1 %v11771_v9  ;;  %6939 = vmatprep.subr.bf16.mxu1 %v11812_v57  ;;  %v802_v45 = vmul.f32 %v9015_v51, %v11848_v28  ;;  %v803_v32 = vmul.f32 %v9015_v51, %v11849_v21  ;;  %v11854_v36 = vld [vmem:[#allocation92_spill] sm:$0xff] }
 0x222   :  { %1127 = vperm.xlu1 %6999, %v9274_v52   ;;  %v1398_v33 = vpop.permute.xlu1 %1397  ;;  %v1410_v40 = vpop.permute.xlu0 %1409  ;;  %1861 = vperm.xlu0 %7010, %v8587_v24   ;;  %v1195_v24 = vmul.f32 %v9030_v62, %v8927_v17  ;;  %v868_v29 = vadd.f32 %v804_v12, %v480_v18  ;;  %v869_v16 = vadd.f32 %v805_v56, %v481_v25  ;;  %v11857_v12 = vld [vmem:[#allocation34_spill] sm:$0xff]  ;;  %v11858_v56 = vld [vmem:[#allocation141_spill] sm:$0xff]  ;;  %v11861_v21 = vld [vmem:[#allocation96_spill] sm:$0xff] }
 0x223   :  { %v1583_v47 = vadd.f32 %v1410_v40, %v1263_v61  ;;  %2967 = vmatpush2.bf16.msra.mxu0 %v1794_v38  ;;  %v1580_v17 = vadd.f32 %v1398_v33, %v1260_v15  ;;  %v479_v30 = vmul.f32 %v9025_v49, %v11850_v23  ;;  %v478_v2 = vmul.f32 %v9025_v49, %v11851_v60  ;;  %v11856_v61 = vld [vmem:[#allocation33_spill] sm:$0xff]  ;;  %v11859_v40 = vld [vmem:[#allocation143_spill] sm:$0xff] }
 0x224   :  { %6955 = vmatpush2.bf16.msra.mxu1 %v1794_v38  ;;  %2968 = vmatprep.subr.bf16.mxu0 %v11812_v57  ;;  %v1193_v43 = vmul.f32 %v9030_v62, %v11852_v55  ;;  %v1258_v1 = vadd.f32 %v1194_v6, %v868_v29  ;;  %v1259_v48 = vadd.f32 %v1195_v24, %v869_v16  ;;  %v9331_v15 = vld [vmem:[%s11562_s2 + $0x1a8] sm:$0xff]  ;;  %v7683_v60 = vld [vmem:[%s11562_s2 + $0xb0] sm:$0xff] }
 0x225   :  { %v1793_v10 = vpack.c.bf16 %v1583_v47, %v1582_v58  ;;  %6940 = vmatprep.subr.bf16.mxu1 %v11812_v57  ;;  %v800_v11 = vmul.f32 %v9015_v51, %v11853_v35  ;;  %v801_v42 = vmul.f32 %v9015_v51, %v11854_v36  ;;  %v866_v59 = vadd.f32 %v802_v45, %v478_v2  ;;  %v11864_v2 = vld [vmem:[#allocation31_spill] sm:$0xff]  ;;  %v11865_v55 = vld [vmem:[#allocation32_spill] sm:$0xff] }
 0x226   :  { %7000 = vset.pattern.permute.xlu1 %v11773_v13  ;;  %v1390_v19 = vpop.permute.xlu1 %1389  ;;  %v1402_v46 = vpop.permute.xlu0 %1401  ;;  %1869 = vperm.xlu0 %7010, %v8603_v31   ;;  %v1192_v31 = vmul.f32 %v9030_v62, %v8902_v44  ;;  %v867_v41 = vadd.f32 %v803_v32, %v479_v30  ;;  %v477_v8 = vmul.f32 %v9025_v49, %v11856_v61  ;;  %v9345_v30 = vld [vmem:[%s11562_s2 + $0x1b8] sm:$0xff] }
 0x227   :  { %v1581_v27 = vadd.f32 %v1402_v46, %v1261_v39  ;;  %1525 = vperm.xlu1 %7000, %v9297_v37   ;;  %2969 = vmatpush2.bf16.msra.mxu0 %v1793_v10  ;;  %v1578_v20 = vadd.f32 %v1390_v19, %v1258_v1  ;;  %v476_v14 = vmul.f32 %v9025_v49, %v11857_v12  ;;  %v11862_v46 = vld [vmem:[#allocation88_spill] sm:$0xff]  ;;  %v11870_v12 = vld [vmem:[#allocation62_spill] sm:$0xff] }
 0x228   :  { %6956 = vmatpush2.bf16.msra.mxu1 %v1793_v10  ;;  %2970 = vmatprep.subr.bf16.mxu0 %v11812_v57  ;;  %v1190_v33 = vmul.f32 %v9030_v62, %v11858_v56  ;;  %v1191_v54 = vmul.f32 %v9030_v62, %v11859_v40  ;;  %v1256_v5 = vadd.f32 %v1192_v31, %v866_v59  ;;  %v11866_v1 = vld [vmem:[#allocation140_spill] sm:$0xff]  ;;  %v7684_v59 = vld [vmem:[%s11562_s2 + $0xc0] sm:$0xff] }
 0x229   :  { %v1792_v34 = vpack.c.bf16 %v1581_v27, %v1580_v17  ;;  %6941 = vmatprep.subr.bf16.mxu1 %v11812_v57  ;;  %v1257_v47 = vadd.f32 %v1193_v43, %v867_v41  ;;  %v865_v18 = vadd.f32 %v801_v42, %v477_v8  ;;  %v798_v16 = vmul.f32 %v9015_v51, %v11862_v46  ;;  %v11863_v17 = vld [vmem:[#allocation89_spill] sm:$0xff]  ;;  %v11868_v41 = vld [vmem:[#allocation122_spill] sm:$0xff]  ;;  %v11869_v8 = vld [vmem:[#allocation111_spill] sm:$0xff] }
 0x22a   :  { %v1382_v7 = vpop.permute.xlu1 %1381  ;;  %v1394_v44 = vpop.permute.xlu0 %1393  ;;  %1877 = vperm.xlu0 %7010, %v11855_v63   ;;  %v799_v27 = vmul.f32 %v9015_v51, %v11863_v17  ;;  %v475_v31 = vmul.f32 %v9025_v49, %v11864_v2  ;;  %v474_v43 = vmul.f32 %v9025_v49, %v11865_v55  ;;  %v11871_v56 = vld [vmem:[#allocation123_spill] sm:$0xff] }
 0x22b   :  { %v1579_v38 = vadd.f32 %v1394_v44, %v1259_v48  ;;  %1529 = vperm.xlu1 %7000, %v9225_v22   ;;  %2971 = vmatpush2.bf16.msra.mxu0 %v1792_v34  ;;  %v864_v22 = vadd.f32 %v800_v11, %v476_v14  ;;  %v1576_v6 = vadd.f32 %v1382_v7, %v1256_v5  ;;  %v11867_v48 = vld [vmem:[#allocation142_spill] sm:$0xff] }
 0x22c   :  { %6957 = vmatpush2.bf16.msra.mxu1 %v1792_v34  ;;  %2972 = vmatprep.subr.bf16.mxu0 %v11812_v57  ;;  %v1255_v28 = vadd.f32 %v1191_v54, %v865_v18  ;;  %v1188_v34 = vmul.f32 %v9030_v62, %v11866_v1  ;;  %v1189_v35 = vmul.f32 %v9030_v62, %v11867_v48  ;;  %v9380_v5 = vld [vmem:[%s11562_s2 + $0x1a0] sm:$0xff]  ;;  %v11875_v1 = vld [vmem:[#allocation120_spill] sm:$0xff] }
 0x22d   :  { %v1791_v58 = vpack.c.bf16 %v1579_v38, %v1578_v20  ;;  %6942 = vmatprep.subr.bf16.mxu1 %v11812_v57  ;;  %v1254_v10 = vadd.f32 %v1190_v33, %v864_v22  ;;  %v862_v36 = vadd.f32 %v798_v16, %v474_v43  ;;  %v863_v42 = vadd.f32 %v799_v27, %v475_v31  ;;  %v11872_v22 = vld [vmem:[#allocation61_spill] sm:$0xff]  ;;  %v11874_v31 = vld [vmem:[#allocation86_spill] sm:$0xff] }
 0x22e   :  { %v1374_v3 = vpop.permute.xlu1 %1373  ;;  %v1386_v25 = vpop.permute.xlu0 %1385  ;;  %1885 = vperm.xlu0 %7010, %v11860_v26   ;;  %v828_v20 = vmul.f32 %v9015_v51, %v11868_v41  ;;  %v504_v14 = vmul.f32 %v9025_v49, %v11870_v12  ;;  %v829_v33 = vmul.f32 %v9015_v51, %v11871_v56  ;;  %v11873_v26 = vld [vmem:[#allocation158_spill] sm:$0xff]  ;;  %v7058_v43 = vld [vmem:[#allocation2 + $0x444] ss:$16 sps:$4 sm:$0xff]  }
 0x22f   :  { %v1577_v24 = vadd.f32 %v1386_v25, %v1257_v47  ;;  %7001 = vset.pattern.permute.xlu1 %v11771_v9  ;;  %2973 = vmatpush2.bf16.msra.mxu0 %v1791_v58  ;;  %v1574_v32 = vadd.f32 %v1374_v3, %v1254_v10  ;;  %v1252_v7 = vadd.f32 %v1188_v34, %v862_v36  ;;  %v7019_v47 = vld [vmem:[#allocation2 + $0x400] ss:$16 sps:$4 sm:$0xff]   ;;  %v7052_v10 = vld [vmem:[#allocation2 + $0x424] ss:$16 sps:$4 sm:$0xff]  }
 0x230   :  { %6958 = vmatpush2.bf16.msra.mxu1 %v1791_v58  ;;  %1123 = vperm.xlu1 %7001, %v9331_v15   ;;  %v1253_v44 = vadd.f32 %v1189_v35, %v863_v42  ;;  %v7016_v58 = vld [vmem:[#allocation2] ss:$16 sps:$4 sm:$0xff]   ;;  %v505_v3 = vmul.f32 %v9025_v49, %v11872_v22  ;;  %v892_v25 = vadd.f32 %v828_v20, %v504_v14 }
 0x231   :  { %v1790_v39 = vpack.c.bf16 %v1577_v24, %v1576_v6  ;;  %2974 = vmatprep.subr.bf16.mxu0 %v11812_v57  ;;  %6943 = vmatprep.subr.bf16.mxu1 %v11812_v57  ;;  %v1219_v18 = vmul.f32 %v9030_v62, %v11873_v26  ;;  %v7022_v24 = vld [vmem:[#allocation2 + $0x24] ss:$16 sps:$4 sm:$0xff]   ;;  %v7024_v27 = vld [vmem:[#allocation2 + $0x20] ss:$16 sps:$4 sm:$0xff]   ;;  %v826_v34 = vmul.f32 %v9015_v51, %v11875_v1 }
 0x232   :  { %v1378_v45 = vpop.permute.xlu0 %1377  ;;  %1893 = vperm.xlu0 %7010, %v11861_v21   ;;  %v7054_v2 = vld [vmem:[#allocation2 + $0x420] ss:$16 sps:$4 sm:$0xff]  }
 0x233   :  { %v1575_v29 = vadd.f32 %v1378_v45, %v1255_v28  ;;  %v1096_v19 = vpop.permute.xlu1 %1095  ;;  %2975 = vmatpush2.bf16.msra.mxu0 %v1790_v39  ;;  %v7686_v28 = vld [vmem:[%s11562_s2 + $0xe8] sm:$0xff]  ;;  %v893_v45 = vadd.f32 %v829_v33, %v505_v3  ;;  %v7027_v12 = vld [vmem:[#allocation2 + $0x40] ss:$16 sps:$4 sm:$0xff]  }
 0x234   :  { %6959 = vmatpush2.bf16.msra.mxu1 %v1790_v39  ;;  %7003 = vset.pattern.permute.xlu1 %v11773_v13  ;;  %v1218_v40 = vmul.f32 %v9030_v62, %v1096_v19  ;;  %v7687_v19 = vld [vmem:[%s11562_s2 + $0xd8] sm:$0xff]  ;;  %v11877_v35 = vld [vmem:[#allocation87_spill] sm:$0xff]  ;;  %v11879_v36 = vld [vmem:[#allocation60_spill] sm:$0xff] }
 0x235   :  { %v1789_v23 = vpack.c.bf16 %v1575_v29, %v1574_v32  ;;  %1521 = vperm.xlu1 %7003, %v9345_v30   ;;  %2976 = vmatprep.subr.bf16.mxu0 %v11812_v57  ;;  %v1283_v32 = vadd.f32 %v1219_v18, %v893_v45  ;;  %v502_v42 = vmul.f32 %v9025_v49, %v11879_v36  ;;  %v11882_v20 = vld [vmem:[#allocation156_spill] sm:$0xff]  ;;  %v11884_v14 = vld [vmem:[#allocation58_spill] sm:$0xff]  ;;  %v11886_v22 = vld [vmem:[#allocation57_spill] sm:$0xff] }
 0x236   :  { %6944 = vmatprep.subr.bf16.mxu1 %v11812_v57  ;;  %1901 = vperm.xlu0 %7010, %v7683_v60   ;;  %v1486_v39 = vpop.permute.xlu0 %1485  ;;  %v1282_v21 = vadd.f32 %v1218_v40, %v892_v25  ;;  %v7025_v60 = vld [vmem:[#allocation2 + $0x44] ss:$16 sps:$4 sm:$0xff]   ;;  %v500_v56 = vmul.f32 %v9025_v49, %v11884_v14  ;;  %v501_v3 = vmul.f32 %v9025_v49, %v11886_v22  ;;  %v7060_v25 = vld [vmem:[#allocation2 + $0x440] ss:$16 sps:$4 sm:$0xff]  }
 0x237   :  { %2977 = vmatpush2.bf16.msra.mxu0 %v1789_v23  ;;  %v890_v33 = vadd.f32 %v826_v34, %v502_v42  ;;  %v11887_v18 = vld [vmem:[#allocation161_spill] sm:$0xff]  ;;  %v11889_v45 = vld [vmem:[#allocation116_spill] sm:$0xff]  ;;  %v11893_v1 = vld [vmem:[#allocation155_spill] sm:$0xff] }
 0x238   :  { %6960 = vmatpush2.bf16.msra.mxu1 %v1789_v23  ;;  %v1366_v11 = vpop.permute.xlu1 %1365  ;;  %2978 = vmatprep.subr.bf16.mxu0 %v11812_v57  ;;  %v1602_v46 = vadd.f32 %v1486_v39, %v1282_v21  ;;  %v11888_v39 = vld [vmem:[#allocation153_spill] sm:$0xff]  ;;  %v822_v21 = vmul.f32 %v9015_v51, %v11889_v45  ;;  %v1212_v34 = vmul.f32 %v9030_v62, %v11893_v1  ;;  %v11896_v36 = vld [vmem:[#allocation114_spill] sm:$0xff] }
 0x239   :  { %7004 = vset.pattern.permute.xlu1 %v11771_v9  ;;  %6945 = vmatprep.subr.bf16.mxu1 %v11812_v57  ;;  %v1572_v38 = vadd.f32 %v1366_v11, %v1252_v7  ;;  %v820_v42 = vmul.f32 %v9015_v51, %v11896_v36  ;;  %v7689_v22 = vld [vmem:[%s11562_s2 + $0x10] sm:$0xff]  ;;  %v7690_v1 = vld [vmem:[%s11562_s2 + $0x18] sm:$0xff] }
 0x23a   :  { %1111 = vperm.xlu1 %7004, %v9119_v4   ;;  %1909 = vperm.xlu0 %7010, %v7684_v59   ;;  %v9397_v17 = vpop.permute.xlu0 %1469  ;;  %v11910_v36 = vld [vmem:[#allocation110_spill] sm:$0xff] }
 0x23c   :  { %v1370_v63 = vpop.permute.xlu1 %1369 }
 0x23d   :  { %v1573_v61 = vadd.f32 %v1370_v63, %v1253_v44  ;;  %v11881_v44 = vld [vmem:[#allocation160_spill] sm:$0xff] }
 0x23e   :  { %7005 = vset.pattern.permute.xlu1 %v11773_v13  ;;  %1937 = vperm.xlu0 %7010, %v11869_v8   ;;  %v9411_v59 = vpop.permute.xlu0 %1465  ;;  %v1216_v63 = vmul.f32 %v9030_v62, %v11881_v44 }
 0x23f   :  { %v1788_v54 = vpack.c.bf16 %v1573_v61, %v1572_v38  ;;  %1509 = vperm.xlu1 %7005, %v9380_v5   ;;  %v11883_v38 = vld [vmem:[#allocation119_spill] sm:$0xff] }
 0x240   :  { %v825_v61 = vmul.f32 %v9015_v51, %v11883_v38 }
 0x241   :  { %v1092_v6 = vpop.permute.xlu1 %1091  ;;  %2979 = vmatpush2.bf16.msra.mxu0 %v1788_v54  ;;  %6961 = vmatpush2.bf16.msra.mxu1 %v1788_v54 }
 0x242   :  { %3301 = vmatprep.subr.bf16.mxu1 %v11812_v57  ;;  %1929 = vperm.xlu0 %7010, %v7686_v28   ;;  %v1217_v41 = vmul.f32 %v9030_v62, %v1092_v6  ;;  %v1215_v6 = vmul.f32 %v9030_v62, %v11887_v18  ;;  %v7064_v28 = vld [vmem:[#allocation2 + $0x464] ss:$16 sps:$4 sm:$0xff]  }
 0x243   :  { %1513 = vperm.xlu1 %7005, %v9331_v15   ;;  %5014 = vmatprep.subr.bf16.mxu0 %v11812_v57 }
 0x244   :  { %2981 = vmatmul.mubr.bf16.vlgmr.msra.gmra.mxu0 %v7016_v58  ;;  %3237 = vmatmul.mubr.bf16.vlgmr.msra.gmra.mxu1 %v7019_v47  ;;  %v11885_v58 = vld [vmem:[#allocation29_spill] sm:$0xff] }
 0x245   :  { %2988 = vmatprep.mubr.bf16.mxu0 %v7022_v24  ;;  %3244 = vmatprep.mubr.bf16.mxu1 %v7052_v10  ;;  %v7028_v47 = vld [vmem:[#allocation2 + $0x64] ss:$16 sps:$4 sm:$0xff]   ;;  %v1280_v24 = vadd.f32 %v1216_v63, %v890_v33  ;;  %v7030_v63 = vld [vmem:[#allocation2 + $0x60] ss:$16 sps:$4 sm:$0xff]  }
 0x246   :  { %v1490_v29 = vpop.permute.xlu1 %1489  ;;  %1921 = vperm.xlu0 %7010, %v7687_v19   ;;  %v889_v19 = vadd.f32 %v825_v61, %v501_v3 }
 0x247   :  { %v1603_v16 = vadd.f32 %v1490_v29, %v1283_v32  ;;  %7006 = vset.pattern.permute.xlu1 %v11771_v9  ;;  %v11876_v9 = vld [vmem:[#allocation121_spill] sm:$0xff] }
 0x248   :  { %1107 = vperm.xlu1 %7006, %v9141_v53   ;;  %v827_v48 = vmul.f32 %v9015_v51, %v11876_v9  ;;  %v11878_v53 = vld [vmem:[#allocation59_spill] sm:$0xff]  ;;  %v11890_v32 = vld [vmem:[#allocation117_spill] sm:$0xff] }
 0x249   :  { %v1803_v23 = vpack.c.bf16 %v1603_v16, %v1602_v46  ;;  %v503_v11 = vmul.f32 %v9025_v49, %v11878_v53  ;;  %v823_v29 = vmul.f32 %v9015_v51, %v11890_v32  ;;  %v9435_v46 = vpop.permute.xlu0 %1457  ;;  %v7688_v9 = vld [vmem:[%s11562_s2] sm:$0xff]  ;;  %v1279_v53 = vadd.f32 %v1215_v6, %v889_v19 }
 0x24a   :  { %1941 = vperm.xlu0 %7010, %v11874_v31   ;;  %v7066_v6 = vld [vmem:[#allocation2 + $0x460] ss:$16 sps:$4 sm:$0xff]  }
 0x24b   :  { %v1080_v55 = vpop.permute.xlu1 %1079  ;;  %3302 = vmatpush1.bf16.msra.mxu1 %v1803_v23  ;;  %v891_v40 = vadd.f32 %v827_v48, %v503_v11  ;;  %v11894_v48 = vld [vmem:[#allocation159_spill] sm:$0xff]  ;;  %v11895_v11 = vld [vmem:[#allocation150_spill] sm:$0xff] }
 0x24c   :  { %7008 = vset.pattern.permute.xlu1 %v11773_v13  ;;  %2989 = vmatmul.mubr.bf16.gmra.mxu0 %v7024_v27  ;;  %v11880_v13 = vld [vmem:[#allocation118_spill] sm:$0xff]  ;;  %v1214_v54 = vmul.f32 %v9030_v62, %v1080_v55  ;;  %v11892_v55 = vld [vmem:[#allocation56_spill] sm:$0xff] }
 0x24d   :  { %1505 = vperm.xlu1 %7008, %v11877_v35   ;;  %2996 = vmatprep.mubr.bf16.mxu0 %v7025_v60  ;;  %v824_v7 = vmul.f32 %v9015_v51, %v11880_v13  ;;  %v1281_v10 = vadd.f32 %v1217_v41, %v891_v40  ;;  %v1213_v35 = vmul.f32 %v9030_v62, %v11894_v48  ;;  %v11897_v13 = vld [vmem:[#allocation115_spill] sm:$0xff]  ;;  %v11900_v40 = vld [vmem:[#allocation152_spill] sm:$0xff] }
 0x24e   :  { %3303 = vmatprep.subr.bf16.mxu1 %v11812_v57  ;;  %3245 = vmatmul.mubr.bf16.gmra.mxu1 %v7054_v2  ;;  %v11891_v2 = vld [vmem:[#allocation55_spill] sm:$0xff] }
 0x24f   :  { %1949 = vperm.xlu0 %7010, %v11882_v20   ;;  %3252 = vmatprep.mubr.bf16.mxu1 %v7058_v43  ;;  %v888_v26 = vadd.f32 %v824_v7, %v500_v56  ;;  %v499_v31 = vmul.f32 %v9025_v49, %v11891_v2  ;;  %v498_v43 = vmul.f32 %v9025_v49, %v11892_v55  ;;  %v11899_v56 = vld [vmem:[#allocation54_spill] sm:$0xff]  ;;  %v11906_v2 = vld [vmem:[#allocation52_spill] sm:$0xff]  ;;  %v11907_v55 = vld [vmem:[#allocation149_spill] sm:$0xff] }
 0x250   :  { %v1478_v8 = vpop.permute.xlu1 %1477  ;;  %v821_v7 = vmul.f32 %v9015_v51, %v11897_v13  ;;  %v496_v33 = vmul.f32 %v9025_v49, %v11899_v56 }
 0x251   :  { %1493 = vperm.xlu1 %7008, %v11885_v58   ;;  %v1278_v27 = vadd.f32 %v1214_v54, %v888_v26  ;;  %v1600_v23 = vadd.f32 %v1478_v8, %v1280_v24  ;;  %v886_v41 = vadd.f32 %v822_v21, %v498_v43  ;;  %v887_v20 = vadd.f32 %v823_v29, %v499_v31  ;;  %v7031_v8 = vld [vmem:[#allocation2 + $0x84] ss:$16 sps:$4 sm:$0xff]  }
 0x252   :  { %v1210_v54 = vmul.f32 %v9030_v62, %v11900_v40  ;;  %v11902_v24 = vld [vmem:[#allocation147_spill] sm:$0xff]  ;;  %v11905_v21 = vld [vmem:[#allocation113_spill] sm:$0xff]  ;;  %v884_v29 = vadd.f32 %v820_v42, %v496_v33  ;;  %v494_v31 = vmul.f32 %v9025_v49, %v11906_v2  ;;  %v1208_v43 = vmul.f32 %v9030_v62, %v11907_v55  ;;  %v11913_v33 = vld [vmem:[#allocation146_spill] sm:$0xff] }
 0x253   :  { %1957 = vperm.xlu0 %7010, %v11888_v39   ;;  %v1598_v38 = vadd.f32 %v9397_v17, %v1278_v27  ;;  %v11901_v17 = vld [vmem:[#allocation157_spill] sm:$0xff]  ;;  %v1276_v18 = vadd.f32 %v1212_v34, %v886_v41  ;;  %v819_v32 = vmul.f32 %v9015_v51, %v11905_v21  ;;  %v817_v42 = vmul.f32 %v9015_v51, %v11910_v36  ;;  %v7692_v40 = vld [vmem:[%s11562_s2 + $0x28] sm:$0xff] }
 0x254   :  { %v1482_v16 = vpop.permute.xlu1 %1481  ;;  %2997 = vmatmul.mubr.bf16.gmra.mxu0 %v7027_v12  ;;  %v11898_v12 = vld [vmem:[#allocation53_spill] sm:$0xff]  ;;  %v1211_v3 = vmul.f32 %v9030_v62, %v11901_v17  ;;  %v1274_v34 = vadd.f32 %v1210_v54, %v884_v29 }
 0x255   :  { %v1601_v60 = vadd.f32 %v1482_v16, %v1281_v10  ;;  %7009 = vset.pattern.permute.xlu1 %v7867_v0  ;;  %3004 = vmatprep.mubr.bf16.mxu0 %v7028_v47  ;;  %v497_v14 = vmul.f32 %v9025_v49, %v11898_v12  ;;  %v9461_v47 = vpop.permute.xlu0 %1449  ;;  %v11903_v10 = vld [vmem:[#allocation51_spill] sm:$0xff] }
 0x256   :  { %1813 = vperm.xlu1 %7009, %v7688_v9   ;;  %3253 = vmatmul.mubr.bf16.gmra.mxu1 %v7060_v25  ;;  %v1277_v25 = vadd.f32 %v1213_v35, %v887_v20  ;;  %v495_v39 = vmul.f32 %v9025_v49, %v11903_v10  ;;  %v7070_v16 = vld [vmem:[#allocation2 + $0x484] ss:$16 sps:$4 sm:$0xff]   ;;  %v11908_v9 = vld [vmem:[#allocation154_spill] sm:$0xff] }
 0x257   :  { %v1802_v0 = vpack.c.bf16 %v1601_v60, %v1600_v23  ;;  %1965 = vperm.xlu0 %7010, %v11895_v11   ;;  %3260 = vmatprep.mubr.bf16.mxu1 %v7064_v28  ;;  %v11904_v28 = vld [vmem:[#allocation112_spill] sm:$0xff]  ;;  %v885_v27 = vadd.f32 %v821_v7, %v497_v14  ;;  %v11912_v14 = vld [vmem:[#allocation50_spill] sm:$0xff] }
 0x258   :  { %v1474_v44 = vpop.permute.xlu1 %1473  ;;  %v818_v45 = vmul.f32 %v9015_v51, %v11904_v28  ;;  %v1597_v23 = vadd.f32 %v9411_v59, %v1277_v25  ;;  %v1209_v59 = vmul.f32 %v9030_v62, %v11908_v9  ;;  %v883_v41 = vadd.f32 %v819_v32, %v495_v39  ;;  %v7072_v25 = vld [vmem:[#allocation2 + $0x480] ss:$16 sps:$4 sm:$0xff]   ;;  %v7694_v28 = vld [vmem:[%s11562_s2 + $0x38] sm:$0xff] }
 0x259   :  { %v1599_v61 = vadd.f32 %v1474_v44, %v1279_v53  ;;  %3304 = vmatpush1.bf16.msra.mxu1 %v1802_v0  ;;  %v1275_v48 = vadd.f32 %v1211_v3, %v885_v27  ;;  %v7691_v0 = vld [vmem:[%s11562_s2 + $0x150] sm:$0xff]  ;;  %v1442_v13 = vpop.permute.xlu0 %1441  ;;  %v492_v56 = vmul.f32 %v9025_v49, %v11912_v14  ;;  %v9534_v9 = vld [vmem:[%s11560_s0 + $0x1] ss:$0 sm:$0xff] }
 0x25a   :  { %1821 = vperm.xlu1 %7009, %v7689_v22   ;;  %3305 = vmatprep.subr.bf16.mxu1 %v11812_v57  ;;  %v11909_v53 = vld [vmem:[#allocation109_spill] sm:$0xff]  ;;  %v1273_v22 = vadd.f32 %v1209_v59, %v883_v41 }
 0x25b   :  { %v1801_v26 = vpack.c.bf16 %v1599_v61, %v1598_v38  ;;  %1973 = vperm.xlu0 %7010, %v11902_v24   ;;  %v816_v11 = vmul.f32 %v9015_v51, %v11909_v53  ;;  %v7033_v44 = vld [vmem:[#allocation2 + $0x80] ss:$16 sps:$4 sm:$0xff]   ;;  %v1595_v20 = vadd.f32 %v9435_v46, %v1275_v48  ;;  %v7034_v61 = vld [vmem:[#allocation2 + $0xa4] ss:$16 sps:$4 sm:$0xff]   ;;  %v1206_v51 = vmul.f32 %v9030_v62, %v11913_v33 }
 0x25c   :  { %v1462_v19 = vpop.permute.xlu1 %1461  ;;  %3005 = vmatmul.mubr.bf16.gmra.mxu0 %v7030_v63  ;;  %v882_v63 = vadd.f32 %v818_v45, %v494_v31  ;;  %v11914_v46 = vld [vmem:[#allocation151_spill] sm:$0xff]  ;;  %v1593_v10 = vadd.f32 %v9461_v47, %v1273_v22  ;;  %v7695_v47 = vld [vmem:[%s11562_s2 + $0x170] sm:$0xff]  ;;  %v9544_v53 = vld [vmem:[%s11560_s0] ss:$0 sm:$0xff] }
 0x25d   :  { %v1596_v60 = vadd.f32 %v1462_v19, %v1276_v18  ;;  %3306 = vmatpush1.bf16.msra.mxu1 %v1801_v26  ;;  %3012 = vmatprep.mubr.bf16.mxu0 %v7031_v8  ;;  %v11911_v8 = vld [vmem:[#allocation49_spill] sm:$0xff]  ;;  %v1207_v54 = vmul.f32 %v9030_v62, %v11914_v46  ;;  %v880_v26 = vadd.f32 %v816_v11, %v492_v56  ;;  %v9511_v62 = vpop.permute.xlu0 %1549  ;;  %v11916_v48 = vld [vmem:[#allocation108_spill] sm:$0xff]  ;;  %v11917_v11 = vld [vmem:[#allocation47_spill] sm:$0xff] }
 0x25e   :  { %1825 = vperm.xlu1 %7009, %v7690_v1   ;;  %3307 = vmatprep.subr.bf16.mxu1 %v11812_v57  ;;  %v493_v12 = vmul.f32 %v9025_v49, %v11911_v8  ;;  %v1272_v3 = vadd.f32 %v1208_v43, %v882_v63  ;;  %v7693_v49 = vld [vmem:[%s11562_s2 + $0x160] sm:$0xff]  ;;  %v491_v36 = vmul.f32 %v9544_v53, %v11917_v11  ;;  %v11920_v63 = vld [vmem:[#allocation148_spill] sm:$0xff]  ;;  %v7702_v46 = vld [vmem:[%s11562_s2 + $0x78] sm:$0xff] }
 0x25f   :  { %v1800_v35 = vpack.c.bf16 %v1597_v23, %v1596_v60  ;;  %3261 = vmatmul.mubr.bf16.gmra.mxu1 %v7066_v6  ;;  %1981 = vperm.xlu0 %7010, %v7691_v0   ;;  %v7076_v6 = vld [vmem:[#allocation2 + $0x4a4] ss:$16 sps:$4 sm:$0xff]   ;;  %v1270_v32 = vadd.f32 %v1206_v51, %v880_v26  ;;  %v7036_v19 = vld [vmem:[#allocation2 + $0xa0] ss:$16 sps:$4 sm:$0xff]   ;;  %v7696_v60 = vld [vmem:[%s11562_s2 + $0x48] sm:$0xff] }
 0x260   :  { %v1454_v7 = vpop.permute.xlu1 %1453  ;;  %3268 = vmatprep.mubr.bf16.mxu1 %v7070_v16  ;;  %v881_v24 = vadd.f32 %v817_v42, %v493_v12  ;;  %v7037_v23 = vld [vmem:[#allocation2 + $0xc4] ss:$16 sps:$4 sm:$0xff]   ;;  %v7078_v31 = vld [vmem:[#allocation2 + $0x4a0] ss:$16 sps:$4 sm:$0xff]   ;;  %v7707_v11 = vld [vmem:[%s11562_s2 + $0xb8] sm:$0xff] }
 0x261   :  { %v1594_v38 = vadd.f32 %v1454_v7, %v1274_v34  ;;  %3308 = vmatpush1.bf16.msra.mxu1 %v1800_v35  ;;  %v9525_v55 = vpop.permute.xlu0 %1533  ;;  %v7082_v43 = vld [vmem:[#allocation2 + $0x4c4] ss:$16 sps:$4 sm:$0xff]   ;;  %v7697_v34 = vld [vmem:[%s11562_s2 + $0x58] sm:$0xff]  ;;  %v815_v35 = vmul.f32 %v9534_v9, %v11916_v48  ;;  %v7039_v0 = vld [vmem:[#allocation2 + $0xc0] ss:$16 sps:$4 sm:$0xff]  }
 0x262   :  { %1833 = vperm.xlu1 %7009, %v7692_v40   ;;  %3309 = vmatprep.subr.bf16.mxu1 %v11812_v57  ;;  %v1271_v45 = vadd.f32 %v1207_v54, %v881_v24  ;;  %v11918_v42 = vld [vmem:[#allocation48_spill] sm:$0xff]  ;;  %v9553_v7 = vld [vmem:[%s11561_s1] ss:$0 sm:$0xff]  ;;  %v7088_v33 = vld [vmem:[#allocation2 + $0x4e4] ss:$16 sps:$4 sm:$0xff]  }
 0x263   :  { %v1799_v17 = vpack.c.bf16 %v1595_v20, %v1594_v38  ;;  %1989 = vperm.xlu0 %7010, %v7693_v49   ;;  %v1205_v41 = vmul.f32 %v9553_v7, %v11920_v63  ;;  %v7040_v20 = vld [vmem:[#allocation2 + $0xe4] ss:$16 sps:$4 sm:$0xff]   ;;  %v879_v14 = vadd.f32 %v815_v35, %v491_v36  ;;  %v7084_v56 = vld [vmem:[#allocation2 + $0x4c0] ss:$16 sps:$4 sm:$0xff]  }
 0x264   :  { %v1446_v18 = vpop.permute.xlu1 %1445  ;;  %3013 = vmatmul.mubr.bf16.gmra.mxu0 %v7033_v44  ;;  %v1591_v16 = vadd.f32 %v1442_v13, %v1271_v45  ;;  %v490_v13 = vmul.f32 %v9544_v53, %v11918_v42  ;;  %v11919_v44 = vld [vmem:[#allocation145_spill] sm:$0xff]  ;;  %v11921_v22 = vld [vmem:[#allocation138_spill] sm:$0xff]  ;;  %v7703_v45 = vld [vmem:[%s11562_s2 + $0x88] sm:$0xff] }
 0x265   :  { %v1592_v39 = vadd.f32 %v1446_v18, %v1272_v3  ;;  %3310 = vmatpush1.bf16.msra.mxu1 %v1799_v17  ;;  %3020 = vmatprep.mubr.bf16.mxu0 %v7034_v61  ;;  %v9559_v38 = vpop.permute.xlu0 %1517  ;;  %v7701_v61 = vld [vmem:[%s11562_s2 + $0x68] sm:$0xff]  ;;  %v1269_v40 = vadd.f32 %v1205_v41, %v879_v14  ;;  %v844_v17 = vmul.f32 %v9534_v9, %v11921_v22  ;;  %v7042_v49 = vld [vmem:[#allocation2 + $0xe0] ss:$16 sps:$4 sm:$0xff]   ;;  %v7049_v14 = vld [vmem:[#allocation2 + $0x144] ss:$16 sps:$4 sm:$0xff]  }
 0x266   :  { %1841 = vperm.xlu1 %7009, %v7694_v28   ;;  %3311 = vmatprep.subr.bf16.mxu1 %v11812_v57  ;;  %v11922_v26 = vld [vmem:[#allocation14_spill] sm:$0xff]  ;;  %v7043_v28 = vld [vmem:[#allocation2 + $0x104] ss:$16 sps:$4 sm:$0xff]  }
 0x267   :  { %v1798_v21 = vpack.c.bf16 %v1593_v10, %v1592_v39  ;;  %3269 = vmatmul.mubr.bf16.gmra.mxu1 %v7072_v25  ;;  %1997 = vperm.xlu0 %7010, %v7695_v47   ;;  %v520_v18 = vmul.f32 %v9544_v53, %v11922_v26  ;;  %v11926_v42 = vld [vmem:[#allocation137_spill] sm:$0xff] }
 0x268   :  { %v1438_v29 = vpop.permute.xlu1 %1437  ;;  %3276 = vmatprep.mubr.bf16.mxu1 %v7076_v6  ;;  %v11923_v6 = vld [vmem:[#allocation139_spill] sm:$0xff]  ;;  %v11927_v63 = vld [vmem:[#allocation13_spill] sm:$0xff] }
 0x269   :  { %v1590_v27 = vadd.f32 %v1438_v29, %v1270_v32  ;;  %3312 = vmatpush1.bf16.msra.mxu1 %v1798_v21  ;;  %v845_v24 = vmul.f32 %v9534_v9, %v11923_v6  ;;  %v11924_v21 = vld [vmem:[#allocation15_spill] sm:$0xff]  ;;  %v908_v32 = vadd.f32 %v844_v17, %v520_v18  ;;  %v519_v41 = vmul.f32 %v9544_v53, %v11927_v63 }
 0x26a   :  { %1849 = vperm.xlu1 %7009, %v7696_v60   ;;  %3313 = vmatprep.subr.bf16.mxu1 %v11812_v57  ;;  %v7704_v60 = vld [vmem:[%s11562_s2 + $0x98] sm:$0xff]  ;;  %v7710_v17 = vld [vmem:[%s11562_s2 + $0xe0] sm:$0xff] }
 0x26b   :  { %v1797_v2 = vpack.c.bf16 %v1591_v16, %v1590_v27  ;;  %2005 = vperm.xlu0 %7010, %v11885_v58   ;;  %v11915_v58 = vld [vmem:[#allocation107_spill] sm:$0xff]  ;;  %v7098_v16 = vld [vmem:[#allocation2 + $0xc] ss:$16 sps:$4 sm:$0xff]  }
 0x26c   :  { %3021 = vmatmul.mubr.bf16.gmra.mxu0 %v7036_v19  ;;  %v814_v59 = vmul.f32 %v9534_v9, %v11915_v58  ;;  %v7090_v19 = vld [vmem:[#allocation2 + $0x4e0] ss:$16 sps:$4 sm:$0xff]   ;;  %v7046_v58 = vld [vmem:[#allocation2 + $0x124] ss:$16 sps:$4 sm:$0xff]  }
 0x26d   :  { %v1160_v1 = vpop.permute.xlu1 %1159  ;;  %3314 = vmatpush1.bf16.msra.mxu1 %v1797_v2  ;;  %3028 = vmatprep.mubr.bf16.mxu0 %v7037_v23  ;;  %v7051_v6 = vld [vmem:[#allocation2 + $0x140] ss:$16 sps:$4 sm:$0xff]  }
 0x26e   :  { %1857 = vperm.xlu1 %7009, %v7697_v34   ;;  %3315 = vmatprep.subr.bf16.mxu1 %v11812_v57  ;;  %v878_v12 = vadd.f32 %v814_v59, %v490_v13  ;;  %v1234_v10 = vmul.f32 %v9553_v7, %v1160_v1  ;;  %v7706_v59 = vld [vmem:[%s11562_s2 + $0xa8] sm:$0xff]  ;;  %v843_v13 = vmul.f32 %v9534_v9, %v11926_v42  ;;  %v7063_v63 = vld [vmem:[#allocation2 + $0x180] ss:$16 sps:$4 sm:$0xff]  }
 0x26f   :  { %3277 = vmatmul.mubr.bf16.gmra.mxu1 %v7078_v31  ;;  %2013 = vperm.xlu0 %7010, %v9119_v4   ;;  %v1204_v4 = vmul.f32 %v9553_v7, %v11919_v44  ;;  %v7705_v31 = vld [vmem:[%s11562_s2 + $0x1f0] sm:$0xff] }
 0x270   :  { %3284 = vmatprep.mubr.bf16.mxu1 %v7082_v43  ;;  %v1298_v23 = vadd.f32 %v1234_v10, %v908_v32  ;;  %v7045_v43 = vld [vmem:[#allocation2 + $0x100] ss:$16 sps:$4 sm:$0xff]   ;;  %v7055_v32 = vld [vmem:[#allocation2 + $0x164] ss:$16 sps:$4 sm:$0xff]  }
 0x271   :  { %v1268_v51 = vadd.f32 %v1204_v4, %v878_v12  ;;  %v7048_v44 = vld [vmem:[#allocation2 + $0x120] ss:$16 sps:$4 sm:$0xff]  }
 0x272   :  { %1865 = vperm.xlu1 %7009, %v7701_v61   ;;  %v1430_v8 = vpop.permute.xlu1 %1429  ;;  %v1618_v1 = vadd.f32 %v9511_v62, %v1298_v23  ;;  %v11925_v62 = vld [vmem:[#allocation136_spill] sm:$0xff]  ;;  %v117_v4 = vld [vmem:[%s11562_s2 + $0x200] sm:$0xff]  ;;  %v11930_v10 = vld [vmem:[#allocation73_spill] sm:$0xff] }
 0x273   :  { %2021 = vperm.xlu0 %7010, %v9380_v5   ;;  %v1588_v3 = vadd.f32 %v1430_v8, %v1268_v51  ;;  %v1164_v5 = vpop.permute.xlu0 %1163  ;;  %v842_v36 = vmul.f32 %v9534_v9, %v11925_v62  ;;  %v127_v62 = vld [vmem:[%s11562_s2 + $0x250] sm:$0xff] }
 0x274   :  { %3029 = vmatmul.mubr.bf16.gmra.mxu0 %v7039_v0  ;;  %v1235_v47 = vmul.f32 %v9553_v7, %v1164_v5 }
 0x275   :  { %3036 = vmatprep.mubr.bf16.mxu0 %v7040_v20  ;;  %v11928_v20 = vld [vmem:[#allocation12_spill] sm:$0xff] }
 0x276   :  { %1873 = vperm.xlu1 %7009, %v7702_v46   ;;  %v1434_v54 = vpop.permute.xlu1 %1433  ;;  %v518_v61 = vmul.f32 %v9544_v53, %v11928_v20  ;;  %v119_v46 = vld [vmem:[%s11562_s2 + $0x210] sm:$0xff]  ;;  %v11935_v20 = vld [vmem:[#allocation71_spill] sm:$0xff] }
 0x277   :  { %v1589_v25 = vadd.f32 %v1434_v54, %v1269_v40  ;;  %3285 = vmatmul.mubr.bf16.gmra.mxu1 %v7084_v56  ;;  %2029 = vperm.xlu0 %7010, %v9274_v52   ;;  %v521_v52 = vmul.f32 %v9544_v53, %v11924_v21  ;;  %v1152_v0 = vpop.permute.xlu0 %1151  ;;  %v7709_v56 = vld [vmem:[%s11562_s2 + $0xf0] sm:$0xff]  ;;  %v907_v40 = vadd.f32 %v843_v13, %v519_v41  ;;  %v129_v41 = vld [vmem:[%s11562_s2 + $0x260] sm:$0xff] }
 0x278   :  { %3292 = vmatprep.mubr.bf16.mxu1 %v7088_v33  ;;  %v1232_v8 = vmul.f32 %v9553_v7, %v1152_v0  ;;  %v906_v51 = vadd.f32 %v842_v36, %v518_v61  ;;  %v7713_v0 = vld [vmem:[%s11562_s2 + $0x108] sm:$0xff]  ;;  %v515_v61 = vmul.f32 %v9544_v53, %v11935_v20 }
 0x279   :  { %v1796_v39 = vpack.c.bf16 %v1589_v25, %v1588_v3  ;;  %v909_v27 = vadd.f32 %v845_v24, %v521_v52  ;;  %v11929_v25 = vld [vmem:[#allocation134_spill] sm:$0xff]  ;;  %v11933_v13 = vld [vmem:[#allocation132_spill] sm:$0xff] }
 0x27a   :  { %1881 = vperm.xlu1 %7009, %v7703_v45   ;;  %v1296_v54 = vadd.f32 %v1232_v8, %v906_v51  ;;  %v840_v5 = vmul.f32 %v9534_v9, %v11929_v25  ;;  %v121_v24 = vld [vmem:[%s11562_s2 + $0x220] sm:$0xff]  ;;  %v11936_v8 = vld [vmem:[#allocation72_spill] sm:$0xff]  ;;  %v7716_v25 = vld [vmem:[%s11562_s2 + $0x138] sm:$0xff] }
 0x27b   :  { %v1156_v29 = vpop.permute.xlu1 %1155  ;;  %3316 = vmatpush1.bf16.msra.mxu1 %v1796_v39  ;;  %2037 = vperm.xlu0 %7010, %v9297_v37   ;;  %v1299_v2 = vadd.f32 %v1235_v47, %v909_v27  ;;  %v1148_v18 = vpop.permute.xlu0 %1147  ;;  %v516_v39 = vmul.f32 %v9544_v53, %v11930_v10  ;;  %v7711_v47 = vld [vmem:[%s11562_s2 + $0xd0] sm:$0xff]  ;;  %v7715_v51 = vld [vmem:[%s11562_s2 + $0x128] sm:$0xff] }
 0x27c   :  { %3037 = vmatmul.mubr.bf16.gmra.mxu0 %v7042_v49  ;;  %3317 = vmatprep.subr.bf16.mxu1 %v11812_v57  ;;  %v1233_v12 = vmul.f32 %v9553_v7, %v1156_v29  ;;  %v11932_v29 = vld [vmem:[#allocation11_spill] sm:$0xff]  ;;  %v1231_v27 = vmul.f32 %v9553_v7, %v1148_v18 }
 0x27d   :  { %3044 = vmatprep.mubr.bf16.mxu0 %v7043_v28  ;;  %v11931_v28 = vld [vmem:[#allocation135_spill] sm:$0xff] }
 0x27e   :  { %1889 = vperm.xlu1 %7009, %v7704_v60   ;;  %v1297_v22 = vadd.f32 %v1233_v12, %v907_v40  ;;  %v841_v45 = vmul.f32 %v9534_v9, %v11931_v28  ;;  %v123_v60 = vld [vmem:[%s11562_s2 + $0x230] sm:$0xff]  ;;  %v514_v12 = vmul.f32 %v9544_v53, %v11936_v8 }
 0x27f   :  { %3293 = vmatmul.mubr.bf16.gmra.mxu1 %v7090_v19  ;;  %2061 = vperm.xlu0 %7010, %v7705_v31   ;;  %v517_v19 = vmul.f32 %v9544_v53, %v11932_v29  ;;  %v1136_v42 = vpop.permute.xlu0 %1135  ;;  %v7069_v10 = vld [vmem:[#allocation2 + $0x1a0] ss:$16 sps:$4 sm:$0xff]   ;;  %v7717_v29 = vld [vmem:[%s11562_s2 + $0x148] sm:$0xff]  ;;  %v7085_v8 = vld [vmem:[#allocation2 + $0x204] ss:$16 sps:$4 sm:$0xff]  }
 0x280   :  { %v1554_v37 = vpop.permute.xlu1 %1553  ;;  %3333 = vmatprep.mubr.bf16.mxu1 %v7098_v16  ;;  %v904_v16 = vadd.f32 %v840_v5, %v516_v39  ;;  %v11938_v39 = vld [vmem:[#allocation70_spill] sm:$0xff] }
 0x281   :  { %v1619_v34 = vadd.f32 %v1554_v37, %v1299_v2  ;;  %v905_v2 = vadd.f32 %v841_v45, %v517_v19  ;;  %v7712_v37 = vld [vmem:[%s11562_s2 + $0xc8] sm:$0xff]  ;;  %v512_v28 = vmul.f32 %v9544_v53, %v11938_v39  ;;  %v11940_v19 = vld [vmem:[#allocation69_spill] sm:$0xff] }
 0x282   :  { %1897 = vperm.xlu1 %7009, %v7706_v59   ;;  %v11939_v45 = vld [vmem:[#allocation131_spill] sm:$0xff] }
 0x283   :  { %v1811_v48 = vpack.c.bf16 %v1619_v34, %v1618_v1  ;;  %2053 = vperm.xlu0 %7010, %v9181_v50   ;;  %v7708_v50 = vld [vmem:[%s11562_s2 + $0x1d0] sm:$0xff] }
 0x284   :  { %3045 = vmatmul.mubr.bf16.gmra.mxu0 %v7045_v43  ;;  %v1295_v43 = vadd.f32 %v1231_v27, %v905_v2  ;;  %v7057_v34 = vld [vmem:[#allocation2 + $0x160] ss:$16 sps:$4 sm:$0xff]  }
 0x285   :  { %v1144_v35 = vpop.permute.xlu1 %1143  ;;  %3318 = vmatpush2.bf16.msra.mxu1 %v1811_v48  ;;  %3052 = vmatprep.mubr.bf16.mxu0 %v7046_v58  ;;  %v125_v58 = vld [vmem:[%s11562_s2 + $0x240] sm:$0xff] }
 0x286   :  { %1905 = vperm.xlu1 %7009, %v7707_v11   ;;  %3319 = vmatprep.subr.bf16.mxu1 %v11812_v57  ;;  %v1230_v21 = vmul.f32 %v9553_v7, %v1144_v35  ;;  %v7061_v35 = vld [vmem:[#allocation2 + $0x184] ss:$16 sps:$4 sm:$0xff]  }
 0x287   :  { %2045 = vperm.xlu0 %7010, %v7708_v50   ;;  %v838_v50 = vmul.f32 %v9534_v9, %v11933_v13 }
 0x288   :  { %v1294_v31 = vadd.f32 %v1230_v21, %v904_v16  ;;  %v837_v21 = vmul.f32 %v9534_v9, %v11939_v45  ;;  %v513_v16 = vmul.f32 %v9544_v53, %v11940_v19 }
 0x28a   :  { %1933 = vperm.xlu1 %7009, %v7709_v56   ;;  %v1542_v33 = vpop.permute.xlu1 %1541  ;;  %v1614_v59 = vadd.f32 %v9525_v55, %v1294_v31  ;;  %v7714_v55 = vld [vmem:[%s11562_s2 + $0x118] sm:$0xff]  ;;  %v901_v2 = vadd.f32 %v837_v21, %v513_v16 }
 0x28b   :  { %2070 = vperm.xlu0 %7010, %v117_v4   ;;  %v1616_v49 = vadd.f32 %v1542_v33, %v1296_v54  ;;  %v7067_v33 = vld [vmem:[#allocation2 + $0x1a4] ss:$16 sps:$4 sm:$0xff]  }
 0x28c   :  { %3053 = vmatmul.mubr.bf16.gmra.mxu0 %v7048_v44  ;;  %v11934_v44 = vld [vmem:[#allocation133_spill] sm:$0xff] }
 0x28d   :  { %3060 = vmatprep.mubr.bf16.mxu0 %v7049_v14  ;;  %v839_v4 = vmul.f32 %v9534_v9, %v11934_v44  ;;  %v1228_v14 = vmul.f32 %v9553_v7, %v1136_v42  ;;  %v11943_v44 = vld [vmem:[#allocation67_spill] sm:$0xff]  ;;  %v11948_v21 = vld [vmem:[#allocation65_spill] sm:$0xff] }
 0x28e   :  { %1925 = vperm.xlu1 %7009, %v7710_v17   ;;  %v1546_v3 = vpop.permute.xlu1 %1545 }
 0x28f   :  { %v1617_v26 = vadd.f32 %v1546_v3, %v1297_v22  ;;  %2080 = vperm.xlu0 %7010, %v119_v46   ;;  %v902_v46 = vadd.f32 %v838_v50, %v514_v12  ;;  %v903_v54 = vadd.f32 %v839_v4, %v515_v61  ;;  %v131_v22 = vld [vmem:[%s11562_s2 + $0x270] sm:$0xff]  ;;  %v511_v4 = vmul.f32 %v9544_v53, %v11943_v44  ;;  %v7721_v12 = vld [vmem:[%s11562_s2 + $0x188] sm:$0xff]  ;;  %v7724_v44 = vld [vmem:[%s11562_s2 + $0x1f8] sm:$0xff] }
 0x290   :  { %v7081_v50 = vld [vmem:[#allocation2 + $0x1e0] ss:$16 sps:$4 sm:$0xff]  }
 0x291   :  { %v1810_v52 = vpack.c.bf16 %v1617_v26, %v1616_v49  ;;  %v1292_v17 = vadd.f32 %v1228_v14, %v902_v46  ;;  %v11937_v49 = vld [vmem:[#allocation130_spill] sm:$0xff] }
 0x292   :  { %1917 = vperm.xlu1 %7009, %v7711_v47   ;;  %v836_v26 = vmul.f32 %v9534_v9, %v11937_v49  ;;  %v7073_v47 = vld [vmem:[#allocation2 + $0x1c4] ss:$16 sps:$4 sm:$0xff]   ;;  %v7087_v49 = vld [vmem:[#allocation2 + $0x200] ss:$16 sps:$4 sm:$0xff]  }
 0x293   :  { %v1140_v23 = vpop.permute.xlu1 %1139  ;;  %3320 = vmatpush2.bf16.msra.mxu1 %v1810_v52  ;;  %2090 = vperm.xlu0 %7010, %v121_v24   ;;  %v1132_v24 = vpop.permute.xlu0 %1131 }
 0x294   :  { %3061 = vmatmul.mubr.bf16.gmra.mxu0 %v7051_v6  ;;  %3321 = vmatprep.subr.bf16.mxu1 %v11812_v57  ;;  %v1229_v56 = vmul.f32 %v9553_v7, %v1140_v23  ;;  %v900_v27 = vadd.f32 %v836_v26, %v512_v28  ;;  %v1227_v23 = vmul.f32 %v9553_v7, %v1132_v24  ;;  %v11946_v26 = vld [vmem:[#allocation66_spill] sm:$0xff]  ;;  %v7091_v28 = vld [vmem:[#allocation2 + $0x224] ss:$16 sps:$4 sm:$0xff]  }
 0x295   :  { %3068 = vmatprep.mubr.bf16.mxu0 %v7055_v32 }
 0x296   :  { %1913 = vperm.xlu1 %7009, %v7712_v37   ;;  %v1293_v3 = vadd.f32 %v1229_v56, %v903_v54  ;;  %v7718_v37 = vld [vmem:[%s11562_s2 + $0x158] sm:$0xff] }
 0x297   :  { %2100 = vperm.xlu0 %7010, %v123_v60   ;;  %v7722_v54 = vld [vmem:[%s11562_s2 + $0x198] sm:$0xff] }
 0x298   :  { %v1538_v1 = vpop.permute.xlu1 %1537 }
 0x299   :  { %v1615_v48 = vadd.f32 %v1538_v1, %v1295_v43  ;;  %v1291_v43 = vadd.f32 %v1227_v23, %v901_v2 }
 0x29a   :  { %1945 = vperm.xlu1 %7009, %v7713_v0  }
 0x29b   :  { %v1809_v11 = vpack.c.bf16 %v1615_v48, %v1614_v59  ;;  %2110 = vperm.xlu0 %7010, %v125_v58   ;;  %v7079_v48 = vld [vmem:[#allocation2 + $0x1e4] ss:$16 sps:$4 sm:$0xff]  }
 0x29c   :  { %3069 = vmatmul.mubr.bf16.gmra.mxu0 %v7057_v34  ;;  %v7075_v34 = vld [vmem:[#allocation2 + $0x1c0] ss:$16 sps:$4 sm:$0xff]  }
 0x29d   :  { %v1128_v36 = vpop.permute.xlu1 %1127  ;;  %3322 = vmatpush2.bf16.msra.mxu1 %v1809_v11  ;;  %3076 = vmatprep.mubr.bf16.mxu0 %v7061_v35  ;;  %v7719_v35 = vld [vmem:[%s11562_s2 + $0x168] sm:$0xff] }
 0x29e   :  { %1953 = vperm.xlu1 %7009, %v7714_v55   ;;  %3323 = vmatprep.subr.bf16.mxu1 %v11812_v57  ;;  %v1226_v52 = vmul.f32 %v9553_v7, %v1128_v36  ;;  %v7720_v36 = vld [vmem:[%s11562_s2 + $0x178] sm:$0xff] }
 0x29f   :  { %2120 = vperm.xlu0 %7010, %v127_v62   ;;  %v1120_v62 = vpop.permute.xlu0 %1119  ;;  %v11942_v55 = vld [vmem:[#allocation129_spill] sm:$0xff] }
 0x2a0   :  { %v1290_v31 = vadd.f32 %v1226_v52, %v900_v27  ;;  %v835_v13 = vmul.f32 %v9534_v9, %v11942_v55  ;;  %v1224_v20 = vmul.f32 %v9553_v7, %v1120_v62  ;;  %v509_v52 = vmul.f32 %v9544_v53, %v11948_v21  ;;  %v11950_v27 = vld [vmem:[#allocation63_spill] sm:$0xff] }
 0x2a1   :  { %v507_v23 = vmul.f32 %v9544_v53, %v11950_v27  ;;  %v7723_v55 = vld [vmem:[%s11562_s2 + $0x1c8] sm:$0xff]  ;;  %v7124_v21 = vld [vmem:[#allocation2 + $0x2e4] ss:$16 sps:$4 sm:$0xff]   ;;  %v7134_v27 = vld [vmem:[#allocation2 + $0x300] ss:$16 sps:$4 sm:$0xff]  }
 0x2a2   :  { %1961 = vperm.xlu1 %7009, %v7715_v51   ;;  %v1526_v40 = vpop.permute.xlu1 %1525  ;;  %v1610_v58 = vadd.f32 %v9559_v38, %v1290_v31  ;;  %v11941_v38 = vld [vmem:[#allocation128_spill] sm:$0xff] }
 0x2a3   :  { %2130 = vperm.xlu0 %7010, %v129_v41   ;;  %v1612_v18 = vadd.f32 %v1526_v40, %v1292_v17  ;;  %v834_v42 = vmul.f32 %v9534_v9, %v11941_v38  ;;  %v1116_v51 = vpop.permute.xlu0 %1115  ;;  %v11945_v17 = vld [vmem:[#allocation126_spill] sm:$0xff]  ;;  %v7094_v38 = vld [vmem:[#allocation2 + $0x244] ss:$16 sps:$4 sm:$0xff]  }
 0x2a4   :  { %3077 = vmatmul.mubr.bf16.gmra.mxu0 %v7063_v63  ;;  %v11944_v63 = vld [vmem:[#allocation68_spill] sm:$0xff]  ;;  %v1223_v19 = vmul.f32 %v9553_v7, %v1116_v51  ;;  %v7106_v51 = vld [vmem:[#allocation2 + $0x284] ss:$16 sps:$4 sm:$0xff]  }
 0x2a5   :  { %3084 = vmatprep.mubr.bf16.mxu0 %v7067_v33  ;;  %v510_v41 = vmul.f32 %v9544_v53, %v11944_v63  ;;  %v899_v33 = vadd.f32 %v835_v13, %v511_v4  ;;  %v7096_v63 = vld [vmem:[#allocation2 + $0x8] ss:$16 sps:$4 sm:$0xff]  }
 0x2a6   :  { %1969 = vperm.xlu1 %7009, %v7716_v25   ;;  %v1530_v5 = vpop.permute.xlu1 %1529 }
 0x2a7   :  { %v1613_v6 = vadd.f32 %v1530_v5, %v1293_v3  ;;  %2140 = vperm.xlu0 %7010, %v131_v22   ;;  %v898_v56 = vadd.f32 %v834_v42, %v510_v41  ;;  %v832_v3 = vmul.f32 %v9534_v9, %v11945_v17  ;;  %v1104_v45 = vpop.permute.xlu0 %1103  ;;  %v7099_v41 = vld [vmem:[#allocation2 + $0x240] ss:$16 sps:$4 sm:$0xff]   ;;  %v7111_v17 = vld [vmem:[#allocation2 + $0x48] ss:$16 sps:$4 sm:$0xff]  }
 0x2a9   :  { %v1808_v32 = vpack.c.bf16 %v1613_v6, %v1612_v18  ;;  %v1288_v40 = vadd.f32 %v1224_v20, %v898_v56  ;;  %v508_v18 = vmul.f32 %v9544_v53, %v11946_v26  ;;  %v11947_v6 = vld [vmem:[#allocation127_spill] sm:$0xff] }
 0x2aa   :  { %1977 = vperm.xlu1 %7009, %v7717_v29   ;;  %v833_v24 = vmul.f32 %v9534_v9, %v11947_v6  ;;  %v7100_v20 = vld [vmem:[#allocation2 + $0x264] ss:$16 sps:$4 sm:$0xff]   ;;  %v7104_v56 = vld [vmem:[#allocation2 + $0x260] ss:$16 sps:$4 sm:$0xff]  }
 0x2ab   :  { %v1124_v60 = vpop.permute.xlu1 %1123  ;;  %3324 = vmatpush2.bf16.msra.mxu1 %v1808_v32  ;;  %v11949_v32 = vld [vmem:[#allocation125_spill] sm:$0xff]  ;;  %v896_v29 = vadd.f32 %v832_v3, %v508_v18 }
 0x2ac   :  { %3085 = vmatmul.mubr.bf16.gmra.mxu0 %v7069_v10  ;;  %3325 = vmatprep.subr.bf16.mxu1 %v11812_v57  ;;  %v1225_v61 = vmul.f32 %v9553_v7, %v1124_v60  ;;  %v11951_v60 = vld [vmem:[#allocation124_spill] sm:$0xff]  ;;  %v897_v2 = vadd.f32 %v833_v24, %v509_v52  ;;  %v7112_v3 = vld [vmem:[#allocation2 + $0x2a4] ss:$16 sps:$4 sm:$0xff]  }
 0x2ad   :  { %3092 = vmatprep.mubr.bf16.mxu0 %v7073_v47  ;;  %v831_v47 = vmul.f32 %v9534_v9, %v11949_v32  ;;  %v7116_v26 = vld [vmem:[#allocation2 + $0x2a0] ss:$16 sps:$4 sm:$0xff]   ;;  %v7117_v18 = vld [vmem:[#allocation2 + $0x68] ss:$16 sps:$4 sm:$0xff]   ;;  %v7118_v6 = vld [vmem:[#allocation2 + $0x2c4] ss:$16 sps:$4 sm:$0xff]  }
 0x2ae   :  { %1985 = vperm.xlu1 %7009, %v7718_v37   ;;  %v1289_v46 = vadd.f32 %v1225_v61, %v899_v33  ;;  %v7102_v61 = vld [vmem:[#allocation2 + $0x2c] ss:$16 sps:$4 sm:$0xff]   ;;  %v7105_v33 = vld [vmem:[#allocation2 + $0x28] ss:$16 sps:$4 sm:$0xff]  }
 0x2af   :  { %v7120_v24 = vld [vmem:[#allocation2 + $0x8c] ss:$16 sps:$4 sm:$0xff]  }
 0x2b0   :  { %v1522_v1 = vpop.permute.xlu1 %1521  ;;  %v7126_v52 = vld [vmem:[#allocation2 + $0xac] ss:$16 sps:$4 sm:$0xff]  }
 0x2b1   :  { %v1611_v59 = vadd.f32 %v1522_v1, %v1291_v43  ;;  %v1502_v43 = vpop.permute.xlu0 %1501  ;;  %v11952_v1 = vld [vmem:[#allocation64_spill] sm:$0xff]  ;;  %v132_v32 = vld [vmem:[%s11562_s2 + $0x278] sm:$0xff] }
 0x2b2   :  { %1993 = vperm.xlu1 %7009, %v7719_v35  }
 0x2b3   :  { %v1807_v0 = vpack.c.bf16 %v1611_v59, %v1610_v58  ;;  %v895_v58 = vadd.f32 %v831_v47, %v507_v23  ;;  %v1220_v59 = vmul.f32 %v9553_v7, %v1104_v45  ;;  %v7123_v45 = vld [vmem:[#allocation2 + $0x88] ss:$16 sps:$4 sm:$0xff]   ;;  %v7128_v47 = vld [vmem:[#allocation2 + $0x2e0] ss:$16 sps:$4 sm:$0xff]  }
 0x2b4   :  { %3093 = vmatmul.mubr.bf16.gmra.mxu0 %v7075_v34  ;;  %v506_v34 = vmul.f32 %v9544_v53, %v11952_v1  ;;  %v7135_v23 = vld [vmem:[#allocation2 + $0xc8] ss:$16 sps:$4 sm:$0xff]  }
 0x2b5   :  { %v1112_v11 = vpop.permute.xlu1 %1111  ;;  %3326 = vmatpush2.bf16.msra.mxu1 %v1807_v0  ;;  %3100 = vmatprep.mubr.bf16.mxu0 %v7079_v48  ;;  %v1287_v48 = vadd.f32 %v1223_v19, %v897_v2  ;;  %v7093_v0 = vld [vmem:[#allocation2 + $0x220] ss:$16 sps:$4 sm:$0xff]   ;;  %v1498_v42 = vpop.permute.xlu0 %1497  ;;  %v7130_v19 = vld [vmem:[#allocation2 + $0x304] ss:$16 sps:$4 sm:$0xff]  }
 0x2b6   :  { %2001 = vperm.xlu1 %7009, %v7720_v36   ;;  %3327 = vmatprep.subr.bf16.mxu1 %v11812_v57  ;;  %v1222_v10 = vmul.f32 %v9553_v7, %v1112_v11 }
 0x2b8   :  { %v1286_v31 = vadd.f32 %v1222_v10, %v896_v29  ;;  %v128_v10 = vld [vmem:[%s11562_s2 + $0x258] sm:$0xff] }
 0x2b9   :  { %v7129_v29 = vld [vmem:[#allocation2 + $0xa8] ss:$16 sps:$4 sm:$0xff]  }
 0x2ba   :  { %2009 = vperm.xlu1 %7009, %v7721_v12   ;;  %v1510_v14 = vpop.permute.xlu1 %1509  ;;  %v1606_v62 = vadd.f32 %v1502_v43, %v1286_v31  ;;  %v7726_v12 = vld [vmem:[%s11562_s2 + $0x1d8] sm:$0xff] }
 0x2bb   :  { %v1608_v25 = vadd.f32 %v1510_v14, %v1288_v40  ;;  %v118_v14 = vld [vmem:[%s11562_s2 + $0x208] sm:$0xff] }
 0x2bc   :  { %3101 = vmatmul.mubr.bf16.gmra.mxu0 %v7081_v50  ;;  %v7108_v40 = vld [vmem:[#allocation2 + $0x4c] ss:$16 sps:$4 sm:$0xff]  }
 0x2bd   :  { %3108 = vmatprep.mubr.bf16.mxu0 %v7085_v8  ;;  %v7725_v8 = vld [vmem:[%s11562_s2 + $0x1e8] sm:$0xff] }
 0x2be   :  { %2017 = vperm.xlu1 %7009, %v7722_v54   ;;  %v1514_v22 = vpop.permute.xlu1 %1513  ;;  %v122_v54 = vld [vmem:[%s11562_s2 + $0x228] sm:$0xff] }
 0x2bf   :  { %v1609_v5 = vadd.f32 %v1514_v22, %v1289_v46  ;;  %v120_v46 = vld [vmem:[%s11562_s2 + $0x218] sm:$0xff]  ;;  %v7110_v22 = vld [vmem:[#allocation2 + $0x280] ss:$16 sps:$4 sm:$0xff]  }
 0x2c1   :  { %v1806_v39 = vpack.c.bf16 %v1609_v5, %v1608_v25  ;;  %v7114_v25 = vld [vmem:[#allocation2 + $0x6c] ss:$16 sps:$4 sm:$0xff]  }
 0x2c2   :  { %2025 = vperm.xlu1 %7009, %v9331_v15   ;;  %v830_v15 = vmul.f32 %v9534_v9, %v11951_v60  ;;  %v124_v5 = vld [vmem:[%s11562_s2 + $0x238] sm:$0xff]  ;;  %v7136_v60 = vld [vmem:[#allocation2 + $0x324] ss:$16 sps:$4 sm:$0xff]  }
 0x2c3   :  { %v1108_v16 = vpop.permute.xlu1 %1107  ;;  %3328 = vmatpush2.bf16.msra.mxu1 %v1806_v39  ;;  %v130_v39 = vld [vmem:[%s11562_s2 + $0x268] sm:$0xff] }
 0x2c4   :  { %3109 = vmatmul.mubr.bf16.gmra.mxu0 %v7087_v49  ;;  %3329 = vmatprep.subr.bf16.mxu1 %v11812_v57  ;;  %v1221_v37 = vmul.f32 %v9553_v7, %v1108_v16  ;;  %v894_v11 = vadd.f32 %v830_v15, %v506_v34  ;;  %v126_v49 = vld [vmem:[%s11562_s2 + $0x248] sm:$0xff]  ;;  %v7140_v34 = vld [vmem:[#allocation2 + $0x320] ss:$16 sps:$4 sm:$0xff]  }
 0x2c5   :  { %3116 = vmatprep.mubr.bf16.mxu0 %v7091_v28  ;;  %v7122_v28 = vld [vmem:[#allocation2 + $0x2c0] ss:$16 sps:$4 sm:$0xff]   ;;  %v7132_v16 = vld [vmem:[#allocation2 + $0xcc] ss:$16 sps:$4 sm:$0xff]  }
 0x2c6   :  { %2033 = vperm.xlu1 %7009, %v9345_v30   ;;  %v1285_v9 = vadd.f32 %v1221_v37, %v895_v58  ;;  %v1284_v13 = vadd.f32 %v1220_v59, %v894_v11  ;;  %v7138_v15 = vld [vmem:[#allocation2 + $0xec] ss:$16 sps:$4 sm:$0xff]   ;;  %v7141_v58 = vld [vmem:[#allocation2 + $0xe8] ss:$16 sps:$4 sm:$0xff]  }
 0x2c8   :  { %v1506_v35 = vpop.permute.xlu1 %1505  ;;  %v1605_v50 = vadd.f32 %v1498_v42, %v1285_v9  ;;  %v7146_v42 = vld [vmem:[#allocation2 + $0x340] ss:$16 sps:$4 sm:$0xff]  }
 0x2c9   :  { %v1607_v36 = vadd.f32 %v1506_v35, %v1287_v48  ;;  %v7142_v48 = vld [vmem:[#allocation2 + $0x344] ss:$16 sps:$4 sm:$0xff]   ;;  %v7144_v35 = vld [vmem:[#allocation2 + $0x10c] ss:$16 sps:$4 sm:$0xff]  }
 0x2ca   :  { %2041 = vperm.xlu1 %7009, %v7723_v55   ;;  %v7147_v55 = vld [vmem:[#allocation2 + $0x108] ss:$16 sps:$4 sm:$0xff]  }
 0x2cb   :  { %v1805_v30 = vpack.c.bf16 %v1607_v36, %v1606_v62 }
 0x2cc   :  { %v1494_v53 = vpop.permute.xlu1 %1493  ;;  %3117 = vmatmul.mubr.bf16.gmra.mxu0 %v7093_v0 }
 0x2cd   :  { %v1604_v7 = vadd.f32 %v1494_v53, %v1284_v13  ;;  %3330 = vmatpush2.bf16.msra.mxu1 %v1805_v30  ;;  %3124 = vmatprep.mubr.bf16.mxu0 %v7094_v38  ;;  %v7148_v13 = vld [vmem:[#allocation2 + $0x364] ss:$16 sps:$4 sm:$0xff]   ;;  %v7150_v53 = vld [vmem:[#allocation2 + $0x12c] ss:$16 sps:$4 sm:$0xff]  }
 0x2ce   :  { %2065 = vperm.xlu1 %7009, %v7724_v44   ;;  %3331 = vmatprep.subr.bf16.mxu1 %v11812_v57 }
 0x2cf   :  { %v1804_v4 = vpack.c.bf16 %v1605_v50, %v1604_v7 }
 0x2d1   :  { %3332 = vmatpush2.bf16.msra.mxu1 %v1804_v4 }
 0x2d2   :  { %2057 = vperm.xlu1 %7009, %v7725_v8   ;;  %5303 = vmatprep.subr.bf16.mxu1 %v11812_v57  ;;  %v7153_v8 = vld [vmem:[#allocation2 + $0x128] ss:$16 sps:$4 sm:$0xff]  }
 0x2d4   :  { %3125 = vmatmul.mubr.bf16.gmra.mxu0 %v7099_v41  ;;  %3334 = vmatmul.mubr.bf16.vlgmr.msra.gmra.mxu1 %v7096_v63 }
 0x2d5   :  { %3132 = vmatprep.mubr.bf16.mxu0 %v7100_v20  ;;  %3341 = vmatprep.mubr.bf16.mxu1 %v7102_v61  ;;  %v7152_v61 = vld [vmem:[#allocation2 + $0x360] ss:$16 sps:$4 sm:$0xff]  }
 0x2d6   :  { %2049 = vperm.xlu1 %7009, %v7726_v12  }
 0x2da   :  { %2075 = vperm.xlu1 %7009, %v118_v14   ;;  %v7156_v14 = vld [vmem:[#allocation2 + $0x384] ss:$16 sps:$4 sm:$0xff]  }
 0x2dc   :  { %3133 = vmatmul.mubr.bf16.gmra.mxu0 %v7104_v56  ;;  %3342 = vmatmul.mubr.bf16.gmra.mxu1 %v7105_v33  ;;  %v7157_v56 = vld [vmem:[#allocation2 + $0x14c] ss:$16 sps:$4 sm:$0xff]  }
 0x2dd   :  { %3140 = vmatprep.mubr.bf16.mxu0 %v7106_v51  ;;  %3349 = vmatprep.mubr.bf16.mxu1 %v7108_v40 }
 0x2de   :  { %2085 = vperm.xlu1 %7009, %v120_v46  }
 0x2e2   :  { %2095 = vperm.xlu1 %7009, %v122_v54  }
 0x2e4   :  { %3141 = vmatmul.mubr.bf16.gmra.mxu0 %v7110_v22  ;;  %3350 = vmatmul.mubr.bf16.gmra.mxu1 %v7111_v17 }
 0x2e5   :  { %3148 = vmatprep.mubr.bf16.mxu0 %v7112_v3  ;;  %3357 = vmatprep.mubr.bf16.mxu1 %v7114_v25  ;;  %v7154_v3 = vld [vmem:[#allocation2 + $0x380] ss:$16 sps:$4 sm:$0xff]   ;;  %v7159_v25 = vld [vmem:[#allocation2 + $0x148] ss:$16 sps:$4 sm:$0xff]  }
 0x2e6   :  { %2105 = vperm.xlu1 %7009, %v124_v5   ;;  %v7162_v5 = vld [vmem:[#allocation2 + $0x3a4] ss:$16 sps:$4 sm:$0xff]  }
 0x2ea   :  { %2115 = vperm.xlu1 %7009, %v126_v49   ;;  %v7163_v49 = vld [vmem:[#allocation2 + $0x16c] ss:$16 sps:$4 sm:$0xff]  }
 0x2ec   :  { %3149 = vmatmul.mubr.bf16.gmra.mxu0 %v7116_v26  ;;  %3358 = vmatmul.mubr.bf16.gmra.mxu1 %v7117_v18 }
 0x2ed   :  { %3156 = vmatprep.mubr.bf16.mxu0 %v7118_v6  ;;  %3365 = vmatprep.mubr.bf16.mxu1 %v7120_v24 }
 0x2ee   :  { %2125 = vperm.xlu1 %7009, %v128_v10  }
 0x2f2   :  { %2135 = vperm.xlu1 %7009, %v130_v39  }
 0x2f4   :  { %3157 = vmatmul.mubr.bf16.gmra.mxu0 %v7122_v28  ;;  %3366 = vmatmul.mubr.bf16.gmra.mxu1 %v7123_v45 }
 0x2f5   :  { %3164 = vmatprep.mubr.bf16.mxu0 %v7124_v21  ;;  %3373 = vmatprep.mubr.bf16.mxu1 %v7126_v52  ;;  %v7160_v21 = vld [vmem:[#allocation2 + $0x3a0] ss:$16 sps:$4 sm:$0xff]   ;;  %v7165_v52 = vld [vmem:[#allocation2 + $0x168] ss:$16 sps:$4 sm:$0xff]  }
 0x2f6   :  { %2145 = vperm.xlu1 %7009, %v132_v32   ;;  %v7168_v32 = vld [vmem:[#allocation2 + $0x3c4] ss:$16 sps:$4 sm:$0xff]  }
 0x2fc   :  { %3165 = vmatmul.mubr.bf16.gmra.mxu0 %v7128_v47  ;;  %3374 = vmatmul.mubr.bf16.gmra.mxu1 %v7129_v29  ;;  %v7169_v47 = vld [vmem:[#allocation2 + $0x18c] ss:$16 sps:$4 sm:$0xff]  }
 0x2fd   :  { %3172 = vmatprep.mubr.bf16.mxu0 %v7130_v19  ;;  %3381 = vmatprep.mubr.bf16.mxu1 %v7132_v16 }
 0x304   :  { %v9785_v2 = vpop.f32.mrf.mxu0  ;;  %3173 = vmatmul.mubr.bf16.gmra.mxu0 %v7134_v27  ;;  %3382 = vmatmul.mubr.bf16.gmra.mxu1 %v7135_v23  ;;  %v9787_v31 = vpop.f32.mrf.mxu1 }
 0x305   :  { %11953 = vst [vmem:[#allocation30_spill] sm:$0xff] %v9787_v31  ;;  %3180 = vmatprep.mubr.bf16.mxu0 %v7136_v60  ;;  %3389 = vmatprep.mubr.bf16.mxu1 %v7138_v15 }
 0x306   :  { %v2984_v37 = vpop.f32.mrf.mxu0  ;;  %v3240_v43 = vpop.f32.mrf.mxu1 }
 0x307   :  { %v7166_v43 = vld [vmem:[#allocation2 + $0x3c0] ss:$16 sps:$4 sm:$0xff]  }
 0x308   :  { %v9789_v1 = vpop.f32.mrf.mxu0  ;;  %v9791_v59 = vpop.f32.mrf.mxu1 }
 0x309   :  { %11954 = vst [vmem:[#allocation84_spill] sm:$0xff] %v9791_v59 }
 0x30a   :  { %v2987_v0 = vpop.f32.mrf.mxu0  ;;  %v3243_v11 = vpop.f32.mrf.mxu1 }
 0x30c   :  { %v9793_v62 = vpop.f32.mrf.mxu0  ;;  %3181 = vmatmul.mubr.bf16.gmra.mxu0 %v7140_v34  ;;  %3390 = vmatmul.mubr.bf16.gmra.mxu1 %v7141_v58  ;;  %v7171_v34 = vld [vmem:[#allocation2 + $0x188] ss:$16 sps:$4 sm:$0xff]   ;;  %v7174_v58 = vld [vmem:[#allocation2 + $0x3e4] ss:$16 sps:$4 sm:$0xff]  }
 0x30d   :  { %3188 = vmatprep.mubr.bf16.mxu0 %v7142_v48  ;;  %3397 = vmatprep.mubr.bf16.mxu1 %v7144_v35  ;;  %v7175_v48 = vld [vmem:[#allocation2 + $0x1ac] ss:$16 sps:$4 sm:$0xff]  }
 0x30e   :  { %v2992_v9 = vpop.f32.mrf.mxu0  ;;  %v9795_v36 = vpop.f32.mrf.mxu1 }
 0x30f   :  { %11955 = vst [vmem:[#allocation85_spill] sm:$0xff] %v9795_v36 }
 0x310   :  { %v9797_v38 = vpop.f32.mrf.mxu0  ;;  %v3248_v30 = vpop.f32.mrf.mxu1 }
 0x312   :  { %v2995_v50 = vpop.f32.mrf.mxu0  ;;  %v9799_v7 = vpop.f32.mrf.mxu1 }
 0x313   :  { %11956 = vst [vmem:[#allocation17_spill] sm:$0xff] %v9799_v7  ;;  %v7177_v50 = vld [vmem:[#allocation2 + $0x1a8] ss:$16 sps:$4 sm:$0xff]  }
 0x314   :  { %v9801_v44 = vpop.f32.mrf.mxu0  ;;  %3189 = vmatmul.mubr.bf16.gmra.mxu0 %v7146_v42  ;;  %3398 = vmatmul.mubr.bf16.gmra.mxu1 %v7147_v55  ;;  %v3251_v4 = vpop.f32.mrf.mxu1 }
 0x315   :  { %3196 = vmatprep.mubr.bf16.mxu0 %v7148_v13  ;;  %3405 = vmatprep.mubr.bf16.mxu1 %v7150_v53  ;;  %v7172_v53 = vld [vmem:[#allocation2 + $0x3e0] ss:$16 sps:$4 sm:$0xff]   ;;  %v7178_v4 = vld [vmem:[#allocation2 + $0x1cc] ss:$16 sps:$4 sm:$0xff]  }
 0x316   :  { %v3000_v63 = vpop.f32.mrf.mxu0  ;;  %v9803_v41 = vpop.f32.mrf.mxu1 }
 0x317   :  { %11957 = vst [vmem:[#allocation27_spill] sm:$0xff] %v9803_v41  ;;  %v1818_v41 = vpop.permute.xlu0 %1817 }
 0x318   :  { %v9805_v20 = vpop.f32.mrf.mxu0  ;;  %v3256_v12 = vpop.f32.mrf.mxu1 }
 0x31a   :  { %v3003_v33 = vpop.f32.mrf.mxu0  ;;  %v9807_v51 = vpop.f32.mrf.mxu1 }
 0x31b   :  { %11958 = vst [vmem:[#allocation28_spill] sm:$0xff] %v9807_v51 }
 0x31c   :  { %v9809_v40 = vpop.f32.mrf.mxu0  ;;  %3197 = vmatmul.mubr.bf16.gmra.mxu0 %v7152_v61  ;;  %3406 = vmatmul.mubr.bf16.gmra.mxu1 %v7153_v8  ;;  %v3259_v46 = vpop.f32.mrf.mxu1 }
 0x31d   :  { %3204 = vmatprep.mubr.bf16.mxu0 %v7156_v14  ;;  %3413 = vmatprep.mubr.bf16.mxu1 %v7157_v56 }
 0x31e   :  { %v3008_v54 = vpop.f32.mrf.mxu0 }
 0x31f   :  { %v9811_v22 = vpop.f32.mrf.mxu1  ;;  %v7180_v54 = vld [vmem:[#allocation2 + $0x1c8] ss:$16 sps:$4 sm:$0xff]  }
 0x320   :  { %11959 = vst [vmem:[#allocation25_spill] sm:$0xff] %v9811_v22  ;;  %v9813_v17 = vpop.f32.mrf.mxu0 }
 0x321   :  { %v3264_v26 = vpop.f32.mrf.mxu1 }
 0x322   :  { %v3011_v18 = vpop.f32.mrf.mxu0 }
 0x323   :  { %v9815_v6 = vpop.f32.mrf.mxu1 }
 0x324   :  { %11960 = vst [vmem:[#allocation82_spill] sm:$0xff] %v9815_v6  ;;  %v9817_v24 = vpop.f32.mrf.mxu0  ;;  %3205 = vmatmul.mubr.bf16.gmra.mxu0 %v7154_v3  ;;  %3414 = vmatmul.mubr.bf16.gmra.mxu1 %v7159_v25  ;;  %v7181_v3 = vld [vmem:[#allocation2 + $0x1ec] ss:$16 sps:$4 sm:$0xff]  }
 0x325   :  { %3212 = vmatprep.mubr.bf16.mxu0 %v7162_v5  ;;  %3421 = vmatprep.mubr.bf16.mxu1 %v7163_v49  ;;  %v3267_v10 = vpop.f32.mrf.mxu1 }
 0x326   :  { %v3016_v39 = vpop.f32.mrf.mxu0 }
 0x327   :  { %v9819_v28 = vpop.f32.mrf.mxu1 }
 0x328   :  { %11961 = vst [vmem:[#allocation83_spill] sm:$0xff] %v9819_v28  ;;  %v9821_v45 = vpop.f32.mrf.mxu0 }
 0x329   :  { %v3272_v29 = vpop.f32.mrf.mxu1 }
 0x32a   :  { %v3019_v19 = vpop.f32.mrf.mxu0 }
 0x32b   :  { %v9823_v16 = vpop.f32.mrf.mxu1 }
 0x32c   :  { %11962 = vst [vmem:[#allocation26_spill] sm:$0xff] %v9823_v16  ;;  %v9825_v27 = vpop.f32.mrf.mxu0  ;;  %3213 = vmatmul.mubr.bf16.gmra.mxu0 %v7160_v21  ;;  %3422 = vmatmul.mubr.bf16.gmra.mxu1 %v7165_v52  ;;  %v7183_v21 = vld [vmem:[#allocation2 + $0x1e8] ss:$16 sps:$4 sm:$0xff]   ;;  %v7184_v52 = vld [vmem:[#allocation2 + $0x20c] ss:$16 sps:$4 sm:$0xff]  }
 0x32d   :  { %3220 = vmatprep.mubr.bf16.mxu0 %v7168_v32  ;;  %3429 = vmatprep.mubr.bf16.mxu1 %v7169_v47  ;;  %v3275_v23 = vpop.f32.mrf.mxu1 }
 0x32e   :  { %v3024_v60 = vpop.f32.mrf.mxu0  ;;  %v7186_v23 = vld [vmem:[#allocation2 + $0x208] ss:$16 sps:$4 sm:$0xff]  }
 0x32f   :  { %v9827_v15 = vpop.f32.mrf.mxu1  ;;  %v7187_v60 = vld [vmem:[#allocation2 + $0x22c] ss:$16 sps:$4 sm:$0xff]  }
 0x330   :  { %11963 = vst [vmem:[#allocation16_spill] sm:$0xff] %v9827_v15  ;;  %v9829_v37 = vpop.f32.mrf.mxu0  ;;  %v1830_v15 = vpop.permute.xlu0 %1829 }
 0x331   :  { %v3280_v35 = vpop.f32.mrf.mxu1 }
 0x332   :  { %v3027_v0 = vpop.f32.mrf.mxu0  ;;  %v7189_v35 = vld [vmem:[#allocation2 + $0x228] ss:$16 sps:$4 sm:$0xff]  }
 0x333   :  { %v9831_v11 = vpop.f32.mrf.mxu1  ;;  %v7190_v0 = vld [vmem:[#allocation2 + $0x24c] ss:$16 sps:$4 sm:$0xff]  }
 0x334   :  { %11964 = vst [vmem:[#allocation23_spill] sm:$0xff] %v9831_v11  ;;  %v9833_v9 = vpop.f32.mrf.mxu0  ;;  %3221 = vmatmul.mubr.bf16.gmra.mxu0 %v7166_v43  ;;  %3430 = vmatmul.mubr.bf16.gmra.mxu1 %v7171_v34  ;;  %v1838_v16 = vpop.permute.xlu0 %1837 }
 0x335   :  { %3228 = vmatprep.mubr.bf16.mxu0 %v7174_v58  ;;  %3437 = vmatprep.mubr.bf16.mxu1 %v7175_v48  ;;  %v3283_v42 = vpop.f32.mrf.mxu1 }
 0x336   :  { %v3032_v55 = vpop.f32.mrf.mxu0 }
 0x337   :  { %v9835_v30 = vpop.f32.mrf.mxu1 }
 0x338   :  { %11965 = vst [vmem:[#allocation80_spill] sm:$0xff] %v9835_v30  ;;  %v9837_v13 = vpop.f32.mrf.mxu0  ;;  %v7211_v30 = vld [vmem:[#allocation2 + $0x328] ss:$16 sps:$4 sm:$0xff]  }
 0x339   :  { %v3288_v63 = vpop.f32.mrf.mxu1 }
 0x33a   :  { %v3035_v61 = vpop.f32.mrf.mxu0  ;;  %v7193_v63 = vld [vmem:[#allocation2 + $0x26c] ss:$16 sps:$4 sm:$0xff]  }
 0x33b   :  { %v9839_v8 = vpop.f32.mrf.mxu1 }
 0x33c   :  { %11966 = vst [vmem:[#allocation81_spill] sm:$0xff] %v9839_v8  ;;  %v9841_v12 = vpop.f32.mrf.mxu0  ;;  %3229 = vmatmul.mubr.bf16.gmra.mxu0 %v7172_v53  ;;  %3438 = vmatmul.mubr.bf16.gmra.mxu1 %v7177_v50 }
 0x33d   :  { %3445 = vmatprep.mubr.bf16.mxu1 %v7178_v4  ;;  %v3291_v14 = vpop.f32.mrf.mxu1  ;;  %v7192_v4 = vld [vmem:[#allocation2 + $0x248] ss:$16 sps:$4 sm:$0xff]  }
 0x33e   :  { %v3040_v56 = vpop.f32.mrf.mxu0 }
 0x33f   :  { %v9843_v33 = vpop.f32.mrf.mxu1 }
 0x340   :  { %11967 = vst [vmem:[#allocation24_spill] sm:$0xff] %v9843_v33  ;;  %v9845_v46 = vpop.f32.mrf.mxu0 }
 0x341   :  { %v3296_v25 = vpop.f32.mrf.mxu1 }
 0x342   :  { %v3043_v5 = vpop.f32.mrf.mxu0  ;;  %v7198_v25 = vld [vmem:[#allocation2 + $0x28c] ss:$16 sps:$4 sm:$0xff]  }
 0x343   :  { %v9847_v49 = vpop.f32.mrf.mxu1 }
 0x344   :  { %11968 = vst [vmem:[#allocation21_spill] sm:$0xff] %v9847_v49  ;;  %v9849_v26 = vpop.f32.mrf.mxu0  ;;  %3446 = vmatmul.mubr.bf16.gmra.mxu1 %v7180_v54 }
 0x345   :  { %3453 = vmatprep.mubr.bf16.mxu1 %v7181_v3  ;;  %v3299_v18 = vpop.f32.mrf.mxu1  ;;  %v7195_v3 = vld [vmem:[#allocation2 + $0x268] ss:$16 sps:$4 sm:$0xff]  }
 0x346   :  { %v3048_v10 = vpop.f32.mrf.mxu0 }
 0x348   :  { %v9851_v39 = vpop.f32.mrf.mxu0 }
 0x34a   :  { %v3051_v32 = vpop.f32.mrf.mxu0 }
 0x34b   :  { %v7201_v32 = vld [vmem:[#allocation2 + $0x2ac] ss:$16 sps:$4 sm:$0xff]  }
 0x34c   :  { %v9853_v47 = vpop.f32.mrf.mxu0  ;;  %3454 = vmatmul.mubr.bf16.gmra.mxu1 %v7183_v21 }
 0x34d   :  { %3461 = vmatprep.mubr.bf16.mxu1 %v7184_v52  ;;  %v7196_v52 = vld [vmem:[#allocation2 + $0x288] ss:$16 sps:$4 sm:$0xff]  }
 0x34e   :  { %v3056_v29 = vpop.f32.mrf.mxu0 }
 0x350   :  { %v9855_v19 = vpop.f32.mrf.mxu0 }
 0x352   :  { %v3059_v43 = vpop.f32.mrf.mxu0 }
 0x354   :  { %v9857_v34 = vpop.f32.mrf.mxu0  ;;  %3462 = vmatmul.mubr.bf16.gmra.mxu1 %v7186_v23 }
 0x355   :  { %3469 = vmatprep.mubr.bf16.mxu1 %v7187_v60 }
 0x356   :  { %v3064_v58 = vpop.f32.mrf.mxu0 }
 0x357   :  { %v7199_v58 = vld [vmem:[#allocation2 + $0x2a8] ss:$16 sps:$4 sm:$0xff]  }
 0x358   :  { %v9859_v48 = vpop.f32.mrf.mxu0 }
 0x35a   :  { %v3067_v42 = vpop.f32.mrf.mxu0 }
 0x35c   :  { %v9861_v55 = vpop.f32.mrf.mxu0  ;;  %3470 = vmatmul.mubr.bf16.gmra.mxu1 %v7189_v35  ;;  %v7204_v35 = vld [vmem:[#allocation2 + $0x2cc] ss:$16 sps:$4 sm:$0xff]  }
 0x35d   :  { %3477 = vmatprep.mubr.bf16.mxu1 %v7190_v0 }
 0x35e   :  { %v3072_v53 = vpop.f32.mrf.mxu0 }
 0x360   :  { %v9863_v50 = vpop.f32.mrf.mxu0 }
 0x362   :  { %v3075_v61 = vpop.f32.mrf.mxu0 }
 0x363   :  { %v7207_v61 = vld [vmem:[#allocation2 + $0x2ec] ss:$16 sps:$4 sm:$0xff]  }
 0x364   :  { %v9865_v14 = vpop.f32.mrf.mxu0  ;;  %3478 = vmatmul.mubr.bf16.gmra.mxu1 %v7192_v4 }
 0x365   :  { %3485 = vmatprep.mubr.bf16.mxu1 %v7193_v63  ;;  %v7202_v63 = vld [vmem:[#allocation2 + $0x2c8] ss:$16 sps:$4 sm:$0xff]  }
 0x366   :  { %v3080_v56 = vpop.f32.mrf.mxu0 }
 0x368   :  { %v9867_v54 = vpop.f32.mrf.mxu0 }
 0x36a   :  { %v3083_v5 = vpop.f32.mrf.mxu0 }
 0x36c   :  { %v9869_v18 = vpop.f32.mrf.mxu0  ;;  %3486 = vmatmul.mubr.bf16.gmra.mxu1 %v7195_v3 }
 0x36d   :  { %3493 = vmatprep.mubr.bf16.mxu1 %v7198_v25 }
 0x36e   :  { %v3088_v10 = vpop.f32.mrf.mxu0 }
 0x36f   :  { %v7205_v10 = vld [vmem:[#allocation2 + $0x2e8] ss:$16 sps:$4 sm:$0xff]  }
 0x370   :  { %v9871_v21 = vpop.f32.mrf.mxu0 }
 0x372   :  { %v3091_v29 = vpop.f32.mrf.mxu0 }
 0x374   :  { %v9873_v23 = vpop.f32.mrf.mxu0  ;;  %3494 = vmatmul.mubr.bf16.gmra.mxu1 %v7196_v52  ;;  %v7210_v52 = vld [vmem:[#allocation2 + $0x30c] ss:$16 sps:$4 sm:$0xff]  }
 0x375   :  { %3501 = vmatprep.mubr.bf16.mxu1 %v7201_v32 }
 0x376   :  { %v3096_v60 = vpop.f32.mrf.mxu0 }
 0x378   :  { %v9875_v43 = vpop.f32.mrf.mxu0 }
 0x37a   :  { %v3099_v0 = vpop.f32.mrf.mxu0 }
 0x37b   :  { %v7208_v0 = vld [vmem:[#allocation2 + $0x308] ss:$16 sps:$4 sm:$0xff]  }
 0x37c   :  { %v9877_v42 = vpop.f32.mrf.mxu0  ;;  %3502 = vmatmul.mubr.bf16.gmra.mxu1 %v7199_v58  ;;  %v1814_v58 = vpop.permute.xlu1 %1813 }
 0x37d   :  { %3509 = vmatprep.mubr.bf16.mxu1 %v7204_v35 }
 0x37e   :  { %v3104_v53 = vpop.f32.mrf.mxu0 }
 0x37f   :  { %v2983_v53 = vadd.f32 %v9785_v2, %v1814_v58 }
 0x380   :  { %v9879_v4 = vpop.f32.mrf.mxu0 }
 0x382   :  { %v3107_v56 = vpop.f32.mrf.mxu0 }
 0x383   :  { %v7213_v56 = vld [vmem:[#allocation2 + $0x32c] ss:$16 sps:$4 sm:$0xff]  }
 0x384   :  { %v9881_v3 = vpop.f32.mrf.mxu0  ;;  %3510 = vmatmul.mubr.bf16.gmra.mxu1 %v7202_v63 }
 0x385   :  { %3517 = vmatprep.mubr.bf16.mxu1 %v7207_v61 }
 0x386   :  { %v3112_v25 = vpop.f32.mrf.mxu0 }
 0x388   :  { %v9883_v5 = vpop.f32.mrf.mxu0 }
 0x38a   :  { %v3115_v32 = vpop.f32.mrf.mxu0 }
 0x38c   :  { %v9885_v29 = vpop.f32.mrf.mxu0  ;;  %3518 = vmatmul.mubr.bf16.gmra.mxu1 %v7205_v10 }
 0x38d   :  { %3525 = vmatprep.mubr.bf16.mxu1 %v7210_v52  ;;  %v1822_v52 = vpop.permute.xlu1 %1821 }
 0x38e   :  { %v3120_v60 = vpop.f32.mrf.mxu0  ;;  %v2991_v2 = vadd.f32 %v9793_v62, %v1822_v52  ;;  %v7214_v52 = vld [vmem:[#allocation2 + $0x348] ss:$16 sps:$4 sm:$0xff]  }
 0x38f   :  { %v2986_v60 = vadd.f32 %v9789_v1, %v1818_v41 }
 0x390   :  { %v9887_v35 = vpop.f32.mrf.mxu0 }
 0x392   :  { %v3123_v63 = vpop.f32.mrf.mxu0 }
 0x393   :  { %v7216_v63 = vld [vmem:[#allocation2 + $0x34c] ss:$16 sps:$4 sm:$0xff]  }
 0x394   :  { %v9890_v61 = vpop.f32.mrf.mxu0  ;;  %v3335_v25 = vpop.f32.mrf.mxu1  ;;  %3526 = vmatmul.mubr.bf16.gmra.mxu1 %v7208_v0 }
 0x395   :  { %v9892_v51 = vadd.f32 %v3335_v25, %v2983_v53  ;;  %3533 = vmatprep.mubr.bf16.mxu1 %v7213_v56  ;;  %v7219_v53 = vld [vmem:[#allocation2 + $0x36c] ss:$16 sps:$4 sm:$0xff]  }
 0x396   :  { %v3128_v32 = vpop.f32.mrf.mxu0  ;;  %v3337_v10 = vpop.f32.mrf.mxu1 }
 0x397   :  { %v1826_v32 = vpop.permute.xlu1 %1825 }
 0x398   :  { %v9895_v33 = vpop.f32.mrf.mxu0  ;;  %v3338_v49 = vpop.f32.mrf.mxu1  ;;  %v2994_v62 = vadd.f32 %v9797_v38, %v1826_v32 }
 0x399   :  { %v9898_v58 = vadd.f32 %v3338_v49, %v2986_v60  ;;  %v2999_v60 = vadd.f32 %v9801_v44, %v1830_v15 }
 0x39a   :  { %v3131_v8 = vpop.f32.mrf.mxu0  ;;  %v3340_v0 = vpop.f32.mrf.mxu1 }
 0x39c   :  { %v9902_v56 = vpop.f32.mrf.mxu0  ;;  %v3343_v25 = vpop.f32.mrf.mxu1  ;;  %3534 = vmatmul.mubr.bf16.gmra.mxu1 %v7211_v30 }
 0x39d   :  { %v9904_v1 = vadd.f32 %v3343_v25, %v2991_v2  ;;  %3541 = vmatprep.mubr.bf16.mxu1 %v7216_v63 }
 0x39e   :  { %v3136_v41 = vpop.f32.mrf.mxu0  ;;  %v3345_v10 = vpop.f32.mrf.mxu1 }
 0x39f   :  { %v1834_v41 = vpop.permute.xlu1 %1833 }
 0x3a0   :  { %v9907_v49 = vpop.f32.mrf.mxu0  ;;  %v3346_v8 = vpop.f32.mrf.mxu1  ;;  %v3002_v44 = vadd.f32 %v9805_v20, %v1834_v41  ;;  %v3007_v20 = vadd.f32 %v9809_v40, %v1838_v16  ;;  %v7228_v40 = vld [vmem:[#allocation2 + $0x3cc] ss:$16 sps:$4 sm:$0xff]  }
 0x3a1   :  { %v9910_v0 = vadd.f32 %v3346_v8, %v2994_v62 }
 0x3a2   :  { %v3139_v11 = vpop.f32.mrf.mxu0  ;;  %v3348_v30 = vpop.f32.mrf.mxu1 }
 0x3a3   :  { %v7217_v11 = vld [vmem:[#allocation2 + $0x368] ss:$16 sps:$4 sm:$0xff]   ;;  %v7222_v30 = vld [vmem:[#allocation2 + $0x38c] ss:$16 sps:$4 sm:$0xff]  }
 0x3a4   :  { %v9914_v63 = vpop.f32.mrf.mxu0  ;;  %v3351_v25 = vpop.f32.mrf.mxu1  ;;  %3542 = vmatmul.mubr.bf16.gmra.mxu1 %v7214_v52  ;;  %v7225_v52 = vld [vmem:[#allocation2 + $0x3ac] ss:$16 sps:$4 sm:$0xff]  }
 0x3a5   :  { %v9916_v38 = vadd.f32 %v3351_v25, %v2999_v60  ;;  %3549 = vmatprep.mubr.bf16.mxu1 %v7219_v53  ;;  %v1842_v25 = vpop.permute.xlu1 %1841 }
 0x3a6   :  { %v3144_v32 = vpop.f32.mrf.mxu0  ;;  %v3353_v10 = vpop.f32.mrf.mxu1 }
 0x3a7   :  { %v3010_v10 = vadd.f32 %v9813_v17, %v1842_v25 }
 0x3a8   :  { %v9919_v15 = vpop.f32.mrf.mxu0  ;;  %v3354_v62 = vpop.f32.mrf.mxu1 }
 0x3a9   :  { %v9921_v8 = vadd.f32 %v3354_v62, %v3002_v44  ;;  %v1850_v36 = vpop.permute.xlu1 %1849 }
 0x3aa   :  { %v3147_v2 = vpop.f32.mrf.mxu0  ;;  %v3356_v28 = vpop.f32.mrf.mxu1 }
 0x3ab   :  { %v7220_v28 = vld [vmem:[#allocation2 + $0x388] ss:$16 sps:$4 sm:$0xff]  }
 0x3ac   :  { %v9925_v60 = vpop.f32.mrf.mxu0  ;;  %v3359_v53 = vpop.f32.mrf.mxu1  ;;  %3550 = vmatmul.mubr.bf16.gmra.mxu1 %v7217_v11 }
 0x3ad   :  { %11969 = vst [vmem:[#allocation78_spill] sm:$0xff] %v9925_v60  ;;  %3557 = vmatprep.mubr.bf16.mxu1 %v7222_v30  ;;  %v9931_v62 = vadd.f32 %v3359_v53, %v3007_v20  ;;  %v1846_v11 = vpop.permute.xlu0 %1845  ;;  %v3018_v20 = vadd.f32 %v9821_v45, %v1850_v36 }
 0x3ae   :  { %v3152_v41 = vpop.f32.mrf.mxu0  ;;  %v3361_v32 = vpop.f32.mrf.mxu1  ;;  %v3015_v17 = vadd.f32 %v9817_v24, %v1846_v11  ;;  %v7231_v24 = vld [vmem:[#allocation2 + $0x3ec] ss:$16 sps:$4 sm:$0xff]  }
 0x3af   :  { %v1858_v32 = vpop.permute.xlu1 %1857 }
 0x3b0   :  { %v9929_v44 = vpop.f32.mrf.mxu0  ;;  %v3362_v2 = vpop.f32.mrf.mxu1 }
 0x3b1   :  { %11970 = vst [vmem:[#allocation79_spill] sm:$0xff] %v9929_v44  ;;  %v9933_v22 = vadd.f32 %v3362_v2, %v3010_v10 }
 0x3b2   :  { %v3155_v6 = vpop.f32.mrf.mxu0  ;;  %v3364_v7 = vpop.f32.mrf.mxu1 }
 0x3b3   :  { %v7223_v7 = vld [vmem:[#allocation2 + $0x3a8] ss:$16 sps:$4 sm:$0xff]  }
 0x3b4   :  { %v9937_v16 = vpop.f32.mrf.mxu0  ;;  %v3367_v30 = vpop.f32.mrf.mxu1  ;;  %3558 = vmatmul.mubr.bf16.gmra.mxu1 %v7220_v28 }
 0x3b5   :  { %11971 = vst [vmem:[#allocation22_spill] sm:$0xff] %v9937_v16  ;;  %3565 = vmatprep.mubr.bf16.mxu1 %v7225_v52  ;;  %v9943_v10 = vadd.f32 %v3367_v30, %v3015_v17  ;;  %v1854_v28 = vpop.permute.xlu0 %1853  ;;  %v1866_v30 = vpop.permute.xlu1 %1865  ;;  %v3026_v17 = vadd.f32 %v9829_v37, %v1858_v32 }
 0x3b6   :  { %v3160_v25 = vpop.f32.mrf.mxu0  ;;  %v3369_v53 = vpop.f32.mrf.mxu1  ;;  %v3023_v36 = vadd.f32 %v9825_v27, %v1854_v28 }
 0x3b8   :  { %v9941_v41 = vpop.f32.mrf.mxu0  ;;  %v3370_v6 = vpop.f32.mrf.mxu1 }
 0x3b9   :  { %11972 = vst [vmem:[#allocation76_spill] sm:$0xff] %v9941_v41  ;;  %v9945_v2 = vadd.f32 %v3370_v6, %v3018_v20  ;;  %v1862_v16 = vpop.permute.xlu0 %1861  ;;  %v1874_v32 = vpop.permute.xlu1 %1873 }
 0x3ba   :  { %v3163_v59 = vpop.f32.mrf.mxu0  ;;  %v3372_v31 = vpop.f32.mrf.mxu1  ;;  %v3031_v28 = vadd.f32 %v9833_v9, %v1862_v16 }
 0x3bb   :  { %v7226_v31 = vld [vmem:[#allocation2 + $0x3c8] ss:$16 sps:$4 sm:$0xff]  }
 0x3bc   :  { %v9949_v52 = vpop.f32.mrf.mxu0  ;;  %v3375_v11 = vpop.f32.mrf.mxu1  ;;  %3566 = vmatmul.mubr.bf16.gmra.mxu1 %v7223_v7 }
 0x3bd   :  { %11973 = vst [vmem:[#allocation77_spill] sm:$0xff] %v9949_v52  ;;  %3573 = vmatprep.mubr.bf16.mxu1 %v7228_v40  ;;  %v9955_v20 = vadd.f32 %v3375_v11, %v3023_v36  ;;  %v7258_v52 = vld [vmem:[#allocation5 + $0x4] ss:$20 sps:$4 sm:$0xff]   ;;  %v1882_v44 = vpop.permute.xlu1 %1881 }
 0x3be   :  { %v3168_v45 = vpop.f32.mrf.mxu0  ;;  %v3377_v25 = vpop.f32.mrf.mxu1  ;;  %5046 = vmatprep.mubr.bf16.mxu0 %v7258_v52  ;;  %v7234_v52 = vld [vmem:[#allocation2 + $0x40c] ss:$16 sps:$4 sm:$0xff]  }
 0x3bf   :  { %v3034_v45 = vadd.f32 %v9837_v13, %v1866_v30 }
 0x3c0   :  { %v9953_v53 = vpop.f32.mrf.mxu0  ;;  %v3378_v59 = vpop.f32.mrf.mxu1 }
 0x3c1   :  { %11974 = vst [vmem:[#allocation19_spill] sm:$0xff] %v9953_v53  ;;  %v9957_v6 = vadd.f32 %v3378_v59, %v3026_v17  ;;  %v7229_v17 = vld [vmem:[#allocation2 + $0x3e8] ss:$16 sps:$4 sm:$0xff]   ;;  %v1870_v59 = vpop.permute.xlu0 %1869 }
 0x3c2   :  { %v3171_v41 = vpop.f32.mrf.mxu0  ;;  %v3380_v7 = vpop.f32.mrf.mxu1  ;;  %v3039_v16 = vadd.f32 %v9841_v12, %v1870_v59 }
 0x3c4   :  { %v9961_v40 = vpop.f32.mrf.mxu0  ;;  %v3383_v37 = vpop.f32.mrf.mxu1  ;;  %3574 = vmatmul.mubr.bf16.gmra.mxu1 %v7226_v31 }
 0x3c5   :  { %11975 = vst [vmem:[#allocation18_spill] sm:$0xff] %v9961_v40  ;;  %3581 = vmatprep.mubr.bf16.mxu1 %v7231_v24  ;;  %v3384_v7 = vadd.f32 %v3383_v37, %v3031_v28  ;;  %v1878_v30 = vpop.permute.xlu0 %1877  ;;  %v7232_v28 = vld [vmem:[#allocation2 + $0x408] ss:$16 sps:$4 sm:$0xff]  }
 0x3c6   :  { %v3176_v11 = vpop.f32.mrf.mxu0  ;;  %v3385_v36 = vpop.f32.mrf.mxu1 }
 0x3c7   :  { %v3042_v11 = vadd.f32 %v9845_v46, %v1874_v32 }
 0x3c8   :  { %v9965_v25 = vpop.f32.mrf.mxu0  ;;  %v3386_v41 = vpop.f32.mrf.mxu1 }
 0x3c9   :  { %v3387_v27 = vadd.f32 %v3386_v41, %v3034_v45  ;;  %v7237_v41 = vld [vmem:[#allocation2 + $0x42c] ss:$16 sps:$4 sm:$0xff]  }
 0x3ca   :  { %v3179_v53 = vpop.f32.mrf.mxu0  ;;  %v3388_v40 = vpop.f32.mrf.mxu1 }
 0x3cb   :  { %v3660_v31 = vpack.c.bf16 %v3387_v27, %v3384_v7  ;;  %v1890_v53 = vpop.permute.xlu1 %1889  ;;  %v3047_v40 = vadd.f32 %v9849_v26, %v1878_v30  ;;  %v1886_v30 = vpop.permute.xlu0 %1885 }
 0x3cc   :  { %v9967_v60 = vpop.f32.mrf.mxu0  ;;  %v3391_v9 = vpop.f32.mrf.mxu1  ;;  %3582 = vmatmul.mubr.bf16.gmra.mxu1 %v7229_v17 }
 0x3cd   :  { %11976 = vst [vmem:[#allocation74_spill] sm:$0xff] %v9967_v60  ;;  %3589 = vmatprep.mubr.bf16.mxu1 %v7234_v52  ;;  %v3392_v27 = vadd.f32 %v3391_v9, %v3039_v16  ;;  %v7235_v16 = vld [vmem:[#allocation2 + $0x428] ss:$16 sps:$4 sm:$0xff]  }
 0x3ce   :  { %v3184_v13 = vpop.f32.mrf.mxu0  ;;  %v3393_v24 = vpop.f32.mrf.mxu1 }
 0x3cf   :  { %v1898_v13 = vpop.permute.xlu1 %1897  ;;  %v3050_v24 = vadd.f32 %v9851_v39, %v1882_v44  ;;  %v11977_v44 = vpack.c.bf16 %v9957_v6, %v9955_v20  ;;  %v7243_v20 = vld [vmem:[#allocation2 + $0x46c] ss:$16 sps:$4 sm:$0xff]  }
 0x3d0   :  { %v9971_v36 = vpop.f32.mrf.mxu0  ;;  %v3394_v37 = vpop.f32.mrf.mxu1 }
 0x3d1   :  { %v3395_v45 = vadd.f32 %v3394_v37, %v3042_v11  ;;  %v7240_v37 = vld [vmem:[#allocation2 + $0x44c] ss:$16 sps:$4 sm:$0xff]  }
 0x3d2   :  { %v3187_v7 = vpop.f32.mrf.mxu0  ;;  %v3396_v17 = vpop.f32.mrf.mxu1 }
 0x3d3   :  { %v3661_v60 = vpack.c.bf16 %v3395_v45, %v3392_v27  ;;  %v1906_v39 = vpop.permute.xlu1 %1905 }
 0x3d4   :  { %v9974_v12 = vpop.f32.mrf.mxu0  ;;  %v3399_v59 = vpop.f32.mrf.mxu1  ;;  %3590 = vmatmul.mubr.bf16.gmra.mxu1 %v7232_v28 }
 0x3d5   :  { %7480 = vtanh.bf16 %v3661_v60  ;;  %v9976_v52 = vadd.f32 %v3399_v59, %v3047_v40  ;;  %3597 = vmatprep.mubr.bf16.mxu1 %v7237_v41  ;;  %v3055_v60 = vadd.f32 %v9853_v47, %v1886_v30  ;;  %v1894_v59 = vpop.permute.xlu0 %1893  ;;  %v3058_v47 = vadd.f32 %v9855_v19, %v1890_v53 }
 0x3d6   :  { %v3192_v46 = vpop.f32.mrf.mxu0  ;;  %v3401_v32 = vpop.f32.mrf.mxu1  ;;  %7482 = vtanh.bf16 %v3660_v31 }
 0x3d7   :  { %7484 = vtanh.bf16 %v11977_v44 }
 0x3d8   :  { %v9979_v26 = vpop.f32.mrf.mxu0  ;;  %v3402_v9 = vpop.f32.mrf.mxu1 }
 0x3d9   :  { %v9981_v11 = vadd.f32 %v3402_v9, %v3050_v24  ;;  %v7238_v24 = vld [vmem:[#allocation2 + $0x448] ss:$16 sps:$4 sm:$0xff]   ;;  %v11978_v9 = vpack.c.bf16 %v9945_v2, %v9943_v10  ;;  %v1902_v10 = vpop.permute.xlu0 %1901  ;;  %v11979_v2 = vpack.c.bf16 %v9933_v22, %v9931_v62  ;;  %v11980_v22 = vpack.c.bf16 %v9921_v8, %v9916_v38 }
 0x3da   :  { %v3195_v27 = vpop.f32.mrf.mxu0  ;;  %v3404_v28 = vpop.f32.mrf.mxu1  ;;  %v11981_v38 = vpack.c.bf16 %v9910_v0, %v9904_v1  ;;  %v11982_v1 = vpack.c.bf16 %v9898_v58, %v9892_v51 }
 0x3db   :  { %v3662_v40 = vpack.c.bf16 %v9981_v11, %v9976_v52  ;;  %7486 = vtanh.bf16 %v11978_v9  ;;  %v3063_v28 = vadd.f32 %v9857_v34, %v1894_v59  ;;  %v7246_v9 = vld [vmem:[#allocation2 + $0x48c] ss:$16 sps:$4 sm:$0xff]   ;;  %v7256_v11 = vld [vmem:[#allocation5] ss:$20 sps:$4 sm:$0xff]  }
 0x3dc   :  { %v9986_v45 = vpop.f32.mrf.mxu0  ;;  %v3407_v41 = vpop.f32.mrf.mxu1  ;;  %3598 = vmatmul.mubr.bf16.gmra.mxu1 %v7235_v16  ;;  %7488 = vtanh.bf16 %v11979_v2 }
 0x3dd   :  { %v9991_v31 = vadd.f32 %v3407_v41, %v3055_v60  ;;  %3605 = vmatprep.mubr.bf16.mxu1 %v7240_v37  ;;  %v10001_v37 = vpop.permute.xlu1 %1933  ;;  %7490 = vtanh.bf16 %v11980_v22 }
 0x3de   :  { %v3200_v7 = vpop.f32.mrf.mxu0  ;;  %v3409_v17 = vpop.f32.mrf.mxu1  ;;  %7492 = vtanh.bf16 %v11981_v38 }
 0x3df   :  { %v3066_v17 = vadd.f32 %v9859_v48, %v1898_v13  ;;  %v1910_v48 = vpop.permute.xlu0 %1909  ;;  %7494 = vtanh.bf16 %v11982_v1 }
 0x3e0   :  { %v9994_v46 = vpop.f32.mrf.mxu0  ;;  %v3410_v32 = vpop.f32.mrf.mxu1 }
 0x3e1   :  { %v9999_v16 = vadd.f32 %v3410_v32, %v3058_v47  ;;  %v7241_v32 = vld [vmem:[#allocation2 + $0x468] ss:$16 sps:$4 sm:$0xff]  }
 0x3e2   :  { %v3203_v6 = vpop.f32.mrf.mxu0  ;;  %v3412_v30 = vpop.f32.mrf.mxu1 }
 0x3e3   :  { %v7481_v27 = vpop.eup %7480  ;;  %v3663_v19 = vpack.c.bf16 %v9999_v16, %v9991_v31  ;;  %v10037_v22 = vpop.permute.xlu0 %1937 }
 0x3e4   :  { %v10006_v53 = vpop.f32.mrf.mxu0  ;;  %v3415_v60 = vpop.f32.mrf.mxu1  ;;  %3606 = vmatmul.mubr.bf16.gmra.mxu1 %v7238_v24  ;;  %5015 = vmatpush1.bf16.msra.mxu0 %v7481_v27 }
 0x3e5   :  { %v10011_v41 = vadd.f32 %v3415_v60, %v3063_v28  ;;  %5016 = vmatprep.subr.bf16.mxu0 %v11812_v57  ;;  %3613 = vmatprep.mubr.bf16.mxu1 %v7243_v20  ;;  %v7483_v7 = vpop.eup %7482  ;;  %v10017_v24 = vpop.permute.xlu1 %1925 }
 0x3e6   :  { %v3208_v44 = vpop.f32.mrf.mxu0  ;;  %v3417_v34 = vpop.f32.mrf.mxu1 }
 0x3e7   :  { %v7485_v30 = vpop.eup %7484  ;;  %v3071_v34 = vadd.f32 %v9861_v55, %v1902_v10  ;;  %v7249_v55 = vld [vmem:[#allocation2 + $0x4ac] ss:$16 sps:$4 sm:$0xff]  }
 0x3e8   :  { %v10015_v59 = vpop.f32.mrf.mxu0  ;;  %v3418_v47 = vpop.f32.mrf.mxu1  ;;  %5017 = vmatpush1.bf16.msra.mxu0 %v7483_v7  ;;  %v3074_v7 = vadd.f32 %v9863_v50, %v1906_v39 }
 0x3e9   :  { %v10022_v62 = vadd.f32 %v3418_v47, %v3066_v17  ;;  %5018 = vmatprep.subr.bf16.mxu0 %v11812_v57  ;;  %v7487_v2 = vpop.eup %7486  ;;  %v1918_v44 = vpop.permute.xlu1 %1917 }
 0x3ea   :  { %v3211_v20 = vpop.f32.mrf.mxu0  ;;  %v3420_v6 = vpop.f32.mrf.mxu1 }
 0x3eb   :  { %v3664_v13 = vpack.c.bf16 %v10022_v62, %v10011_v41  ;;  %v7489_v39 = vpop.eup %7488 }
 0x3ec   :  { %v10027_v27 = vpop.f32.mrf.mxu0  ;;  %v3423_v28 = vpop.f32.mrf.mxu1  ;;  %3614 = vmatmul.mubr.bf16.gmra.mxu1 %v7241_v32  ;;  %5019 = vmatpush1.bf16.msra.mxu0 %v7485_v30  ;;  %v7244_v32 = vld [vmem:[#allocation2 + $0x488] ss:$16 sps:$4 sm:$0xff]  }
 0x3ed   :  { %5020 = vmatprep.subr.bf16.mxu0 %v11812_v57  ;;  %3621 = vmatprep.mubr.bf16.mxu1 %v7246_v9  ;;  %v10042_v0 = vadd.f32 %v3423_v28, %v3071_v34  ;;  %v1914_v51 = vpop.permute.xlu1 %1913  ;;  %v7491_v38 = vpop.eup %7490 }
 0x3ee   :  { %v3216_v8 = vpop.f32.mrf.mxu0  ;;  %v3425_v60 = vpop.f32.mrf.mxu1 }
 0x3ef   :  { %v1930_v8 = vpop.permute.xlu0 %1929  ;;  %v3079_v60 = vadd.f32 %v9865_v14, %v1910_v48 }
 0x3f0   :  { %v10035_v17 = vpop.f32.mrf.mxu0  ;;  %v3426_v47 = vpop.f32.mrf.mxu1  ;;  %5021 = vmatpush1.bf16.msra.mxu0 %v7487_v2  ;;  %v3082_v2 = vadd.f32 %v9867_v54, %v1914_v51 }
 0x3f1   :  { %v10044_v9 = vadd.f32 %v3426_v47, %v3074_v7  ;;  %5022 = vmatprep.subr.bf16.mxu0 %v11812_v57  ;;  %v7247_v47 = vld [vmem:[#allocation2 + $0x4a8] ss:$16 sps:$4 sm:$0xff]  }
 0x3f2   :  { %v3219_v10 = vpop.f32.mrf.mxu0  ;;  %v3428_v50 = vpop.f32.mrf.mxu1 }
 0x3f3   :  { %v3665_v20 = vpack.c.bf16 %v10044_v9, %v10042_v0  ;;  %v1922_v51 = vpop.permute.xlu0 %1921 }
 0x3f4   :  { %v10049_v6 = vpop.f32.mrf.mxu0  ;;  %v3431_v30 = vpop.f32.mrf.mxu1  ;;  %3622 = vmatmul.mubr.bf16.gmra.mxu1 %v7244_v32  ;;  %5023 = vmatpush1.bf16.msra.mxu0 %v7489_v39 }
 0x3f5   :  { %5024 = vmatprep.subr.bf16.mxu0 %v11812_v57  ;;  %3629 = vmatprep.mubr.bf16.mxu1 %v7249_v55  ;;  %v10056_v1 = vadd.f32 %v3431_v30, %v3079_v60  ;;  %v7252_v55 = vld [vmem:[#allocation2 + $0x4cc] ss:$16 sps:$4 sm:$0xff]   ;;  %v7493_v39 = vpop.eup %7492  ;;  %v3090_v60 = vadd.f32 %v9871_v21, %v1922_v51 }
 0x3f6   :  { %v3224_v58 = vpop.f32.mrf.mxu0  ;;  %v3433_v28 = vpop.f32.mrf.mxu1 }
 0x3f7   :  { %v7495_v28 = vpop.eup %7494 }
 0x3f8   :  { %v10054_v34 = vpop.f32.mrf.mxu0  ;;  %v3434_v7 = vpop.f32.mrf.mxu1  ;;  %5025 = vmatpush1.bf16.msra.mxu0 %v7491_v38  ;;  %v3087_v38 = vadd.f32 %v9869_v18, %v1918_v44  ;;  %v3095_v44 = vadd.f32 %v9873_v23, %v10017_v24  ;;  %v10089_v23 = vld [vmem:[%s11562_s2] sm:$0xff] }
 0x3f9   :  { %v10058_v32 = vadd.f32 %v3434_v7, %v3082_v2  ;;  %5026 = vmatprep.subr.bf16.mxu0 %v11812_v57 }
 0x3fa   :  { %v3227_v10 = vpop.f32.mrf.mxu0  ;;  %v3436_v50 = vpop.f32.mrf.mxu1 }
 0x3fb   :  { %v3666_v14 = vpack.c.bf16 %v10058_v32, %v10056_v1  ;;  %v7250_v10 = vld [vmem:[#allocation2 + $0x4c8] ss:$16 sps:$4 sm:$0xff]  }
 0x3fc   :  { %v10063_v48 = vpop.f32.mrf.mxu0  ;;  %v3439_v54 = vpop.f32.mrf.mxu1  ;;  %3630 = vmatmul.mubr.bf16.gmra.mxu1 %v7247_v47  ;;  %5027 = vmatpush1.bf16.msra.mxu0 %v7493_v39  ;;  %v7255_v39 = vld [vmem:[#allocation2 + $0x4ec] ss:$16 sps:$4 sm:$0xff]  }
 0x3fd   :  { %5028 = vmatprep.subr.bf16.mxu0 %v11812_v57  ;;  %3637 = vmatprep.mubr.bf16.mxu1 %v7252_v55  ;;  %v10070_v50 = vadd.f32 %v3439_v54, %v3087_v38  ;;  %v3098_v54 = vadd.f32 %v9875_v43, %v1930_v8  ;;  %v7868_v38 = vmov 5  }
 0x3fe   :  { %v3232_v30 = vpop.f32.mrf.mxu0  ;;  %v3441_v58 = vpop.f32.mrf.mxu1  ;;  %7012 = vset.pattern.permute.xlu1 %v7868_v38  ;;  %7011 = vset.pattern.permute.xlu0 %v7868_v38 }
 0x3ff   :  { %3927 = vperm.xlu0 %7011, %v10089_v23  }
 0x400   :  { %v10068_v2 = vpop.f32.mrf.mxu0  ;;  %v3442_v7 = vpop.f32.mrf.mxu1  ;;  %5029 = vmatpush1.bf16.msra.mxu0 %v7495_v28  ;;  %v7253_v28 = vld [vmem:[#allocation2 + $0x4e8] ss:$16 sps:$4 sm:$0xff]  }
 0x401   :  { %v10072_v47 = vadd.f32 %v3442_v7, %v3090_v60  ;;  %5030 = vmatprep.subr.bf16.mxu0 %v11812_v57 }
 0x402   :  { %v3444_v55 = vpop.f32.mrf.mxu1  ;;  %v3235_v30 = vpop.f32.mrf.mxu0 }
 0x403   :  { %v3667_v58 = vpack.c.bf16 %v10072_v47, %v10070_v50  ;;  %v10083_v50 = vld [vmem:[%s11562_s2 + $0x8] sm:$0xff]  ;;  %v10101_v47 = vld [vmem:[%s11562_s2 + $0x18] sm:$0xff]  ;;  %v3103_v55 = vadd.f32 %v9877_v42, %v10001_v37  ;;  %v3106_v30 = vadd.f32 %v9879_v4, %v10037_v22  ;;  %v1942_v42 = vpop.permute.xlu0 %1941 }
 0x404   :  { %v3447_v18 = vpop.f32.mrf.mxu1  ;;  %3638 = vmatmul.mubr.bf16.gmra.mxu1 %v7250_v10  ;;  %3931 = vperm.xlu1 %7012, %v10083_v50   ;;  %v10095_v10 = vld [vmem:[%s11562_s2 + $0x10] sm:$0xff]  ;;  %v3111_v4 = vadd.f32 %v9881_v3, %v1942_v42  ;;  %v1946_v3 = vpop.permute.xlu1 %1945 }
 0x405   :  { %3645 = vmatprep.mubr.bf16.mxu1 %v7255_v39  ;;  %v3448_v60 = vadd.f32 %v3447_v18, %v3095_v44  ;;  %3939 = vperm.xlu0 %7011, %v10101_v47  }
 0x406   :  { %v3449_v21 = vpop.f32.mrf.mxu1 }
 0x408   :  { %v3450_v51 = vpop.f32.mrf.mxu1  ;;  %3935 = vperm.xlu1 %7012, %v10095_v10  }
 0x409   :  { %v3451_v7 = vadd.f32 %v3450_v51, %v3098_v54  ;;  %v10111_v54 = vld [vmem:[%s11562_s2 + $0x20] sm:$0xff]  ;;  %v10117_v51 = vld [vmem:[%s11562_s2 + $0x28] sm:$0xff] }
 0x40a   :  { %v3452_v43 = vpop.f32.mrf.mxu1  ;;  %3947 = vperm.xlu0 %7011, %v10117_v51  }
 0x40b   :  { %v3668_v24 = vpack.c.bf16 %v3451_v7, %v3448_v60  ;;  %v10126_v60 = vld [vmem:[%s11562_s2 + $0x30] sm:$0xff]  ;;  %v10132_v7 = vld [vmem:[%s11562_s2 + $0x38] sm:$0xff] }
 0x40c   :  { %v3455_v8 = vpop.f32.mrf.mxu1  ;;  %3646 = vmatmul.mubr.bf16.gmra.mxu1 %v7253_v28  ;;  %3943 = vperm.xlu1 %7012, %v10111_v54  }
 0x40d   :  { %v3456_v21 = vadd.f32 %v3455_v8, %v3103_v55  ;;  %v3114_v8 = vadd.f32 %v9883_v5, %v1946_v3 }
 0x40e   :  { %v3457_v39 = vpop.f32.mrf.mxu1  ;;  %3955 = vperm.xlu0 %7011, %v10132_v7  }
 0x410   :  { %v3458_v18 = vpop.f32.mrf.mxu1  ;;  %3951 = vperm.xlu1 %7012, %v10126_v60  }
 0x411   :  { %v3459_v44 = vadd.f32 %v3458_v18, %v3106_v30  ;;  %v10141_v30 = vld [vmem:[%s11562_s2 + $0x40] sm:$0xff]  ;;  %v10147_v18 = vld [vmem:[%s11562_s2 + $0x48] sm:$0xff] }
 0x412   :  { %v3460_v37 = vpop.f32.mrf.mxu1  ;;  %3963 = vperm.xlu0 %7011, %v10147_v18  }
 0x413   :  { %v3669_v22 = vpack.c.bf16 %v3459_v44, %v3456_v21  ;;  %v1950_v21 = vpop.permute.xlu0 %1949 }
 0x414   :  { %v3463_v28 = vpop.f32.mrf.mxu1  ;;  %3959 = vperm.xlu1 %7012, %v10141_v30  }
 0x415   :  { %7496 = vtanh.bf16 %v3669_v22  ;;  %v10121_v38 = vadd.f32 %v3463_v28, %v3111_v4  ;;  %v10158_v4 = vld [vmem:[%s11562_s2 + $0x50] sm:$0xff]  ;;  %v10164_v22 = vld [vmem:[%s11562_s2 + $0x58] sm:$0xff] }
 0x416   :  { %v3465_v43 = vpop.f32.mrf.mxu1  ;;  %7498 = vtanh.bf16 %v3668_v24  ;;  %v3119_v24 = vadd.f32 %v9885_v29, %v1950_v21  ;;  %3971 = vperm.xlu0 %7011, %v10164_v22   ;;  %v1954_v29 = vpop.permute.xlu1 %1953 }
 0x417   :  { %7500 = vtanh.bf16 %v3667_v58  ;;  %v3122_v58 = vadd.f32 %v9887_v35, %v1954_v29  ;;  %v1958_v35 = vpop.permute.xlu0 %1957 }
 0x418   :  { %v3466_v39 = vpop.f32.mrf.mxu1  ;;  %3967 = vperm.xlu1 %7012, %v10158_v4   ;;  %7502 = vtanh.bf16 %v3666_v14  ;;  %v3127_v32 = vadd.f32 %v9890_v61, %v1958_v35  ;;  %v11992_v14 = vld [vmem:[#allocation79_spill] sm:$0xff] }
 0x419   :  { %v10136_v55 = vadd.f32 %v3466_v39, %v3114_v8  ;;  %v10176_v8 = vld [vmem:[%s11562_s2 + $0x60] sm:$0xff]  ;;  %v10182_v39 = vld [vmem:[%s11562_s2 + $0x68] sm:$0xff]  ;;  %7504 = vtanh.bf16 %v3665_v20 }
 0x41a   :  { %v3468_v5 = vpop.f32.mrf.mxu1  ;;  %3979 = vperm.xlu0 %7011, %v10182_v39   ;;  %v1962_v61 = vpop.permute.xlu1 %1961  ;;  %7506 = vtanh.bf16 %v3664_v13 }
 0x41b   :  { %v3130_v9 = vadd.f32 %v9895_v33, %v1962_v61  ;;  %v10222_v33 = vld [vmem:[%s11562_s2 + $0x88] sm:$0xff]  ;;  %7508 = vtanh.bf16 %v3663_v19  ;;  %v10240_v61 = vld [vmem:[%s11562_s2 + $0x98] sm:$0xff] }
 0x41c   :  { %v3471_v42 = vpop.f32.mrf.mxu1  ;;  %3975 = vperm.xlu1 %7012, %v10176_v8   ;;  %11983 = vst [vmem:[#allocation75_spill] sm:$0xff] %v10240_v61  ;;  %7510 = vtanh.bf16 %v3662_v40 }
 0x41d   :  { %v10153_v37 = vadd.f32 %v3471_v42, %v3119_v24  ;;  %v10197_v42 = vld [vmem:[%s11562_s2 + $0x70] sm:$0xff] }
 0x41e   :  { %v3473_v28 = vpop.f32.mrf.mxu1 }
 0x41f   :  { %v10203_v28 = vld [vmem:[%s11562_s2 + $0x78] sm:$0xff] }
 0x420   :  { %v3474_v3 = vpop.f32.mrf.mxu1  ;;  %3983 = vperm.xlu1 %7012, %v10197_v42   ;;  %3987 = vperm.xlu0 %7011, %v10203_v28  }
 0x421   :  { %v10171_v43 = vadd.f32 %v3474_v3, %v3122_v58  ;;  %v10216_v3 = vld [vmem:[%s11562_s2 + $0x80] sm:$0xff] }
 0x422   :  { %v3476_v21 = vpop.f32.mrf.mxu1 }
 0x423   :  { %v7497_v1 = vpop.eup %7496  ;;  %v1966_v21 = vpop.permute.xlu0 %1965 }
 0x424   :  { %v3479_v5 = vpop.f32.mrf.mxu1  ;;  %5031 = vmatpush2.bf16.msra.mxu0 %v7497_v1  ;;  %v7499_v0 = vpop.eup %7498  ;;  %3991 = vperm.xlu1 %7012, %v10216_v3   ;;  %v10234_v1 = vld [vmem:[%s11562_s2 + $0x90] sm:$0xff]  ;;  %v3135_v16 = vadd.f32 %v9902_v56, %v1966_v21 }
 0x425   :  { %v10191_v24 = vadd.f32 %v3479_v5, %v3127_v32  ;;  %5032 = vmatprep.subr.bf16.mxu0 %v11812_v57  ;;  %3995 = vperm.xlu0 %7011, %v10222_v33   ;;  %v7501_v41 = vpop.eup %7500  ;;  %v1970_v32 = vpop.permute.xlu1 %1969 }
 0x426   :  { %v3481_v29 = vpop.f32.mrf.mxu1  ;;  %v7503_v31 = vpop.eup %7502  ;;  %v3138_v19 = vadd.f32 %v9907_v49, %v1970_v32  ;;  %v10262_v49 = vld [vmem:[%s11562_s2 + $0xa8] sm:$0xff]  ;;  %v10277_v32 = vld [vmem:[%s11562_s2 + $0xb8] sm:$0xff] }
 0x427   :  { %11984 = vst [vmem:[#allocation20_spill] sm:$0xff] %v10262_v49  ;;  %v7505_v52 = vpop.eup %7504  ;;  %11986 = vst [vmem:[#allocation105_spill] sm:$0xff] %v10277_v32 }
 0x428   :  { %v3482_v20 = vpop.f32.mrf.mxu1  ;;  %5033 = vmatpush2.bf16.msra.mxu0 %v7499_v0  ;;  %3999 = vperm.xlu1 %7012, %v10234_v1  }
 0x429   :  { %v10210_v58 = vadd.f32 %v3482_v20, %v3130_v9  ;;  %5034 = vmatprep.subr.bf16.mxu0 %v11812_v57  ;;  %4003 = vperm.xlu0 %7011, %v10240_v61   ;;  %v10256_v20 = vld [vmem:[%s11562_s2 + $0xa0] sm:$0xff] }
 0x42a   :  { %v3484_v35 = vpop.f32.mrf.mxu1 }
 0x42b   :  { %v1974_v35 = vpop.permute.xlu0 %1973 }
 0x42c   :  { %v3487_v13 = vpop.f32.mrf.mxu1  ;;  %5035 = vmatpush2.bf16.msra.mxu0 %v7501_v41  ;;  %4007 = vperm.xlu1 %7012, %v10256_v20   ;;  %v10271_v41 = vld [vmem:[%s11562_s2 + $0xb0] sm:$0xff] }
 0x42d   :  { %5036 = vmatprep.subr.bf16.mxu0 %v11812_v57  ;;  %v10248_v0 = vadd.f32 %v3487_v13, %v3135_v16  ;;  %4011 = vperm.xlu0 %7011, %v10262_v49   ;;  %11985 = vst [vmem:[#allocation45_spill] sm:$0xff] %v10271_v41  ;;  %v1978_v13 = vpop.permute.xlu1 %1977 }
 0x42e   :  { %v3489_v5 = vpop.f32.mrf.mxu1  ;;  %v3146_v16 = vadd.f32 %v9919_v15, %v1978_v13 }
 0x42f   :  { %v7507_v5 = vpop.eup %7506  ;;  %v1982_v13 = vpop.permute.xlu0 %1981 }
 0x430   :  { %v3490_v29 = vpop.f32.mrf.mxu1  ;;  %5037 = vmatpush2.bf16.msra.mxu0 %v7503_v31  ;;  %4015 = vperm.xlu1 %7012, %v10271_v41   ;;  %v3143_v31 = vadd.f32 %v9914_v63, %v1974_v35  ;;  %v10296_v63 = vld [vmem:[%s11562_s2 + $0xc8] sm:$0xff]  ;;  %v7509_v15 = vpop.eup %7508 }
 0x431   :  { %v10250_v9 = vadd.f32 %v3490_v29, %v3138_v19  ;;  %5038 = vmatprep.subr.bf16.mxu0 %v11812_v57  ;;  %4019 = vperm.xlu0 %7011, %v10277_v32   ;;  %11988 = vst [vmem:[#allocation46_spill] sm:$0xff] %v10296_v63 }
 0x432   :  { %v3492_v56 = vpop.f32.mrf.mxu1 }
 0x434   :  { %v3495_v40 = vpop.f32.mrf.mxu1  ;;  %5039 = vmatpush2.bf16.msra.mxu0 %v7505_v52  ;;  %v10290_v52 = vld [vmem:[%s11562_s2 + $0xc0] sm:$0xff] }
 0x435   :  { %5040 = vmatprep.subr.bf16.mxu0 %v11812_v57  ;;  %v10282_v29 = vadd.f32 %v3495_v40, %v3143_v31  ;;  %11987 = vst [vmem:[#allocation106_spill] sm:$0xff] %v10290_v52  ;;  %4023 = vperm.xlu1 %7012, %v10290_v52   ;;  %v1986_v31 = vpop.permute.xlu1 %1985  ;;  %v10323_v52 = vld [vmem:[%s11562_s2 + $0xe0] sm:$0xff] }
 0x436   :  { %v3497_v21 = vpop.f32.mrf.mxu1  ;;  %4027 = vperm.xlu0 %7011, %v10296_v63   ;;  %v3154_v62 = vadd.f32 %v11992_v14, %v1986_v31  ;;  %v7261_v63 = vld [vmem:[#allocation5 + $0x2c] ss:$20 sps:$4 sm:$0xff]   ;;  %11993 = vst [vmem:[#allocation104_spill] sm:$0xff] %v10323_v52 }
 0x437   :  { %v10329_v14 = vld [vmem:[%s11562_s2 + $0xe8] sm:$0xff] }
 0x438   :  { %v3498_v19 = vpop.f32.mrf.mxu1  ;;  %5041 = vmatpush2.bf16.msra.mxu0 %v7507_v5  ;;  %v10305_v5 = vld [vmem:[%s11562_s2 + $0xd0] sm:$0xff]  ;;  %11994 = vst [vmem:[#allocation44_spill] sm:$0xff] %v10329_v14 }
 0x439   :  { %v10284_v56 = vadd.f32 %v3498_v19, %v3146_v16  ;;  %5042 = vmatprep.subr.bf16.mxu0 %v11812_v57  ;;  %11989 = vst [vmem:[#allocation43_spill] sm:$0xff] %v10305_v5  ;;  %4031 = vperm.xlu1 %7012, %v10305_v5   ;;  %v10311_v19 = vld [vmem:[%s11562_s2 + $0xd8] sm:$0xff] }
 0x43a   :  { %v3500_v21 = vpop.f32.mrf.mxu1  ;;  %11990 = vst [vmem:[#allocation103_spill] sm:$0xff] %v10311_v19  ;;  %4035 = vperm.xlu0 %7011, %v10311_v19  }
 0x43b   :  { %v7511_v21 = vpop.eup %7510 }
 0x43c   :  { %v3503_v35 = vpop.f32.mrf.mxu1  ;;  %5043 = vmatpush2.bf16.msra.mxu0 %v7509_v15  ;;  %v11991_v15 = vld [vmem:[#allocation78_spill] sm:$0xff] }
 0x43d   :  { %5044 = vmatprep.subr.bf16.mxu0 %v11812_v57  ;;  %v3151_v44 = vadd.f32 %v11991_v15, %v1982_v13  ;;  %4039 = vperm.xlu1 %7012, %v10323_v52   ;;  %v1994_v13 = vpop.permute.xlu1 %1993 }
 0x43e   :  { %v3505_v16 = vpop.f32.mrf.mxu1  ;;  %4043 = vperm.xlu0 %7011, %v10329_v14   ;;  %v7264_v14 = vld [vmem:[#allocation5 + $0x54] ss:$20 sps:$4 sm:$0xff]  }
 0x43f   :  { %v10316_v32 = vadd.f32 %v3503_v35, %v3151_v44  ;;  %v7309_v16 = vld [vmem:[#allocation5 + $0xc] ss:$20 sps:$4 sm:$0xff]   ;;  %v10337_v35 = vld [vmem:[%s11562_s2 + $0xf0] sm:$0xff] }
 0x440   :  { %v3506_v40 = vpop.f32.mrf.mxu1  ;;  %5045 = vmatpush2.bf16.msra.mxu0 %v7511_v21  ;;  %5335 = vmatprep.mubr.bf16.mxu1 %v7309_v16  ;;  %11995 = vst [vmem:[#allocation41_spill] sm:$0xff] %v10337_v35  ;;  %v7259_v16 = vld [vmem:[#allocation5 + $0x28] ss:$20 sps:$4 sm:$0xff]  }
 0x441   :  { %v10318_v5 = vadd.f32 %v3506_v40, %v3154_v62  ;;  %v1990_v40 = vpop.permute.xlu0 %1989  ;;  %4047 = vperm.xlu1 %7012, %v10337_v35  }
 0x442   :  { %v3508_v19 = vpop.f32.mrf.mxu1 }
 0x443   :  { %5047 = vmatmul.mubr.bf16.vlgmr.msra.gmra.mxu0 %v7256_v11  ;;  %v10343_v19 = vld [vmem:[%s11562_s2 + $0xf8] sm:$0xff] }
 0x444   :  { %v3511_v62 = vpop.f32.mrf.mxu1  ;;  %5054 = vmatprep.mubr.bf16.mxu0 %v7261_v63  ;;  %11996 = vst [vmem:[#allocation101_spill] sm:$0xff] %v10343_v19  ;;  %4051 = vperm.xlu0 %7011, %v10343_v19   ;;  %v11997_v11 = vld [vmem:[#allocation22_spill] sm:$0xff]  ;;  %v11998_v63 = vld [vmem:[#allocation76_spill] sm:$0xff] }
 0x445   :  { %v3159_v21 = vadd.f32 %v11997_v11, %v1990_v40  ;;  %v3162_v15 = vadd.f32 %v11998_v63, %v1994_v13  ;;  %v10357_v19 = vld [vmem:[%s11562_s2 + $0x108] sm:$0xff]  ;;  %v1998_v13 = vpop.permute.xlu0 %1997 }
 0x446   :  { %v3513_v31 = vpop.f32.mrf.mxu1  ;;  %12000 = vst [vmem:[#allocation42_spill] sm:$0xff] %v10357_v19  ;;  %v12003_v63 = vld [vmem:[#allocation19_spill] sm:$0xff] }
 0x447   :  { %v3512_v52 = vadd.f32 %v3511_v62, %v3159_v21  ;;  %v10351_v31 = vld [vmem:[%s11562_s2 + $0x100] sm:$0xff]  ;;  %v10369_v21 = vld [vmem:[%s11562_s2 + $0x118] sm:$0xff] }
 0x448   :  { %v3514_v44 = vpop.f32.mrf.mxu1  ;;  %11999 = vst [vmem:[#allocation102_spill] sm:$0xff] %v10351_v31  ;;  %4055 = vperm.xlu1 %7012, %v10351_v31   ;;  %4059 = vperm.xlu0 %7011, %v10357_v19   ;;  %v7267_v19 = vld [vmem:[#allocation5 + $0x7c] ss:$20 sps:$4 sm:$0xff]  }
 0x449   :  { %v3515_v49 = vadd.f32 %v3514_v44, %v3162_v15  ;;  %v10363_v44 = vld [vmem:[%s11562_s2 + $0x110] sm:$0xff] }
 0x44a   :  { %v3516_v35 = vpop.f32.mrf.mxu1  ;;  %12001 = vst [vmem:[#allocation39_spill] sm:$0xff] %v10363_v44  ;;  %v7262_v15 = vld [vmem:[#allocation5 + $0x50] ss:$20 sps:$4 sm:$0xff]  }
 0x44b   :  { %v3676_v40 = vpack.c.bf16 %v3515_v49, %v3512_v52  ;;  %5055 = vmatmul.mubr.bf16.gmra.mxu0 %v7259_v16  ;;  %v2002_v35 = vpop.permute.xlu1 %2001  ;;  %v12002_v49 = vld [vmem:[#allocation77_spill] sm:$0xff] }
 0x44c   :  { %v3519_v62 = vpop.f32.mrf.mxu1  ;;  %5062 = vmatprep.mubr.bf16.mxu0 %v7264_v14  ;;  %4063 = vperm.xlu1 %7012, %v10363_v44   ;;  %v3167_v52 = vadd.f32 %v12002_v49, %v1998_v13  ;;  %v3170_v14 = vadd.f32 %v12003_v63, %v2002_v35  ;;  %v2006_v44 = vpop.permute.xlu0 %2005  ;;  %v10383_v13 = vld [vmem:[%s11562_s2 + $0x128] sm:$0xff]  ;;  %v12004_v35 = vld [vmem:[#allocation18_spill] sm:$0xff] }
 0x44d   :  { %4067 = vperm.xlu0 %7011, %v10369_v21   ;;  %v3175_v49 = vadd.f32 %v12004_v35, %v2006_v44  ;;  %v10398_v44 = vld [vmem:[%s11562_s2 + $0x138] sm:$0xff] }
 0x44e   :  { %v3521_v11 = vpop.f32.mrf.mxu1  ;;  %v3520_v31 = vadd.f32 %v3519_v62, %v3167_v52  ;;  %12005 = vst [vmem:[#allocation99_spill] sm:$0xff] %v10398_v44 }
 0x44f   :  { %v10377_v11 = vld [vmem:[%s11562_s2 + $0x120] sm:$0xff]  ;;  %v2010_v52 = vpop.permute.xlu1 %2009 }
 0x450   :  { %v3522_v16 = vpop.f32.mrf.mxu1  ;;  %4071 = vperm.xlu1 %7012, %v10377_v11   ;;  %v2014_v35 = vpop.permute.xlu0 %2013 }
 0x451   :  { %v3523_v41 = vadd.f32 %v3522_v16, %v3170_v14  ;;  %4075 = vperm.xlu0 %7011, %v10383_v13  }
 0x452   :  { %v3524_v61 = vpop.f32.mrf.mxu1 }
 0x453   :  { %v3677_v62 = vpack.c.bf16 %v3523_v41, %v3520_v31  ;;  %5063 = vmatmul.mubr.bf16.gmra.mxu0 %v7262_v15  ;;  %v10392_v61 = vld [vmem:[%s11562_s2 + $0x130] sm:$0xff]  ;;  %v3178_v41 = vadd.f32 %v9965_v25, %v2010_v52  ;;  %v7270_v15 = vld [vmem:[#allocation5 + $0xa4] ss:$20 sps:$4 sm:$0xff]   ;;  %v10413_v25 = vld [vmem:[%s11562_s2 + $0x148] sm:$0xff] }
 0x454   :  { %v3527_v63 = vpop.f32.mrf.mxu1  ;;  %5070 = vmatprep.mubr.bf16.mxu0 %v7267_v19  ;;  %4079 = vperm.xlu1 %7012, %v10392_v61   ;;  %v7265_v19 = vld [vmem:[#allocation5 + $0x78] ss:$20 sps:$4 sm:$0xff]  }
 0x455   :  { %7512 = vtanh.bf16 %v3677_v62  ;;  %v10387_v14 = vadd.f32 %v3527_v63, %v3175_v49  ;;  %4083 = vperm.xlu0 %7011, %v10398_v44   ;;  %v10407_v62 = vld [vmem:[%s11562_s2 + $0x140] sm:$0xff]  ;;  %v2018_v63 = vpop.permute.xlu1 %2017  ;;  %v12008_v44 = vpack.c.bf16 %v10318_v5, %v10316_v32 }
 0x456   :  { %v3529_v16 = vpop.f32.mrf.mxu1  ;;  %7514 = vtanh.bf16 %v3676_v40  ;;  %12006 = vst [vmem:[#allocation100_spill] sm:$0xff] %v10407_v62  ;;  %v12007_v52 = vld [vmem:[#allocation74_spill] sm:$0xff]  ;;  %v3186_v32 = vadd.f32 %v9971_v36, %v2018_v63  ;;  %v10451_v36 = vld [vmem:[%s11562_s2 + $0x168] sm:$0xff] }
 0x457   :  { %v3183_v40 = vadd.f32 %v12007_v52, %v2014_v35  ;;  %7516 = vtanh.bf16 %v12008_v44  ;;  %v7268_v5 = vld [vmem:[#allocation5 + $0xa0] ss:$20 sps:$4 sm:$0xff]   ;;  %12011 = vst [vmem:[#allocation97_spill] sm:$0xff] %v10451_v36 }
 0x458   :  { %v3530_v31 = vpop.f32.mrf.mxu1  ;;  %4087 = vperm.xlu1 %7012, %v10407_v62   ;;  %v10427_v62 = vld [vmem:[%s11562_s2 + $0x150] sm:$0xff] }
 0x459   :  { %v10402_v49 = vadd.f32 %v3530_v31, %v3178_v41  ;;  %4091 = vperm.xlu0 %7011, %v10413_v25   ;;  %v2026_v44 = vpop.permute.xlu1 %2025 }
 0x45a   :  { %v3532_v16 = vpop.f32.mrf.mxu1 }
 0x45b   :  { %5071 = vmatmul.mubr.bf16.gmra.mxu0 %v7265_v19  ;;  %v10433_v19 = vld [vmem:[%s11562_s2 + $0x158] sm:$0xff] }
 0x45c   :  { %v3535_v31 = vpop.f32.mrf.mxu1  ;;  %5078 = vmatprep.mubr.bf16.mxu0 %v7270_v15  ;;  %4095 = vperm.xlu1 %7012, %v10427_v62   ;;  %12009 = vst [vmem:[#allocation40_spill] sm:$0xff] %v10433_v19  ;;  %v2022_v15 = vpop.permute.xlu0 %2021 }
 0x45d   :  { %v10422_v16 = vadd.f32 %v3535_v31, %v3183_v40  ;;  %4099 = vperm.xlu0 %7011, %v10433_v19   ;;  %v7273_v40 = vld [vmem:[#allocation5 + $0xcc] ss:$20 sps:$4 sm:$0xff]   ;;  %v12010_v31 = vpack.c.bf16 %v10284_v56, %v10282_v29  ;;  %v3191_v29 = vadd.f32 %v9974_v12, %v2022_v15  ;;  %v10466_v12 = vld [vmem:[%s11562_s2 + $0x170] sm:$0xff]  ;;  %v2034_v15 = vpop.permute.xlu1 %2033 }
 0x45e   :  { %v3537_v35 = vpop.f32.mrf.mxu1 }
 0x45f   :  { %7518 = vtanh.bf16 %v12010_v31  ;;  %v10445_v35 = vld [vmem:[%s11562_s2 + $0x160] sm:$0xff] }
 0x460   :  { %v3538_v52 = vpop.f32.mrf.mxu1  ;;  %4103 = vperm.xlu1 %7012, %v10445_v35  }
 0x461   :  { %v10440_v41 = vadd.f32 %v3538_v52, %v3186_v32  ;;  %4107 = vperm.xlu0 %7011, %v10451_v36   ;;  %v2030_v52 = vpop.permute.xlu0 %2029 }
 0x462   :  { %v3540_v19 = vpop.f32.mrf.mxu1 }
 0x463   :  { %v7513_v63 = vpop.eup %7512  ;;  %5079 = vmatmul.mubr.bf16.gmra.mxu0 %v7268_v5  ;;  %v12012_v19 = vpack.c.bf16 %v10250_v9, %v10248_v0  ;;  %v3194_v9 = vadd.f32 %v9979_v26, %v2026_v44  ;;  %v10491_v44 = vld [vmem:[%s11562_s2 + $0x188] sm:$0xff] }
 0x464   :  { %v3543_v32 = vpop.f32.mrf.mxu1  ;;  %5304 = vmatpush1.bf16.msra.mxu1 %v7513_v63  ;;  %5086 = vmatprep.mubr.bf16.mxu0 %v7273_v40  ;;  %v10472_v40 = vld [vmem:[%s11562_s2 + $0x178] sm:$0xff]  ;;  %v7515_v0 = vpop.eup %7514  ;;  %12016 = vst [vmem:[#allocation38_spill] sm:$0xff] %v10491_v44 }
 0x465   :  { %7520 = vtanh.bf16 %v12012_v19  ;;  %v10460_v31 = vadd.f32 %v3543_v32, %v3191_v29  ;;  %5305 = vmatprep.subr.bf16.mxu1 %v11812_v57  ;;  %4111 = vperm.xlu1 %7012, %v10466_v12   ;;  %12013 = vst [vmem:[#allocation98_spill] sm:$0xff] %v10472_v40  ;;  %v7271_v63 = vld [vmem:[#allocation5 + $0xc8] ss:$20 sps:$4 sm:$0xff]   ;;  %v12014_v19 = vpack.c.bf16 %v10210_v58, %v10191_v24  ;;  %v7517_v24 = vpop.eup %7516  ;;  %v2038_v58 = vpop.permute.xlu0 %2037 }
 0x466   :  { %v3545_v5 = vpop.f32.mrf.mxu1  ;;  %4115 = vperm.xlu0 %7011, %v10472_v40   ;;  %v7276_v32 = vld [vmem:[#allocation5 + $0xf4] ss:$20 sps:$4 sm:$0xff]  }
 0x467   :  { %7522 = vtanh.bf16 %v12014_v19  ;;  %v10485_v5 = vld [vmem:[%s11562_s2 + $0x180] sm:$0xff]  ;;  %v12017_v19 = vpack.c.bf16 %v10171_v43, %v10153_v37  ;;  %v3199_v37 = vadd.f32 %v9986_v45, %v2030_v52  ;;  %v3202_v43 = vadd.f32 %v9994_v46, %v2034_v15 }
 0x468   :  { %v3546_v29 = vpop.f32.mrf.mxu1  ;;  %5306 = vmatpush1.bf16.msra.mxu1 %v7515_v0  ;;  %12015 = vst [vmem:[#allocation37_spill] sm:$0xff] %v10485_v5  ;;  %v7279_v0 = vld [vmem:[#allocation5 + $0x11c] ss:$20 sps:$4 sm:$0xff]   ;;  %v10527_v45 = vld [vmem:[%s11562_s2 + $0x1a0] sm:$0xff] }
 0x469   :  { %v10479_v56 = vadd.f32 %v3546_v29, %v3194_v9  ;;  %5307 = vmatprep.subr.bf16.mxu1 %v11812_v57  ;;  %4119 = vperm.xlu1 %7012, %v10485_v5   ;;  %v2042_v9 = vpop.permute.xlu1 %2041  ;;  %7524 = vtanh.bf16 %v12017_v19  ;;  %v10514_v40 = vpop.permute.xlu0 %2061  ;;  %12021 = vst [vmem:[#allocation35_spill] sm:$0xff] %v10527_v45 }
 0x46a   :  { %v3548_v26 = vpop.f32.mrf.mxu1  ;;  %4123 = vperm.xlu0 %7011, %v10491_v44  }
 0x46b   :  { %5087 = vmatmul.mubr.bf16.gmra.mxu0 %v7271_v63  ;;  %v10503_v26 = vld [vmem:[%s11562_s2 + $0x190] sm:$0xff]  ;;  %v10509_v63 = vld [vmem:[%s11562_s2 + $0x198] sm:$0xff] }
 0x46c   :  { %v3551_v29 = vpop.f32.mrf.mxu1  ;;  %5308 = vmatpush1.bf16.msra.mxu1 %v7517_v24  ;;  %5094 = vmatprep.mubr.bf16.mxu0 %v7276_v32  ;;  %12018 = vst [vmem:[#allocation94_spill] sm:$0xff] %v10503_v26  ;;  %12019 = vst [vmem:[#allocation95_spill] sm:$0xff] %v10509_v63  ;;  %v7274_v24 = vld [vmem:[#allocation5 + $0xf0] ss:$20 sps:$4 sm:$0xff]  }
 0x46d   :  { %5309 = vmatprep.subr.bf16.mxu1 %v11812_v57  ;;  %4127 = vperm.xlu1 %7012, %v10503_v26   ;;  %v7519_v32 = vpop.eup %7518  ;;  %v10519_v26 = vadd.f32 %v3551_v29, %v3199_v37  ;;  %v10530_v46 = vpop.permute.xlu1 %2065 }
 0x46e   :  { %v3553_v44 = vpop.f32.mrf.mxu1  ;;  %4131 = vperm.xlu0 %7011, %v10509_v63  }
 0x46f   :  { %v12020_v44 = vpack.c.bf16 %v10136_v55, %v10121_v38  ;;  %v10535_v38 = vld [vmem:[%s11562_s2 + $0x1a8] sm:$0xff] }
 0x470   :  { %v3554_v19 = vpop.f32.mrf.mxu1  ;;  %5310 = vmatpush1.bf16.msra.mxu1 %v7519_v32  ;;  %12022 = vst [vmem:[#allocation36_spill] sm:$0xff] %v10535_v38  ;;  %v10544_v32 = vld [vmem:[%s11562_s2 + $0x1b0] sm:$0xff] }
 0x471   :  { %7526 = vtanh.bf16 %v12020_v44  ;;  %v10521_v5 = vadd.f32 %v3554_v19, %v3202_v43  ;;  %5311 = vmatprep.subr.bf16.mxu1 %v11812_v57  ;;  %4135 = vperm.xlu1 %7012, %v10527_v45   ;;  %12023 = vst [vmem:[#allocation144_spill] sm:$0xff] %v10544_v32  ;;  %v10550_v43 = vld [vmem:[%s11562_s2 + $0x1b8] sm:$0xff]  ;;  %v2054_v19 = vpop.permute.xlu0 %2053  ;;  %v3210_v44 = vadd.f32 %v10015_v59, %v2042_v9  ;;  %v10569_v59 = vld [vmem:[%s11562_s2 + $0x1c8] sm:$0xff]  ;;  %v7280_v9 = vld [vmem:[#allocation5 + $0x140] ss:$20 sps:$4 sm:$0xff]  }
 0x472   :  { %v3556_v52 = vpop.f32.mrf.mxu1  ;;  %4139 = vperm.xlu0 %7011, %v10535_v38   ;;  %12024 = vst [vmem:[#allocation91_spill] sm:$0xff] %v10550_v43  ;;  %v7282_v38 = vld [vmem:[#allocation5 + $0x144] ss:$20 sps:$4 sm:$0xff]   ;;  %12026 = vst [vmem:[#allocation90_spill] sm:$0xff] %v10569_v59 }
 0x473   :  { %v7521_v55 = vpop.eup %7520  ;;  %5095 = vmatmul.mubr.bf16.gmra.mxu0 %v7274_v24  ;;  %v7277_v52 = vld [vmem:[#allocation5 + $0x118] ss:$20 sps:$4 sm:$0xff]  }
 0x474   :  { %v3559_v29 = vpop.f32.mrf.mxu1  ;;  %5312 = vmatpush1.bf16.msra.mxu1 %v7521_v55  ;;  %5102 = vmatprep.mubr.bf16.mxu0 %v7279_v0  ;;  %v3207_v0 = vadd.f32 %v10006_v53, %v2038_v58  ;;  %v2058_v55 = vpop.permute.xlu1 %2057 }
 0x475   :  { %5313 = vmatprep.subr.bf16.mxu1 %v11812_v57  ;;  %4143 = vperm.xlu1 %7012, %v10544_v32   ;;  %v7523_v24 = vpop.eup %7522 }
 0x476   :  { %v3561_v37 = vpop.f32.mrf.mxu1  ;;  %4147 = vperm.xlu0 %7011, %v10550_v43   ;;  %v10555_v32 = vadd.f32 %v3559_v29, %v3207_v0  ;;  %v10563_v43 = vld [vmem:[%s11562_s2 + $0x1c0] sm:$0xff]  ;;  %v2046_v29 = vpop.permute.xlu0 %2045 }
 0x477   :  { %12025 = vst [vmem:[#allocation92_spill] sm:$0xff] %v10563_v43  ;;  %v7525_v58 = vpop.eup %7524 }
 0x478   :  { %v3562_v15 = vpop.f32.mrf.mxu1  ;;  %5314 = vmatpush1.bf16.msra.mxu1 %v7523_v24  ;;  %v10578_v24 = vld [vmem:[%s11562_s2 + $0x1d0] sm:$0xff]  ;;  %v2050_v0 = vpop.permute.xlu1 %2049 }
 0x479   :  { %v10557_v37 = vadd.f32 %v3562_v15, %v3210_v44  ;;  %5315 = vmatprep.subr.bf16.mxu1 %v11812_v57  ;;  %4151 = vperm.xlu1 %7012, %v10563_v43   ;;  %12027 = vst [vmem:[#allocation33_spill] sm:$0xff] %v10578_v24  ;;  %v7285_v43 = vld [vmem:[#allocation5 + $0x16c] ss:$20 sps:$4 sm:$0xff]  }
 0x47a   :  { %v3564_v53 = vpop.f32.mrf.mxu1  ;;  %4155 = vperm.xlu0 %7011, %v10569_v59  }
 0x47b   :  { %5103 = vmatmul.mubr.bf16.gmra.mxu0 %v7277_v52  ;;  %v10584_v53 = vld [vmem:[%s11562_s2 + $0x1d8] sm:$0xff]  ;;  %v3215_v52 = vadd.f32 %v10027_v27, %v2046_v29  ;;  %v10599_v27 = vld [vmem:[%s11562_s2 + $0x1e8] sm:$0xff] }
 0x47c   :  { %v3567_v15 = vpop.f32.mrf.mxu1  ;;  %5316 = vmatpush1.bf16.msra.mxu1 %v7525_v58  ;;  %5110 = vmatprep.mubr.bf16.mxu0 %v7282_v38  ;;  %12028 = vst [vmem:[#allocation34_spill] sm:$0xff] %v10584_v53  ;;  %v3218_v58 = vadd.f32 %v10035_v17, %v2050_v0  ;;  %12030 = vst [vmem:[#allocation143_spill] sm:$0xff] %v10599_v27  ;;  %v10611_v0 = vld [vmem:[%s11562_s2 + $0x1f8] sm:$0xff] }
 0x47d   :  { %5317 = vmatprep.subr.bf16.mxu1 %v11812_v57  ;;  %4159 = vperm.xlu1 %7012, %v10578_v24   ;;  %v3568_v63 = vadd.f32 %v3567_v15, %v3215_v52  ;;  %v10605_v15 = vld [vmem:[%s11562_s2 + $0x1f0] sm:$0xff]  ;;  %12032 = vst [vmem:[#allocation96_spill] sm:$0xff] %v10611_v0 }
 0x47e   :  { %v3569_v44 = vpop.f32.mrf.mxu1  ;;  %4163 = vperm.xlu0 %7011, %v10584_v53   ;;  %12031 = vst [vmem:[#allocation93_spill] sm:$0xff] %v10605_v15 }
 0x47f   :  { %v7527_v38 = vpop.eup %7526  ;;  %v10593_v44 = vld [vmem:[%s11562_s2 + $0x1e0] sm:$0xff] }
 0x480   :  { %v3570_v59 = vpop.f32.mrf.mxu1  ;;  %5318 = vmatpush1.bf16.msra.mxu1 %v7527_v38  ;;  %12029 = vst [vmem:[#allocation141_spill] sm:$0xff] %v10593_v44 }
 0x481   :  { %v3571_v24 = vadd.f32 %v3570_v59, %v3218_v58  ;;  %5319 = vmatprep.subr.bf16.mxu1 %v11812_v57  ;;  %4167 = vperm.xlu1 %7012, %v10593_v44   ;;  %v3231_v44 = vadd.f32 %v10063_v48, %v10514_v40  ;;  %v12034_v40 = vld [vmem:[#allocation84_spill] sm:$0xff] }
 0x482   :  { %v3572_v53 = vpop.f32.mrf.mxu1  ;;  %4171 = vperm.xlu0 %7011, %v10599_v27  }
 0x483   :  { %v3683_v17 = vpack.c.bf16 %v3571_v24, %v3568_v63  ;;  %5111 = vmatmul.mubr.bf16.gmra.mxu0 %v7280_v9  ;;  %v3223_v63 = vadd.f32 %v10049_v6, %v2054_v19  ;;  %v3226_v9 = vadd.f32 %v10054_v34, %v2058_v55  ;;  %v7288_v53 = vld [vmem:[#allocation5 + $0x194] ss:$20 sps:$4 sm:$0xff]   ;;  %v7286_v6 = vld [vmem:[#allocation5 + $0x190] ss:$20 sps:$4 sm:$0xff]   ;;  %v2071_v19 = vpop.permute.xlu0 %2070 }
 0x484   :  { %v3575_v59 = vpop.f32.mrf.mxu1  ;;  %5118 = vmatprep.mubr.bf16.mxu0 %v7285_v43  ;;  %v7283_v43 = vld [vmem:[#allocation5 + $0x168] ss:$20 sps:$4 sm:$0xff]  }
 0x485   :  { %4175 = vperm.xlu1 %7012, %v10605_v15   ;;  %v3576_v38 = vadd.f32 %v3575_v59, %v3223_v63  ;;  %v7291_v55 = vld [vmem:[#allocation5 + $0x1bc] ss:$20 sps:$4 sm:$0xff]  }
 0x486   :  { %v3577_v29 = vpop.f32.mrf.mxu1  ;;  %4179 = vperm.xlu0 %7011, %v10611_v0   ;;  %v3234_v0 = vadd.f32 %v10068_v2, %v10530_v46  ;;  %v12033_v63 = vld [vmem:[#allocation30_spill] sm:$0xff] }
 0x487   :  { %v7289_v46 = vld [vmem:[#allocation5 + $0x1b8] ss:$20 sps:$4 sm:$0xff]  }
 0x488   :  { %v3578_v24 = vpop.f32.mrf.mxu1 }
 0x489   :  { %v3579_v52 = vadd.f32 %v3578_v24, %v3226_v9  ;;  %v3239_v9 = vadd.f32 %v12033_v63, %v2071_v19 }
 0x48a   :  { %v3580_v58 = vpop.f32.mrf.mxu1 }
 0x48b   :  { %v3684_v27 = vpack.c.bf16 %v3579_v52, %v3576_v38  ;;  %5119 = vmatmul.mubr.bf16.gmra.mxu0 %v7283_v43  ;;  %v2076_v43 = vpop.permute.xlu1 %2075  ;;  %v2081_v38 = vpop.permute.xlu0 %2080  ;;  %v7294_v58 = vld [vmem:[#allocation5 + $0x1e4] ss:$20 sps:$4 sm:$0xff]  }
 0x48c   :  { %v3583_v29 = vpop.f32.mrf.mxu1  ;;  %5126 = vmatprep.mubr.bf16.mxu0 %v7288_v53  ;;  %v3242_v2 = vadd.f32 %v12034_v40, %v2076_v43  ;;  %v12037_v43 = vpack.c.bf16 %v10557_v37, %v10555_v32  ;;  %v12038_v32 = vpack.c.bf16 %v10521_v5, %v10519_v26  ;;  %v12039_v5 = vpack.c.bf16 %v10479_v56, %v10460_v31 }
 0x48d   :  { %v3584_v45 = vadd.f32 %v3583_v29, %v3231_v44  ;;  %v12035_v29 = vld [vmem:[#allocation85_spill] sm:$0xff] }
 0x48e   :  { %v3585_v15 = vpop.f32.mrf.mxu1 }
 0x490   :  { %v3586_v34 = vpop.f32.mrf.mxu1 }
 0x491   :  { %v3587_v36 = vadd.f32 %v3586_v34, %v3234_v0 }
 0x492   :  { %v3588_v59 = vpop.f32.mrf.mxu1 }
 0x493   :  { %v3685_v24 = vpack.c.bf16 %v3587_v36, %v3584_v45  ;;  %5127 = vmatmul.mubr.bf16.gmra.mxu0 %v7286_v6  ;;  %v3247_v36 = vadd.f32 %v12035_v29, %v2081_v38  ;;  %v2086_v6 = vpop.permute.xlu1 %2085  ;;  %v12036_v59 = vld [vmem:[#allocation17_spill] sm:$0xff]  ;;  %v7295_v38 = vld [vmem:[#allocation5 + $0x208] ss:$20 sps:$4 sm:$0xff]  }
 0x494   :  { %v3591_v53 = vpop.f32.mrf.mxu1  ;;  %5134 = vmatprep.mubr.bf16.mxu0 %v7291_v55  ;;  %v3250_v63 = vadd.f32 %v12036_v59, %v2086_v6  ;;  %v12040_v6 = vpack.c.bf16 %v10440_v41, %v10422_v16  ;;  %v7298_v59 = vld [vmem:[#allocation5 + $0x230] ss:$20 sps:$4 sm:$0xff]   ;;  %v12043_v41 = vpack.c.bf16 %v10402_v49, %v10387_v14 }
 0x495   :  { %7528 = vtanh.bf16 %v3685_v24  ;;  %v10621_v15 = vadd.f32 %v3591_v53, %v3239_v9  ;;  %v7292_v9 = vld [vmem:[#allocation5 + $0x1e0] ss:$20 sps:$4 sm:$0xff]  }
 0x496   :  { %v3593_v48 = vpop.f32.mrf.mxu1  ;;  %7530 = vtanh.bf16 %v3684_v27  ;;  %v7297_v24 = vld [vmem:[#allocation5 + $0x20c] ss:$20 sps:$4 sm:$0xff]  }
 0x497   :  { %7532 = vtanh.bf16 %v3683_v17  ;;  %v7869_v48 = vmov 6  }
 0x498   :  { %v3594_v52 = vpop.f32.mrf.mxu1  ;;  %7534 = vtanh.bf16 %v12037_v43  ;;  %7013 = vset.pattern.permute.xlu1 %v7869_v48  ;;  %7014 = vset.pattern.permute.xlu0 %v7869_v48 }
 0x499   :  { %v10624_v44 = vadd.f32 %v3594_v52, %v3242_v2  ;;  %6010 = vperm.xlu1 %7013, %v10089_v23   ;;  %6014 = vperm.xlu0 %7014, %v10083_v50   ;;  %7536 = vtanh.bf16 %v12038_v32  ;;  %v10649_v23 = vpop.permute.xlu0 %2090  ;;  %v10651_v52 = vpop.permute.xlu1 %2095 }
 0x49a   :  { %v3596_v0 = vpop.f32.mrf.mxu1  ;;  %7538 = vtanh.bf16 %v12039_v5 }
 0x49b   :  { %v3686_v45 = vpack.c.bf16 %v10624_v44, %v10621_v15  ;;  %5135 = vmatmul.mubr.bf16.gmra.mxu0 %v7289_v46  ;;  %v7300_v0 = vld [vmem:[#allocation5 + $0x234] ss:$20 sps:$4 sm:$0xff]   ;;  %7540 = vtanh.bf16 %v12040_v6  ;;  %v7346_v44 = vld [vmem:[#allocation5 + $0x398] ss:$20 sps:$4 sm:$0xff]  }
 0x49c   :  { %v3599_v19 = vpop.f32.mrf.mxu1  ;;  %5142 = vmatprep.mubr.bf16.mxu0 %v7294_v58  ;;  %7542 = vtanh.bf16 %v12043_v41  ;;  %v12046_v6 = vld [vmem:[#allocation23_spill] sm:$0xff] }
 0x49d   :  { %v10629_v34 = vadd.f32 %v3599_v19, %v3247_v36  ;;  %6018 = vperm.xlu1 %7013, %v10095_v10   ;;  %6026 = vperm.xlu0 %7014, %v10111_v54   ;;  %v2101_v54 = vpop.permute.xlu0 %2100  ;;  %v2106_v29 = vpop.permute.xlu1 %2105  ;;  %v12042_v19 = vld [vmem:[#allocation25_spill] sm:$0xff] }
 0x49e   :  { %v3601_v55 = vpop.f32.mrf.mxu1 }
 0x49f   :  { %v3263_v55 = vadd.f32 %v12042_v19, %v2101_v54 }
 0x4a0   :  { %v3602_v27 = vpop.f32.mrf.mxu1 }
 0x4a1   :  { %v10635_v53 = vadd.f32 %v3602_v27, %v3250_v63  ;;  %6022 = vperm.xlu1 %7013, %v10101_v47   ;;  %6034 = vperm.xlu0 %7014, %v10126_v60   ;;  %v12041_v60 = vld [vmem:[#allocation82_spill] sm:$0xff]  ;;  %v2116_v48 = vpop.permute.xlu1 %2115 }
 0x4a2   :  { %v3604_v40 = vpop.f32.mrf.mxu1  ;;  %v3266_v31 = vadd.f32 %v12041_v60, %v2106_v29  ;;  %v7304_v60 = vld [vmem:[#allocation5 + $0x280] ss:$20 sps:$4 sm:$0xff]  }
 0x4a3   :  { %v7529_v17 = vpop.eup %7528  ;;  %v3687_v2 = vpack.c.bf16 %v10635_v53, %v10629_v34  ;;  %5143 = vmatmul.mubr.bf16.gmra.mxu0 %v7292_v9  ;;  %v7303_v9 = vld [vmem:[#allocation5 + $0x25c] ss:$20 sps:$4 sm:$0xff]   ;;  %v7343_v34 = vld [vmem:[#allocation5 + $0xf8] ss:$20 sps:$4 sm:$0xff]  }
 0x4a4   :  { %v10641_v46 = vpop.f32.mrf.mxu1  ;;  %5320 = vmatpush2.bf16.msra.mxu1 %v7529_v17  ;;  %5150 = vmatprep.mubr.bf16.mxu0 %v7297_v24  ;;  %v7531_v50 = vpop.eup %7530  ;;  %v12044_v40 = vld [vmem:[#allocation26_spill] sm:$0xff]  ;;  %v12045_v17 = vld [vmem:[#allocation83_spill] sm:$0xff] }
 0x4a5   :  { %5321 = vmatprep.subr.bf16.mxu1 %v11812_v57  ;;  %v7533_v10 = vpop.eup %7532  ;;  %6030 = vperm.xlu1 %7013, %v10117_v51   ;;  %v2111_v24 = vpop.permute.xlu0 %2110  ;;  %v7348_v53 = vld [vmem:[#allocation5 + $0x39c] ss:$20 sps:$4 sm:$0xff]  }
 0x4a6   :  { %v3609_v37 = vpop.f32.mrf.mxu1  ;;  %6042 = vperm.xlu0 %7014, %v10141_v30   ;;  %v7535_v47 = vpop.eup %7534  ;;  %v3271_v32 = vadd.f32 %v12045_v17, %v2111_v24  ;;  %v12048_v24 = vld [vmem:[#allocation81_spill] sm:$0xff] }
 0x4a7   :  { %v7537_v30 = vpop.eup %7536  ;;  %v7301_v37 = vld [vmem:[#allocation5 + $0x258] ss:$20 sps:$4 sm:$0xff]   ;;  %v2126_v54 = vpop.permute.xlu1 %2125 }
 0x4a8   :  { %v10653_v58 = vpop.f32.mrf.mxu1  ;;  %5322 = vmatpush2.bf16.msra.mxu1 %v7531_v50 }
 0x4a9   :  { %5323 = vmatprep.subr.bf16.mxu1 %v11812_v57  ;;  %6038 = vperm.xlu1 %7013, %v10132_v7   ;;  %v7539_v7 = vpop.eup %7538 }
 0x4aa   :  { %v3612_v26 = vpop.f32.mrf.mxu1  ;;  %6050 = vperm.xlu0 %7014, %v10158_v4   ;;  %v3274_v4 = vadd.f32 %v12044_v40, %v2116_v48  ;;  %v7318_v40 = vld [vmem:[#allocation5 + $0x2d4] ss:$20 sps:$4 sm:$0xff]  }
 0x4ab   :  { %5151 = vmatmul.mubr.bf16.gmra.mxu0 %v7295_v38  ;;  %v7306_v38 = vld [vmem:[#allocation5 + $0x284] ss:$20 sps:$4 sm:$0xff]   ;;  %v2136_v41 = vpop.permute.xlu1 %2135 }
 0x4ac   :  { %v3615_v36 = vpop.f32.mrf.mxu1  ;;  %5324 = vmatpush2.bf16.msra.mxu1 %v7533_v10  ;;  %5158 = vmatprep.mubr.bf16.mxu0 %v7300_v0  ;;  %v3290_v48 = vadd.f32 %v12048_v24, %v2136_v41  ;;  %v7322_v24 = vld [vmem:[#allocation5 + $0x2f8] ss:$20 sps:$4 sm:$0xff]  }
 0x4ad   :  { %5325 = vmatprep.subr.bf16.mxu1 %v11812_v57  ;;  %v10672_v16 = vadd.f32 %v3615_v36, %v3263_v55  ;;  %6046 = vperm.xlu1 %7013, %v10147_v18   ;;  %v7541_v18 = vpop.eup %7540  ;;  %v7312_v55 = vld [vmem:[#allocation5 + $0x2ac] ss:$20 sps:$4 sm:$0xff]  }
 0x4ae   :  { %v3617_v56 = vpop.f32.mrf.mxu1  ;;  %6058 = vperm.xlu0 %7014, %v10176_v8   ;;  %v2121_v8 = vpop.permute.xlu0 %2120 }
 0x4af   :  { %v12047_v56 = vld [vmem:[#allocation16_spill] sm:$0xff] }
 0x4b0   :  { %v3618_v63 = vpop.f32.mrf.mxu1  ;;  %5326 = vmatpush2.bf16.msra.mxu1 %v7535_v47  ;;  %v3279_v47 = vadd.f32 %v12047_v56, %v2121_v8  ;;  %v7316_v56 = vld [vmem:[#allocation5 + $0x2d0] ss:$20 sps:$4 sm:$0xff]  }
 0x4b1   :  { %v10674_v27 = vadd.f32 %v3618_v63, %v3266_v31  ;;  %5327 = vmatprep.subr.bf16.mxu1 %v11812_v57  ;;  %6054 = vperm.xlu1 %7013, %v10164_v22   ;;  %v7543_v22 = vpop.eup %7542  ;;  %v7307_v31 = vld [vmem:[#allocation5 + $0x8] ss:$20 sps:$4 sm:$0xff]  }
 0x4b2   :  { %v3620_v51 = vpop.f32.mrf.mxu1  ;;  %6066 = vperm.xlu0 %7014, %v10197_v42   ;;  %v3282_v42 = vadd.f32 %v12046_v6, %v2126_v54  ;;  %v12052_v54 = vld [vmem:[#allocation20_spill] sm:$0xff] }
 0x4b3   :  { %v3689_v43 = vpack.c.bf16 %v10674_v27, %v10672_v16  ;;  %5159 = vmatmul.mubr.bf16.gmra.mxu0 %v7298_v59  ;;  %v7315_v59 = vld [vmem:[#allocation5 + $0x34] ss:$20 sps:$4 sm:$0xff]   ;;  %v7345_v27 = vld [vmem:[#allocation5 + $0xfc] ss:$20 sps:$4 sm:$0xff]  }
 0x4b4   :  { %v3623_v14 = vpop.f32.mrf.mxu1  ;;  %5328 = vmatpush2.bf16.msra.mxu1 %v7537_v30  ;;  %5166 = vmatprep.mubr.bf16.mxu0 %v7303_v9  ;;  %v12055_v6 = vld [vmem:[#allocation24_spill] sm:$0xff] }
 0x4b5   :  { %5329 = vmatprep.subr.bf16.mxu1 %v11812_v57  ;;  %v10686_v0 = vadd.f32 %v3623_v14, %v3271_v32  ;;  %6062 = vperm.xlu1 %7013, %v10182_v39   ;;  %v2131_v39 = vpop.permute.xlu0 %2130  ;;  %v7342_v16 = vld [vmem:[#allocation5 + $0x374] ss:$20 sps:$4 sm:$0xff]  }
 0x4b6   :  { %v3625_v49 = vpop.f32.mrf.mxu1  ;;  %6074 = vperm.xlu0 %7014, %v10216_v3  }
 0x4b7   :  { %v7313_v49 = vld [vmem:[#allocation5 + $0x30] ss:$20 sps:$4 sm:$0xff]  }
 0x4b8   :  { %v3626_v50 = vpop.f32.mrf.mxu1  ;;  %5330 = vmatpush2.bf16.msra.mxu1 %v7539_v7 }
 0x4b9   :  { %v10688_v5 = vadd.f32 %v3626_v50, %v3274_v4  ;;  %5331 = vmatprep.subr.bf16.mxu1 %v11812_v57  ;;  %6070 = vperm.xlu1 %7013, %v10203_v28   ;;  %v12049_v28 = vld [vmem:[#allocation80_spill] sm:$0xff]  ;;  %v12050_v50 = vld [vmem:[#allocation75_spill] sm:$0xff] }
 0x4ba   :  { %v3628_v26 = vpop.f32.mrf.mxu1  ;;  %6082 = vperm.xlu0 %7014, %v10234_v1   ;;  %v3287_v14 = vadd.f32 %v12049_v28, %v2131_v39  ;;  %v7310_v1 = vld [vmem:[#allocation5 + $0x2a8] ss:$20 sps:$4 sm:$0xff]   ;;  %v7330_v28 = vld [vmem:[#allocation5 + $0x324] ss:$20 sps:$4 sm:$0xff]  }
 0x4bb   :  { %v3690_v10 = vpack.c.bf16 %v10688_v5, %v10686_v0  ;;  %5167 = vmatmul.mubr.bf16.gmra.mxu0 %v7301_v37  ;;  %v7321_v4 = vld [vmem:[#allocation5 + $0x5c] ss:$20 sps:$4 sm:$0xff]   ;;  %v2141_v26 = vpop.permute.xlu0 %2140  ;;  %v12057_v39 = vld [vmem:[#allocation43_spill] sm:$0xff] }
 0x4bc   :  { %v3631_v29 = vpop.f32.mrf.mxu1  ;;  %5332 = vmatpush2.bf16.msra.mxu1 %v7541_v18  ;;  %5174 = vmatprep.mubr.bf16.mxu0 %v7306_v38  ;;  %v12051_v38 = vld [vmem:[#allocation45_spill] sm:$0xff] }
 0x4bd   :  { %5333 = vmatprep.subr.bf16.mxu1 %v11812_v57  ;;  %v10700_v63 = vadd.f32 %v3631_v29, %v3279_v47  ;;  %6078 = vperm.xlu1 %7013, %v10222_v33   ;;  %v12053_v29 = vld [vmem:[#allocation106_spill] sm:$0xff] }
 0x4be   :  { %v3633_v36 = vpop.f32.mrf.mxu1  ;;  %6090 = vperm.xlu0 %7014, %v10256_v20   ;;  %v2146_v20 = vpop.permute.xlu1 %2145  ;;  %v7319_v47 = vld [vmem:[#allocation5 + $0x58] ss:$20 sps:$4 sm:$0xff]  }
 0x4bf   :  { %v12054_v36 = vld [vmem:[#allocation21_spill] sm:$0xff] }
 0x4c0   :  { %v3634_v19 = vpop.f32.mrf.mxu1  ;;  %5334 = vmatpush2.bf16.msra.mxu1 %v7543_v22  ;;  %v3298_v22 = vadd.f32 %v12054_v36, %v2146_v20  ;;  %v7331_v20 = vld [vmem:[#allocation5 + $0xa8] ss:$20 sps:$4 sm:$0xff]   ;;  %v12066_v36 = vld [vmem:[#allocation101_spill] sm:$0xff] }
 0x4c1   :  { %v10702_v9 = vadd.f32 %v3634_v19, %v3282_v42  ;;  %6086 = vperm.xlu1 %7013, %v12050_v50   ;;  %v3295_v42 = vadd.f32 %v12055_v6, %v2141_v26  ;;  %v7327_v19 = vld [vmem:[#allocation5 + $0x84] ss:$20 sps:$4 sm:$0xff]   ;;  %v7334_v6 = vld [vmem:[#allocation5 + $0x348] ss:$20 sps:$4 sm:$0xff]  }
 0x4c2   :  { %v3636_v57 = vpop.f32.mrf.mxu1  ;;  %6098 = vperm.xlu0 %7014, %v12051_v38   ;;  %v12064_v50 = vld [vmem:[#allocation102_spill] sm:$0xff]  ;;  %v12065_v38 = vld [vmem:[#allocation27_spill] sm:$0xff] }
 0x4c3   :  { %v3691_v3 = vpack.c.bf16 %v10702_v9, %v10700_v63  ;;  %5175 = vmatmul.mubr.bf16.gmra.mxu0 %v7304_v60  ;;  %5336 = vmatmul.mubr.bf16.vlgmr.msra.gmra.mxu1 %v7307_v31  ;;  %v7324_v31 = vld [vmem:[#allocation5 + $0x2fc] ss:$20 sps:$4 sm:$0xff]   ;;  %v10718_v9 = vpop.permute.xlu1 %3931  ;;  %v3255_v26 = vadd.f32 %v12065_v38, %v10649_v23 }
 0x4c4   :  { %v3639_v51 = vpop.f32.mrf.mxu1  ;;  %5182 = vmatprep.mubr.bf16.mxu0 %v7312_v55  ;;  %5343 = vmatprep.mubr.bf16.mxu1 %v7315_v59  ;;  %v12056_v57 = vld [vmem:[#allocation105_spill] sm:$0xff] }
 0x4c5   :  { %v3640_v17 = vadd.f32 %v3639_v51, %v3287_v14  ;;  %6094 = vperm.xlu1 %7013, %v12052_v54   ;;  %v12058_v51 = vld [vmem:[#allocation46_spill] sm:$0xff]  ;;  %v7339_v54 = vld [vmem:[#allocation5 + $0xd4] ss:$20 sps:$4 sm:$0xff]  }
 0x4c6   :  { %v3641_v30 = vpop.f32.mrf.mxu1  ;;  %6106 = vperm.xlu0 %7014, %v12053_v29   ;;  %v7333_v14 = vld [vmem:[#allocation5 + $0xac] ss:$20 sps:$4 sm:$0xff]  }
 0x4c7   :  { %v12059_v30 = vld [vmem:[#allocation104_spill] sm:$0xff] }
 0x4c8   :  { %v3642_v7 = vpop.f32.mrf.mxu1 }
 0x4c9   :  { %v3643_v32 = vadd.f32 %v3642_v7, %v3290_v48  ;;  %6102 = vperm.xlu1 %7013, %v12056_v57   ;;  %v7325_v48 = vld [vmem:[#allocation5 + $0x80] ss:$20 sps:$4 sm:$0xff]   ;;  %v7354_v57 = vld [vmem:[#allocation5 + $0x3c4] ss:$20 sps:$4 sm:$0xff]  }
 0x4ca   :  { %v3644_v37 = vpop.f32.mrf.mxu1  ;;  %6114 = vperm.xlu0 %7014, %v12057_v39   ;;  %v12061_v7 = vld [vmem:[#allocation41_spill] sm:$0xff]  ;;  %v7357_v39 = vld [vmem:[#allocation5 + $0x14c] ss:$20 sps:$4 sm:$0xff]  }
 0x4cb   :  { %v3692_v33 = vpack.c.bf16 %v3643_v32, %v3640_v17  ;;  %5183 = vmatmul.mubr.bf16.gmra.mxu0 %v7310_v1  ;;  %5344 = vmatmul.mubr.bf16.gmra.mxu1 %v7313_v49  ;;  %v10724_v1 = vpop.permute.xlu1 %3935  ;;  %v12060_v49 = vld [vmem:[#allocation103_spill] sm:$0xff]  ;;  %v10732_v32 = vpop.permute.xlu0 %3927  ;;  %v12063_v37 = vld [vmem:[#allocation44_spill] sm:$0xff] }
 0x4cc   :  { %v3647_v18 = vpop.f32.mrf.mxu1  ;;  %5190 = vmatprep.mubr.bf16.mxu0 %v7318_v40  ;;  %5351 = vmatprep.mubr.bf16.mxu1 %v7321_v4  ;;  %v12062_v4 = vld [vmem:[#allocation28_spill] sm:$0xff] }
 0x4cd   :  { %v3648_v55 = vadd.f32 %v3647_v18, %v3295_v42  ;;  %6110 = vperm.xlu1 %7013, %v12058_v51   ;;  %v3258_v17 = vadd.f32 %v12062_v4, %v10651_v52  ;;  %v7336_v18 = vld [vmem:[#allocation5 + $0x34c] ss:$20 sps:$4 sm:$0xff]   ;;  %v3608_v52 = vadd.f32 %v10641_v46, %v3255_v26  ;;  %v7337_v42 = vld [vmem:[#allocation5 + $0xd0] ss:$20 sps:$4 sm:$0xff]  }
 0x4ce   :  { %v3649_v8 = vpop.f32.mrf.mxu1  ;;  %6122 = vperm.xlu0 %7014, %v12059_v30   ;;  %v12073_v4 = vld [vmem:[#allocation37_spill] sm:$0xff]  ;;  %v12075_v26 = vld [vmem:[#allocation94_spill] sm:$0xff] }
 0x4cf   :  { %v10728_v40 = vpop.permute.xlu1 %3943  ;;  %v10745_v29 = vpop.permute.xlu0 %3939 }
 0x4d0   :  { %v3650_v60 = vpop.f32.mrf.mxu1 }
 0x4d1   :  { %v3651_v59 = vadd.f32 %v3650_v60, %v3298_v22  ;;  %6118 = vperm.xlu1 %7013, %v12060_v49   ;;  %v12067_v22 = vld [vmem:[#allocation39_spill] sm:$0xff] }
 0x4d2   :  { %v3652_v63 = vpop.f32.mrf.mxu1  ;;  %6130 = vperm.xlu0 %7014, %v12061_v7   ;;  %v7363_v7 = vld [vmem:[#allocation5 + $0x174] ss:$20 sps:$4 sm:$0xff]  }
 0x4d3   :  { %v3693_v41 = vpack.c.bf16 %v3651_v59, %v3648_v55  ;;  %5191 = vmatmul.mubr.bf16.gmra.mxu0 %v7316_v56  ;;  %5352 = vmatmul.mubr.bf16.gmra.mxu1 %v7319_v47  ;;  %v10742_v8 = vpop.permute.xlu1 %3951  ;;  %v10754_v5 = vpop.permute.xlu0 %3947  ;;  %v12069_v59 = vld [vmem:[#allocation100_spill] sm:$0xff] }
 0x4d4   :  { %5198 = vmatprep.mubr.bf16.mxu0 %v7324_v31  ;;  %5359 = vmatprep.mubr.bf16.mxu1 %v7327_v19 }
 0x4d5   :  { %7544 = vtanh.bf16 %v3693_v41  ;;  %6126 = vperm.xlu1 %7013, %v12063_v37  }
 0x4d6   :  { %7546 = vtanh.bf16 %v3692_v33  ;;  %6138 = vperm.xlu0 %7014, %v12064_v50   ;;  %v7328_v33 = vld [vmem:[#allocation5 + $0x320] ss:$20 sps:$4 sm:$0xff]  }
 0x4d7   :  { %7548 = vtanh.bf16 %v3691_v3  ;;  %v3611_v3 = vadd.f32 %v10653_v58, %v3258_v17  ;;  %v10752_v0 = vpop.permute.xlu1 %3959  ;;  %v10760_v47 = vpop.permute.xlu0 %3955  ;;  %v12074_v17 = vld [vmem:[#allocation98_spill] sm:$0xff] }
 0x4d8   :  { %7550 = vtanh.bf16 %v3690_v10  ;;  %v12068_v10 = vld [vmem:[#allocation42_spill] sm:$0xff] }
 0x4d9   :  { %6134 = vperm.xlu1 %7013, %v12066_v36   ;;  %v3688_v58 = vpack.c.bf16 %v3611_v3, %v3608_v52  ;;  %7552 = vtanh.bf16 %v3689_v43  ;;  %v12076_v3 = vld [vmem:[#allocation38_spill] sm:$0xff]  ;;  %v7366_v52 = vld [vmem:[#allocation5 + $0x414] ss:$20 sps:$4 sm:$0xff]  }
 0x4da   :  { %6146 = vperm.xlu0 %7014, %v12067_v22   ;;  %v12077_v22 = vld [vmem:[#allocation35_spill] sm:$0xff] }
 0x4db   :  { %5199 = vmatmul.mubr.bf16.gmra.mxu0 %v7322_v24  ;;  %5360 = vmatmul.mubr.bf16.gmra.mxu1 %v7325_v48  ;;  %7554 = vtanh.bf16 %v3688_v58  ;;  %v10758_v43 = vpop.permute.xlu1 %3967  ;;  %v10768_v31 = vpop.permute.xlu0 %3963  ;;  %v12071_v24 = vld [vmem:[#allocation40_spill] sm:$0xff]  ;;  %v12072_v48 = vld [vmem:[#allocation97_spill] sm:$0xff]  ;;  %v12078_v58 = vld [vmem:[#allocation95_spill] sm:$0xff] }
 0x4dc   :  { %5206 = vmatprep.mubr.bf16.mxu0 %v7330_v28  ;;  %5367 = vmatprep.mubr.bf16.mxu1 %v7333_v14  ;;  %7556 = vtanh.bf16 %v3687_v2  ;;  %v7351_v2 = vld [vmem:[#allocation5 + $0x124] ss:$20 sps:$4 sm:$0xff]   ;;  %v7352_v28 = vld [vmem:[#allocation5 + $0x3c0] ss:$20 sps:$4 sm:$0xff]   ;;  %v7355_v14 = vld [vmem:[#allocation5 + $0x148] ss:$20 sps:$4 sm:$0xff]  }
 0x4dd   :  { %6142 = vperm.xlu1 %7013, %v12068_v10   ;;  %7558 = vtanh.bf16 %v3686_v45  ;;  %v7349_v45 = vld [vmem:[#allocation5 + $0x120] ss:$20 sps:$4 sm:$0xff]  }
 0x4de   :  { %6154 = vperm.xlu0 %7014, %v10377_v11  }
 0x4df   :  { %v10766_v11 = vpop.permute.xlu1 %3975  ;;  %v10775_v55 = vpop.permute.xlu0 %3971 }
 0x4e1   :  { %6150 = vperm.xlu1 %7013, %v10369_v21   ;;  %v7340_v21 = vld [vmem:[#allocation5 + $0x370] ss:$20 sps:$4 sm:$0xff]  }
 0x4e2   :  { %6162 = vperm.xlu0 %7014, %v10392_v61   ;;  %v12070_v61 = vld [vmem:[#allocation99_spill] sm:$0xff] }
 0x4e3   :  { %v7545_v23 = vpop.eup %7544  ;;  %5207 = vmatmul.mubr.bf16.gmra.mxu0 %v7328_v33  ;;  %5368 = vmatmul.mubr.bf16.gmra.mxu1 %v7331_v20  ;;  %v10778_v63 = vpop.permute.xlu1 %3983  ;;  %v7358_v20 = vld [vmem:[#allocation5 + $0x3e8] ss:$20 sps:$4 sm:$0xff]  }
 0x4e4   :  { %6850 = vmatprep.subr.bf16.mxu0 %v7545_v23  ;;  %5214 = vmatprep.mubr.bf16.mxu0 %v7336_v18  ;;  %v7547_v46 = vpop.eup %7546  ;;  %v10781_v15 = vpop.permute.xlu0 %3979  ;;  %v7361_v18 = vld [vmem:[#allocation5 + $0x170] ss:$20 sps:$4 sm:$0xff]  }
 0x4e5   :  { %6851 = vmatpush3.bf16.msra.mxu0 %v7545_v23  ;;  %5375 = vmatprep.mubr.bf16.mxu1 %v7339_v54  ;;  %v7549_v56 = vpop.eup %7548  ;;  %v7369_v54 = vld [vmem:[#allocation5 + $0x19c] ss:$20 sps:$4 sm:$0xff]  }
 0x4e6   :  { %6852 = vmatprep.subr.bf16.mxu0 %v7547_v46  ;;  %v7551_v60 = vpop.eup %7550  ;;  %6158 = vperm.xlu1 %7013, %v10383_v13  }
 0x4e7   :  { %v7553_v19 = vpop.eup %7552  ;;  %6170 = vperm.xlu0 %7014, %v12069_v59   ;;  %v10785_v41 = vpop.permute.xlu1 %3991  ;;  %v12082_v59 = vld [vmem:[#allocation92_spill] sm:$0xff] }
 0x4e8   :  { %v10787_v30 = vpop.permute.xlu0 %3987 }
 0x4e9   :  { %6853 = vmatpush3.bf16.msra.mxu0 %v7547_v46  ;;  %v7555_v13 = vpop.eup %7554 }
 0x4ea   :  { %6854 = vmatprep.subr.bf16.mxu0 %v7549_v56  ;;  %6166 = vperm.xlu1 %7013, %v12070_v61   ;;  %v7557_v51 = vpop.eup %7556  ;;  %v12083_v61 = vld [vmem:[#allocation91_spill] sm:$0xff] }
 0x4eb   :  { %5215 = vmatmul.mubr.bf16.gmra.mxu0 %v7334_v6  ;;  %5376 = vmatmul.mubr.bf16.gmra.mxu1 %v7337_v42  ;;  %v12079_v42 = vld [vmem:[#allocation144_spill] sm:$0xff] }
 0x4ec   :  { %5222 = vmatprep.mubr.bf16.mxu0 %v7342_v16  ;;  %5383 = vmatprep.mubr.bf16.mxu1 %v7345_v27  ;;  %v10795_v49 = vpop.permute.xlu0 %3995  ;;  %v12080_v16 = vld [vmem:[#allocation36_spill] sm:$0xff] }
 0x4ed   :  { %6855 = vmatpush3.bf16.msra.mxu0 %v7549_v56  ;;  %6178 = vperm.xlu0 %7014, %v10427_v62   ;;  %v7559_v62 = vpop.eup %7558  ;;  %v7364_v56 = vld [vmem:[#allocation5 + $0x410] ss:$20 sps:$4 sm:$0xff]  }
 0x4ee   :  { %6856 = vmatprep.subr.bf16.mxu0 %v7551_v60  ;;  %6174 = vperm.xlu1 %7013, %v10413_v25   ;;  %v10792_v25 = vpop.permute.xlu1 %3999 }
 0x4f0   :  { %v10803_v38 = vpop.permute.xlu0 %4003 }
 0x4f1   :  { %6857 = vmatpush3.bf16.msra.mxu0 %v7551_v60  ;;  %6186 = vperm.xlu0 %7014, %v10445_v35   ;;  %v7360_v35 = vld [vmem:[#allocation5 + $0x3ec] ss:$20 sps:$4 sm:$0xff]  }
 0x4f2   :  { %6858 = vmatprep.subr.bf16.mxu0 %v7553_v19  ;;  %6182 = vperm.xlu1 %7013, %v12071_v24   ;;  %v7367_v60 = vld [vmem:[#allocation5 + $0x198] ss:$20 sps:$4 sm:$0xff]  }
 0x4f3   :  { %5223 = vmatmul.mubr.bf16.gmra.mxu0 %v7340_v21  ;;  %5384 = vmatmul.mubr.bf16.gmra.mxu1 %v7343_v34  ;;  %v7372_v21 = vld [vmem:[#allocation5 + $0x43c] ss:$20 sps:$4 sm:$0xff]   ;;  %v7375_v34 = vld [vmem:[#allocation5 + $0x1c4] ss:$20 sps:$4 sm:$0xff]  }
 0x4f4   :  { %5230 = vmatprep.mubr.bf16.mxu0 %v7348_v53  ;;  %5391 = vmatprep.mubr.bf16.mxu1 %v7351_v2  ;;  %v10815_v10 = vpop.permute.xlu0 %4011  ;;  %v7370_v24 = vld [vmem:[#allocation5 + $0x438] ss:$20 sps:$4 sm:$0xff]  }
 0x4f5   :  { %6859 = vmatpush3.bf16.msra.mxu0 %v7553_v19  ;;  %6194 = vperm.xlu0 %7014, %v10466_v12   ;;  %v10801_v12 = vpop.permute.xlu1 %4007 }
 0x4f6   :  { %6860 = vmatprep.subr.bf16.mxu0 %v7555_v13  ;;  %6190 = vperm.xlu1 %7013, %v12072_v48  }
 0x4f8   :  { %v10823_v19 = vpop.permute.xlu0 %4019 }
 0x4f9   :  { %6861 = vmatpush3.bf16.msra.mxu0 %v7555_v13  ;;  %6202 = vperm.xlu0 %7014, %v12073_v4   ;;  %v10810_v23 = vpop.permute.xlu1 %4015  ;;  %v12089_v4 = vld [vmem:[#allocation34_spill] sm:$0xff] }
 0x4fa   :  { %6862 = vmatprep.subr.bf16.mxu0 %v7557_v51  ;;  %6198 = vperm.xlu1 %7013, %v12074_v17  }
 0x4fb   :  { %5231 = vmatmul.mubr.bf16.gmra.mxu0 %v7346_v44  ;;  %5392 = vmatmul.mubr.bf16.gmra.mxu1 %v7349_v45  ;;  %v12084_v45 = vld [vmem:[#allocation33_spill] sm:$0xff] }
 0x4fc   :  { %5238 = vmatprep.mubr.bf16.mxu0 %v7354_v57  ;;  %5399 = vmatprep.mubr.bf16.mxu1 %v7357_v39  ;;  %v12086_v39 = vld [vmem:[#allocation90_spill] sm:$0xff]  ;;  %v10835_v48 = vpop.permute.xlu0 %4027 }
 0x4fd   :  { %6863 = vmatpush3.bf16.msra.mxu0 %v7557_v51  ;;  %6210 = vperm.xlu0 %7014, %v12075_v26   ;;  %v10821_v53 = vpop.permute.xlu1 %4023  ;;  %12087 = vst [vmem:[#allocation31_spill] sm:$0xff] %v10835_v48 }
 0x4fe   :  { %6864 = vmatprep.subr.bf16.mxu0 %v7559_v62  ;;  %6206 = vperm.xlu1 %7013, %v12076_v3   ;;  %12081 = vst [vmem:[#allocation88_spill] sm:$0xff] %v10821_v53 }
 0x500   :  { %v10843_v3 = vpop.permute.xlu0 %4035 }
 0x501   :  { %6865 = vmatpush3.bf16.msra.mxu0 %v7559_v62  ;;  %6218 = vperm.xlu0 %7014, %v12077_v22   ;;  %v10830_v57 = vpop.permute.xlu1 %4031  ;;  %v7373_v62 = vld [vmem:[#allocation5 + $0x1c0] ss:$20 sps:$4 sm:$0xff]   ;;  %12091 = vst [vmem:[#allocation140_spill] sm:$0xff] %v10843_v3 }
 0x502   :  { %6214 = vperm.xlu1 %7013, %v12078_v58   ;;  %12085 = vst [vmem:[#allocation89_spill] sm:$0xff] %v10830_v57  ;;  %v7384_v22 = vld [vmem:[#allocation5 + $0x48c] ss:$20 sps:$4 sm:$0xff]   ;;  %v7387_v58 = vld [vmem:[#allocation5 + $0x214] ss:$20 sps:$4 sm:$0xff]  }
 0x503   :  { %v10799_v37 = vpop.f32.mrf.mxu0  ;;  %5239 = vmatmul.mubr.bf16.gmra.mxu0 %v7352_v28  ;;  %5400 = vmatmul.mubr.bf16.gmra.mxu1 %v7355_v14  ;;  %v7378_v28 = vld [vmem:[#allocation5 + $0x464] ss:$20 sps:$4 sm:$0xff]   ;;  %v7381_v14 = vld [vmem:[#allocation5 + $0x1ec] ss:$20 sps:$4 sm:$0xff]  }
 0x504   :  { %5246 = vmatprep.mubr.bf16.mxu0 %v7360_v35  ;;  %5407 = vmatprep.mubr.bf16.mxu1 %v7363_v7  ;;  %v12088_v7 = vld [vmem:[#allocation141_spill] sm:$0xff] }
 0x505   :  { %v5050_v50 = vpop.f32.mrf.mxu0  ;;  %6226 = vperm.xlu0 %7014, %v12079_v42  }
 0x506   :  { %6222 = vperm.xlu1 %7013, %v12080_v16   ;;  %v10841_v50 = vpop.permute.xlu1 %4039  ;;  %v12095_v16 = vld [vmem:[#allocation96_spill] sm:$0xff] }
 0x507   :  { %v10807_v33 = vpop.f32.mrf.mxu0  ;;  %12090 = vst [vmem:[#allocation32_spill] sm:$0xff] %v10841_v50 }
 0x509   :  { %v5053_v36 = vpop.f32.mrf.mxu0  ;;  %6234 = vperm.xlu0 %7014, %v12082_v59   ;;  %v7390_v59 = vld [vmem:[#allocation5 + $0x4b4] ss:$20 sps:$4 sm:$0xff]  }
 0x50a   :  { %6230 = vperm.xlu1 %7013, %v12083_v61   ;;  %v7379_v36 = vld [vmem:[#allocation5 + $0x1e8] ss:$20 sps:$4 sm:$0xff]   ;;  %v10849_v42 = vpop.permute.xlu1 %4047 }
 0x50b   :  { %v10813_v46 = vpop.f32.mrf.mxu0  ;;  %5247 = vmatmul.mubr.bf16.gmra.mxu0 %v7358_v20  ;;  %5408 = vmatmul.mubr.bf16.gmra.mxu1 %v7361_v18  ;;  %v12092_v20 = vld [vmem:[#allocation93_spill] sm:$0xff]  ;;  %v12093_v18 = vld [vmem:[#allocation143_spill] sm:$0xff]  ;;  %12094 = vst [vmem:[#allocation142_spill] sm:$0xff] %v10849_v42 }
 0x50c   :  { %5254 = vmatprep.mubr.bf16.mxu0 %v7366_v52  ;;  %5415 = vmatprep.mubr.bf16.mxu1 %v7369_v54  ;;  %v7376_v54 = vld [vmem:[#allocation5 + $0x460] ss:$20 sps:$4 sm:$0xff]   ;;  %v7393_v61 = vld [vmem:[#allocation5 + $0x23c] ss:$20 sps:$4 sm:$0xff]  }
 0x50d   :  { %v5058_v6 = vpop.f32.mrf.mxu0  ;;  %6242 = vperm.xlu0 %7014, %v12084_v45  }
 0x50e   :  { %6238 = vperm.xlu1 %7013, %v12086_v39  }
 0x50f   :  { %v10819_v27 = vpop.f32.mrf.mxu0 }
 0x511   :  { %v5061_v2 = vpop.f32.mrf.mxu0  ;;  %6250 = vperm.xlu0 %7014, %v12088_v7  }
 0x512   :  { %6246 = vperm.xlu1 %7013, %v12089_v4   ;;  %v7385_v2 = vld [vmem:[#allocation5 + $0x210] ss:$20 sps:$4 sm:$0xff]  }
 0x513   :  { %v10827_v13 = vpop.f32.mrf.mxu0  ;;  %5255 = vmatmul.mubr.bf16.gmra.mxu0 %v7364_v56  ;;  %5416 = vmatmul.mubr.bf16.gmra.mxu1 %v7367_v60 }
 0x514   :  { %5262 = vmatprep.mubr.bf16.mxu0 %v7372_v21  ;;  %5423 = vmatprep.mubr.bf16.mxu1 %v7375_v34  ;;  %v7382_v34 = vld [vmem:[#allocation5 + $0x488] ss:$20 sps:$4 sm:$0xff]  }
 0x515   :  { %v5066_v44 = vpop.f32.mrf.mxu0  ;;  %6258 = vperm.xlu0 %7014, %v12092_v20  }
 0x516   :  { %6254 = vperm.xlu1 %7013, %v12093_v18   ;;  %v7394_v18 = vld [vmem:[#allocation5 + $0x4d8] ss:$20 sps:$4 sm:$0xff]  }
 0x517   :  { %v10833_v51 = vpop.f32.mrf.mxu0 }
 0x519   :  { %v5069_v35 = vpop.f32.mrf.mxu0 }
 0x51a   :  { %6262 = vperm.xlu1 %7013, %v12095_v16   ;;  %v7399_v35 = vld [vmem:[#allocation5 + $0x264] ss:$20 sps:$4 sm:$0xff]  }
 0x51b   :  { %v10839_v17 = vpop.f32.mrf.mxu0  ;;  %5263 = vmatmul.mubr.bf16.gmra.mxu0 %v7370_v24  ;;  %5424 = vmatmul.mubr.bf16.gmra.mxu1 %v7373_v62  ;;  %v7388_v62 = vld [vmem:[#allocation5 + $0x4b0] ss:$20 sps:$4 sm:$0xff]  }
 0x51c   :  { %5270 = vmatprep.mubr.bf16.mxu0 %v7378_v28  ;;  %5431 = vmatprep.mubr.bf16.mxu1 %v7381_v14  ;;  %v7391_v28 = vld [vmem:[#allocation5 + $0x238] ss:$20 sps:$4 sm:$0xff]   ;;  %v7396_v14 = vld [vmem:[#allocation5 + $0x4dc] ss:$20 sps:$4 sm:$0xff]  }
 0x51d   :  { %v5074_v26 = vpop.f32.mrf.mxu0 }
 0x51f   :  { %v10847_v52 = vpop.f32.mrf.mxu0 }
 0x521   :  { %v5077_v6 = vpop.f32.mrf.mxu0 }
 0x523   :  { %v10852_v56 = vpop.f32.mrf.mxu0  ;;  %5271 = vmatmul.mubr.bf16.gmra.mxu0 %v7376_v54  ;;  %5432 = vmatmul.mubr.bf16.gmra.mxu1 %v7379_v36  ;;  %v7397_v54 = vld [vmem:[#allocation5 + $0x260] ss:$20 sps:$4 sm:$0xff]  }
 0x524   :  { %5278 = vmatprep.mubr.bf16.mxu0 %v7384_v22  ;;  %5439 = vmatprep.mubr.bf16.mxu1 %v7387_v58  ;;  %v7402_v36 = vld [vmem:[#allocation5 + $0x28c] ss:$20 sps:$4 sm:$0xff]   ;;  %v7403_v22 = vld [vmem:[#allocation5 + $0x10] ss:$20 sps:$4 sm:$0xff]  }
 0x525   :  { %v5082_v60 = vpop.f32.mrf.mxu0 }
 0x527   :  { %v10854_v21 = vpop.f32.mrf.mxu0 }
 0x529   :  { %v5085_v44 = vpop.f32.mrf.mxu0 }
 0x52b   :  { %v10856_v45 = vpop.f32.mrf.mxu0  ;;  %5279 = vmatmul.mubr.bf16.gmra.mxu0 %v7382_v34  ;;  %5440 = vmatmul.mubr.bf16.gmra.mxu1 %v7385_v2  ;;  %v7400_v34 = vld [vmem:[#allocation5 + $0x288] ss:$20 sps:$4 sm:$0xff]   ;;  %v7404_v2 = vld [vmem:[#allocation5 + $0x38] ss:$20 sps:$4 sm:$0xff]  }
 0x52c   :  { %5286 = vmatprep.mubr.bf16.mxu0 %v7390_v59  ;;  %5447 = vmatprep.mubr.bf16.mxu1 %v7393_v61  ;;  %v7407_v59 = vld [vmem:[#allocation5 + $0x2b4] ss:$20 sps:$4 sm:$0xff]  }
 0x52d   :  { %v5090_v39 = vpop.f32.mrf.mxu0  ;;  %v7408_v61 = vld [vmem:[#allocation5 + $0x60] ss:$20 sps:$4 sm:$0xff]  }
 0x52f   :  { %v10858_v24 = vpop.f32.mrf.mxu0 }
 0x531   :  { %v5093_v7 = vpop.f32.mrf.mxu0 }
 0x532   :  { %v7412_v7 = vld [vmem:[#allocation5 + $0x2dc] ss:$20 sps:$4 sm:$0xff]  }
 0x533   :  { %v10860_v4 = vpop.f32.mrf.mxu0  ;;  %5287 = vmatmul.mubr.bf16.gmra.mxu0 %v7388_v62  ;;  %5448 = vmatmul.mubr.bf16.gmra.mxu1 %v7391_v28 }
 0x534   :  { %5294 = vmatprep.mubr.bf16.mxu0 %v7396_v14  ;;  %5455 = vmatprep.mubr.bf16.mxu1 %v7399_v35  ;;  %v7405_v14 = vld [vmem:[#allocation5 + $0x2b0] ss:$20 sps:$4 sm:$0xff]   ;;  %v7409_v35 = vld [vmem:[#allocation5 + $0x88] ss:$20 sps:$4 sm:$0xff]  }
 0x535   :  { %v5098_v26 = vpop.f32.mrf.mxu0 }
 0x536   :  { %v7413_v26 = vld [vmem:[#allocation5 + $0xb0] ss:$20 sps:$4 sm:$0xff]  }
 0x537   :  { %v10862_v20 = vpop.f32.mrf.mxu0 }
 0x539   :  { %v5101_v58 = vpop.f32.mrf.mxu0 }
 0x53a   :  { %v7410_v58 = vld [vmem:[#allocation5 + $0x2d8] ss:$20 sps:$4 sm:$0xff]  }
 0x53b   :  { %v10864_v6 = vpop.f32.mrf.mxu0  ;;  %5295 = vmatmul.mubr.bf16.gmra.mxu0 %v7394_v18  ;;  %5456 = vmatmul.mubr.bf16.gmra.mxu1 %v7397_v54 }
 0x53c   :  { %5463 = vmatprep.mubr.bf16.mxu1 %v7402_v36  ;;  %6866 = vmatprep.mubr.bf16.mxu0 %v7403_v22 }
 0x53d   :  { %v5106_v16 = vpop.f32.mrf.mxu0 }
 0x53e   :  { %v7414_v16 = vld [vmem:[#allocation5 + $0xd8] ss:$20 sps:$4 sm:$0xff]  }
 0x53f   :  { %v10866_v60 = vpop.f32.mrf.mxu0 }
 0x541   :  { %v5109_v44 = vpop.f32.mrf.mxu0 }
 0x543   :  { %v10868_v39 = vpop.f32.mrf.mxu0  ;;  %5464 = vmatmul.mubr.bf16.gmra.mxu1 %v7400_v34  ;;  %6867 = vmatmul.mubr.bf16.vlgmr.msra.gmra.mxu0 %v7404_v2  ;;  %v7417_v34 = vld [vmem:[#allocation5 + $0x304] ss:$20 sps:$4 sm:$0xff]   ;;  %v7418_v2 = vld [vmem:[#allocation5 + $0x100] ss:$20 sps:$4 sm:$0xff]  }
 0x544   :  { %5471 = vmatprep.mubr.bf16.mxu1 %v7407_v59  ;;  %6870 = vmatprep.mubr.bf16.mxu0 %v7408_v61 }
 0x545   :  { %v5114_v62 = vpop.f32.mrf.mxu0 }
 0x547   :  { %v10870_v28 = vpop.f32.mrf.mxu0 }
 0x549   :  { %v5117_v18 = vpop.f32.mrf.mxu0 }
 0x54b   :  { %v10872_v54 = vpop.f32.mrf.mxu0  ;;  %5472 = vmatmul.mubr.bf16.gmra.mxu1 %v7405_v14  ;;  %6871 = vmatmul.mubr.bf16.gmra.mxu0 %v7409_v35  ;;  %v7415_v14 = vld [vmem:[#allocation5 + $0x300] ss:$20 sps:$4 sm:$0xff]   ;;  %v7419_v35 = vld [vmem:[#allocation5 + $0x128] ss:$20 sps:$4 sm:$0xff]  }
 0x54c   :  { %5479 = vmatprep.mubr.bf16.mxu1 %v7412_v7  ;;  %6874 = vmatprep.mubr.bf16.mxu0 %v7413_v26  ;;  %v7422_v7 = vld [vmem:[#allocation5 + $0x32c] ss:$20 sps:$4 sm:$0xff]   ;;  %v7423_v26 = vld [vmem:[#allocation5 + $0x150] ss:$20 sps:$4 sm:$0xff]  }
 0x54d   :  { %v5122_v36 = vpop.f32.mrf.mxu0 }
 0x54f   :  { %v10874_v22 = vpop.f32.mrf.mxu0 }
 0x551   :  { %v5125_v59 = vpop.f32.mrf.mxu0 }
 0x553   :  { %v10876_v61 = vpop.f32.mrf.mxu0  ;;  %5480 = vmatmul.mubr.bf16.gmra.mxu1 %v7410_v58  ;;  %6875 = vmatmul.mubr.bf16.gmra.mxu0 %v7414_v16  ;;  %v7420_v58 = vld [vmem:[#allocation5 + $0x328] ss:$20 sps:$4 sm:$0xff]   ;;  %v7424_v16 = vld [vmem:[#allocation5 + $0x178] ss:$20 sps:$4 sm:$0xff]  }
 0x554   :  { %5487 = vmatprep.mubr.bf16.mxu1 %v7417_v34  ;;  %6878 = vmatprep.mubr.bf16.mxu0 %v7418_v2  ;;  %v7427_v34 = vld [vmem:[#allocation5 + $0x354] ss:$20 sps:$4 sm:$0xff]  }
 0x555   :  { %v5130_v44 = vpop.f32.mrf.mxu0  ;;  %v7428_v2 = vld [vmem:[#allocation5 + $0x1a0] ss:$20 sps:$4 sm:$0xff]  }
 0x557   :  { %v10878_v62 = vpop.f32.mrf.mxu0 }
 0x559   :  { %v5133_v18 = vpop.f32.mrf.mxu0 }
 0x55b   :  { %v10880_v36 = vpop.f32.mrf.mxu0  ;;  %5488 = vmatmul.mubr.bf16.gmra.mxu1 %v7415_v14  ;;  %6879 = vmatmul.mubr.bf16.gmra.mxu0 %v7419_v35  ;;  %v7425_v14 = vld [vmem:[#allocation5 + $0x350] ss:$20 sps:$4 sm:$0xff]   ;;  %v7429_v35 = vld [vmem:[#allocation5 + $0x1c8] ss:$20 sps:$4 sm:$0xff]  }
 0x55c   :  { %5495 = vmatprep.mubr.bf16.mxu1 %v7422_v7  ;;  %6882 = vmatprep.mubr.bf16.mxu0 %v7423_v26  ;;  %v7432_v7 = vld [vmem:[#allocation5 + $0x37c] ss:$20 sps:$4 sm:$0xff]  }
 0x55d   :  { %v5138_v59 = vpop.f32.mrf.mxu0  ;;  %v7433_v26 = vld [vmem:[#allocation5 + $0x1f0] ss:$20 sps:$4 sm:$0xff]  }
 0x55f   :  { %v10882_v42 = vpop.f32.mrf.mxu0 }
 0x561   :  { %v5141_v44 = vpop.f32.mrf.mxu0 }
 0x563   :  { %v10884_v50 = vpop.f32.mrf.mxu0  ;;  %5496 = vmatmul.mubr.bf16.gmra.mxu1 %v7420_v58  ;;  %6883 = vmatmul.mubr.bf16.gmra.mxu0 %v7424_v16  ;;  %v7430_v58 = vld [vmem:[#allocation5 + $0x378] ss:$20 sps:$4 sm:$0xff]  }
 0x564   :  { %12096 = vst [vmem:[#allocation122_spill] sm:$0xff] %v10884_v50  ;;  %5503 = vmatprep.mubr.bf16.mxu1 %v7427_v34  ;;  %6886 = vmatprep.mubr.bf16.mxu0 %v7428_v2  ;;  %v7434_v16 = vld [vmem:[#allocation5 + $0x218] ss:$20 sps:$4 sm:$0xff]   ;;  %v7438_v2 = vld [vmem:[#allocation5 + $0x240] ss:$20 sps:$4 sm:$0xff]   ;;  %v10898_v50 = vpop.permute.xlu0 %4043 }
 0x565   :  { %v5146_v18 = vpop.f32.mrf.mxu0  ;;  %v7437_v34 = vld [vmem:[#allocation5 + $0x3a4] ss:$20 sps:$4 sm:$0xff]   ;;  %12102 = vst [vmem:[#allocation86_spill] sm:$0xff] %v10898_v50  ;;  %v5049_v50 = vadd.f32 %v10799_v37, %v10732_v32 }
 0x566   :  { %v7445_v37 = vld [vmem:[#allocation5 + $0x3f0] ss:$20 sps:$4 sm:$0xff]  }
 0x567   :  { %v10886_v3 = vpop.f32.mrf.mxu0 }
 0x568   :  { %12097 = vst [vmem:[#allocation111_spill] sm:$0xff] %v10886_v3 }
 0x569   :  { %v5149_v59 = vpop.f32.mrf.mxu0 }
 0x56b   :  { %v10888_v57 = vpop.f32.mrf.mxu0  ;;  %5504 = vmatmul.mubr.bf16.gmra.mxu1 %v7425_v14  ;;  %6887 = vmatmul.mubr.bf16.gmra.mxu0 %v7429_v35  ;;  %v7435_v14 = vld [vmem:[#allocation5 + $0x3a0] ss:$20 sps:$4 sm:$0xff]   ;;  %v7439_v35 = vld [vmem:[#allocation5 + $0x268] ss:$20 sps:$4 sm:$0xff]  }
 0x56c   :  { %12098 = vst [vmem:[#allocation62_spill] sm:$0xff] %v10888_v57  ;;  %5511 = vmatprep.mubr.bf16.mxu1 %v7432_v7  ;;  %6890 = vmatprep.mubr.bf16.mxu0 %v7433_v26  ;;  %v7442_v7 = vld [vmem:[#allocation5 + $0x3cc] ss:$20 sps:$4 sm:$0xff]   ;;  %v7443_v26 = vld [vmem:[#allocation5 + $0x290] ss:$20 sps:$4 sm:$0xff]  }
 0x56d   :  { %v5154_v44 = vpop.f32.mrf.mxu0 }
 0x56f   :  { %v10890_v48 = vpop.f32.mrf.mxu0 }
 0x570   :  { %12099 = vst [vmem:[#allocation123_spill] sm:$0xff] %v10890_v48  ;;  %v10896_v48 = vpop.permute.xlu1 %4055 }
 0x571   :  { %v5157_v18 = vpop.f32.mrf.mxu0  ;;  %12101 = vst [vmem:[#allocation158_spill] sm:$0xff] %v10896_v48 }
 0x572   :  { %v7447_v18 = vld [vmem:[#allocation5 + $0x3f4] ss:$20 sps:$4 sm:$0xff]  }
 0x573   :  { %v10892_v3 = vpop.f32.mrf.mxu0  ;;  %5512 = vmatmul.mubr.bf16.gmra.mxu1 %v7430_v58  ;;  %6891 = vmatmul.mubr.bf16.gmra.mxu0 %v7434_v16 }
 0x574   :  { %5519 = vmatprep.mubr.bf16.mxu1 %v7437_v34  ;;  %6894 = vmatprep.mubr.bf16.mxu0 %v7438_v2  ;;  %v7440_v34 = vld [vmem:[#allocation5 + $0x3c8] ss:$20 sps:$4 sm:$0xff]   ;;  %v7444_v2 = vld [vmem:[#allocation5 + $0x2b8] ss:$20 sps:$4 sm:$0xff]  }
 0x575   :  { %v5162_v59 = vpop.f32.mrf.mxu0 }
 0x576   :  { %v7448_v59 = vld [vmem:[#allocation5 + $0x2e0] ss:$20 sps:$4 sm:$0xff]  }
 0x577   :  { %v10894_v57 = vpop.f32.mrf.mxu0 }
 0x578   :  { %12100 = vst [vmem:[#allocation61_spill] sm:$0xff] %v10894_v57  ;;  %v10904_v57 = vpop.permute.xlu1 %4063 }
 0x579   :  { %v5165_v44 = vpop.f32.mrf.mxu0  ;;  %12105 = vst [vmem:[#allocation87_spill] sm:$0xff] %v10904_v57 }
 0x57a   :  { %v10906_v44 = vpop.permute.xlu0 %4051 }
 0x57b   :  { %v10900_v53 = vpop.f32.mrf.mxu0  ;;  %5520 = vmatmul.mubr.bf16.gmra.mxu1 %v7435_v14  ;;  %6895 = vmatmul.mubr.bf16.gmra.mxu0 %v7439_v35 }
 0x57c   :  { %12103 = vst [vmem:[#allocation120_spill] sm:$0xff] %v10900_v53  ;;  %5527 = vmatprep.mubr.bf16.mxu1 %v7442_v7  ;;  %6898 = vmatprep.mubr.bf16.mxu0 %v7443_v26  ;;  %v10916_v57 = vpop.permute.xlu1 %4071 }
 0x57d   :  { %v5170_v58 = vpop.f32.mrf.mxu0  ;;  %12107 = vst [vmem:[#allocation60_spill] sm:$0xff] %v10916_v57 }
 0x57e   :  { %v5052_v58 = vadd.f32 %v10807_v33, %v10718_v9 }
 0x57f   :  { %v10902_v16 = vpop.f32.mrf.mxu0 }
 0x580   :  { %12104 = vst [vmem:[#allocation121_spill] sm:$0xff] %v10902_v16  ;;  %v10928_v33 = vpop.permute.xlu1 %4079 }
 0x581   :  { %v5173_v48 = vpop.f32.mrf.mxu0  ;;  %12109 = vst [vmem:[#allocation160_spill] sm:$0xff] %v10928_v33 }
 0x582   :  { %v10918_v48 = vpop.permute.xlu0 %4059 }
 0x583   :  { %v10910_v53 = vpop.f32.mrf.mxu0  ;;  %v5337_v14 = vpop.f32.mrf.mxu1  ;;  %5528 = vmatmul.mubr.bf16.gmra.mxu1 %v7440_v34  ;;  %6899 = vmatmul.mubr.bf16.gmra.mxu0 %v7444_v2  ;;  %v7452_v34 = vld [vmem:[#allocation5 + $0x41c] ss:$20 sps:$4 sm:$0xff]  }
 0x584   :  { %12106 = vst [vmem:[#allocation59_spill] sm:$0xff] %v10910_v53  ;;  %5535 = vmatprep.mubr.bf16.mxu1 %v7447_v18  ;;  %6902 = vmatprep.mubr.bf16.mxu0 %v7448_v59  ;;  %v10912_v35 = vadd.f32 %v5337_v14, %v5049_v50  ;;  %v7449_v53 = vld [vmem:[#allocation5 + $0x308] ss:$20 sps:$4 sm:$0xff]   ;;  %v7453_v2 = vld [vmem:[#allocation5 + $0x330] ss:$20 sps:$4 sm:$0xff]   ;;  %v5057_v14 = vadd.f32 %v10813_v46, %v10724_v1 }
 0x585   :  { %v5178_v7 = vpop.f32.mrf.mxu0  ;;  %v5339_v26 = vpop.f32.mrf.mxu1  ;;  %v7450_v46 = vld [vmem:[#allocation5 + $0x418] ss:$20 sps:$4 sm:$0xff]  }
 0x586   :  { %v10930_v26 = vpop.permute.xlu0 %4067 }
 0x587   :  { %v10920_v16 = vpop.f32.mrf.mxu0  ;;  %v5340_v32 = vpop.f32.mrf.mxu1  ;;  %12110 = vst [vmem:[#allocation156_spill] sm:$0xff] %v10930_v26 }
 0x588   :  { %v10922_v18 = vadd.f32 %v5340_v32, %v5052_v58 }
 0x589   :  { %v5181_v50 = vpop.f32.mrf.mxu0  ;;  %v5342_v59 = vpop.f32.mrf.mxu1 }
 0x58a   :  { %12108 = vst [vmem:[#allocation118_spill] sm:$0xff] %v10922_v18  ;;  %v5060_v50 = vadd.f32 %v10819_v27, %v10745_v29  ;;  %v7454_v18 = vld [vmem:[#allocation5 + $0x358] ss:$20 sps:$4 sm:$0xff]  }
 0x58b   :  { %v10926_v7 = vpop.f32.mrf.mxu0  ;;  %v5345_v9 = vpop.f32.mrf.mxu1  ;;  %5536 = vmatmul.mubr.bf16.gmra.mxu1 %v7445_v37  ;;  %6903 = vmatmul.mubr.bf16.gmra.mxu0 %v7449_v53  ;;  %v7457_v37 = vld [vmem:[#allocation5 + $0x444] ss:$20 sps:$4 sm:$0xff]   ;;  %v7458_v53 = vld [vmem:[#allocation5 + $0x380] ss:$20 sps:$4 sm:$0xff]  }
 0x58c   :  { %5543 = vmatprep.mubr.bf16.mxu1 %v7452_v34  ;;  %6906 = vmatprep.mubr.bf16.mxu0 %v7453_v2  ;;  %v10932_v57 = vadd.f32 %v5345_v9, %v5057_v14  ;;  %v5065_v14 = vadd.f32 %v10827_v13, %v10728_v40  ;;  %v10942_v9 = vpop.permute.xlu1 %4087  ;;  %v7455_v13 = vld [vmem:[#allocation5 + $0x440] ss:$20 sps:$4 sm:$0xff]  }
 0x58d   :  { %v5186_v58 = vpop.f32.mrf.mxu0  ;;  %v5347_v32 = vpop.f32.mrf.mxu1  ;;  %12112 = vst [vmem:[#allocation58_spill] sm:$0xff] %v10942_v9  ;;  %v7459_v9 = vld [vmem:[#allocation5 + $0x3a8] ss:$20 sps:$4 sm:$0xff]  }
 0x58e   :  { %v10944_v58 = vpop.permute.xlu0 %4075 }
 0x58f   :  { %v10936_v59 = vpop.f32.mrf.mxu0  ;;  %v5348_v1 = vpop.f32.mrf.mxu1  ;;  %12113 = vst [vmem:[#allocation29_spill] sm:$0xff] %v10944_v58  ;;  %v7462_v58 = vld [vmem:[#allocation5 + $0x46c] ss:$20 sps:$4 sm:$0xff]  }
 0x590   :  { %12111 = vst [vmem:[#allocation119_spill] sm:$0xff] %v10936_v59  ;;  %v10938_v34 = vadd.f32 %v5348_v1, %v5060_v50  ;;  %v7463_v59 = vld [vmem:[#allocation5 + $0x3d0] ss:$20 sps:$4 sm:$0xff]  }
 0x591   :  { %v5189_v2 = vpop.f32.mrf.mxu0  ;;  %v5350_v33 = vpop.f32.mrf.mxu1  ;;  %v12185_v26 = vld [vmem:[#allocation118_spill] sm:$0xff] }
 0x592   :  { %v5068_v33 = vadd.f32 %v10833_v51, %v10754_v5 }
 0x593   :  { %v10946_v32 = vpop.f32.mrf.mxu0  ;;  %v5353_v29 = vpop.f32.mrf.mxu1  ;;  %5544 = vmatmul.mubr.bf16.gmra.mxu1 %v7450_v46  ;;  %6907 = vmatmul.mubr.bf16.gmra.mxu0 %v7454_v18 }
 0x594   :  { %12114 = vst [vmem:[#allocation57_spill] sm:$0xff] %v10946_v32  ;;  %5551 = vmatprep.mubr.bf16.mxu1 %v7457_v37  ;;  %6910 = vmatprep.mubr.bf16.mxu0 %v7458_v53  ;;  %v10948_v27 = vadd.f32 %v5353_v29, %v5065_v14  ;;  %v10954_v32 = vpop.permute.xlu1 %4095  ;;  %v10956_v46 = vpop.permute.xlu0 %4083  ;;  %v5073_v14 = vadd.f32 %v10839_v17, %v10742_v8  ;;  %v7460_v17 = vld [vmem:[#allocation5 + $0x468] ss:$20 sps:$4 sm:$0xff]  }
 0x595   :  { %v5194_v50 = vpop.f32.mrf.mxu0  ;;  %v5355_v1 = vpop.f32.mrf.mxu1  ;;  %12116 = vst [vmem:[#allocation153_spill] sm:$0xff] %v10954_v32  ;;  %12117 = vst [vmem:[#allocation116_spill] sm:$0xff] %v10956_v46  ;;  %v7464_v32 = vld [vmem:[#allocation5 + $0x3f8] ss:$20 sps:$4 sm:$0xff]  }
 0x597   :  { %v10952_v2 = vpop.f32.mrf.mxu0  ;;  %v5356_v40 = vpop.f32.mrf.mxu1 }
 0x598   :  { %12115 = vst [vmem:[#allocation161_spill] sm:$0xff] %v10952_v2  ;;  %v10958_v18 = vadd.f32 %v5356_v40, %v5068_v33  ;;  %v5076_v33 = vadd.f32 %v10847_v52, %v10760_v47  ;;  %v10968_v40 = vpop.permute.xlu1 %4103 }
 0x599   :  { %v5197_v37 = vpop.f32.mrf.mxu0  ;;  %v5358_v53 = vpop.f32.mrf.mxu1  ;;  %12119 = vst [vmem:[#allocation55_spill] sm:$0xff] %v10968_v40 }
 0x59a   :  { %v10970_v37 = vpop.permute.xlu0 %4091 }
 0x59b   :  { %v10962_v29 = vpop.f32.mrf.mxu0  ;;  %v5361_v5 = vpop.f32.mrf.mxu1  ;;  %5552 = vmatmul.mubr.bf16.gmra.mxu1 %v7455_v13  ;;  %6911 = vmatmul.mubr.bf16.gmra.mxu0 %v7459_v9  ;;  %12120 = vst [vmem:[#allocation56_spill] sm:$0xff] %v10970_v37  ;;  %v7467_v13 = vld [vmem:[#allocation5 + $0x494] ss:$20 sps:$4 sm:$0xff]  }
 0x59c   :  { %12118 = vst [vmem:[#allocation117_spill] sm:$0xff] %v10962_v29  ;;  %5559 = vmatprep.mubr.bf16.mxu1 %v7462_v58  ;;  %6914 = vmatprep.mubr.bf16.mxu0 %v7463_v59  ;;  %v10964_v51 = vadd.f32 %v5361_v5, %v5073_v14  ;;  %v7468_v9 = vld [vmem:[#allocation5 + $0x420] ss:$20 sps:$4 sm:$0xff]   ;;  %v5081_v5 = vadd.f32 %v10852_v56, %v10752_v0  ;;  %v10980_v52 = vpop.permute.xlu1 %4111  ;;  %v7465_v56 = vld [vmem:[#allocation5 + $0x490] ss:$20 sps:$4 sm:$0xff]  }
 0x59d   :  { %v5202_v50 = vpop.f32.mrf.mxu0  ;;  %v5363_v1 = vpop.f32.mrf.mxu1  ;;  %12123 = vst [vmem:[#allocation150_spill] sm:$0xff] %v10980_v52  ;;  %v7469_v37 = vld [vmem:[#allocation5 + $0x448] ss:$20 sps:$4 sm:$0xff]  }
 0x59e   :  { %v10982_v1 = vpop.permute.xlu0 %4099 }
 0x59f   :  { %v10972_v53 = vpop.f32.mrf.mxu0  ;;  %v5364_v8 = vpop.f32.mrf.mxu1  ;;  %12124 = vst [vmem:[#allocation114_spill] sm:$0xff] %v10982_v1  ;;  %v7478_v1 = vld [vmem:[#allocation5 + $0x4c0] ss:$20 sps:$4 sm:$0xff]  }
 0x5a0   :  { %12121 = vst [vmem:[#allocation155_spill] sm:$0xff] %v10972_v53  ;;  %v10974_v58 = vadd.f32 %v5364_v8, %v5076_v33  ;;  %v12182_v53 = vld [vmem:[#allocation59_spill] sm:$0xff] }
 0x5a1   :  { %v5205_v59 = vpop.f32.mrf.mxu0  ;;  %v5366_v14 = vpop.f32.mrf.mxu1 }
 0x5a2   :  { %v5084_v59 = vadd.f32 %v10854_v21, %v10768_v31 }
 0x5a3   :  { %v10978_v50 = vpop.f32.mrf.mxu0  ;;  %v5369_v47 = vpop.f32.mrf.mxu1  ;;  %5560 = vmatmul.mubr.bf16.gmra.mxu1 %v7460_v17  ;;  %6915 = vmatmul.mubr.bf16.gmra.mxu0 %v7464_v32  ;;  %v7472_v17 = vld [vmem:[#allocation5 + $0x4bc] ss:$20 sps:$4 sm:$0xff]  }
 0x5a4   :  { %12122 = vst [vmem:[#allocation159_spill] sm:$0xff] %v10978_v50  ;;  %5567 = vmatprep.mubr.bf16.mxu1 %v7467_v13  ;;  %6918 = vmatprep.mubr.bf16.mxu0 %v7468_v9  ;;  %v10984_v40 = vadd.f32 %v5369_v47, %v5081_v5  ;;  %v7473_v32 = vld [vmem:[#allocation5 + $0x470] ss:$20 sps:$4 sm:$0xff]   ;;  %v5089_v5 = vadd.f32 %v10856_v45, %v10758_v43  ;;  %v10994_v47 = vpop.permute.xlu1 %4119  ;;  %v7470_v45 = vld [vmem:[#allocation5 + $0x4b8] ss:$20 sps:$4 sm:$0xff]  }
 0x5a5   :  { %v5210_v33 = vpop.f32.mrf.mxu0  ;;  %v5371_v8 = vpop.f32.mrf.mxu1  ;;  %12126 = vst [vmem:[#allocation53_spill] sm:$0xff] %v10994_v47  ;;  %v7474_v47 = vld [vmem:[#allocation5 + $0x498] ss:$20 sps:$4 sm:$0xff]  }
 0x5a6   :  { %v10996_v33 = vpop.permute.xlu0 %4107 }
 0x5a7   :  { %v10988_v14 = vpop.f32.mrf.mxu0  ;;  %v5372_v0 = vpop.f32.mrf.mxu1  ;;  %12127 = vst [vmem:[#allocation54_spill] sm:$0xff] %v10996_v33  ;;  %v7477_v33 = vld [vmem:[#allocation5 + $0x4e4] ss:$20 sps:$4 sm:$0xff]  }
 0x5a8   :  { %12125 = vst [vmem:[#allocation115_spill] sm:$0xff] %v10988_v14  ;;  %v10990_v13 = vadd.f32 %v5372_v0, %v5084_v59  ;;  %v11006_v14 = vpop.permute.xlu1 %4127 }
 0x5a9   :  { %v5213_v9 = vpop.f32.mrf.mxu0  ;;  %v5374_v52 = vpop.f32.mrf.mxu1  ;;  %12130 = vst [vmem:[#allocation147_spill] sm:$0xff] %v11006_v14  ;;  %v7475_v14 = vld [vmem:[#allocation5 + $0x4e0] ss:$20 sps:$4 sm:$0xff]  }
 0x5aa   :  { %v5092_v52 = vadd.f32 %v10858_v24, %v10775_v55  ;;  %v133_v55 = vld [vmem:[%s11562_s2] sm:$0x1]  ;;  %s7871_s2 = smov [#allocation7]  }
 0x5ab   :  { %v10998_v8 = vpop.f32.mrf.mxu0  ;;  %v5377_v31 = vpop.f32.mrf.mxu1  ;;  %5568 = vmatmul.mubr.bf16.gmra.mxu1 %v7465_v56  ;;  %6919 = vmatmul.mubr.bf16.gmra.mxu0 %v7469_v37  ;;  %s6477_s3 = sshll.u32 %s7871_s2, 4  ;;  %s6478_s3 = int_to_ptr.vmem [resolvable:$true] %s6477_s3 }
 0x5ac   :  { %12128 = vst [vmem:[#allocation152_spill] sm:$0xff] %v10998_v8  ;;  %v11000_v21 = vadd.f32 %v5377_v31, %v5089_v5  ;;  %5575 = vmatprep.mubr.bf16.mxu1 %v7472_v17  ;;  %6922 = vmatprep.mubr.bf16.mxu0 %v7473_v32  ;;  %v11008_v56 = vpop.permute.xlu0 %4115  ;;  %v5097_v5 = vadd.f32 %v10860_v4, %v10766_v11  ;;  %v7870_v31 = vmov 7   ;;  %v11023_v4 = vpop.permute.xlu1 %4135  ;;  %s7831_s7 = scalar_lea.vmem %s6478_s3, 16  ;;  %s7835_s8 = scalar_lea.vmem %s6478_s3, 32 }
 0x5ad   :  { %v5218_v59 = vpop.f32.mrf.mxu0  ;;  %v5379_v0 = vpop.f32.mrf.mxu1  ;;  %12131 = vst [vmem:[#allocation51_spill] sm:$0xff] %v11008_v56  ;;  %7015 = vset.pattern.permute.xlu0 %v7870_v31  ;;  %v5100_v11 = vadd.f32 %v10862_v20, %v10781_v15  ;;  %12133 = vst [vmem:[#allocation113_spill] sm:$0xff] %v11023_v4  ;;  %p7832_p10 = scmp.ne.s32.totalorder %s6478_s3, %s7831_s7  ;;  %p7836_p11 = scmp.lt.s32.totalorder %s6478_s3, %s6478_s3 }
 0x5ae   :  { %6465 = vperm.xlu0 %7015, %v133_v55   ;;  %p7837_p12 = scmp.lt.s32.totalorder %s7835_s8, %s7831_s7 }
 0x5af   :  { %v11004_v9 = vpop.f32.mrf.mxu0  ;;  %v5380_v43 = vpop.f32.mrf.mxu1 }
 0x5b0   :  { %12129 = vst [vmem:[#allocation157_spill] sm:$0xff] %v11004_v9  ;;  %v11010_v37 = vadd.f32 %v5380_v43, %v5092_v52  ;;  %v11037_v20 = vpop.permute.xlu1 %4143  ;;  %v12177_v9 = vld [vmem:[#allocation120_spill] sm:$0xff]  ;;  %p7838_p13 = por %p7837_p12, %p7836_p11 }
 0x5b1   :  { %v5221_v17 = vpop.f32.mrf.mxu0  ;;  %v5382_v32 = vpop.f32.mrf.mxu1  ;;  %12137 = vst [vmem:[#allocation109_spill] sm:$0xff] %v11037_v20  ;;  %v12159_v20 = vld [vmem:[#allocation122_spill] sm:$0xff] }
 0x5b2   :  { %v11025_v17 = vpop.permute.xlu0 %4123  ;;  %p7839_p0 = pnand %p7838_p13, %p7832_p10 }
 0x5b3   :  { %v11017_v24 = vpop.f32.mrf.mxu0  ;;  %v5385_v59 = vpop.f32.mrf.mxu1  ;;  %5576 = vmatmul.mubr.bf16.gmra.mxu1 %v7470_v45  ;;  %6923 = vmatmul.mubr.bf16.gmra.mxu0 %v7474_v47  ;;  %12134 = vst [vmem:[#allocation52_spill] sm:$0xff] %v11025_v17  ;;  %v7479_v45 = vld [vmem:[#allocation5 + $0x4e8] ss:$20 sps:$4 sm:$0xff]  }
 0x5b4   :  { %12132 = vst [vmem:[#allocation112_spill] sm:$0xff] %v11017_v24  ;;  %v11019_v0 = vadd.f32 %v5385_v59, %v5097_v5  ;;  %5583 = vmatprep.mubr.bf16.mxu1 %v7477_v33  ;;  %6926 = vmatprep.mubr.bf16.mxu0 %v7478_v1  ;;  %v5105_v1 = vadd.f32 %v10864_v6, %v10778_v63 }
 0x5b5   :  { %v5226_v52 = vpop.f32.mrf.mxu0  ;;  %v5387_v43 = vpop.f32.mrf.mxu1 }
 0x5b6   :  { %v11039_v52 = vpop.permute.xlu0 %4131 }
 0x5b7   :  { %v11027_v32 = vpop.f32.mrf.mxu0  ;;  %v5388_v31 = vpop.f32.mrf.mxu1  ;;  %12138 = vst [vmem:[#allocation110_spill] sm:$0xff] %v11039_v52  ;;  %v12165_v52 = vld [vmem:[#allocation62_spill] sm:$0xff] }
 0x5b8   :  { %12135 = vst [vmem:[#allocation149_spill] sm:$0xff] %v11027_v32  ;;  %v11029_v47 = vadd.f32 %v5388_v31, %v5100_v11  ;;  %v5108_v11 = vadd.f32 %v10866_v60, %v10787_v30 }
 0x5b9   :  { %v5229_v5 = vpop.f32.mrf.mxu0  ;;  %v5390_v33 = vpop.f32.mrf.mxu1 }
 0x5bb   :  { %v11033_v55 = vpop.f32.mrf.mxu0  ;;  %v5393_v59 = vpop.f32.mrf.mxu1  ;;  %5584 = vmatmul.mubr.bf16.gmra.mxu1 %v7475_v14  ;;  %6927 = vmatmul.mubr.bf16.gmra.mxu0 %v7479_v45  ;;  %v5113_v14 = vadd.f32 %v10868_v39, %v10785_v41 }
 0x5bc   :  { %12136 = vst [vmem:[#allocation154_spill] sm:$0xff] %v11033_v55  ;;  %v11035_v15 = vadd.f32 %v5393_v59, %v5105_v1  ;;  %v11049_v45 = vpop.permute.xlu1 %4151  ;;  %v11051_v1 = vpop.permute.xlu0 %4139 }
 0x5bd   :  { %v5234_v43 = vpop.f32.mrf.mxu0  ;;  %v5395_v4 = vpop.f32.mrf.mxu1  ;;  %12140 = vst [vmem:[#allocation50_spill] sm:$0xff] %v11049_v45  ;;  %12141 = vst [vmem:[#allocation146_spill] sm:$0xff] %v11051_v1 }
 0x5bf   :  { %v11043_v31 = vpop.f32.mrf.mxu0  ;;  %v5396_v5 = vpop.f32.mrf.mxu1 }
 0x5c0   :  { %12139 = vst [vmem:[#allocation49_spill] sm:$0xff] %v11043_v31  ;;  %v11045_v63 = vadd.f32 %v5396_v5, %v5108_v11  ;;  %v5116_v11 = vadd.f32 %v10870_v28, %v10795_v49  ;;  %v11063_v41 = vpop.permute.xlu1 %4159  ;;  %v11065_v39 = vpop.permute.xlu0 %4147 }
 0x5c1   :  { %v5237_v6 = vpop.f32.mrf.mxu0  ;;  %v5398_v33 = vpop.f32.mrf.mxu1  ;;  %12144 = vst [vmem:[#allocation108_spill] sm:$0xff] %v11063_v41  ;;  %12145 = vst [vmem:[#allocation47_spill] sm:$0xff] %v11065_v39 }
 0x5c3   :  { %v11053_v59 = vpop.f32.mrf.mxu0  ;;  %v5401_v4 = vpop.f32.mrf.mxu1 }
 0x5c4   :  { %12142 = vst [vmem:[#allocation151_spill] sm:$0xff] %v11053_v59  ;;  %v11055_v43 = vadd.f32 %v5401_v4, %v5113_v14  ;;  %v5121_v14 = vadd.f32 %v10872_v54, %v10792_v25  ;;  %v11077_v41 = vpop.permute.xlu0 %4155  ;;  %v12173_v59 = vld [vmem:[#allocation61_spill] sm:$0xff] }
 0x5c5   :  { %v5242_v30 = vpop.f32.mrf.mxu0  ;;  %v5403_v60 = vpop.f32.mrf.mxu1  ;;  %12148 = vst [vmem:[#allocation148_spill] sm:$0xff] %v11077_v41 }
 0x5c7   :  { %v11059_v5 = vpop.f32.mrf.mxu0  ;;  %v5404_v6 = vpop.f32.mrf.mxu1 }
 0x5c8   :  { %12143 = vst [vmem:[#allocation107_spill] sm:$0xff] %v11059_v5  ;;  %v11061_v33 = vadd.f32 %v5404_v6, %v5116_v11  ;;  %v5124_v11 = vadd.f32 %v10874_v22, %v10803_v38  ;;  %v11075_v6 = vpop.permute.xlu1 %4167  ;;  %v11091_v22 = vpop.permute.xlu0 %4163 }
 0x5c9   :  { %v5245_v45 = vpop.f32.mrf.mxu0  ;;  %v5406_v1 = vpop.f32.mrf.mxu1  ;;  %12147 = vst [vmem:[#allocation145_spill] sm:$0xff] %v11075_v6  ;;  %12152 = vst [vmem:[#allocation15_spill] sm:$0xff] %v11091_v22 }
 0x5cb   :  { %v11069_v4 = vpop.f32.mrf.mxu0  ;;  %v5409_v30 = vpop.f32.mrf.mxu1 }
 0x5cc   :  { %12146 = vst [vmem:[#allocation48_spill] sm:$0xff] %v11069_v4  ;;  %v11071_v60 = vadd.f32 %v5409_v30, %v5121_v14  ;;  %v5129_v14 = vadd.f32 %v10876_v61, %v10801_v12  ;;  %v11089_v38 = vpop.permute.xlu1 %4175  ;;  %v12168_v4 = vld [vmem:[#allocation123_spill] sm:$0xff] }
 0x5cd   :  { %v5250_v49 = vpop.f32.mrf.mxu0  ;;  %v5411_v28 = vpop.f32.mrf.mxu1  ;;  %12151 = vst [vmem:[#allocation139_spill] sm:$0xff] %v11089_v38 }
 0x5ce   :  { %v11103_v38 = vpop.permute.xlu0 %4171 }
 0x5cf   :  { %v11079_v39 = vpop.f32.mrf.mxu0  ;;  %v5412_v45 = vpop.f32.mrf.mxu1  ;;  %12154 = vst [vmem:[#allocation137_spill] sm:$0xff] %v11103_v38 }
 0x5d0   :  { %12149 = vst [vmem:[#allocation138_spill] sm:$0xff] %v11079_v39  ;;  %v11081_v1 = vadd.f32 %v5412_v45, %v5124_v11  ;;  %v5132_v11 = vadd.f32 %v10878_v62, %v10815_v10 }
 0x5d1   :  { %v5253_v25 = vpop.f32.mrf.mxu0  ;;  %v5414_v54 = vpop.f32.mrf.mxu1 }
 0x5d3   :  { %v11085_v30 = vpop.f32.mrf.mxu0  ;;  %v5417_v49 = vpop.f32.mrf.mxu1 }
 0x5d4   :  { %12150 = vst [vmem:[#allocation14_spill] sm:$0xff] %v11085_v30  ;;  %v11087_v28 = vadd.f32 %v5417_v49, %v5129_v14  ;;  %v5137_v14 = vadd.f32 %v10880_v36, %v10810_v23  ;;  %v11101_v49 = vpop.permute.xlu1 %6010  ;;  %v11117_v36 = vpop.permute.xlu0 %4179 }
 0x5d5   :  { %v5258_v6 = vpop.f32.mrf.mxu0  ;;  %v5419_v41 = vpop.f32.mrf.mxu1  ;;  %12157 = vst [vmem:[#allocation134_spill] sm:$0xff] %v11117_v36 }
 0x5d7   :  { %v11095_v45 = vpop.f32.mrf.mxu0  ;;  %v5420_v25 = vpop.f32.mrf.mxu1 }
 0x5d8   :  { %12153 = vst [vmem:[#allocation136_spill] sm:$0xff] %v11095_v45  ;;  %v11097_v54 = vadd.f32 %v5420_v25, %v5132_v11  ;;  %v5140_v11 = vadd.f32 %v10882_v42, %v10823_v19  ;;  %v11115_v23 = vpop.permute.xlu1 %6018  ;;  %v11125_v19 = vpop.permute.xlu0 %6014 }
 0x5d9   :  { %v5261_v12 = vpop.f32.mrf.mxu0  ;;  %v5422_v61 = vpop.f32.mrf.mxu1 }
 0x5db   :  { %v11105_v22 = vpop.f32.mrf.mxu0  ;;  %v5425_v41 = vpop.f32.mrf.mxu1 }
 0x5dc   :  { %12155 = vst [vmem:[#allocation13_spill] sm:$0xff] %v11105_v22  ;;  %v11107_v6 = vadd.f32 %v5425_v41, %v5137_v14  ;;  %v12158_v22 = vld [vmem:[#allocation88_spill] sm:$0xff]  ;;  %v11129_v39 = vpop.permute.xlu1 %6022 }
 0x5dd   :  { %v5266_v10 = vpop.f32.mrf.mxu0  ;;  %v5427_v62 = vpop.f32.mrf.mxu1  ;;  %v5145_v14 = vadd.f32 %v12159_v20, %v12158_v22 }
 0x5df   :  { %v11111_v25 = vpop.f32.mrf.mxu0  ;;  %v5428_v12 = vpop.f32.mrf.mxu1 }
 0x5e0   :  { %12156 = vst [vmem:[#allocation12_spill] sm:$0xff] %v11111_v25  ;;  %v11113_v61 = vadd.f32 %v5428_v12, %v5140_v11  ;;  %v12161_v11 = vld [vmem:[#allocation31_spill] sm:$0xff] }
 0x5e1   :  { %v5269_v38 = vpop.f32.mrf.mxu0  ;;  %v5430_v45 = vpop.f32.mrf.mxu1  ;;  %v12162_v12 = vld [vmem:[#allocation111_spill] sm:$0xff] }
 0x5e2   :  { %v5148_v30 = vadd.f32 %v12162_v12, %v12161_v11  ;;  %v11143_v11 = vpop.permute.xlu1 %6030 }
 0x5e3   :  { %v11121_v41 = vpop.f32.mrf.mxu0  ;;  %v5433_v10 = vpop.f32.mrf.mxu1 }
 0x5e4   :  { %12160 = vst [vmem:[#allocation73_spill] sm:$0xff] %v11121_v41  ;;  %v11123_v62 = vadd.f32 %v5433_v10, %v5145_v14  ;;  %v12164_v41 = vld [vmem:[#allocation89_spill] sm:$0xff]  ;;  %v11137_v10 = vpop.permute.xlu0 %6026 }
 0x5e5   :  { %v5274_v42 = vpop.f32.mrf.mxu0  ;;  %v5435_v25 = vpop.f32.mrf.mxu1  ;;  %v5153_v14 = vadd.f32 %v12165_v52, %v12164_v41 }
 0x5e7   :  { %v11131_v36 = vpop.f32.mrf.mxu0  ;;  %v5436_v38 = vpop.f32.mrf.mxu1 }
 0x5e8   :  { %12163 = vst [vmem:[#allocation135_spill] sm:$0xff] %v11131_v36  ;;  %v11133_v45 = vadd.f32 %v5436_v38, %v5148_v30  ;;  %v12167_v36 = vld [vmem:[#allocation140_spill] sm:$0xff]  ;;  %v11151_v52 = vpop.permute.xlu0 %6034 }
 0x5e9   :  { %v5277_v20 = vpop.f32.mrf.mxu0  ;;  %v5438_v22 = vpop.f32.mrf.mxu1  ;;  %v5156_v30 = vadd.f32 %v12168_v4, %v12167_v36 }
 0x5eb   :  { %v11139_v5 = vpop.f32.mrf.mxu0  ;;  %v5441_v25 = vpop.f32.mrf.mxu1 }
 0x5ec   :  { %12166 = vst [vmem:[#allocation11_spill] sm:$0xff] %v11139_v5  ;;  %v11141_v42 = vadd.f32 %v5441_v25, %v5153_v14  ;;  %v12170_v5 = vld [vmem:[#allocation32_spill] sm:$0xff]  ;;  %v11155_v25 = vpop.permute.xlu1 %6038 }
 0x5ed   :  { %v5282_v12 = vpop.f32.mrf.mxu0  ;;  %v5443_v17 = vpop.f32.mrf.mxu1  ;;  %v5161_v14 = vadd.f32 %v10892_v3, %v12170_v5 }
 0x5ef   :  { %v11147_v38 = vpop.f32.mrf.mxu0  ;;  %v5444_v20 = vpop.f32.mrf.mxu1 }
 0x5f0   :  { %12169 = vst [vmem:[#allocation132_spill] sm:$0xff] %v11147_v38  ;;  %v11149_v22 = vadd.f32 %v5444_v20, %v5156_v30  ;;  %v12172_v38 = vld [vmem:[#allocation86_spill] sm:$0xff]  ;;  %v11163_v20 = vpop.permute.xlu0 %6042  ;;  %v11169_v3 = vpop.permute.xlu1 %6046 }
 0x5f1   :  { %v5285_v41 = vpop.f32.mrf.mxu0  ;;  %v5446_v31 = vpop.f32.mrf.mxu1  ;;  %v5164_v30 = vadd.f32 %v12173_v59, %v12172_v38 }
 0x5f3   :  { %v11157_v56 = vpop.f32.mrf.mxu0  ;;  %v5449_v17 = vpop.f32.mrf.mxu1 }
 0x5f4   :  { %12171 = vst [vmem:[#allocation133_spill] sm:$0xff] %v11157_v56  ;;  %v11159_v12 = vadd.f32 %v5449_v17, %v5161_v14  ;;  %v12176_v56 = vld [vmem:[#allocation142_spill] sm:$0xff]  ;;  %v11177_v59 = vpop.permute.xlu0 %6050 }
 0x5f5   :  { %v5290_v4 = vpop.f32.mrf.mxu0  ;;  %v5451_v36 = vpop.f32.mrf.mxu1  ;;  %v5169_v14 = vadd.f32 %v12177_v9, %v12176_v56 }
 0x5f7   :  { %v11165_v32 = vpop.f32.mrf.mxu0  ;;  %v5452_v31 = vpop.f32.mrf.mxu1 }
 0x5f8   :  { %12174 = vst [vmem:[#allocation71_spill] sm:$0xff] %v11165_v32  ;;  %v11167_v41 = vadd.f32 %v5452_v31, %v5164_v30  ;;  %v12179_v32 = vld [vmem:[#allocation121_spill] sm:$0xff]  ;;  %v11181_v31 = vpop.permute.xlu1 %6054 }
 0x5f9   :  { %v5293_v5 = vpop.f32.mrf.mxu0  ;;  %v5454_v55 = vpop.f32.mrf.mxu1  ;;  %v5172_v30 = vadd.f32 %v12179_v32, %v10906_v44 }
 0x5fa   :  { %12175 = vst [vmem:[#allocation72_spill] sm:$0xff] %v11167_v41 }
 0x5fb   :  { %v11173_v17 = vpop.f32.mrf.mxu0  ;;  %v5457_v4 = vpop.f32.mrf.mxu1 }
 0x5fc   :  { %12178 = vst [vmem:[#allocation130_spill] sm:$0xff] %v11173_v17  ;;  %v11175_v36 = vadd.f32 %v5457_v4, %v5169_v14  ;;  %v12181_v17 = vld [vmem:[#allocation158_spill] sm:$0xff]  ;;  %v11189_v4 = vpop.permute.xlu0 %6058  ;;  %v11193_v50 = vpop.permute.xlu1 %6062 }
 0x5fd   :  { %v5298_v38 = vpop.f32.mrf.mxu0  ;;  %v5459_v24 = vpop.f32.mrf.mxu1  ;;  %v5177_v14 = vadd.f32 %v12182_v53, %v12181_v17 }
 0x5ff   :  { %v11183_v8 = vpop.f32.mrf.mxu0  ;;  %v5460_v55 = vpop.f32.mrf.mxu1 }
 0x600   :  { %12180 = vst [vmem:[#allocation70_spill] sm:$0xff] %v11183_v8  ;;  %v11185_v5 = vadd.f32 %v5460_v55, %v5172_v30  ;;  %v5180_v8 = vadd.f32 %v10920_v16, %v10918_v48  ;;  %v11201_v17 = vpop.permute.xlu0 %6066  ;;  %v11207_v48 = vpop.permute.xlu1 %6070 }
 0x601   :  { %v5301_v9 = vpop.f32.mrf.mxu0  ;;  %v5462_v56 = vpop.f32.mrf.mxu1 }
 0x603   :  { %v5465_v46 = vpop.f32.mrf.mxu1  ;;  %v6868_v38 = vpop.f32.mrf.mxu0 }
 0x604   :  { %v11191_v24 = vadd.f32 %v5465_v46, %v5177_v14  ;;  %v5635_v9 = vadd.f32 %v6868_v38, %v10932_v57  ;;  %v12184_v14 = vld [vmem:[#allocation87_spill] sm:$0xff] }
 0x605   :  { %v5467_v44 = vpop.f32.mrf.mxu1  ;;  %v5626_v32 = vpop.f32.mrf.mxu0 }
 0x606   :  { %12183 = vst [vmem:[#allocation131_spill] sm:$0xff] %v11191_v24  ;;  %v5185_v24 = vadd.f32 %v10926_v7, %v12184_v14  ;;  %v5627_v44 = vadd.f32 %v5626_v32, %v10912_v35  ;;  %v11217_v32 = vpop.permute.xlu1 %6078 }
 0x607   :  { %v5468_v30 = vpop.f32.mrf.mxu1  ;;  %v6869_v55 = vpop.f32.mrf.mxu0 }
 0x608   :  { %v11198_v56 = vadd.f32 %v5468_v30, %v5180_v8  ;;  %v5638_v53 = vadd.f32 %v6869_v55, %v10938_v34 }
 0x609   :  { %v5470_v2 = vpop.f32.mrf.mxu1  ;;  %v5629_v46 = vpop.f32.mrf.mxu0 }
 0x60a   :  { %v5882_v29 = vpack.c.bf16 %v5638_v53, %v5635_v9  ;;  %v5630_v16 = vadd.f32 %v5629_v46, %v12185_v26  ;;  %v11211_v2 = vpop.permute.xlu0 %6074 }
 0x60b   :  { %v5473_v41 = vpop.f32.mrf.mxu1  ;;  %v6872_v57 = vpop.f32.mrf.mxu0 }
 0x60c   :  { %7560 = vtanh.bf16 %v5882_v29  ;;  %v5881_v8 = vpack.c.bf16 %v5630_v16, %v5627_v44  ;;  %v11209_v38 = vadd.f32 %v5473_v41, %v5185_v24  ;;  %v5651_v35 = vadd.f32 %v6872_v57, %v10964_v51 }
 0x60d   :  { %v5475_v34 = vpop.f32.mrf.mxu1  ;;  %v5642_v30 = vpop.f32.mrf.mxu0 }
 0x60e   :  { %7562 = vtanh.bf16 %v5881_v8  ;;  %v5643_v29 = vadd.f32 %v5642_v30, %v10948_v27  ;;  %v11223_v16 = vpop.permute.xlu0 %6082 }
 0x60f   :  { %v11213_v55 = vpop.f32.mrf.mxu1  ;;  %v6873_v7 = vpop.f32.mrf.mxu0 }
 0x610   :  { %v5654_v26 = vadd.f32 %v6873_v7, %v10974_v58  ;;  %v11225_v58 = vpop.permute.xlu1 %6086 }
 0x611   :  { %v5478_v9 = vpop.f32.mrf.mxu1  ;;  %v5645_v53 = vpop.f32.mrf.mxu0 }
 0x612   :  { %v5884_v41 = vpack.c.bf16 %v5654_v26, %v5651_v35  ;;  %v5646_v24 = vadd.f32 %v5645_v53, %v10958_v18 }
 0x613   :  { %v11221_v46 = vpop.f32.mrf.mxu1  ;;  %v6876_v14 = vpop.f32.mrf.mxu0 }
 0x614   :  { %12186 = vst [vmem:[#allocation69_spill] sm:$0xff] %v11221_v46  ;;  %7564 = vtanh.bf16 %v5884_v41  ;;  %v5883_v44 = vpack.c.bf16 %v5646_v24, %v5643_v29  ;;  %v5667_v27 = vadd.f32 %v6876_v14, %v11000_v21  ;;  %v11233_v29 = vpop.permute.xlu0 %6090  ;;  %v11237_v21 = vpop.permute.xlu1 %6094 }
 0x615   :  { %v5483_v8 = vpop.f32.mrf.mxu1  ;;  %v5658_v51 = vpop.f32.mrf.mxu0 }
 0x616   :  { %7566 = vtanh.bf16 %v5883_v44  ;;  %v5659_v26 = vadd.f32 %v5658_v51, %v10984_v40 }
 0x617   :  { %v11227_v57 = vpop.f32.mrf.mxu1  ;;  %v6877_v34 = vpop.f32.mrf.mxu0 }
 0x618   :  { %12187 = vst [vmem:[#allocation128_spill] sm:$0xff] %v11227_v57  ;;  %v5670_v30 = vadd.f32 %v6877_v34, %v11010_v37 }
 0x619   :  { %v5486_v18 = vpop.f32.mrf.mxu1  ;;  %v5661_v7 = vpop.f32.mrf.mxu0 }
 0x61a   :  { %v7561_v35 = vpop.eup %7560  ;;  %v5886_v9 = vpack.c.bf16 %v5670_v30, %v5667_v27  ;;  %v5662_v53 = vadd.f32 %v5661_v7, %v10990_v13 }
 0x61b   :  { %v5947_v41 = vunpack.c.l.bf16 %v7561_v35  ;;  %v11235_v24 = vpop.f32.mrf.mxu1  ;;  %v6880_v44 = vpop.f32.mrf.mxu0  ;;  %v5948_v14 = vunpack.c.h.bf16 %v7561_v35 }
 0x61c   :  { %v7563_v8 = vpop.eup %7562  ;;  %7568 = vtanh.bf16 %v5886_v9  ;;  %v5885_v57 = vpack.c.bf16 %v5662_v53, %v5659_v26  ;;  %v5683_v7 = vadd.f32 %v6880_v44, %v11035_v15  ;;  %v11246_v9 = vpop.permute.xlu0 %6098 }
 0x61d   :  { %v5945_v37 = vunpack.c.l.bf16 %v7563_v8  ;;  %v5946_v34 = vunpack.c.h.bf16 %v7563_v8  ;;  %v5491_v18 = vpop.f32.mrf.mxu1  ;;  %v5674_v46 = vpop.f32.mrf.mxu0  ;;  %v6267_v13 = vmul.f32 %v11115_v23, %v5947_v41 }
 0x61e   :  { %7570 = vtanh.bf16 %v5885_v57  ;;  %v6268_v57 = vmul.f32 %v11129_v39, %v5948_v14  ;;  %v5675_v8 = vadd.f32 %v5674_v46, %v11019_v0  ;;  %v11253_v15 = vpop.permute.xlu1 %6102 }
 0x61f   :  { %v6265_v40 = vmul.f32 %v11101_v49, %v5945_v37  ;;  %v6266_v51 = vmul.f32 %v11125_v19, %v5946_v34  ;;  %v11242_v27 = vpop.f32.mrf.mxu1  ;;  %v6881_v30 = vpop.f32.mrf.mxu0 }
 0x620   :  { %v5686_v26 = vadd.f32 %v6881_v30, %v11045_v63  ;;  %v6333_v63 = vsel %vm6329_vm0, %v6267_v13, 0.0 }
 0x621   :  { %v6330_v35 = vsel %vm6329_vm0, %v6265_v40, 0.0  ;;  %v6331_v49 = vsel %vm6329_vm0, %v6266_v51, 0.0  ;;  %v5494_v53 = vpop.f32.mrf.mxu1  ;;  %v5677_v23 = vpop.f32.mrf.mxu0  ;;  %v6335_v51 = vsel %vm6329_vm0, %v6268_v57, 0.0 }
 0x622   :  { %v7565_v41 = vpop.eup %7564  ;;  %v6332_v19 = vadd.f32 %v6331_v49, %v6330_v35  ;;  %v5888_v37 = vpack.c.bf16 %v5686_v26, %v5683_v7  ;;  %v5678_v34 = vadd.f32 %v5677_v23, %v11029_v47  ;;  %v11259_v47 = vpop.permute.xlu0 %6106 }
 0x623   :  { %v11256_v44 = vpop.f32.mrf.mxu1  ;;  %v6884_v18 = vpop.f32.mrf.mxu0  ;;  %v5951_v49 = vunpack.c.l.bf16 %v7565_v41  ;;  %v5952_v53 = vunpack.c.h.bf16 %v7565_v41 }
 0x624   :  { %v7567_v40 = vpop.eup %7566  ;;  %v6334_v39 = vadd.f32 %v6333_v63, %v6332_v19  ;;  %7572 = vtanh.bf16 %v5888_v37  ;;  %v5887_v14 = vpack.c.bf16 %v5678_v34, %v5675_v8  ;;  %v5699_v8 = vadd.f32 %v6884_v18, %v11071_v60  ;;  %v11267_v37 = vpop.permute.xlu1 %6110 }
 0x625   :  { %v5950_v30 = vunpack.c.h.bf16 %v7567_v40  ;;  %v5949_v35 = vunpack.c.l.bf16 %v7567_v40  ;;  %v5499_v0 = vpop.f32.mrf.mxu1  ;;  %v5690_v46 = vpop.f32.mrf.mxu0  ;;  %v6271_v63 = vmul.f32 %v11151_v52, %v5951_v49  ;;  %v6272_v60 = vmul.f32 %v11155_v25, %v5952_v53 }
 0x626   :  { %v6336_v7 = vadd.f32 %v6335_v51, %v6334_v39  ;;  %7574 = vtanh.bf16 %v5887_v14  ;;  %v11277_v49 = vpop.permute.xlu0 %6114 }
 0x627   :  { %v6270_v13 = vmul.f32 %v11143_v11, %v5950_v30  ;;  %v6269_v26 = vmul.f32 %v11137_v10, %v5949_v35  ;;  %v11263_v23 = vpop.f32.mrf.mxu1  ;;  %v6885_v19 = vpop.f32.mrf.mxu0  ;;  %v5691_v10 = vadd.f32 %v5690_v46, %v11055_v43  ;;  %v6343_v25 = vsel %vm6329_vm0, %v6272_v60, 0.0 }
 0x628   :  { %v5702_v57 = vadd.f32 %v6885_v19, %v11081_v1 }
 0x629   :  { %v6337_v34 = vsel %vm6329_vm0, %v6269_v26, 0.0  ;;  %v5502_v40 = vpop.f32.mrf.mxu1  ;;  %v5693_v39 = vpop.f32.mrf.mxu0  ;;  %v6339_v30 = vsel %vm6329_vm0, %v6270_v13, 0.0 }
 0x62a   :  { %v7569_v14 = vpop.eup %7568  ;;  %v6338_v11 = vadd.f32 %v6337_v34, %v6336_v7  ;;  %v5890_v41 = vpack.c.bf16 %v5702_v57, %v5699_v8  ;;  %v5694_v51 = vadd.f32 %v5693_v39, %v11061_v33  ;;  %v6341_v7 = vsel %vm6329_vm0, %v6271_v63, 0.0  ;;  %v11280_v13 = vpop.permute.xlu1 %6118 }
 0x62b   :  { %v11275_v1 = vpop.f32.mrf.mxu1  ;;  %v6888_v18 = vpop.f32.mrf.mxu0  ;;  %v5955_v46 = vunpack.c.l.bf16 %v7569_v14  ;;  %v5956_v34 = vunpack.c.h.bf16 %v7569_v14 }
 0x62c   :  { %v7571_v35 = vpop.eup %7570  ;;  %v6340_v0 = vadd.f32 %v6339_v30, %v6338_v11  ;;  %7576 = vtanh.bf16 %v5890_v41  ;;  %v5889_v52 = vpack.c.bf16 %v5694_v51, %v5691_v10  ;;  %v5715_v11 = vadd.f32 %v6888_v18, %v11107_v6 }
 0x62d   :  { %v5954_v26 = vunpack.c.h.bf16 %v7571_v35  ;;  %v5953_v43 = vunpack.c.l.bf16 %v7571_v35  ;;  %v5507_v19 = vpop.f32.mrf.mxu1  ;;  %v5706_v33 = vpop.f32.mrf.mxu0  ;;  %v6275_v51 = vmul.f32 %v11177_v59, %v5955_v46  ;;  %v6276_v6 = vmul.f32 %v11181_v31, %v5956_v34 }
 0x62e   :  { %v6342_v8 = vadd.f32 %v6341_v7, %v6340_v0  ;;  %7578 = vtanh.bf16 %v5889_v52  ;;  %v11293_v52 = vpop.permute.xlu0 %6122  ;;  %v11299_v46 = vpop.permute.xlu1 %6126 }
 0x62f   :  { %v6274_v53 = vmul.f32 %v11169_v3, %v5954_v26  ;;  %v6273_v57 = vmul.f32 %v11163_v20, %v5953_v43  ;;  %v11285_v40 = vpop.f32.mrf.mxu1  ;;  %v6889_v39 = vpop.f32.mrf.mxu0  ;;  %v5707_v3 = vadd.f32 %v5706_v33, %v11087_v28  ;;  %v6349_v28 = vsel %vm6329_vm0, %v6275_v51, 0.0 }
 0x630   :  { %v6344_v63 = vadd.f32 %v6343_v25, %v6342_v8  ;;  %v5718_v10 = vadd.f32 %v6889_v39, %v11113_v61  ;;  %v6351_v31 = vsel %vm6329_vm0, %v6276_v6, 0.0 }
 0x631   :  { %v6345_v41 = vsel %vm6329_vm0, %v6273_v57, 0.0  ;;  %v5510_v30 = vpop.f32.mrf.mxu1  ;;  %v5709_v35 = vpop.f32.mrf.mxu0  ;;  %v6347_v7 = vsel %vm6329_vm0, %v6274_v53, 0.0 }
 0x632   :  { %v7573_v60 = vpop.eup %7572  ;;  %v6346_v0 = vadd.f32 %v6345_v41, %v6344_v63  ;;  %v5892_v20 = vpack.c.bf16 %v5718_v10, %v5715_v11  ;;  %v5710_v14 = vadd.f32 %v5709_v35, %v11097_v54  ;;  %v11309_v30 = vpop.permute.xlu0 %6130 }
 0x633   :  { %v11297_v61 = vpop.f32.mrf.mxu1  ;;  %v6892_v18 = vpop.f32.mrf.mxu0  ;;  %v5959_v54 = vunpack.c.l.bf16 %v7573_v60  ;;  %v5960_v39 = vunpack.c.h.bf16 %v7573_v60 }
 0x634   :  { %v7575_v26 = vpop.eup %7574  ;;  %v6348_v59 = vadd.f32 %v6347_v7, %v6346_v0  ;;  %7580 = vtanh.bf16 %v5892_v20  ;;  %v5891_v43 = vpack.c.bf16 %v5710_v14, %v5707_v3  ;;  %v5731_v41 = vadd.f32 %v6892_v18, %v11141_v42  ;;  %v11315_v6 = vpop.permute.xlu1 %6134 }
 0x635   :  { %v5958_v19 = vunpack.c.h.bf16 %v7575_v26  ;;  %v5957_v33 = vunpack.c.l.bf16 %v7575_v26  ;;  %v5515_v8 = vpop.f32.mrf.mxu1  ;;  %v5722_v25 = vpop.f32.mrf.mxu0  ;;  %v6279_v0 = vmul.f32 %v11201_v17, %v5959_v54 }
 0x636   :  { %v6350_v57 = vadd.f32 %v6349_v28, %v6348_v59  ;;  %7582 = vtanh.bf16 %v5891_v43 }
 0x637   :  { %v6278_v53 = vmul.f32 %v11193_v50, %v5958_v19  ;;  %v6277_v34 = vmul.f32 %v11189_v4, %v5957_v33  ;;  %v11305_v63 = vpop.f32.mrf.mxu1  ;;  %v6893_v11 = vpop.f32.mrf.mxu0  ;;  %v5723_v4 = vadd.f32 %v5722_v25, %v11123_v62  ;;  %v6357_v28 = vsel %vm6329_vm0, %v6279_v0, 0.0 }
 0x638   :  { %v6352_v10 = vadd.f32 %v6351_v31, %v6350_v57  ;;  %v5734_v51 = vadd.f32 %v6893_v11, %v11149_v22  ;;  %v6280_v22 = vmul.f32 %v11207_v48, %v5960_v39  ;;  %v11322_v25 = vpop.permute.xlu0 %6138 }
 0x639   :  { %v6353_v35 = vsel %vm6329_vm0, %v6277_v34, 0.0  ;;  %v5518_v3 = vpop.f32.mrf.mxu1  ;;  %v5725_v20 = vpop.f32.mrf.mxu0  ;;  %v6355_v42 = vsel %vm6329_vm0, %v6278_v53, 0.0 }
 0x63a   :  { %v7577_v50 = vpop.eup %7576  ;;  %v6354_v14 = vadd.f32 %v6353_v35, %v6352_v10  ;;  %v5894_v60 = vpack.c.bf16 %v5734_v51, %v5731_v41  ;;  %v5726_v7 = vadd.f32 %v5725_v20, %v11133_v45  ;;  %v6359_v48 = vsel %vm6329_vm0, %v6280_v22, 0.0  ;;  %v11331_v51 = vpop.permute.xlu1 %6142 }
 0x63b   :  { %v11319_v18 = vpop.f32.mrf.mxu1  ;;  %v6896_v26 = vpop.f32.mrf.mxu0  ;;  %v5963_v45 = vunpack.c.l.bf16 %v7577_v50  ;;  %v5964_v53 = vunpack.c.h.bf16 %v7577_v50 }
 0x63c   :  { %v7579_v59 = vpop.eup %7578  ;;  %v6356_v17 = vadd.f32 %v6355_v42, %v6354_v14  ;;  %7584 = vtanh.bf16 %v5894_v60  ;;  %v5893_v43 = vpack.c.bf16 %v5726_v7, %v5723_v4  ;;  %v5747_v10 = vadd.f32 %v6896_v26, %v11175_v36  ;;  %v12188_v4 = vld [vmem:[#allocation72_spill] sm:$0xff] }
 0x63d   :  { %v5962_v19 = vunpack.c.h.bf16 %v7579_v59  ;;  %v5961_v62 = vunpack.c.l.bf16 %v7579_v59  ;;  %v5523_v33 = vpop.f32.mrf.mxu1  ;;  %v5738_v54 = vpop.f32.mrf.mxu0  ;;  %v6283_v0 = vmul.f32 %v11223_v16, %v5963_v45  ;;  %v6284_v36 = vmul.f32 %v11225_v58, %v5964_v53  ;;  %v12189_v26 = vld [vmem:[#allocation156_spill] sm:$0xff]  ;;  %v12190_v59 = vld [vmem:[#allocation119_spill] sm:$0xff] }
 0x63e   :  { %v6358_v8 = vadd.f32 %v6357_v28, %v6356_v17  ;;  %7586 = vtanh.bf16 %v5893_v43  ;;  %v5188_v16 = vadd.f32 %v12190_v59, %v12189_v26  ;;  %v11343_v28 = vpop.permute.xlu0 %6146  ;;  %v12197_v59 = vld [vmem:[#allocation131_spill] sm:$0xff] }
 0x63f   :  { %v6282_v57 = vmul.f32 %v11217_v32, %v5962_v19  ;;  %v6281_v31 = vmul.f32 %v11211_v2, %v5961_v62  ;;  %v11327_v34 = vpop.f32.mrf.mxu1  ;;  %v6897_v39 = vpop.f32.mrf.mxu0  ;;  %v5739_v2 = vadd.f32 %v5738_v54, %v11159_v12  ;;  %v6365_v12 = vsel %vm6329_vm0, %v6283_v0, 0.0 }
 0x640   :  { %v6360_v11 = vadd.f32 %v6359_v48, %v6358_v8  ;;  %v5750_v41 = vadd.f32 %v6897_v39, %v11185_v5  ;;  %v5477_v58 = vadd.f32 %v11213_v55, %v5188_v16  ;;  %v11347_v48 = vpop.permute.xlu1 %6150 }
 0x641   :  { %v6361_v35 = vsel %vm6329_vm0, %v6281_v31, 0.0  ;;  %v5526_v3 = vpop.f32.mrf.mxu1  ;;  %v5741_v20 = vpop.f32.mrf.mxu0  ;;  %v6363_v7 = vsel %vm6329_vm0, %v6282_v57, 0.0  ;;  %v6367_v57 = vsel %vm6329_vm0, %v6284_v36, 0.0 }
 0x642   :  { %v7581_v32 = vpop.eup %7580  ;;  %v6362_v14 = vadd.f32 %v6361_v35, %v6360_v11  ;;  %v5896_v50 = vpack.c.bf16 %v5750_v41, %v5747_v10  ;;  %v5742_v60 = vadd.f32 %v5741_v20, %v12188_v4  ;;  %v12191_v41 = vld [vmem:[#allocation60_spill] sm:$0xff]  ;;  %v12192_v35 = vld [vmem:[#allocation57_spill] sm:$0xff] }
 0x643   :  { %v11339_v5 = vpop.f32.mrf.mxu1  ;;  %v6900_v42 = vpop.f32.mrf.mxu0  ;;  %v5967_v45 = vunpack.c.l.bf16 %v7581_v32  ;;  %v5968_v39 = vunpack.c.h.bf16 %v7581_v32  ;;  %v5193_v0 = vadd.f32 %v12192_v35, %v12191_v41  ;;  %v12195_v4 = vld [vmem:[#allocation29_spill] sm:$0xff] }
 0x644   :  { %v7583_v22 = vpop.eup %7582  ;;  %v6364_v17 = vadd.f32 %v6363_v7, %v6362_v14  ;;  %7588 = vtanh.bf16 %v5896_v50  ;;  %v5895_v43 = vpack.c.bf16 %v5742_v60, %v5739_v2  ;;  %v5763_v55 = vadd.f32 %v6900_v42, %v11209_v38  ;;  %v12193_v14 = vld [vmem:[#allocation160_spill] sm:$0xff]  ;;  %v12194_v2 = vld [vmem:[#allocation117_spill] sm:$0xff]  ;;  %v11365_v42 = vpop.permute.xlu0 %6154 }
 0x645   :  { %v5966_v19 = vunpack.c.h.bf16 %v7583_v22  ;;  %v5965_v62 = vunpack.c.l.bf16 %v7583_v22  ;;  %v5531_v33 = vpop.f32.mrf.mxu1  ;;  %v5754_v54 = vpop.f32.mrf.mxu0  ;;  %v5201_v50 = vadd.f32 %v12194_v2, %v12193_v14  ;;  %v12196_v60 = vld [vmem:[#allocation161_spill] sm:$0xff] }
 0x646   :  { %v6366_v8 = vadd.f32 %v6365_v12, %v6364_v17  ;;  %7590 = vtanh.bf16 %v5895_v43  ;;  %v5196_v7 = vadd.f32 %v12196_v60, %v12195_v4  ;;  %v5755_v16 = vadd.f32 %v5754_v54, %v12197_v59  ;;  %v12198_v43 = vld [vmem:[#allocation58_spill] sm:$0xff]  ;;  %v12199_v12 = vld [vmem:[#allocation159_spill] sm:$0xff]  ;;  %v12202_v54 = vld [vmem:[#allocation69_spill] sm:$0xff]  ;;  %v11376_v35 = vpop.permute.xlu1 %6158 }
 0x647   :  { %v6286_v31 = vmul.f32 %v11237_v21, %v5966_v19  ;;  %v6285_v53 = vmul.f32 %v11233_v29, %v5965_v62  ;;  %v11352_v11 = vpop.f32.mrf.mxu1  ;;  %v6901_v10 = vpop.f32.mrf.mxu0  ;;  %v6287_v29 = vmul.f32 %v11246_v9, %v5967_v45  ;;  %v5209_v19 = vadd.f32 %v12199_v12, %v12198_v43  ;;  %v12200_v62 = vld [vmem:[#allocation116_spill] sm:$0xff]  ;;  %v12201_v33 = vld [vmem:[#allocation155_spill] sm:$0xff] }
 0x648   :  { %v6368_v3 = vadd.f32 %v6367_v57, %v6366_v8  ;;  %v5766_v20 = vadd.f32 %v6901_v10, %v5477_v58  ;;  %v5204_v58 = vadd.f32 %v12201_v33, %v12200_v62  ;;  %v6288_v9 = vmul.f32 %v11253_v15, %v5968_v39  ;;  %v12206_v12 = vld [vmem:[#allocation56_spill] sm:$0xff]  ;;  %v12207_v62 = vld [vmem:[#allocation115_spill] sm:$0xff] }
 0x649   :  { %v6369_v21 = vsel %vm6329_vm0, %v6285_v53, 0.0  ;;  %v5534_v32 = vpop.f32.mrf.mxu1  ;;  %v5757_v36 = vpop.f32.mrf.mxu0  ;;  %v6371_v8 = vsel %vm6329_vm0, %v6286_v31, 0.0  ;;  %v5482_v10 = vadd.f32 %v12202_v54, %v5193_v0  ;;  %v5490_v15 = vadd.f32 %v11235_v24, %v5201_v50  ;;  %v12205_v50 = vld [vmem:[#allocation152_spill] sm:$0xff] }
 0x64a   :  { %v7585_v22 = vpop.eup %7584  ;;  %v6370_v26 = vadd.f32 %v6369_v21, %v6368_v3  ;;  %v5898_v17 = vpack.c.bf16 %v5766_v20, %v5763_v55  ;;  %v5758_v38 = vadd.f32 %v5757_v36, %v11198_v56  ;;  %v6373_v3 = vsel %vm6329_vm0, %v6287_v29, 0.0  ;;  %v11387_v24 = vpop.permute.xlu0 %6162 }
 0x64b   :  { %v11373_v45 = vpop.f32.mrf.mxu1  ;;  %v6904_v57 = vpop.f32.mrf.mxu0  ;;  %v5971_v31 = vunpack.c.l.bf16 %v7585_v22  ;;  %v5493_v39 = vadd.f32 %v11242_v27, %v5204_v58  ;;  %v6375_v0 = vsel %vm6329_vm0, %v6288_v9, 0.0  ;;  %v5972_v32 = vunpack.c.h.bf16 %v7585_v22  ;;  %v12204_v27 = vld [vmem:[#allocation153_spill] sm:$0xff] }
 0x64c   :  { %v7587_v53 = vpop.eup %7586  ;;  %v6372_v41 = vadd.f32 %v6371_v8, %v6370_v26  ;;  %7592 = vtanh.bf16 %v5898_v17  ;;  %v5897_v56 = vpack.c.bf16 %v5758_v38, %v5755_v16  ;;  %v12203_v26 = vld [vmem:[#allocation128_spill] sm:$0xff]  ;;  %v5779_v17 = vadd.f32 %v6904_v57, %v5490_v15  ;;  %v11395_v54 = vpop.permute.xlu1 %6166 }
 0x64d   :  { %v5970_v55 = vunpack.c.h.bf16 %v7587_v53  ;;  %v5969_v20 = vunpack.c.l.bf16 %v7587_v53  ;;  %v5539_v14 = vpop.f32.mrf.mxu1  ;;  %v5770_v2 = vpop.f32.mrf.mxu0  ;;  %v5485_v59 = vadd.f32 %v12203_v26, %v5196_v7  ;;  %v5217_v43 = vadd.f32 %v12205_v50, %v12204_v27 }
 0x64e   :  { %v6374_v4 = vadd.f32 %v6373_v3, %v6372_v41  ;;  %7594 = vtanh.bf16 %v5897_v56  ;;  %v5212_v33 = vadd.f32 %v12207_v62, %v12206_v12  ;;  %v5771_v7 = vadd.f32 %v5770_v2, %v5482_v10  ;;  %v12208_v41 = vld [vmem:[#allocation55_spill] sm:$0xff]  ;;  %v12209_v56 = vld [vmem:[#allocation112_spill] sm:$0xff] }
 0x64f   :  { %v6290_v60 = vmul.f32 %v11267_v37, %v5970_v55  ;;  %v6289_v21 = vmul.f32 %v11259_v47, %v5969_v20  ;;  %v11384_v36 = vpop.f32.mrf.mxu1  ;;  %v6905_v29 = vpop.f32.mrf.mxu0  ;;  %v6291_v47 = vmul.f32 %v11277_v49, %v5971_v31  ;;  %v5225_v3 = vadd.f32 %v12209_v56, %v12208_v41  ;;  %v12210_v55 = vld [vmem:[#allocation114_spill] sm:$0xff]  ;;  %v12211_v20 = vld [vmem:[#allocation157_spill] sm:$0xff] }
 0x650   :  { %v6376_v16 = vadd.f32 %v6375_v0, %v6374_v4  ;;  %v5782_v38 = vadd.f32 %v6905_v29, %v5493_v39  ;;  %v5220_v14 = vadd.f32 %v12211_v20, %v12210_v55  ;;  %v6292_v39 = vmul.f32 %v11280_v13, %v5972_v32 }
 0x651   :  { %v6377_v37 = vsel %vm6329_vm0, %v6289_v21, 0.0  ;;  %v5542_v22 = vpop.f32.mrf.mxu1  ;;  %v5773_v58 = vpop.f32.mrf.mxu0  ;;  %v6379_v15 = vsel %vm6329_vm0, %v6290_v60, 0.0  ;;  %v5498_v10 = vadd.f32 %v11256_v44, %v5209_v19  ;;  %v6381_v21 = vsel %vm6329_vm0, %v6291_v47, 0.0 }
 0x652   :  { %v7589_v8 = vpop.eup %7588  ;;  %v6378_v9 = vadd.f32 %v6377_v37, %v6376_v16  ;;  %v5900_v53 = vpack.c.bf16 %v5782_v38, %v5779_v17  ;;  %v5774_v57 = vadd.f32 %v5773_v58, %v5485_v59  ;;  %v5506_v60 = vadd.f32 %v11275_v1, %v5217_v43  ;;  %v11409_v38 = vpop.permute.xlu0 %6170  ;;  %v12212_v22 = vld [vmem:[#allocation150_spill] sm:$0xff] }
 0x653   :  { %v11403_v49 = vpop.f32.mrf.mxu1  ;;  %v6908_v31 = vpop.f32.mrf.mxu0  ;;  %v5975_v17 = vunpack.c.l.bf16 %v7589_v8  ;;  %v5509_v13 = vadd.f32 %v11285_v40, %v5220_v14  ;;  %v6383_v44 = vsel %vm6329_vm0, %v6292_v39, 0.0  ;;  %v5976_v50 = vunpack.c.h.bf16 %v7589_v8  ;;  %v12213_v58 = vld [vmem:[#allocation154_spill] sm:$0xff]  ;;  %v12216_v14 = vld [vmem:[#allocation53_spill] sm:$0xff] }
 0x654   :  { %v7591_v4 = vpop.eup %7590  ;;  %v6380_v2 = vadd.f32 %v6379_v15, %v6378_v9  ;;  %7596 = vtanh.bf16 %v5900_v53  ;;  %v5899_v0 = vpack.c.bf16 %v5774_v57, %v5771_v7  ;;  %v5501_v37 = vadd.f32 %v11263_v23, %v5212_v33  ;;  %v11417_v40 = vpop.permute.xlu1 %6174  ;;  %v12214_v7 = vld [vmem:[#allocation54_spill] sm:$0xff]  ;;  %v12215_v53 = vld [vmem:[#allocation149_spill] sm:$0xff]  ;;  %v12217_v15 = vld [vmem:[#allocation151_spill] sm:$0xff] }
 0x655   :  { %v5974_v29 = vunpack.c.h.bf16 %v7591_v4  ;;  %v5973_v26 = vunpack.c.l.bf16 %v7591_v4  ;;  %v5547_v59 = vpop.f32.mrf.mxu1  ;;  %v5786_v16 = vpop.f32.mrf.mxu0  ;;  %v5795_v1 = vadd.f32 %v6908_v31, %v5506_v60  ;;  %v5233_v9 = vadd.f32 %v12213_v58, %v12212_v22  ;;  %v12218_v31 = vld [vmem:[#allocation51_spill] sm:$0xff]  ;;  %v12219_v4 = vld [vmem:[#allocation49_spill] sm:$0xff] }
 0x656   :  { %v6382_v32 = vadd.f32 %v6381_v21, %v6380_v2  ;;  %7598 = vtanh.bf16 %v5899_v0  ;;  %v5228_v57 = vadd.f32 %v12215_v53, %v12214_v7  ;;  %v5787_v23 = vadd.f32 %v5786_v16, %v5498_v10  ;;  %v11434_v16 = vpop.permute.xlu0 %6178  ;;  %v12221_v53 = vld [vmem:[#allocation48_spill] sm:$0xff] }
 0x657   :  { %v6294_v19 = vmul.f32 %v11299_v46, %v5974_v29  ;;  %v6293_v27 = vmul.f32 %v11293_v52, %v5973_v26  ;;  %v11414_v12 = vpop.f32.mrf.mxu1  ;;  %v6909_v62 = vpop.f32.mrf.mxu0  ;;  %v6295_v52 = vmul.f32 %v11309_v30, %v5975_v17  ;;  %v5241_v39 = vadd.f32 %v12217_v15, %v12216_v14  ;;  %v12224_v15 = vld [vmem:[#allocation110_spill] sm:$0xff] }
 0x658   :  { %v6384_v47 = vadd.f32 %v6383_v44, %v6382_v32  ;;  %v5798_v43 = vadd.f32 %v6909_v62, %v5509_v13  ;;  %v5236_v2 = vadd.f32 %v12219_v4, %v12218_v31  ;;  %v6296_v21 = vmul.f32 %v11315_v6, %v5976_v50  ;;  %v12225_v31 = vld [vmem:[#allocation138_spill] sm:$0xff] }
 0x659   :  { %v6385_v46 = vsel %vm6329_vm0, %v6293_v27, 0.0  ;;  %v5550_v8 = vpop.f32.mrf.mxu1  ;;  %v5789_v41 = vpop.f32.mrf.mxu0  ;;  %v6387_v0 = vsel %vm6329_vm0, %v6294_v19, 0.0  ;;  %v5514_v59 = vadd.f32 %v11297_v61, %v5225_v3  ;;  %v6389_v60 = vsel %vm6329_vm0, %v6295_v52, 0.0  ;;  %v12222_v52 = vld [vmem:[#allocation52_spill] sm:$0xff] }
 0x65a   :  { %v7593_v56 = vpop.eup %7592  ;;  %v6386_v55 = vadd.f32 %v6385_v46, %v6384_v47  ;;  %v5902_v33 = vpack.c.bf16 %v5798_v43, %v5795_v1  ;;  %v5790_v20 = vadd.f32 %v5789_v41, %v5501_v37  ;;  %v5522_v6 = vadd.f32 %v11319_v18, %v5233_v9  ;;  %v11439_v37 = vpop.permute.xlu1 %6182  ;;  %v12223_v8 = vld [vmem:[#allocation107_spill] sm:$0xff] }
 0x65b   :  { %v11431_v29 = vpop.f32.mrf.mxu1  ;;  %v6912_v30 = vpop.f32.mrf.mxu0  ;;  %v5979_v19 = vunpack.c.l.bf16 %v7593_v56  ;;  %v5525_v50 = vadd.f32 %v11327_v34, %v5236_v2  ;;  %v6391_v61 = vsel %vm6329_vm0, %v6296_v21, 0.0  ;;  %v5980_v1 = vunpack.c.h.bf16 %v7593_v56  ;;  %v12220_v34 = vld [vmem:[#allocation147_spill] sm:$0xff] }
 0x65c   :  { %v7595_v26 = vpop.eup %7594  ;;  %v6388_v17 = vadd.f32 %v6387_v0, %v6386_v55  ;;  %7600 = vtanh.bf16 %v5902_v33  ;;  %v5901_v10 = vpack.c.bf16 %v5790_v20, %v5787_v23  ;;  %v5517_v58 = vadd.f32 %v11305_v63, %v5228_v57  ;;  %v11453_v57 = vpop.permute.xlu0 %6186 }
 0x65d   :  { %v5978_v13 = vunpack.c.h.bf16 %v7595_v26  ;;  %v5977_v32 = vunpack.c.l.bf16 %v7595_v26  ;;  %v5555_v44 = vpop.f32.mrf.mxu1  ;;  %v5802_v27 = vpop.f32.mrf.mxu0  ;;  %v5811_v18 = vadd.f32 %v6912_v30, %v5522_v6  ;;  %v5249_v46 = vadd.f32 %v12221_v53, %v12220_v34  ;;  %v12228_v34 = vld [vmem:[#allocation109_spill] sm:$0xff] }
 0x65e   :  { %v6390_v62 = vadd.f32 %v6389_v60, %v6388_v17  ;;  %7602 = vtanh.bf16 %v5901_v10  ;;  %v5244_v41 = vadd.f32 %v12223_v8, %v12222_v52  ;;  %v5803_v20 = vadd.f32 %v5802_v27, %v5514_v59  ;;  %v11462_v60 = vpop.permute.xlu1 %6190  ;;  %v12229_v53 = vld [vmem:[#allocation13_spill] sm:$0xff]  ;;  %v12231_v52 = vld [vmem:[#allocation136_spill] sm:$0xff] }
 0x65f   :  { %v6298_v3 = vmul.f32 %v11331_v51, %v5978_v13  ;;  %v6297_v47 = vmul.f32 %v11322_v25, %v5977_v32  ;;  %v11444_v43 = vpop.f32.mrf.mxu1  ;;  %v6913_v22 = vpop.f32.mrf.mxu0  ;;  %v6299_v51 = vmul.f32 %v11343_v28, %v5979_v19  ;;  %v5252_v4 = vadd.f32 %v12225_v31, %v12224_v15  ;;  %v12234_v15 = vld [vmem:[#allocation47_spill] sm:$0xff]  ;;  %v12235_v31 = vld [vmem:[#allocation12_spill] sm:$0xff] }
 0x660   :  { %v6392_v7 = vadd.f32 %v6391_v61, %v6390_v62  ;;  %v5814_v9 = vadd.f32 %v6913_v22, %v5525_v50  ;;  %v5530_v2 = vadd.f32 %v11339_v5, %v5241_v39  ;;  %v6300_v21 = vmul.f32 %v11347_v48, %v5980_v1 }
 0x661   :  { %v6393_v55 = vsel %vm6329_vm0, %v6297_v47, 0.0  ;;  %v5558_v25 = vpop.f32.mrf.mxu1  ;;  %v5805_v56 = vpop.f32.mrf.mxu0  ;;  %v6395_v0 = vsel %vm6329_vm0, %v6298_v3, 0.0  ;;  %v5533_v13 = vadd.f32 %v11352_v11, %v5244_v41  ;;  %v6397_v32 = vsel %vm6329_vm0, %v6299_v51, 0.0 }
 0x662   :  { %v7597_v23 = vpop.eup %7596  ;;  %v6394_v33 = vadd.f32 %v6393_v55, %v6392_v7  ;;  %v5904_v14 = vpack.c.bf16 %v5814_v9, %v5811_v18  ;;  %v5806_v63 = vadd.f32 %v5805_v56, %v5517_v58  ;;  %v5538_v48 = vadd.f32 %v11373_v45, %v5249_v46  ;;  %v11474_v45 = vpop.permute.xlu0 %6194  ;;  %v12227_v18 = vld [vmem:[#allocation14_spill] sm:$0xff] }
 0x663   :  { %v11460_v30 = vpop.f32.mrf.mxu1  ;;  %v6916_v28 = vpop.f32.mrf.mxu0  ;;  %v5983_v10 = vunpack.c.l.bf16 %v7597_v23  ;;  %v5541_v19 = vadd.f32 %v11384_v36, %v5252_v4  ;;  %v6399_v50 = vsel %vm6329_vm0, %v6300_v21, 0.0  ;;  %v5984_v3 = vunpack.c.h.bf16 %v7597_v23  ;;  %v12226_v36 = vld [vmem:[#allocation113_spill] sm:$0xff] }
 0x664   :  { %v7599_v26 = vpop.eup %7598  ;;  %v6396_v17 = vadd.f32 %v6395_v0, %v6394_v33  ;;  %7604 = vtanh.bf16 %v5904_v14  ;;  %v5903_v59 = vpack.c.bf16 %v5806_v63, %v5803_v20  ;;  %v5827_v22 = vadd.f32 %v6916_v28, %v5538_v48  ;;  %v11483_v33 = vpop.permute.xlu1 %6198  ;;  %v12232_v20 = vld [vmem:[#allocation50_spill] sm:$0xff]  ;;  %v12233_v14 = vld [vmem:[#allocation73_spill] sm:$0xff] }
 0x665   :  { %v5982_v44 = vunpack.c.h.bf16 %v7599_v26  ;;  %v5981_v5 = vunpack.c.l.bf16 %v7599_v26  ;;  %v5563_v39 = vpop.f32.mrf.mxu1  ;;  %v5818_v27 = vpop.f32.mrf.mxu0  ;;  %v6303_v58 = vmul.f32 %v11387_v24, %v5983_v10  ;;  %v5257_v9 = vadd.f32 %v12227_v18, %v12226_v36  ;;  %v12236_v36 = vld [vmem:[#allocation148_spill] sm:$0xff]  ;;  %v12237_v18 = vld [vmem:[#allocation135_spill] sm:$0xff] }
 0x666   :  { %v6398_v6 = vadd.f32 %v6397_v32, %v6396_v17  ;;  %7606 = vtanh.bf16 %v5903_v59  ;;  %v5265_v46 = vadd.f32 %v12229_v53, %v12228_v34  ;;  %v5819_v56 = vadd.f32 %v5818_v27, %v5530_v2 }
 0x667   :  { %v6302_v62 = vmul.f32 %v11376_v35, %v5982_v44  ;;  %v6301_v61 = vmul.f32 %v11365_v42, %v5981_v5  ;;  %v11471_v11 = vpop.f32.mrf.mxu1  ;;  %v6917_v47 = vpop.f32.mrf.mxu0  ;;  %v12230_v35 = vld [vmem:[#allocation146_spill] sm:$0xff]  ;;  %v5273_v63 = vadd.f32 %v12233_v14, %v12232_v20  ;;  %v5268_v4 = vadd.f32 %v12235_v31, %v12234_v15 }
 0x668   :  { %v6400_v1 = vadd.f32 %v6399_v50, %v6398_v6  ;;  %v5830_v7 = vadd.f32 %v6917_v47, %v5541_v19  ;;  %v5260_v42 = vadd.f32 %v12231_v52, %v12230_v35  ;;  %v6304_v21 = vmul.f32 %v11395_v54, %v5984_v3  ;;  %v11494_v54 = vpop.permute.xlu0 %6202 }
 0x669   :  { %v6401_v8 = vsel %vm6329_vm0, %v6301_v61, 0.0  ;;  %v5566_v41 = vpop.f32.mrf.mxu1  ;;  %v5821_v55 = vpop.f32.mrf.mxu0  ;;  %v6403_v0 = vsel %vm6329_vm0, %v6302_v62, 0.0  ;;  %v6405_v2 = vsel %vm6329_vm0, %v6303_v58, 0.0  ;;  %v5554_v48 = vadd.f32 %v11431_v29, %v5265_v46 }
 0x66a   :  { %v7601_v51 = vpop.eup %7600  ;;  %v6402_v25 = vadd.f32 %v6401_v8, %v6400_v1  ;;  %v5906_v24 = vpack.c.bf16 %v5830_v7, %v5827_v22  ;;  %v5822_v23 = vadd.f32 %v5821_v55, %v5533_v13  ;;  %v5557_v19 = vadd.f32 %v11444_v43, %v5268_v4  ;;  %v11501_v43 = vpop.permute.xlu1 %6206  ;;  %v12238_v8 = vld [vmem:[#allocation108_spill] sm:$0xff]  ;;  %v12239_v41 = vld [vmem:[#allocation11_spill] sm:$0xff] }
 0x66b   :  { %v5569_v28 = vpop.f32.mrf.mxu1  ;;  %v6920_v26 = vpop.f32.mrf.mxu0  ;;  %v5988_v39 = vunpack.c.h.bf16 %v7601_v51  ;;  %v5987_v27 = vunpack.c.l.bf16 %v7601_v51  ;;  %v5546_v50 = vadd.f32 %v11403_v49, %v5257_v9  ;;  %v6407_v62 = vsel %vm6329_vm0, %v6304_v21, 0.0  ;;  %v12240_v51 = vld [vmem:[#allocation15_spill] sm:$0xff] }
 0x66c   :  { %v7603_v17 = vpop.eup %7602  ;;  %v6404_v59 = vadd.f32 %v6403_v0, %v6402_v25  ;;  %7608 = vtanh.bf16 %v5906_v24  ;;  %v5905_v10 = vpack.c.bf16 %v5822_v23, %v5819_v56  ;;  %v5549_v22 = vadd.f32 %v11414_v12, %v5260_v42  ;;  %v12241_v25 = vld [vmem:[#allocation132_spill] sm:$0xff]  ;;  %v11516_v4 = vpop.permute.xlu0 %6210 }
 0x66d   :  { %v5986_v13 = vunpack.c.h.bf16 %v7603_v17  ;;  %v5985_v32 = vunpack.c.l.bf16 %v7603_v17  ;;  %v5571_v44 = vpop.f32.mrf.mxu1  ;;  %v5834_v5 = vpop.f32.mrf.mxu0  ;;  %v5843_v29 = vadd.f32 %v6920_v26, %v5554_v48  ;;  %v5276_v34 = vadd.f32 %v12237_v18, %v12236_v36  ;;  %v12244_v36 = vld [vmem:[#allocation139_spill] sm:$0xff]  ;;  %v12245_v18 = vld [vmem:[#allocation130_spill] sm:$0xff] }
 0x66e   :  { %v6406_v6 = vadd.f32 %v6405_v2, %v6404_v59  ;;  %7610 = vtanh.bf16 %v5905_v10  ;;  %v6308_v9 = vmul.f32 %v11439_v37, %v5988_v39  ;;  %v5835_v52 = vadd.f32 %v5834_v5, %v5546_v50  ;;  %v6215_v44 = vpop.permute.xlu1 %6214 }
 0x66f   :  { %v6306_v61 = vmul.f32 %v11417_v40, %v5986_v13  ;;  %v6305_v3 = vmul.f32 %v11409_v38, %v5985_v32  ;;  %v5572_v47 = vpop.f32.mrf.mxu1  ;;  %v6921_v1 = vpop.f32.mrf.mxu0  ;;  %v6307_v40 = vmul.f32 %v11434_v16, %v5987_v27  ;;  %v5281_v55 = vadd.f32 %v12239_v41, %v12238_v8 }
 0x670   :  { %v6408_v58 = vadd.f32 %v6407_v62, %v6406_v6  ;;  %v5846_v7 = vadd.f32 %v6921_v1, %v5557_v19  ;;  %v5284_v56 = vadd.f32 %v12241_v25, %v12240_v51  ;;  %v5562_v14 = vadd.f32 %v11460_v30, %v5273_v63  ;;  %v12242_v62 = vld [vmem:[#allocation145_spill] sm:$0xff] }
 0x671   :  { %v6409_v49 = vsel %vm6329_vm0, %v6305_v3, 0.0  ;;  %v5574_v53 = vpop.f32.mrf.mxu1  ;;  %v5837_v38 = vpop.f32.mrf.mxu0  ;;  %v6411_v24 = vsel %vm6329_vm0, %v6306_v61, 0.0  ;;  %v5570_v0 = vadd.f32 %v5569_v28, %v5281_v55  ;;  %v6413_v21 = vsel %vm6329_vm0, %v6307_v40, 0.0  ;;  %v12243_v61 = vld [vmem:[#allocation133_spill] sm:$0xff] }
 0x672   :  { %v7605_v46 = vpop.eup %7604  ;;  %v6410_v35 = vadd.f32 %v6409_v49, %v6408_v58  ;;  %v5908_v12 = vpack.c.bf16 %v5846_v7, %v5843_v29  ;;  %v5838_v42 = vadd.f32 %v5837_v38, %v5549_v22  ;;  %v6415_v10 = vsel %vm6329_vm0, %v6308_v9, 0.0 }
 0x673   :  { %v11513_v23 = vpop.f32.mrf.mxu1  ;;  %v6924_v37 = vpop.f32.mrf.mxu0  ;;  %v5991_v20 = vunpack.c.l.bf16 %v7605_v46  ;;  %v5573_v32 = vadd.f32 %v5572_v47, %v5284_v56  ;;  %v5992_v5 = vunpack.c.h.bf16 %v7605_v46  ;;  %v5565_v48 = vadd.f32 %v11471_v11, %v5276_v34  ;;  %v12246_v56 = vld [vmem:[#allocation137_spill] sm:$0xff] }
 0x674   :  { %v7607_v16 = vpop.eup %7606  ;;  %v6412_v15 = vadd.f32 %v6411_v24, %v6410_v35  ;;  %7612 = vtanh.bf16 %v5908_v12  ;;  %v5907_v31 = vpack.c.bf16 %v5838_v42, %v5835_v52  ;;  %v5859_v6 = vadd.f32 %v6924_v37, %v5570_v0  ;;  %v6223_v12 = vpop.permute.xlu1 %6222  ;;  %v12247_v24 = vld [vmem:[#allocation71_spill] sm:$0xff] }
 0x675   :  { %v5990_v26 = vunpack.c.h.bf16 %v7607_v16  ;;  %v5989_v17 = vunpack.c.l.bf16 %v7607_v16  ;;  %v5579_v59 = vpop.f32.mrf.mxu1  ;;  %v5850_v2 = vpop.f32.mrf.mxu0  ;;  %v6311_v39 = vmul.f32 %v11474_v45, %v5991_v20  ;;  %v5289_v3 = vadd.f32 %v12243_v61, %v12242_v62  ;;  %v12249_v20 = vld [vmem:[#allocation70_spill] sm:$0xff] }
 0x676   :  { %v6414_v13 = vadd.f32 %v6413_v21, %v6412_v15  ;;  %7614 = vtanh.bf16 %v5907_v31  ;;  %v6219_v45 = vpop.permute.xlu0 %6218  ;;  %v5297_v49 = vadd.f32 %v12245_v18, %v12244_v36  ;;  %v6312_v34 = vmul.f32 %v11483_v33, %v5992_v5  ;;  %v12248_v33 = vld [vmem:[#allocation134_spill] sm:$0xff] }
 0x677   :  { %v6310_v30 = vmul.f32 %v11462_v60, %v5990_v26  ;;  %v6309_v63 = vmul.f32 %v11453_v57, %v5989_v17  ;;  %v5580_v28 = vpop.f32.mrf.mxu1  ;;  %v6925_v27 = vpop.f32.mrf.mxu0  ;;  %v5851_v57 = vadd.f32 %v5850_v2, %v5562_v14  ;;  %v6421_v9 = vsel %vm6329_vm0, %v6311_v39, 0.0 }
 0x678   :  { %v6416_v19 = vadd.f32 %v6415_v10, %v6414_v13  ;;  %v5862_v50 = vadd.f32 %v6925_v27, %v5573_v32  ;;  %v5292_v37 = vadd.f32 %v12247_v24, %v12246_v56  ;;  %v5300_v16 = vadd.f32 %v12249_v20, %v12248_v33 }
 0x679   :  { %v6417_v47 = vsel %vm6329_vm0, %v6309_v63, 0.0  ;;  %v5582_v1 = vpop.f32.mrf.mxu1  ;;  %v5853_v22 = vpop.f32.mrf.mxu0  ;;  %v6419_v11 = vsel %vm6329_vm0, %v6310_v30, 0.0  ;;  %v6423_v15 = vsel %vm6329_vm0, %v6312_v34, 0.0  ;;  %v5578_v17 = vadd.f32 %v11513_v23, %v5289_v3 }
 0x67a   :  { %v7609_v60 = vpop.eup %7608  ;;  %v6418_v58 = vadd.f32 %v6417_v47, %v6416_v19  ;;  %v5910_v29 = vpack.c.bf16 %v5862_v50, %v5859_v6  ;;  %v5854_v7 = vadd.f32 %v5853_v22, %v5565_v48  ;;  %v5581_v59 = vadd.f32 %v5580_v28, %v5292_v37  ;;  %v6227_v13 = vpop.permute.xlu0 %6226 }
 0x67b   :  { %v5585_v40 = vpop.f32.mrf.mxu1  ;;  %v6928_v53 = vpop.f32.mrf.mxu0  ;;  %v5996_v52 = vunpack.c.h.bf16 %v7609_v60  ;;  %v5995_v25 = vunpack.c.l.bf16 %v7609_v60 }
 0x67c   :  { %v7611_v38 = vpop.eup %7610  ;;  %v6420_v46 = vadd.f32 %v6419_v11, %v6418_v58  ;;  %7616 = vtanh.bf16 %v5910_v29  ;;  %v5909_v35 = vpack.c.bf16 %v5854_v7, %v5851_v57  ;;  %v5586_v41 = vadd.f32 %v5585_v40, %v5297_v49  ;;  %v6231_v23 = vpop.permute.xlu1 %6230 }
 0x67d   :  { %v5994_v42 = vunpack.c.h.bf16 %v7611_v38  ;;  %v5993_v8 = vunpack.c.l.bf16 %v7611_v38  ;;  %v5587_v55 = vpop.f32.mrf.mxu1  ;;  %v5866_v51 = vpop.f32.mrf.mxu0  ;;  %v6316_v63 = vmul.f32 %v6215_v44, %v5996_v52  ;;  %v6315_v5 = vmul.f32 %v11516_v4, %v5995_v25 }
 0x67e   :  { %v6422_v14 = vadd.f32 %v6421_v9, %v6420_v46  ;;  %7618 = vtanh.bf16 %v5909_v35  ;;  %v5875_v30 = vadd.f32 %v6928_v53, %v5586_v41  ;;  %v5867_v19 = vadd.f32 %v5866_v51, %v5578_v17  ;;  %v6235_v7 = vpop.permute.xlu0 %6234 }
 0x67f   :  { %v6314_v31 = vmul.f32 %v11501_v43, %v5994_v42  ;;  %v6313_v0 = vmul.f32 %v11494_v54, %v5993_v8  ;;  %v5588_v21 = vpop.f32.mrf.mxu1  ;;  %v6929_v26 = vpop.f32.mrf.mxu0  ;;  %v6429_v47 = vsel %vm6329_vm0, %v6315_v5, 0.0  ;;  %v6431_v4 = vsel %vm6329_vm0, %v6316_v63, 0.0 }
 0x680   :  { %v6424_v2 = vadd.f32 %v6423_v15, %v6422_v14  ;;  %v5589_v10 = vadd.f32 %v5588_v21, %v5300_v16  ;;  %v6239_v11 = vpop.permute.xlu1 %6238 }
 0x681   :  { %v6425_v32 = vsel %vm6329_vm0, %v6313_v0, 0.0  ;;  %v5869_v39 = vpop.f32.mrf.mxu0  ;;  %v5590_v27 = vpop.f32.mrf.mxu1  ;;  %v6427_v50 = vsel %vm6329_vm0, %v6314_v31, 0.0 }
 0x682   :  { %v7613_v48 = vpop.eup %7612  ;;  %v6426_v43 = vadd.f32 %v6425_v32, %v6424_v2  ;;  %v5878_v54 = vadd.f32 %v6929_v26, %v5589_v10  ;;  %v5870_v6 = vadd.f32 %v5869_v39, %v5581_v59 }
 0x683   :  { %v5999_v22 = vunpack.c.l.bf16 %v7613_v48  ;;  %v6000_v29 = vunpack.c.h.bf16 %v7613_v48 }
 0x684   :  { %v7615_v28 = vpop.eup %7614  ;;  %v6428_v62 = vadd.f32 %v6427_v50, %v6426_v43  ;;  %v5912_v61 = vpack.c.bf16 %v5878_v54, %v5875_v30  ;;  %v5911_v3 = vpack.c.bf16 %v5870_v6, %v5867_v19  ;;  %v6247_v25 = vpop.permute.xlu1 %6246 }
 0x685   :  { %v5998_v1 = vunpack.c.h.bf16 %v7615_v28  ;;  %v5997_v44 = vunpack.c.l.bf16 %v7615_v28  ;;  %v6319_v49 = vmul.f32 %v6227_v13, %v5999_v22  ;;  %v6320_v53 = vmul.f32 %v6231_v23, %v6000_v29 }
 0x686   :  { %v6430_v60 = vadd.f32 %v6429_v47, %v6428_v62  ;;  %7620 = vtanh.bf16 %v5912_v61 }
 0x687   :  { %7622 = vtanh.bf16 %v5911_v3  ;;  %v6318_v58 = vmul.f32 %v6223_v12, %v5998_v1  ;;  %v6317_v57 = vmul.f32 %v6219_v45, %v5997_v44  ;;  %v6437_v35 = vsel %vm6329_vm0, %v6319_v49, 0.0  ;;  %v6243_v12 = vpop.permute.xlu0 %6242 }
 0x688   :  { %v6432_v36 = vadd.f32 %v6431_v4, %v6430_v60  ;;  %v6439_v41 = vsel %vm6329_vm0, %v6320_v53, 0.0  ;;  %v6255_v17 = vpop.permute.xlu1 %6254 }
 0x689   :  { %v6433_v18 = vsel %vm6329_vm0, %v6317_v57, 0.0  ;;  %v6435_v40 = vsel %vm6329_vm0, %v6318_v58, 0.0 }
 0x68a   :  { %v7617_v34 = vpop.eup %7616  ;;  %v6434_v9 = vadd.f32 %v6433_v18, %v6432_v36 }
 0x68b   :  { %v6003_v45 = vunpack.c.l.bf16 %v7617_v34  ;;  %v6004_v56 = vunpack.c.h.bf16 %v7617_v34  ;;  %v6251_v15 = vpop.permute.xlu0 %6250 }
 0x68c   :  { %v7619_v38 = vpop.eup %7618  ;;  %v6436_v46 = vadd.f32 %v6435_v40, %v6434_v9  ;;  %v6263_v54 = vpop.permute.xlu1 %6262 }
 0x68d   :  { %v6002_v52 = vunpack.c.h.bf16 %v7619_v38  ;;  %v6001_v42 = vunpack.c.l.bf16 %v7619_v38  ;;  %v6323_v33 = vmul.f32 %v6243_v12, %v6003_v45  ;;  %v6324_v14 = vmul.f32 %v6247_v25, %v6004_v56 }
 0x68e   :  { %v6438_v8 = vadd.f32 %v6437_v35, %v6436_v46 }
 0x68f   :  { %v6322_v55 = vmul.f32 %v6239_v11, %v6002_v52  ;;  %v6321_v51 = vmul.f32 %v6235_v7, %v6001_v42  ;;  %v6445_v26 = vsel %vm6329_vm0, %v6323_v33, 0.0  ;;  %v6447_v32 = vsel %vm6329_vm0, %v6324_v14, 0.0  ;;  %v6259_v27 = vpop.permute.xlu0 %6258 }
 0x690   :  { %v6440_v24 = vadd.f32 %v6439_v41, %v6438_v8 }
 0x691   :  { %v6441_v37 = vsel %vm6329_vm0, %v6321_v51, 0.0  ;;  %v6443_v16 = vsel %vm6329_vm0, %v6322_v55, 0.0 }
 0x692   :  { %v6442_v20 = vadd.f32 %v6441_v37, %v6440_v24 }
 0x693   :  { %v6466_v60 = vpop.permute.xlu0 %6465 }
 0x694   :  { %v7621_v31 = vpop.eup %7620  ;;  %v6444_v0 = vadd.f32 %v6443_v16, %v6442_v20 }
 0x695   :  { %v7623_v21 = vpop.eup %7622  ;;  %v6007_v13 = vunpack.c.l.bf16 %v7621_v31  ;;  %v6008_v39 = vunpack.c.h.bf16 %v7621_v31 }
 0x696   :  { %v6446_v59 = vadd.f32 %v6445_v26, %v6444_v0  ;;  %v6006_v2 = vunpack.c.h.bf16 %v7623_v21  ;;  %v6005_v10 = vunpack.c.l.bf16 %v7623_v21 }
 0x697   :  { %v6327_v43 = vmul.f32 %v6259_v27, %v6007_v13  ;;  %v6328_v50 = vmul.f32 %v6263_v54, %v6008_v39 }
 0x698   :  { %v6326_v30 = vmul.f32 %v6255_v17, %v6006_v2  ;;  %v6325_v63 = vmul.f32 %v6251_v15, %v6005_v10  ;;  %v6448_v5 = vadd.f32 %v6447_v32, %v6446_v59 }
 0x699   :  { %v6453_v28 = vsel %vm6329_vm0, %v6327_v43, 0.0  ;;  %v6455_v61 = vsel %vm6329_vm0, %v6328_v50, 0.0 }
 0x69a   :  { %v6449_v48 = vsel %vm6329_vm0, %v6325_v63, 0.0  ;;  %v6451_v6 = vsel %vm6329_vm0, %v6326_v30, 0.0 }
 0x69b   :  { %v6450_v19 = vadd.f32 %v6449_v48, %v6448_v5 }
 0x69d   :  { %v6452_v23 = vadd.f32 %v6451_v6, %v6450_v19 }
 0x69f   :  { %v6454_v62 = vadd.f32 %v6453_v28, %v6452_v23 }
 0x6a1   :  { %v6456_v3 = vadd.f32 %v6455_v61, %v6454_v62 }
 0x6a3   :  { %v6457_v47 = vrot.slane %v6456_v3, 4 }
 0x6a5   :  { %v6458_v1 = vadd.f32 %v6457_v47, %v6456_v3 }
 0x6a7   :  { %v6459_v44 = vrot.slane %v6458_v1, 2 }
 0x6a9   :  { %v6460_v22 = vadd.f32 %v6459_v44, %v6458_v1 }
 0x6ab   :  { %v6461_v4 = vrot.slane %v6460_v22, 1 }
 0x6ad   :  { %v6462_v58 = vadd.f32 %v6461_v4, %v6460_v22 }
 0x6af   :  { %v6468_v57 = vadd.f32 %v6466_v60, %v6462_v58 }
 0x6b1   :  { %6470 = vst.msk [vmem:[#allocation7] sm:$0x1] %vm6469_vm1, %v6468_v57 }
 0x6b2   :  { %7842 = shalt.err (!%p7839_p0)
}
 0x6b3   :  { %6480 = dma.vmem_to_hbm [thread:$0]  %s6478_s3, 16, %s11565_s5, [#allocation4]  }
 0x6b4   :  { %7855 = dma.done.wait [#allocation4], 16  }
 0x6b5   :  { %7856 = vsyncadd [#allocation4], 4294967280 }
 0x6b6   :  { %6484 = vsyncpa [#allocation3], 1 }
 0x6b7   :  { %6485 = vsyncpa [#allocation6], 1 }
 0x6b8   :  { %6486 = vsyncpa [#allocation4], 1 }

</bundles_post_ra>
